<compile_context>
chip_gen: v7x
topology: tpu7x:2x2x1
jax: 0.10.0
libtpu: 0.0.40
codegen_flags: <defaults>
</compile_context>

<pallas_src>
import functools

import jax
import jax.numpy as jnp
from jax import lax
from jax.experimental import pallas as pl
from jax.experimental.pallas import tpu as pltpu

_LANE = 128


def _round_up(v, m):
    return ((v + m - 1) // m) * m


def _choose_row_tile(H, W, target=8):
    """Largest divisor of H <= target with (TH*W) % 8 == 0 (else smallest
    valid divisor > target, else full H)."""
    best_le, best_gt = None, None
    for th in range(1, H + 1):
        if H % th or (th * W) % 8:
            continue
        if th <= target:
            best_le = th
        elif best_gt is None:
            best_gt = th
    if best_le is not None:
        return best_le
    if best_gt is not None:
        return best_gt
    return H


def _bottleneck_kernel(x_ref, xany_ref,
                       w1_ref, s1_ref, b1_ref,
                       w2_ref, s2_ref, b2_ref,
                       w3_ref, s3_ref, b3_ref,
                       out_ref,
                       pad_ref, col_ref, halo_ref, halo_sem,
                       *, H, W, TH, skip_scale):
    """One (image, row-tile) per grid step:
       conv1x1+bn+relu -> conv3x3 (3 accumulated K=3C dots)+bn+relu
       -> conv1x1+bn -> + skip_scale*identity -> relu."""
    n_idx = pl.program_id(0)
    t_idx = pl.program_id(1)
    n_tiles = pl.num_programs(1)

    Cinp = x_ref.shape[-1]
    Cp = w1_ref.shape[1]
    Coutp = w3_ref.shape[1]
    THW = TH * W

    # --- kick off the two halo-row DMAs early (clamped rows, masked later) --
    row0 = t_idx * TH
    r_top = jnp.maximum(row0 - 1, 0)
    r_bot = jnp.minimum(row0 + TH, H - 1)
    cp_top = pltpu.make_async_copy(
        xany_ref.at[n_idx, pl.ds(r_top * W, W), :], halo_ref.at[0], halo_sem.at[0])
    cp_bot = pltpu.make_async_copy(
        xany_ref.at[n_idx, pl.ds(r_bot * W, W), :], halo_ref.at[1], halo_sem.at[1])
    cp_top.start()
    cp_bot.start()

    # --- conv1 (1x1, bias=False) + bn1 (folded) + relu on the main rows -----
    xt = x_ref[...].reshape(THW, Cinp)                      # bf16
    h1 = jnp.dot(xt, w1_ref[...], preferred_element_type=jnp.float32)
    h1 = jnp.maximum(h1 * s1_ref[...] + b1_ref[...], 0.0)
    h1_bf = h1.astype(jnp.bfloat16)                         # cast exactly once

    # --- stage h1 into the zero-halo padded buffer (bf16) -------------------
    # Only cells the 3x3 windows read need valid zeros: col 0, col W+1,
    # row 0 and row TH+1 (alignment columns >= W+2 are never read).
    zcol = jnp.zeros((TH + 2, 1, Cp), pad_ref.dtype)
    pad_ref[:, 0:1, :] = zcol
    pad_ref[:, W + 1:W + 2, :] = zcol
    pad_ref[1:TH + 1, 1:W + 1, :] = h1_bf.reshape(TH, W, Cp)

    # --- halo rows: conv1 on the two neighbour rows (zero at image edges) ---
    cp_top.wait()
    cp_bot.wait()
    hh = jnp.dot(halo_ref[...].reshape(2 * W, Cinp), w1_ref[...],
                 preferred_element_type=jnp.float32)
    hh = jnp.maximum(hh * s1_ref[...] + b1_ref[...], 0.0).astype(jnp.bfloat16)
    hh = hh.reshape(2, W, Cp)
    top_keep = (t_idx > 0).astype(jnp.bfloat16)             # first tile -> zeros
    bot_keep = (t_idx < n_tiles - 1).astype(jnp.bfloat16)   # last tile  -> zeros
    pad_ref[0:1, 1:W + 1, :] = hh[0:1] * top_keep
    pad_ref[TH + 1:TH + 2, 1:W + 1, :] = hh[1:2] * bot_keep

    # --- conv2 (3x3, padding=1, stride=1): 3 accumulated dots of K = 3*Cp ---
    h2 = None
    for dy in range(3):
        for dx in range(3):
            patch = pad_ref[dy:dy + TH, dx:dx + W, :]        # (TH, W, Cp) bf16
            col_ref[:, dx * Cp:(dx + 1) * Cp] = patch.reshape(THW, Cp)
        part = jnp.dot(col_ref[...], w2_ref[dy * 3 * Cp:(dy + 1) * 3 * Cp, :],
                       preferred_element_type=jnp.float32)
        h2 = part if h2 is None else h2 + part
    h2 = jnp.maximum(h2 * s2_ref[...] + b2_ref[...], 0.0)

    # --- conv3 (1x1) + bn3 (folded) ------------------------------------------
    h3 = jnp.dot(h2.astype(jnp.bfloat16), w3_ref[...],
                 preferred_element_type=jnp.float32)
    h3 = h3 * s3_ref[...] + b3_ref[...]

    # --- residual add (identity skip, downsample=None) + relu ----------------
    if skip_scale == 1.0:
        res = xt                                  # bf16, promoted to f32 in the add
    else:
        res = xt.astype(jnp.float32) * skip_scale
    out = jnp.maximum(h3 + res, 0.0)
    out_ref[...] = out.astype(out_ref.dtype).reshape(1, THW, Coutp)


def pack_params(params, lane=_LANE):
    """One-time packing: pad channel dims to lane width (128) and cast the
    matmul weights to bf16.  Folded-BN scale/bias stay f32 (VPU epilogue)."""
    w1, w2, w3 = params["w1"], params["w2"], params["w3"]
    cin, c = w1.shape
    cout = w3.shape[1]
    cinp = _round_up(cin, lane)
    cp = _round_up(c, lane)
    coutp = _round_up(cout, lane)

    def pad2(a, r, k):
        return jnp.pad(a, ((0, r - a.shape[0]), (0, k - a.shape[1])))

    def padv(v, n):
        return jnp.pad(v, ((0, 0), (0, n - v.shape[1])))

    w2p = jnp.pad(w2, ((0, 0), (0, 0), (0, cp - c), (0, cp - c)))   # (3,3,Cp,Cp)
    packed = dict(
        w1=pad2(w1, cinp, cp).astype(jnp.bfloat16),                 # (Cinp, Cp)
        w2=w2p.reshape(9 * cp, cp).astype(jnp.bfloat16),            # (9*Cp, Cp)
        w3=pad2(w3, cp, coutp).astype(jnp.bfloat16),                # (Cp, Coutp)
        s1=padv(params["s1"], cp), b1=padv(params["b1"], cp),
        s2=padv(params["s2"], cp), b2=padv(params["b2"], cp),
        s3=padv(params["s3"], coutp), b3=padv(params["b3"], coutp),
    )
    meta = dict(cin=cin, c=c, cout=cout, cinp=cinp, cp=cp, coutp=coutp)
    return packed, meta


def _vmem_limit(TH, W, Wp, Cinp, Cp, Coutp):
    thw = TH * W
    est = (2 * thw * (Cinp + Coutp) * 2                    # double-buffered x/out (bf16)
           + (Cinp * Cp + 9 * Cp * Cp + Cp * Coutp) * 2    # resident bf16 weights
           + 6 * max(Cp, Coutp) * 4                        # folded-BN scale/bias
           + (TH + 2) * Wp * Cp * 2                        # padded h1 staging (bf16)
           + thw * 3 * Cp * 2                              # im2col chunk (bf16)
           + 2 * W * Cinp * 2                              # halo rows (bf16)
           + thw * (Cinp + 2 * Cp + 2 * Coutp) * 4)        # live f32 temps
    try:
        phys = getattr(pltpu.get_tpu_info(), "vmem_capacity_bytes", 64 * 2 ** 20)
    except Exception:
        phys = 64 * 2 ** 20
    cap = (int(phys) * 3) // 4    # leave Mosaic internal-scratch headroom (v7x!)
    return int(min(cap, max(32 * 2 ** 20, 2 * est)))


def bottleneck_forward(x_nhwc, packed, meta, skip_scale=1.0, row_tile=8):
    """NHWC in -> NHWC out (bf16).  Identity skip (downsample=None, stride=1)."""
    N, H, W, Cin = x_nhwc.shape
    assert Cin == meta["cin"] == meta["cout"], (
        "identity skip (downsample=None) requires in_channels == 4*out_channels")
    Cinp, Cp, Coutp = meta["cinp"], meta["cp"], meta["coutp"]

    x = x_nhwc.astype(jnp.bfloat16)
    if Cinp != Cin:   # lane-pad channels (no-op for real ResNet widths >= 128)
        x = jnp.pad(x, ((0, 0), (0, 0), (0, 0), (0, Cinp - Cin)))
    x_flat = x.reshape(N, H * W, Cinp)            # flattened, lane-dense I/O layout

    TH = _choose_row_tile(H, W, target=row_tile)
    n_tiles = H // TH
    THW = TH * W
    Wp = _round_up(W + 2, 8)                      # sublane-aligned staging width

    kernel = functools.partial(_bottleneck_kernel, H=H, W=W, TH=TH,
                               skip_scale=float(skip_scale))
    vmem_limit = _vmem_limit(TH, W, Wp, Cinp, Cp, Coutp)

    def build(single_buffer_weights):
        wmode = {}
        if single_buffer_weights:
            wmode = dict(pipeline_mode=pl.Buffered(1))   # constant index_map -> 1 buffer

        def wspec(shape):
            return pl.BlockSpec(shape, lambda n, t: (0, 0), **wmode)

        grid_spec = pltpu.PrefetchScalarGridSpec(
            num_scalar_prefetch=0,
            grid=(N, n_tiles),
            in_specs=[
                pl.BlockSpec((1, THW, Cinp), lambda n, t: (n, t, 0)),  # x row tile
                pl.BlockSpec(memory_space=pl.ANY),                     # x for halo DMA
                wspec((Cinp, Cp)), wspec((1, Cp)), wspec((1, Cp)),     # w1/s1/b1
                wspec((9 * Cp, Cp)), wspec((1, Cp)), wspec((1, Cp)),   # w2/s2/b2
                wspec((Cp, Coutp)), wspec((1, Coutp)), wspec((1, Coutp)),  # w3/s3/b3
            ],
            out_specs=pl.BlockSpec((1, THW, Coutp), lambda n, t: (n, t, 0)),
            scratch_shapes=[
                pltpu.VMEM((TH + 2, Wp, Cp), jnp.bfloat16),   # zero-halo padded h1
                pltpu.VMEM((THW, 3 * Cp), jnp.bfloat16),      # im2col chunk (K=3*Cp)
                pltpu.VMEM((2, W, Cinp), jnp.bfloat16),       # halo x rows
                pltpu.SemaphoreType.DMA((2,)),
            ],
        )
        return pl.pallas_call(
            kernel,
            out_shape=jax.ShapeDtypeStruct((N, H * W, Coutp), jnp.bfloat16),
            grid_spec=grid_spec,
            compiler_params=pltpu.CompilerParams(
                dimension_semantics=("parallel", "parallel"),
                vmem_limit_bytes=vmem_limit),
        )

    args = (x_flat, x_flat,
            packed["w1"], packed["s1"], packed["b1"],
            packed["w2"], packed["s2"], packed["b2"],
            packed["w3"], packed["s3"], packed["b3"])
    try:
        out = build(True)(*args)
    except Exception:
        # Fallback if this JAX build rejects pipeline_mode=pl.Buffered(1).
        out = build(False)(*args)

    out = out.reshape(N, H, W, Coutp)
    if Coutp != Cin:
        out = out[..., :Cin]
    return out


def init_params(key, in_channels, out_channels, eps=1e-5):
    """Deterministic synthetic parameters (shapes match nn.Module __init__)."""
    C = out_channels
    Cin = in_channels
    Cout = out_channels * 4   # Bottleneck.expansion = 4
    assert Cout == Cin, "downsample=None requires in_channels == out_channels*4"

    ks = jax.random.split(key, 9)
    w1_t = jax.random.normal(ks[0], (C, Cin, 1, 1), jnp.float32) * 0.1    # conv1
    w2_t = jax.random.normal(ks[1], (C, C, 3, 3), jnp.float32) * 0.1      # conv2
    w3_t = jax.random.normal(ks[2], (Cout, C, 1, 1), jnp.float32) * 0.1   # conv3

    def bn_fold(kg, kb, n):
        gamma = 1.0 + 0.1 * jax.random.normal(kg, (n,), jnp.float32)
        beta = 0.1 * jax.random.normal(kb, (n,), jnp.float32)
        running_mean = jnp.zeros((n,), jnp.float32)
        running_var = jnp.ones((n,), jnp.float32)
        scale = gamma / jnp.sqrt(running_var + eps)
        bias = beta - running_mean * scale
        return scale.reshape(1, n), bias.reshape(1, n)

    s1, b1 = bn_fold(ks[3], ks[4], C)
    s2, b2 = bn_fold(ks[5], ks[6], C)
    s3, b3 = bn_fold(ks[7], ks[8], Cout)

    return dict(
        w1=jnp.transpose(w1_t[:, :, 0, 0], (1, 0)),   # (Cin, C)
        w2=jnp.transpose(w2_t, (2, 3, 1, 0)),         # (3, 3, Cin=C, Cout=C) HWIO
        w3=jnp.transpose(w3_t[:, :, 0, 0], (1, 0)),   # (C, 4C)
        s1=s1, b1=b1, s2=s2, b2=b2, s3=s3, b3=b3,
    )


def ref_forward(x_nhwc, params, skip_scale=1.0):
    """Pure-JAX NHWC reference for correctness checking."""
    x = x_nhwc.astype(jnp.float32)
    h = jnp.einsum("nhwc,cd->nhwd", x, params["w1"])
    h = jnp.maximum(h * params["s1"][0] + params["b1"][0], 0.0)
    h = lax.conv_general_dilated(h, params["w2"], (1, 1), "SAME",
                                 dimension_numbers=("NHWC", "HWIO", "NHWC"))
    h = jnp.maximum(h * params["s2"][0] + params["b2"][0], 0.0)
    h = jnp.einsum("nhwc,cd->nhwd", h, params["w3"])
    h = h * params["s3"][0] + params["b3"][0]
    return jnp.maximum(h + skip_scale * x, 0.0)


if __name__ == "__main__":
    key = jax.random.PRNGKey(0)
    kx, kp = jax.random.split(key)

    # Small NHWC shapes consistent with Bottleneck(downsample=None):
    # in_channels must equal out_channels * expansion(=4).
    N, H, W, C = 2, 16, 16, 4
    Cin = C * 4                                               # 16

    x = jax.random.normal(kx, (N, H, W, Cin), jnp.float32).astype(jnp.bfloat16)
    params = init_params(kp, in_channels=Cin, out_channels=C)
    packed, meta = pack_params(params)                        # pad + bf16, once

    y = bottleneck_forward(x, packed, meta, skip_scale=1.0)
    y = jax.block_until_ready(y)

    y_ref = ref_forward(x.astype(jnp.float32), params, skip_scale=1.0)
    assert y.shape == (N, H, W, Cin)
    err = float(jnp.max(jnp.abs(y.astype(jnp.float32) - y_ref)))
    assert jnp.allclose(y.astype(jnp.float32), y_ref, atol=5e-2, rtol=5e-2), (
        "mismatch vs JAX reference: max|err|=%g" % err)

    print("KERNEL_OK")
</pallas_src>

<mosaic_0001>
module attributes {stable_mosaic.version = 11 : i64} {
  func.func @_bottleneck_kernel(%arg0: i32, %arg1: i32, %arg2: memref<1x128x128xbf16, #tpu.memory_space<vmem>>, %arg3: memref<2x256x128xbf16, #tpu.memory_space<any>>, %arg4: memref<128x128xbf16, #tpu.memory_space<vmem>>, %arg5: memref<1x128xf32, #tpu.memory_space<vmem>>, %arg6: memref<1x128xf32, #tpu.memory_space<vmem>>, %arg7: memref<1152x128xbf16, #tpu.memory_space<vmem>>, %arg8: memref<1x128xf32, #tpu.memory_space<vmem>>, %arg9: memref<1x128xf32, #tpu.memory_space<vmem>>, %arg10: memref<128x128xbf16, #tpu.memory_space<vmem>>, %arg11: memref<1x128xf32, #tpu.memory_space<vmem>>, %arg12: memref<1x128xf32, #tpu.memory_space<vmem>>, %arg13: memref<1x128x128xbf16, #tpu.memory_space<vmem>>, %arg14: memref<10x24x128xbf16, #tpu.memory_space<vmem>>, %arg15: memref<128x384xbf16, #tpu.memory_space<vmem>>, %arg16: memref<2x16x128xbf16, #tpu.memory_space<vmem>>, %arg17: memref<2x!tpu.dma_semaphore, #tpu.memory_space<semaphore_mem>>) attributes {dimension_semantics = [#tpu.dimension_semantics<parallel>, #tpu.dimension_semantics<parallel>], iteration_bounds = array<i64: 2, 2>, scalar_prefetch = 0 : i64, scratch_operands = 4 : i64, tpu.core_type = #tpu.core_type<tc>, window_params = [{transform_indices = @transform_0, window_bounds = array<i64: 1, 128, 128>}, {}, {pipeline_mode = #tpu.pipeline_mode<synchronous>, transform_indices = @transform_2, window_bounds = array<i64: 128, 128>}, {pipeline_mode = #tpu.pipeline_mode<synchronous>, transform_indices = @transform_3, window_bounds = array<i64: 1, 128>}, {pipeline_mode = #tpu.pipeline_mode<synchronous>, transform_indices = @transform_4, window_bounds = array<i64: 1, 128>}, {pipeline_mode = #tpu.pipeline_mode<synchronous>, transform_indices = @transform_5, window_bounds = array<i64: 1152, 128>}, {pipeline_mode = #tpu.pipeline_mode<synchronous>, transform_indices = @transform_6, window_bounds = array<i64: 1, 128>}, {pipeline_mode = #tpu.pipeline_mode<synchronous>, transform_indices = @transform_7, window_bounds = array<i64: 1, 128>}, {pipeline_mode = #tpu.pipeline_mode<synchronous>, transform_indices = @transform_8, window_bounds = array<i64: 128, 128>}, {pipeline_mode = #tpu.pipeline_mode<synchronous>, transform_indices = @transform_9, window_bounds = array<i64: 1, 128>}, {pipeline_mode = #tpu.pipeline_mode<synchronous>, transform_indices = @transform_10, window_bounds = array<i64: 1, 128>}, {transform_indices = @transform_11, window_bounds = array<i64: 1, 128, 128>}]} {
    %c8_i32 = arith.constant 8 : i32
    %0 = arith.muli %arg1, %c8_i32 : i32
    %c1_i32 = arith.constant 1 : i32
    %1 = arith.subi %0, %c1_i32 : i32
    %c0_i32 = arith.constant 0 : i32
    %2 = arith.maxsi %1, %c0_i32 : i32
    %c8_i32_0 = arith.constant 8 : i32
    %3 = arith.addi %0, %c8_i32_0 : i32
    %c15_i32 = arith.constant 15 : i32
    %4 = arith.minsi %3, %c15_i32 : i32
    %c16_i32 = arith.constant 16 : i32
    %5 = arith.muli %2, %c16_i32 : i32
    %c16_i32_1 = arith.constant 16 : i32
    %6 = arith.muli %4, %c16_i32_1 : i32
    %c0_i32_2 = arith.constant 0 : i32
    %c0_i32_3 = arith.constant 0 : i32
    %c0_i32_4 = arith.constant 0 : i32
    %7 = tpu.memref_slice %arg3[%arg0, %5, %c0_i32_4] : memref<2x256x128xbf16, #tpu.memory_space<any>> -> memref<1x16x128xbf16, #tpu.memory_space<any>>
    %8 = tpu.memref_squeeze %7 : memref<1x16x128xbf16, #tpu.memory_space<any>> -> memref<16x128xbf16, #tpu.memory_space<any>>
    %c0_i32_5 = arith.constant 0 : i32
    %c0_i32_6 = arith.constant 0 : i32
    %9 = tpu.memref_slice %arg16[%c0_i32_2, %c0_i32_5, %c0_i32_6] : memref<2x16x128xbf16, #tpu.memory_space<vmem>> -> memref<1x16x128xbf16, #tpu.memory_space<vmem>>
    %10 = tpu.memref_squeeze %9 : memref<1x16x128xbf16, #tpu.memory_space<vmem>> -> memref<16x128xbf16, #tpu.memory_space<vmem>>
    %11 = tpu.memref_slice %arg17[%c0_i32_3] : memref<2x!tpu.dma_semaphore, #tpu.memory_space<semaphore_mem>> -> memref<1x!tpu.dma_semaphore, #tpu.memory_space<semaphore_mem>>
    %12 = tpu.memref_squeeze %11 : memref<1x!tpu.dma_semaphore, #tpu.memory_space<semaphore_mem>> -> memref<!tpu.dma_semaphore, #tpu.memory_space<semaphore_mem>>
    tpu.enqueue_dma source(%8 : memref<16x128xbf16, #tpu.memory_space<any>>) target(%10 : memref<16x128xbf16, #tpu.memory_space<vmem>>) target_semaphore(%12 : memref<!tpu.dma_semaphore, #tpu.memory_space<semaphore_mem>>)
    %c1_i32_7 = arith.constant 1 : i32
    %c1_i32_8 = arith.constant 1 : i32
    %c0_i32_9 = arith.constant 0 : i32
    %13 = tpu.memref_slice %arg3[%arg0, %6, %c0_i32_9] : memref<2x256x128xbf16, #tpu.memory_space<any>> -> memref<1x16x128xbf16, #tpu.memory_space<any>>
    %14 = tpu.memref_squeeze %13 : memref<1x16x128xbf16, #tpu.memory_space<any>> -> memref<16x128xbf16, #tpu.memory_space<any>>
    %c0_i32_10 = arith.constant 0 : i32
    %c0_i32_11 = arith.constant 0 : i32
    %15 = tpu.memref_slice %arg16[%c1_i32_7, %c0_i32_10, %c0_i32_11] : memref<2x16x128xbf16, #tpu.memory_space<vmem>> -> memref<1x16x128xbf16, #tpu.memory_space<vmem>>
    %16 = tpu.memref_squeeze %15 : memref<1x16x128xbf16, #tpu.memory_space<vmem>> -> memref<16x128xbf16, #tpu.memory_space<vmem>>
    %17 = tpu.memref_slice %arg17[%c1_i32_8] : memref<2x!tpu.dma_semaphore, #tpu.memory_space<semaphore_mem>> -> memref<1x!tpu.dma_semaphore, #tpu.memory_space<semaphore_mem>>
    %18 = tpu.memref_squeeze %17 : memref<1x!tpu.dma_semaphore, #tpu.memory_space<semaphore_mem>> -> memref<!tpu.dma_semaphore, #tpu.memory_space<semaphore_mem>>
    tpu.enqueue_dma source(%14 : memref<16x128xbf16, #tpu.memory_space<any>>) target(%16 : memref<16x128xbf16, #tpu.memory_space<vmem>>) target_semaphore(%18 : memref<!tpu.dma_semaphore, #tpu.memory_space<semaphore_mem>>)
    %c0 = arith.constant 0 : index
    %c0_12 = arith.constant 0 : index
    %c0_13 = arith.constant 0 : index
    %19 = vector.load %arg2[%c0, %c0_12, %c0_13] : memref<1x128x128xbf16, #tpu.memory_space<vmem>>, vector<1x128x128xbf16>
    %20 = vector.shape_cast %19 : vector<1x128x128xbf16> to vector<128x128xbf16>
    %c0_14 = arith.constant 0 : index
    %c0_15 = arith.constant 0 : index
    %21 = vector.load %arg4[%c0_14, %c0_15] : memref<128x128xbf16, #tpu.memory_space<vmem>>, vector<128x128xbf16>
    %cst = arith.constant dense<0.000000e+00> : vector<128x128xf32>
    %22 = tpu.matmul %20, %21, %cst {dimension_numbers = #tpu.dot_dimension_numbers<[1], [0], [0], [1], [0, 0, 1, 1], [], []>} : vector<128x128xbf16>, vector<128x128xbf16>, vector<128x128xf32> -> vector<128x128xf32>
    %c0_16 = arith.constant 0 : index
    %c0_17 = arith.constant 0 : index
    %23 = vector.load %arg5[%c0_16, %c0_17] : memref<1x128xf32, #tpu.memory_space<vmem>>, vector<1x128xf32>
    %24 = vector.broadcast %23 : vector<1x128xf32> to vector<128x128xf32>
    %25 = arith.mulf %22, %24 : vector<128x128xf32>
    %c0_18 = arith.constant 0 : index
    %c0_19 = arith.constant 0 : index
    %26 = vector.load %arg6[%c0_18, %c0_19] : memref<1x128xf32, #tpu.memory_space<vmem>>, vector<1x128xf32>
    %27 = vector.broadcast %26 : vector<1x128xf32> to vector<128x128xf32>
    %28 = arith.addf %25, %27 : vector<128x128xf32>
    %cst_20 = arith.constant 0.000000e+00 : f32
    %29 = vector.broadcast %cst_20 : f32 to vector<128x128xf32>
    %30 = arith.maximumf %28, %29 : vector<128x128xf32>
    %31 = arith.truncf %30 : vector<128x128xf32> to vector<128x128xbf16>
    %cst_21 = arith.constant 0.000000e+00 : bf16
    %32 = vector.broadcast %cst_21 : bf16 to vector<10x1x128xbf16>
    %c0_22 = arith.constant 0 : index
    %c0_23 = arith.constant 0 : index
    %c0_24 = arith.constant 0 : index
    %33 = vector.load %arg14[%c0_22, %c0_23, %c0_24] : memref<10x24x128xbf16, #tpu.memory_space<vmem>>, vector<10x1x128xbf16>
    tpu.vector_store %arg14[%c0_22, %c0_23, %c0_24], %32 {strides = array<i32>} : memref<10x24x128xbf16, #tpu.memory_space<vmem>>, vector<10x1x128xbf16>,
    %c0_25 = arith.constant 0 : index
    %c17 = arith.constant 17 : index
    %c0_26 = arith.constant 0 : index
    %34 = vector.load %arg14[%c0_25, %c17, %c0_26] : memref<10x24x128xbf16, #tpu.memory_space<vmem>>, vector<10x1x128xbf16>
    tpu.vector_store %arg14[%c0_25, %c17, %c0_26], %32 {strides = array<i32>} : memref<10x24x128xbf16, #tpu.memory_space<vmem>>, vector<10x1x128xbf16>,
    %35 = vector.shape_cast %31 : vector<128x128xbf16> to vector<8x16x128xbf16>
    %c1 = arith.constant 1 : index
    %c1_27 = arith.constant 1 : index
    %c0_28 = arith.constant 0 : index
    %36 = vector.load %arg14[%c1, %c1_27, %c0_28] : memref<10x24x128xbf16, #tpu.memory_space<vmem>>, vector<8x16x128xbf16>
    tpu.vector_store %arg14[%c1, %c1_27, %c0_28], %35 {strides = array<i32>} : memref<10x24x128xbf16, #tpu.memory_space<vmem>>, vector<8x16x128xbf16>,
    %c0_i32_29 = arith.constant 0 : i32
    %c0_i32_30 = arith.constant 0 : i32
    %c0_i32_31 = arith.constant 0 : i32
    %37 = tpu.memref_slice %arg3[%arg0, %5, %c0_i32_31] : memref<2x256x128xbf16, #tpu.memory_space<any>> -> memref<1x16x128xbf16, #tpu.memory_space<any>>
    %38 = tpu.memref_squeeze %37 : memref<1x16x128xbf16, #tpu.memory_space<any>> -> memref<16x128xbf16, #tpu.memory_space<any>>
    %c0_i32_32 = arith.constant 0 : i32
    %c0_i32_33 = arith.constant 0 : i32
    %39 = tpu.memref_slice %arg16[%c0_i32_29, %c0_i32_32, %c0_i32_33] : memref<2x16x128xbf16, #tpu.memory_space<vmem>> -> memref<1x16x128xbf16, #tpu.memory_space<vmem>>
    %40 = tpu.memref_squeeze %39 : memref<1x16x128xbf16, #tpu.memory_space<vmem>> -> memref<16x128xbf16, #tpu.memory_space<vmem>>
    %41 = tpu.memref_slice %arg17[%c0_i32_30] : memref<2x!tpu.dma_semaphore, #tpu.memory_space<semaphore_mem>> -> memref<1x!tpu.dma_semaphore, #tpu.memory_space<semaphore_mem>>
    %42 = tpu.memref_squeeze %41 : memref<1x!tpu.dma_semaphore, #tpu.memory_space<semaphore_mem>> -> memref<!tpu.dma_semaphore, #tpu.memory_space<semaphore_mem>>
    tpu.wait_dma2 semaphore(%42 : memref<!tpu.dma_semaphore, #tpu.memory_space<semaphore_mem>>) src(%38 : memref<16x128xbf16, #tpu.memory_space<any>>) dst(%40 : memref<16x128xbf16, #tpu.memory_space<vmem>>)
    %c1_i32_34 = arith.constant 1 : i32
    %c1_i32_35 = arith.constant 1 : i32
    %c0_i32_36 = arith.constant 0 : i32
    %43 = tpu.memref_slice %arg3[%arg0, %6, %c0_i32_36] : memref<2x256x128xbf16, #tpu.memory_space<any>> -> memref<1x16x128xbf16, #tpu.memory_space<any>>
    %44 = tpu.memref_squeeze %43 : memref<1x16x128xbf16, #tpu.memory_space<any>> -> memref<16x128xbf16, #tpu.memory_space<any>>
    %c0_i32_37 = arith.constant 0 : i32
    %c0_i32_38 = arith.constant 0 : i32
    %45 = tpu.memref_slice %arg16[%c1_i32_34, %c0_i32_37, %c0_i32_38] : memref<2x16x128xbf16, #tpu.memory_space<vmem>> -> memref<1x16x128xbf16, #tpu.memory_space<vmem>>
    %46 = tpu.memref_squeeze %45 : memref<1x16x128xbf16, #tpu.memory_space<vmem>> -> memref<16x128xbf16, #tpu.memory_space<vmem>>
    %47 = tpu.memref_slice %arg17[%c1_i32_35] : memref<2x!tpu.dma_semaphore, #tpu.memory_space<semaphore_mem>> -> memref<1x!tpu.dma_semaphore, #tpu.memory_space<semaphore_mem>>
    %48 = tpu.memref_squeeze %47 : memref<1x!tpu.dma_semaphore, #tpu.memory_space<semaphore_mem>> -> memref<!tpu.dma_semaphore, #tpu.memory_space<semaphore_mem>>
    tpu.wait_dma2 semaphore(%48 : memref<!tpu.dma_semaphore, #tpu.memory_space<semaphore_mem>>) src(%44 : memref<16x128xbf16, #tpu.memory_space<any>>) dst(%46 : memref<16x128xbf16, #tpu.memory_space<vmem>>)
    %c0_39 = arith.constant 0 : index
    %c0_40 = arith.constant 0 : index
    %c0_41 = arith.constant 0 : index
    %49 = vector.load %arg16[%c0_39, %c0_40, %c0_41] : memref<2x16x128xbf16, #tpu.memory_space<vmem>>, vector<2x16x128xbf16>
    %50 = vector.shape_cast %49 : vector<2x16x128xbf16> to vector<32x128xbf16>
    %c0_42 = arith.constant 0 : index
    %c0_43 = arith.constant 0 : index
    %51 = vector.load %arg4[%c0_42, %c0_43] : memref<128x128xbf16, #tpu.memory_space<vmem>>, vector<128x128xbf16>
    %cst_44 = arith.constant dense<0.000000e+00> : vector<32x128xf32>
    %52 = tpu.matmul %50, %51, %cst_44 {dimension_numbers = #tpu.dot_dimension_numbers<[1], [0], [0], [1], [0, 0, 1, 1], [], []>} : vector<32x128xbf16>, vector<128x128xbf16>, vector<32x128xf32> -> vector<32x128xf32>
    %c0_45 = arith.constant 0 : index
    %c0_46 = arith.constant 0 : index
    %53 = vector.load %arg5[%c0_45, %c0_46] : memref<1x128xf32, #tpu.memory_space<vmem>>, vector<1x128xf32>
    %54 = vector.broadcast %53 : vector<1x128xf32> to vector<32x128xf32>
    %55 = arith.mulf %52, %54 : vector<32x128xf32>
    %c0_47 = arith.constant 0 : index
    %c0_48 = arith.constant 0 : index
    %56 = vector.load %arg6[%c0_47, %c0_48] : memref<1x128xf32, #tpu.memory_space<vmem>>, vector<1x128xf32>
    %57 = vector.broadcast %56 : vector<1x128xf32> to vector<32x128xf32>
    %58 = arith.addf %55, %57 : vector<32x128xf32>
    %cst_49 = arith.constant 0.000000e+00 : f32
    %59 = vector.broadcast %cst_49 : f32 to vector<32x128xf32>
    %60 = arith.maximumf %58, %59 : vector<32x128xf32>
    %61 = arith.truncf %60 : vector<32x128xf32> to vector<32x128xbf16>
    %62 = vector.shape_cast %61 : vector<32x128xbf16> to vector<2x16x128xbf16>
    %c0_i32_50 = arith.constant 0 : i32
    %63 = arith.cmpi sgt, %arg1, %c0_i32_50 : i32
    %64 = arith.extui %63 : i1 to i32
    %65 = arith.sitofp %64 : i32 to f32
    %66 = arith.truncf %65 : f32 to bf16
    %c1_i32_51 = arith.constant 1 : i32
    %67 = arith.cmpi slt, %arg1, %c1_i32_51 : i32
    %68 = arith.extui %67 : i1 to i32
    %69 = arith.sitofp %68 : i32 to f32
    %70 = arith.truncf %69 : f32 to bf16
    %71 = vector.extract_strided_slice %62 {offsets = [0, 0, 0], sizes = [1, 16, 128], strides = [1, 1, 1]} : vector<2x16x128xbf16> to vector<1x16x128xbf16>
    %72 = vector.broadcast %66 : bf16 to vector<1x16x128xbf16>
    %73 = arith.mulf %71, %72 : vector<1x16x128xbf16>
    %c0_52 = arith.constant 0 : index
    %c1_53 = arith.constant 1 : index
    %c0_54 = arith.constant 0 : index
    %74 = vector.load %arg14[%c0_52, %c1_53, %c0_54] : memref<10x24x128xbf16, #tpu.memory_space<vmem>>, vector<1x16x128xbf16>
    tpu.vector_store %arg14[%c0_52, %c1_53, %c0_54], %73 {strides = array<i32>} : memref<10x24x128xbf16, #tpu.memory_space<vmem>>, vector<1x16x128xbf16>,
    %75 = vector.extract_strided_slice %62 {offsets = [1, 0, 0], sizes = [1, 16, 128], strides = [1, 1, 1]} : vector<2x16x128xbf16> to vector<1x16x128xbf16>
    %76 = vector.broadcast %70 : bf16 to vector<1x16x128xbf16>
    %77 = arith.mulf %75, %76 : vector<1x16x128xbf16>
    %c9 = arith.constant 9 : index
    %c1_55 = arith.constant 1 : index
    %c0_56 = arith.constant 0 : index
    %78 = vector.load %arg14[%c9, %c1_55, %c0_56] : memref<10x24x128xbf16, #tpu.memory_space<vmem>>, vector<1x16x128xbf16>
    tpu.vector_store %arg14[%c9, %c1_55, %c0_56], %77 {strides = array<i32>} : memref<10x24x128xbf16, #tpu.memory_space<vmem>>, vector<1x16x128xbf16>,
    %c0_57 = arith.constant 0 : index
    %c0_58 = arith.constant 0 : index
    %c0_59 = arith.constant 0 : index
    %79 = vector.load %arg14[%c0_57, %c0_58, %c0_59] : memref<10x24x128xbf16, #tpu.memory_space<vmem>>, vector<8x16x128xbf16>
    %80 = vector.shape_cast %79 : vector<8x16x128xbf16> to vector<128x128xbf16>
    %c0_60 = arith.constant 0 : index
    %c0_61 = arith.constant 0 : index
    %81 = vector.load %arg15[%c0_60, %c0_61] : memref<128x384xbf16, #tpu.memory_space<vmem>>, vector<128x128xbf16>
    tpu.vector_store %arg15[%c0_60, %c0_61], %80 {strides = array<i32>} : memref<128x384xbf16, #tpu.memory_space<vmem>>, vector<128x128xbf16>,
    %c0_62 = arith.constant 0 : index
    %c1_63 = arith.constant 1 : index
    %c0_64 = arith.constant 0 : index
    %82 = vector.load %arg14[%c0_62, %c1_63, %c0_64] : memref<10x24x128xbf16, #tpu.memory_space<vmem>>, vector<8x16x128xbf16>
    %83 = vector.shape_cast %82 : vector<8x16x128xbf16> to vector<128x128xbf16>
    %c0_65 = arith.constant 0 : index
    %c128 = arith.constant 128 : index
    %84 = vector.load %arg15[%c0_65, %c128] : memref<128x384xbf16, #tpu.memory_space<vmem>>, vector<128x128xbf16>
    tpu.vector_store %arg15[%c0_65, %c128], %83 {strides = array<i32>} : memref<128x384xbf16, #tpu.memory_space<vmem>>, vector<128x128xbf16>,
    %c0_66 = arith.constant 0 : index
    %c2 = arith.constant 2 : index
    %c0_67 = arith.constant 0 : index
    %85 = vector.load %arg14[%c0_66, %c2, %c0_67] : memref<10x24x128xbf16, #tpu.memory_space<vmem>>, vector<8x16x128xbf16>
    %86 = vector.shape_cast %85 : vector<8x16x128xbf16> to vector<128x128xbf16>
    %c0_68 = arith.constant 0 : index
    %c256 = arith.constant 256 : index
    %87 = vector.load %arg15[%c0_68, %c256] : memref<128x384xbf16, #tpu.memory_space<vmem>>, vector<128x128xbf16>
    tpu.vector_store %arg15[%c0_68, %c256], %86 {strides = array<i32>} : memref<128x384xbf16, #tpu.memory_space<vmem>>, vector<128x128xbf16>,
    %c0_69 = arith.constant 0 : index
    %c0_70 = arith.constant 0 : index
    %88 = vector.load %arg15[%c0_69, %c0_70] : memref<128x384xbf16, #tpu.memory_space<vmem>>, vector<128x384xbf16>
    %c0_71 = arith.constant 0 : index
    %c0_72 = arith.constant 0 : index
    %89 = vector.load %arg7[%c0_71, %c0_72] : memref<1152x128xbf16, #tpu.memory_space<vmem>>, vector<384x128xbf16>
    %cst_73 = arith.constant dense<0.000000e+00> : vector<128x128xf32>
    %90 = tpu.matmul %88, %89, %cst_73 {dimension_numbers = #tpu.dot_dimension_numbers<[1], [0], [0], [1], [0, 0, 1, 1], [], []>} : vector<128x384xbf16>, vector<384x128xbf16>, vector<128x128xf32> -> vector<128x128xf32>
    %c1_74 = arith.constant 1 : index
    %c0_75 = arith.constant 0 : index
    %c0_76 = arith.constant 0 : index
    %91 = vector.load %arg14[%c1_74, %c0_75, %c0_76] : memref<10x24x128xbf16, #tpu.memory_space<vmem>>, vector<8x16x128xbf16>
    %92 = vector.shape_cast %91 : vector<8x16x128xbf16> to vector<128x128xbf16>
    %c0_77 = arith.constant 0 : index
    %c0_78 = arith.constant 0 : index
    %93 = vector.load %arg15[%c0_77, %c0_78] : memref<128x384xbf16, #tpu.memory_space<vmem>>, vector<128x128xbf16>
    tpu.vector_store %arg15[%c0_77, %c0_78], %92 {strides = array<i32>} : memref<128x384xbf16, #tpu.memory_space<vmem>>, vector<128x128xbf16>,
    %c1_79 = arith.constant 1 : index
    %c1_80 = arith.constant 1 : index
    %c0_81 = arith.constant 0 : index
    %94 = vector.load %arg14[%c1_79, %c1_80, %c0_81] : memref<10x24x128xbf16, #tpu.memory_space<vmem>>, vector<8x16x128xbf16>
    %95 = vector.shape_cast %94 : vector<8x16x128xbf16> to vector<128x128xbf16>
    %c0_82 = arith.constant 0 : index
    %c128_83 = arith.constant 128 : index
    %96 = vector.load %arg15[%c0_82, %c128_83] : memref<128x384xbf16, #tpu.memory_space<vmem>>, vector<128x128xbf16>
    tpu.vector_store %arg15[%c0_82, %c128_83], %95 {strides = array<i32>} : memref<128x384xbf16, #tpu.memory_space<vmem>>, vector<128x128xbf16>,
    %c1_84 = arith.constant 1 : index
    %c2_85 = arith.constant 2 : index
    %c0_86 = arith.constant 0 : index
    %97 = vector.load %arg14[%c1_84, %c2_85, %c0_86] : memref<10x24x128xbf16, #tpu.memory_space<vmem>>, vector<8x16x128xbf16>
    %98 = vector.shape_cast %97 : vector<8x16x128xbf16> to vector<128x128xbf16>
    %c0_87 = arith.constant 0 : index
    %c256_88 = arith.constant 256 : index
    %99 = vector.load %arg15[%c0_87, %c256_88] : memref<128x384xbf16, #tpu.memory_space<vmem>>, vector<128x128xbf16>
    tpu.vector_store %arg15[%c0_87, %c256_88], %98 {strides = array<i32>} : memref<128x384xbf16, #tpu.memory_space<vmem>>, vector<128x128xbf16>,
    %c0_89 = arith.constant 0 : index
    %c0_90 = arith.constant 0 : index
    %100 = vector.load %arg15[%c0_89, %c0_90] : memref<128x384xbf16, #tpu.memory_space<vmem>>, vector<128x384xbf16>
    %c384 = arith.constant 384 : index
    %c0_91 = arith.constant 0 : index
    %101 = vector.load %arg7[%c384, %c0_91] : memref<1152x128xbf16, #tpu.memory_space<vmem>>, vector<384x128xbf16>
    %cst_92 = arith.constant dense<0.000000e+00> : vector<128x128xf32>
    %102 = tpu.matmul %100, %101, %cst_92 {dimension_numbers = #tpu.dot_dimension_numbers<[1], [0], [0], [1], [0, 0, 1, 1], [], []>} : vector<128x384xbf16>, vector<384x128xbf16>, vector<128x128xf32> -> vector<128x128xf32>
    %103 = arith.addf %90, %102 : vector<128x128xf32>
    %c2_93 = arith.constant 2 : index
    %c0_94 = arith.constant 0 : index
    %c0_95 = arith.constant 0 : index
    %104 = vector.load %arg14[%c2_93, %c0_94, %c0_95] : memref<10x24x128xbf16, #tpu.memory_space<vmem>>, vector<8x16x128xbf16>
    %105 = vector.shape_cast %104 : vector<8x16x128xbf16> to vector<128x128xbf16>
    %c0_96 = arith.constant 0 : index
    %c0_97 = arith.constant 0 : index
    %106 = vector.load %arg15[%c0_96, %c0_97] : memref<128x384xbf16, #tpu.memory_space<vmem>>, vector<128x128xbf16>
    tpu.vector_store %arg15[%c0_96, %c0_97], %105 {strides = array<i32>} : memref<128x384xbf16, #tpu.memory_space<vmem>>, vector<128x128xbf16>,
    %c2_98 = arith.constant 2 : index
    %c1_99 = arith.constant 1 : index
    %c0_100 = arith.constant 0 : index
    %107 = vector.load %arg14[%c2_98, %c1_99, %c0_100] : memref<10x24x128xbf16, #tpu.memory_space<vmem>>, vector<8x16x128xbf16>
    %108 = vector.shape_cast %107 : vector<8x16x128xbf16> to vector<128x128xbf16>
    %c0_101 = arith.constant 0 : index
    %c128_102 = arith.constant 128 : index
    %109 = vector.load %arg15[%c0_101, %c128_102] : memref<128x384xbf16, #tpu.memory_space<vmem>>, vector<128x128xbf16>
    tpu.vector_store %arg15[%c0_101, %c128_102], %108 {strides = array<i32>} : memref<128x384xbf16, #tpu.memory_space<vmem>>, vector<128x128xbf16>,
    %c2_103 = arith.constant 2 : index
    %c2_104 = arith.constant 2 : index
    %c0_105 = arith.constant 0 : index
    %110 = vector.load %arg14[%c2_103, %c2_104, %c0_105] : memref<10x24x128xbf16, #tpu.memory_space<vmem>>, vector<8x16x128xbf16>
    %111 = vector.shape_cast %110 : vector<8x16x128xbf16> to vector<128x128xbf16>
    %c0_106 = arith.constant 0 : index
    %c256_107 = arith.constant 256 : index
    %112 = vector.load %arg15[%c0_106, %c256_107] : memref<128x384xbf16, #tpu.memory_space<vmem>>, vector<128x128xbf16>
    tpu.vector_store %arg15[%c0_106, %c256_107], %111 {strides = array<i32>} : memref<128x384xbf16, #tpu.memory_space<vmem>>, vector<128x128xbf16>,
    %c0_108 = arith.constant 0 : index
    %c0_109 = arith.constant 0 : index
    %113 = vector.load %arg15[%c0_108, %c0_109] : memref<128x384xbf16, #tpu.memory_space<vmem>>, vector<128x384xbf16>
    %c768 = arith.constant 768 : index
    %c0_110 = arith.constant 0 : index
    %114 = vector.load %arg7[%c768, %c0_110] : memref<1152x128xbf16, #tpu.memory_space<vmem>>, vector<384x128xbf16>
    %cst_111 = arith.constant dense<0.000000e+00> : vector<128x128xf32>
    %115 = tpu.matmul %113, %114, %cst_111 {dimension_numbers = #tpu.dot_dimension_numbers<[1], [0], [0], [1], [0, 0, 1, 1], [], []>} : vector<128x384xbf16>, vector<384x128xbf16>, vector<128x128xf32> -> vector<128x128xf32>
    %116 = arith.addf %103, %115 : vector<128x128xf32>
    %c0_112 = arith.constant 0 : index
    %c0_113 = arith.constant 0 : index
    %117 = vector.load %arg8[%c0_112, %c0_113] : memref<1x128xf32, #tpu.memory_space<vmem>>, vector<1x128xf32>
    %118 = vector.broadcast %117 : vector<1x128xf32> to vector<128x128xf32>
    %119 = arith.mulf %116, %118 : vector<128x128xf32>
    %c0_114 = arith.constant 0 : index
    %c0_115 = arith.constant 0 : index
    %120 = vector.load %arg9[%c0_114, %c0_115] : memref<1x128xf32, #tpu.memory_space<vmem>>, vector<1x128xf32>
    %121 = vector.broadcast %120 : vector<1x128xf32> to vector<128x128xf32>
    %122 = arith.addf %119, %121 : vector<128x128xf32>
    %cst_116 = arith.constant 0.000000e+00 : f32
    %123 = vector.broadcast %cst_116 : f32 to vector<128x128xf32>
    %124 = arith.maximumf %122, %123 : vector<128x128xf32>
    %125 = arith.truncf %124 : vector<128x128xf32> to vector<128x128xbf16>
    %c0_117 = arith.constant 0 : index
    %c0_118 = arith.constant 0 : index
    %126 = vector.load %arg10[%c0_117, %c0_118] : memref<128x128xbf16, #tpu.memory_space<vmem>>, vector<128x128xbf16>
    %cst_119 = arith.constant dense<0.000000e+00> : vector<128x128xf32>
    %127 = tpu.matmul %125, %126, %cst_119 {dimension_numbers = #tpu.dot_dimension_numbers<[1], [0], [0], [1], [0, 0, 1, 1], [], []>} : vector<128x128xbf16>, vector<128x128xbf16>, vector<128x128xf32> -> vector<128x128xf32>
    %c0_120 = arith.constant 0 : index
    %c0_121 = arith.constant 0 : index
    %128 = vector.load %arg11[%c0_120, %c0_121] : memref<1x128xf32, #tpu.memory_space<vmem>>, vector<1x128xf32>
    %129 = vector.broadcast %128 : vector<1x128xf32> to vector<128x128xf32>
    %130 = arith.mulf %127, %129 : vector<128x128xf32>
    %c0_122 = arith.constant 0 : index
    %c0_123 = arith.constant 0 : index
    %131 = vector.load %arg12[%c0_122, %c0_123] : memref<1x128xf32, #tpu.memory_space<vmem>>, vector<1x128xf32>
    %132 = vector.broadcast %131 : vector<1x128xf32> to vector<128x128xf32>
    %133 = arith.addf %130, %132 : vector<128x128xf32>
    %134 = arith.extf %20 : vector<128x128xbf16> to vector<128x128xf32>
    %135 = arith.addf %133, %134 : vector<128x128xf32>
    %cst_124 = arith.constant 0.000000e+00 : f32
    %136 = vector.broadcast %cst_124 : f32 to vector<128x128xf32>
    %137 = arith.maximumf %135, %136 : vector<128x128xf32>
    %138 = arith.truncf %137 : vector<128x128xf32> to vector<128x128xbf16>
    %139 = vector.shape_cast %138 : vector<128x128xbf16> to vector<1x128x128xbf16>
    %c0_125 = arith.constant 0 : index
    %c0_126 = arith.constant 0 : index
    %c0_127 = arith.constant 0 : index
    %140 = vector.load %arg13[%c0_125, %c0_126, %c0_127] : memref<1x128x128xbf16, #tpu.memory_space<vmem>>, vector<1x128x128xbf16>
    tpu.vector_store %arg13[%c0_125, %c0_126, %c0_127], %139 {strides = array<i32>} : memref<1x128x128xbf16, #tpu.memory_space<vmem>>, vector<1x128x128xbf16>,
    return
  }
  func.func @transform_0(%arg0: i32, %arg1: i32) -> (i32, i32, i32) {
    %c0_i32 = arith.constant 0 : i32
    %c0_i32_0 = arith.constant 0 : i32
    return %arg0, %arg1, %c0_i32 : i32, i32, i32
  }
  func.func @transform_2(%arg0: i32, %arg1: i32) -> (i32, i32) {
    %c0_i32 = arith.constant 0 : i32
    %c0_i32_0 = arith.constant 0 : i32
    %c0_i32_1 = arith.constant 0 : i32
    return %c0_i32, %c0_i32_0 : i32, i32
  }
  func.func @transform_3(%arg0: i32, %arg1: i32) -> (i32, i32) {
    %c0_i32 = arith.constant 0 : i32
    %c0_i32_0 = arith.constant 0 : i32
    %c0_i32_1 = arith.constant 0 : i32
    return %c0_i32, %c0_i32_0 : i32, i32
  }
  func.func @transform_4(%arg0: i32, %arg1: i32) -> (i32, i32) {
    %c0_i32 = arith.constant 0 : i32
    %c0_i32_0 = arith.constant 0 : i32
    %c0_i32_1 = arith.constant 0 : i32
    return %c0_i32, %c0_i32_0 : i32, i32
  }
  func.func @transform_5(%arg0: i32, %arg1: i32) -> (i32, i32) {
    %c0_i32 = arith.constant 0 : i32
    %c0_i32_0 = arith.constant 0 : i32
    %c0_i32_1 = arith.constant 0 : i32
    return %c0_i32, %c0_i32_0 : i32, i32
  }
  func.func @transform_6(%arg0: i32, %arg1: i32) -> (i32, i32) {
    %c0_i32 = arith.constant 0 : i32
    %c0_i32_0 = arith.constant 0 : i32
    %c0_i32_1 = arith.constant 0 : i32
    return %c0_i32, %c0_i32_0 : i32, i32
  }
  func.func @transform_7(%arg0: i32, %arg1: i32) -> (i32, i32) {
    %c0_i32 = arith.constant 0 : i32
    %c0_i32_0 = arith.constant 0 : i32
    %c0_i32_1 = arith.constant 0 : i32
    return %c0_i32, %c0_i32_0 : i32, i32
  }
  func.func @transform_8(%arg0: i32, %arg1: i32) -> (i32, i32) {
    %c0_i32 = arith.constant 0 : i32
    %c0_i32_0 = arith.constant 0 : i32
    %c0_i32_1 = arith.constant 0 : i32
    return %c0_i32, %c0_i32_0 : i32, i32
  }
  func.func @transform_9(%arg0: i32, %arg1: i32) -> (i32, i32) {
    %c0_i32 = arith.constant 0 : i32
    %c0_i32_0 = arith.constant 0 : i32
    %c0_i32_1 = arith.constant 0 : i32
    return %c0_i32, %c0_i32_0 : i32, i32
  }
  func.func @transform_10(%arg0: i32, %arg1: i32) -> (i32, i32) {
    %c0_i32 = arith.constant 0 : i32
    %c0_i32_0 = arith.constant 0 : i32
    %c0_i32_1 = arith.constant 0 : i32
    return %c0_i32, %c0_i32_0 : i32, i32
  }
  func.func @transform_11(%arg0: i32, %arg1: i32) -> (i32, i32, i32) {
    %c0_i32 = arith.constant 0 : i32
    %c0_i32_0 = arith.constant 0 : i32
    return %arg0, %arg1, %c0_i32 : i32, i32, i32
  }
}

module attributes {stable_mosaic.version = 11 : i64} {
  func.func @_bottleneck_kernel(%arg0: i32, %arg1: i32, %arg2: memref<1x128x128xbf16, #tpu.memory_space<vmem>>, %arg3: memref<2x256x128xbf16, #tpu.memory_space<any>>, %arg4: memref<128x128xbf16, #tpu.memory_space<vmem>>, %arg5: memref<1x128xf32, #tpu.memory_space<vmem>>, %arg6: memref<1x128xf32, #tpu.memory_space<vmem>>, %arg7: memref<1152x128xbf16, #tpu.memory_space<vmem>>, %arg8: memref<1x128xf32, #tpu.memory_space<vmem>>, %arg9: memref<1x128xf32, #tpu.memory_space<vmem>>, %arg10: memref<128x128xbf16, #tpu.memory_space<vmem>>, %arg11: memref<1x128xf32, #tpu.memory_space<vmem>>, %arg12: memref<1x128xf32, #tpu.memory_space<vmem>>, %arg13: memref<1x128x128xbf16, #tpu.memory_space<vmem>>, %arg14: memref<10x24x128xbf16, #tpu.memory_space<vmem>>, %arg15: memref<128x384xbf16, #tpu.memory_space<vmem>>, %arg16: memref<2x16x128xbf16, #tpu.memory_space<vmem>>, %arg17: memref<2x!tpu.dma_semaphore, #tpu.memory_space<semaphore_mem>>) attributes {dimension_semantics = [#tpu.dimension_semantics<parallel>, #tpu.dimension_semantics<parallel>], iteration_bounds = array<i64: 2, 2>, scalar_prefetch = 0 : i64, scratch_operands = 4 : i64, tpu.core_type = #tpu.core_type<tc>, window_params = [{transform_indices = @transform_0, window_bounds = array<i64: 1, 128, 128>}, {}, {pipeline_mode = #tpu.pipeline_mode<synchronous>, transform_indices = @transform_2, window_bounds = array<i64: 128, 128>}, {pipeline_mode = #tpu.pipeline_mode<synchronous>, transform_indices = @transform_3, window_bounds = array<i64: 1, 128>}, {pipeline_mode = #tpu.pipeline_mode<synchronous>, transform_indices = @transform_4, window_bounds = array<i64: 1, 128>}, {pipeline_mode = #tpu.pipeline_mode<synchronous>, transform_indices = @transform_5, window_bounds = array<i64: 1152, 128>}, {pipeline_mode = #tpu.pipeline_mode<synchronous>, transform_indices = @transform_6, window_bounds = array<i64: 1, 128>}, {pipeline_mode = #tpu.pipeline_mode<synchronous>, transform_indices = @transform_7, window_bounds = array<i64: 1, 128>}, {pipeline_mode = #tpu.pipeline_mode<synchronous>, transform_indices = @transform_8, window_bounds = array<i64: 128, 128>}, {pipeline_mode = #tpu.pipeline_mode<synchronous>, transform_indices = @transform_9, window_bounds = array<i64: 1, 128>}, {pipeline_mode = #tpu.pipeline_mode<synchronous>, transform_indices = @transform_10, window_bounds = array<i64: 1, 128>}, {transform_indices = @transform_11, window_bounds = array<i64: 1, 128, 128>}]} {
    %c8_i32 = arith.constant 8 : i32
    %0 = arith.muli %arg1, %c8_i32 : i32
    %c1_i32 = arith.constant 1 : i32
    %1 = arith.subi %0, %c1_i32 : i32
    %c0_i32 = arith.constant 0 : i32
    %2 = arith.maxsi %1, %c0_i32 : i32
    %c8_i32_0 = arith.constant 8 : i32
    %3 = arith.addi %0, %c8_i32_0 : i32
    %c15_i32 = arith.constant 15 : i32
    %4 = arith.minsi %3, %c15_i32 : i32
    %c16_i32 = arith.constant 16 : i32
    %5 = arith.muli %2, %c16_i32 : i32
    %c16_i32_1 = arith.constant 16 : i32
    %6 = arith.muli %4, %c16_i32_1 : i32
    %c0_i32_2 = arith.constant 0 : i32
    %c0_i32_3 = arith.constant 0 : i32
    %c0_i32_4 = arith.constant 0 : i32
    %7 = tpu.memref_slice %arg3[%arg0, %5, %c0_i32_4] : memref<2x256x128xbf16, #tpu.memory_space<any>> -> memref<1x16x128xbf16, #tpu.memory_space<any>>
    %8 = tpu.memref_squeeze %7 : memref<1x16x128xbf16, #tpu.memory_space<any>> -> memref<16x128xbf16, #tpu.memory_space<any>>
    %c0_i32_5 = arith.constant 0 : i32
    %c0_i32_6 = arith.constant 0 : i32
    %9 = tpu.memref_slice %arg16[%c0_i32_2, %c0_i32_5, %c0_i32_6] : memref<2x16x128xbf16, #tpu.memory_space<vmem>> -> memref<1x16x128xbf16, #tpu.memory_space<vmem>>
    %10 = tpu.memref_squeeze %9 : memref<1x16x128xbf16, #tpu.memory_space<vmem>> -> memref<16x128xbf16, #tpu.memory_space<vmem>>
    %11 = tpu.memref_slice %arg17[%c0_i32_3] : memref<2x!tpu.dma_semaphore, #tpu.memory_space<semaphore_mem>> -> memref<1x!tpu.dma_semaphore, #tpu.memory_space<semaphore_mem>>
    %12 = tpu.memref_squeeze %11 : memref<1x!tpu.dma_semaphore, #tpu.memory_space<semaphore_mem>> -> memref<!tpu.dma_semaphore, #tpu.memory_space<semaphore_mem>>
    tpu.enqueue_dma source(%8 : memref<16x128xbf16, #tpu.memory_space<any>>) target(%10 : memref<16x128xbf16, #tpu.memory_space<vmem>>) target_semaphore(%12 : memref<!tpu.dma_semaphore, #tpu.memory_space<semaphore_mem>>)
    %c1_i32_7 = arith.constant 1 : i32
    %c1_i32_8 = arith.constant 1 : i32
    %c0_i32_9 = arith.constant 0 : i32
    %13 = tpu.memref_slice %arg3[%arg0, %6, %c0_i32_9] : memref<2x256x128xbf16, #tpu.memory_space<any>> -> memref<1x16x128xbf16, #tpu.memory_space<any>>
    %14 = tpu.memref_squeeze %13 : memref<1x16x128xbf16, #tpu.memory_space<any>> -> memref<16x128xbf16, #tpu.memory_space<any>>
    %c0_i32_10 = arith.constant 0 : i32
    %c0_i32_11 = arith.constant 0 : i32
    %15 = tpu.memref_slice %arg16[%c1_i32_7, %c0_i32_10, %c0_i32_11] : memref<2x16x128xbf16, #tpu.memory_space<vmem>> -> memref<1x16x128xbf16, #tpu.memory_space<vmem>>
    %16 = tpu.memref_squeeze %15 : memref<1x16x128xbf16, #tpu.memory_space<vmem>> -> memref<16x128xbf16, #tpu.memory_space<vmem>>
    %17 = tpu.memref_slice %arg17[%c1_i32_8] : memref<2x!tpu.dma_semaphore, #tpu.memory_space<semaphore_mem>> -> memref<1x!tpu.dma_semaphore, #tpu.memory_space<semaphore_mem>>
    %18 = tpu.memref_squeeze %17 : memref<1x!tpu.dma_semaphore, #tpu.memory_space<semaphore_mem>> -> memref<!tpu.dma_semaphore, #tpu.memory_space<semaphore_mem>>
    tpu.enqueue_dma source(%14 : memref<16x128xbf16, #tpu.memory_space<any>>) target(%16 : memref<16x128xbf16, #tpu.memory_space<vmem>>) target_semaphore(%18 : memref<!tpu.dma_semaphore, #tpu.memory_space<semaphore_mem>>)
    %c0 = arith.constant 0 : index
    %c0_12 = arith.constant 0 : index
    %c0_13 = arith.constant 0 : index
    %19 = vector.load %arg2[%c0, %c0_12, %c0_13] : memref<1x128x128xbf16, #tpu.memory_space<vmem>>, vector<1x128x128xbf16>
    %20 = vector.shape_cast %19 : vector<1x128x128xbf16> to vector<128x128xbf16>
    %c0_14 = arith.constant 0 : index
    %c0_15 = arith.constant 0 : index
    %21 = vector.load %arg4[%c0_14, %c0_15] : memref<128x128xbf16, #tpu.memory_space<vmem>>, vector<128x128xbf16>
    %cst = arith.constant dense<0.000000e+00> : vector<128x128xf32>
    %22 = tpu.matmul %20, %21, %cst {dimension_numbers = #tpu.dot_dimension_numbers<[1], [0], [0], [1], [0, 0, 1, 1], [], []>} : vector<128x128xbf16>, vector<128x128xbf16>, vector<128x128xf32> -> vector<128x128xf32>
    %c0_16 = arith.constant 0 : index
    %c0_17 = arith.constant 0 : index
    %23 = vector.load %arg5[%c0_16, %c0_17] : memref<1x128xf32, #tpu.memory_space<vmem>>, vector<1x128xf32>
    %24 = vector.broadcast %23 : vector<1x128xf32> to vector<128x128xf32>
    %25 = arith.mulf %22, %24 : vector<128x128xf32>
    %c0_18 = arith.constant 0 : index
    %c0_19 = arith.constant 0 : index
    %26 = vector.load %arg6[%c0_18, %c0_19] : memref<1x128xf32, #tpu.memory_space<vmem>>, vector<1x128xf32>
    %27 = vector.broadcast %26 : vector<1x128xf32> to vector<128x128xf32>
    %28 = arith.addf %25, %27 : vector<128x128xf32>
    %cst_20 = arith.constant 0.000000e+00 : f32
    %29 = vector.broadcast %cst_20 : f32 to vector<128x128xf32>
    %30 = arith.maximumf %28, %29 : vector<128x128xf32>
    %31 = arith.truncf %30 : vector<128x128xf32> to vector<128x128xbf16>
    %cst_21 = arith.constant 0.000000e+00 : bf16
    %32 = vector.broadcast %cst_21 : bf16 to vector<10x1x128xbf16>
    %c0_22 = arith.constant 0 : index
    %c0_23 = arith.constant 0 : index
    %c0_24 = arith.constant 0 : index
    %33 = vector.load %arg14[%c0_22, %c0_23, %c0_24] : memref<10x24x128xbf16, #tpu.memory_space<vmem>>, vector<10x1x128xbf16>
    tpu.vector_store %arg14[%c0_22, %c0_23, %c0_24], %32 {strides = array<i32>} : memref<10x24x128xbf16, #tpu.memory_space<vmem>>, vector<10x1x128xbf16>,
    %c0_25 = arith.constant 0 : index
    %c17 = arith.constant 17 : index
    %c0_26 = arith.constant 0 : index
    %34 = vector.load %arg14[%c0_25, %c17, %c0_26] : memref<10x24x128xbf16, #tpu.memory_space<vmem>>, vector<10x1x128xbf16>
    tpu.vector_store %arg14[%c0_25, %c17, %c0_26], %32 {strides = array<i32>} : memref<10x24x128xbf16, #tpu.memory_space<vmem>>, vector<10x1x128xbf16>,
    %35 = vector.shape_cast %31 : vector<128x128xbf16> to vector<8x16x128xbf16>
    %c1 = arith.constant 1 : index
    %c1_27 = arith.constant 1 : index
    %c0_28 = arith.constant 0 : index
    %36 = vector.load %arg14[%c1, %c1_27, %c0_28] : memref<10x24x128xbf16, #tpu.memory_space<vmem>>, vector<8x16x128xbf16>
    tpu.vector_store %arg14[%c1, %c1_27, %c0_28], %35 {strides = array<i32>} : memref<10x24x128xbf16, #tpu.memory_space<vmem>>, vector<8x16x128xbf16>,
    %c0_i32_29 = arith.constant 0 : i32
    %c0_i32_30 = arith.constant 0 : i32
    %c0_i32_31 = arith.constant 0 : i32
    %37 = tpu.memref_slice %arg3[%arg0, %5, %c0_i32_31] : memref<2x256x128xbf16, #tpu.memory_space<any>> -> memref<1x16x128xbf16, #tpu.memory_space<any>>
    %38 = tpu.memref_squeeze %37 : memref<1x16x128xbf16, #tpu.memory_space<any>> -> memref<16x128xbf16, #tpu.memory_space<any>>
    %c0_i32_32 = arith.constant 0 : i32
    %c0_i32_33 = arith.constant 0 : i32
    %39 = tpu.memref_slice %arg16[%c0_i32_29, %c0_i32_32, %c0_i32_33] : memref<2x16x128xbf16, #tpu.memory_space<vmem>> -> memref<1x16x128xbf16, #tpu.memory_space<vmem>>
    %40 = tpu.memref_squeeze %39 : memref<1x16x128xbf16, #tpu.memory_space<vmem>> -> memref<16x128xbf16, #tpu.memory_space<vmem>>
    %41 = tpu.memref_slice %arg17[%c0_i32_30] : memref<2x!tpu.dma_semaphore, #tpu.memory_space<semaphore_mem>> -> memref<1x!tpu.dma_semaphore, #tpu.memory_space<semaphore_mem>>
    %42 = tpu.memref_squeeze %41 : memref<1x!tpu.dma_semaphore, #tpu.memory_space<semaphore_mem>> -> memref<!tpu.dma_semaphore, #tpu.memory_space<semaphore_mem>>
    tpu.wait_dma2 semaphore(%42 : memref<!tpu.dma_semaphore, #tpu.memory_space<semaphore_mem>>) src(%38 : memref<16x128xbf16, #tpu.memory_space<any>>) dst(%40 : memref<16x128xbf16, #tpu.memory_space<vmem>>)
    %c1_i32_34 = arith.constant 1 : i32
    %c1_i32_35 = arith.constant 1 : i32
    %c0_i32_36 = arith.constant 0 : i32
    %43 = tpu.memref_slice %arg3[%arg0, %6, %c0_i32_36] : memref<2x256x128xbf16, #tpu.memory_space<any>> -> memref<1x16x128xbf16, #tpu.memory_space<any>>
    %44 = tpu.memref_squeeze %43 : memref<1x16x128xbf16, #tpu.memory_space<any>> -> memref<16x128xbf16, #tpu.memory_space<any>>
    %c0_i32_37 = arith.constant 0 : i32
    %c0_i32_38 = arith.constant 0 : i32
    %45 = tpu.memref_slice %arg16[%c1_i32_34, %c0_i32_37, %c0_i32_38] : memref<2x16x128xbf16, #tpu.memory_space<vmem>> -> memref<1x16x128xbf16, #tpu.memory_space<vmem>>
    %46 = tpu.memref_squeeze %45 : memref<1x16x128xbf16, #tpu.memory_space<vmem>> -> memref<16x128xbf16, #tpu.memory_space<vmem>>
    %47 = tpu.memref_slice %arg17[%c1_i32_35] : memref<2x!tpu.dma_semaphore, #tpu.memory_space<semaphore_mem>> -> memref<1x!tpu.dma_semaphore, #tpu.memory_space<semaphore_mem>>
    %48 = tpu.memref_squeeze %47 : memref<1x!tpu.dma_semaphore, #tpu.memory_space<semaphore_mem>> -> memref<!tpu.dma_semaphore, #tpu.memory_space<semaphore_mem>>
    tpu.wait_dma2 semaphore(%48 : memref<!tpu.dma_semaphore, #tpu.memory_space<semaphore_mem>>) src(%44 : memref<16x128xbf16, #tpu.memory_space<any>>) dst(%46 : memref<16x128xbf16, #tpu.memory_space<vmem>>)
    %c0_39 = arith.constant 0 : index
    %c0_40 = arith.constant 0 : index
    %c0_41 = arith.constant 0 : index
    %49 = vector.load %arg16[%c0_39, %c0_40, %c0_41] : memref<2x16x128xbf16, #tpu.memory_space<vmem>>, vector<2x16x128xbf16>
    %50 = vector.shape_cast %49 : vector<2x16x128xbf16> to vector<32x128xbf16>
    %c0_42 = arith.constant 0 : index
    %c0_43 = arith.constant 0 : index
    %51 = vector.load %arg4[%c0_42, %c0_43] : memref<128x128xbf16, #tpu.memory_space<vmem>>, vector<128x128xbf16>
    %cst_44 = arith.constant dense<0.000000e+00> : vector<32x128xf32>
    %52 = tpu.matmul %50, %51, %cst_44 {dimension_numbers = #tpu.dot_dimension_numbers<[1], [0], [0], [1], [0, 0, 1, 1], [], []>} : vector<32x128xbf16>, vector<128x128xbf16>, vector<32x128xf32> -> vector<32x128xf32>
    %c0_45 = arith.constant 0 : index
    %c0_46 = arith.constant 0 : index
    %53 = vector.load %arg5[%c0_45, %c0_46] : memref<1x128xf32, #tpu.memory_space<vmem>>, vector<1x128xf32>
    %54 = vector.broadcast %53 : vector<1x128xf32> to vector<32x128xf32>
    %55 = arith.mulf %52, %54 : vector<32x128xf32>
    %c0_47 = arith.constant 0 : index
    %c0_48 = arith.constant 0 : index
    %56 = vector.load %arg6[%c0_47, %c0_48] : memref<1x128xf32, #tpu.memory_space<vmem>>, vector<1x128xf32>
    %57 = vector.broadcast %56 : vector<1x128xf32> to vector<32x128xf32>
    %58 = arith.addf %55, %57 : vector<32x128xf32>
    %cst_49 = arith.constant 0.000000e+00 : f32
    %59 = vector.broadcast %cst_49 : f32 to vector<32x128xf32>
    %60 = arith.maximumf %58, %59 : vector<32x128xf32>
    %61 = arith.truncf %60 : vector<32x128xf32> to vector<32x128xbf16>
    %62 = vector.shape_cast %61 : vector<32x128xbf16> to vector<2x16x128xbf16>
    %c0_i32_50 = arith.constant 0 : i32
    %63 = arith.cmpi sgt, %arg1, %c0_i32_50 : i32
    %64 = arith.extui %63 : i1 to i32
    %65 = arith.sitofp %64 : i32 to f32
    %66 = arith.truncf %65 : f32 to bf16
    %c1_i32_51 = arith.constant 1 : i32
    %67 = arith.cmpi slt, %arg1, %c1_i32_51 : i32
    %68 = arith.extui %67 : i1 to i32
    %69 = arith.sitofp %68 : i32 to f32
    %70 = arith.truncf %69 : f32 to bf16
    %71 = vector.extract_strided_slice %62 {offsets = [0, 0, 0], sizes = [1, 16, 128], strides = [1, 1, 1]} : vector<2x16x128xbf16> to vector<1x16x128xbf16>
    %72 = vector.broadcast %66 : bf16 to vector<1x16x128xbf16>
    %73 = arith.mulf %71, %72 : vector<1x16x128xbf16>
    %c0_52 = arith.constant 0 : index
    %c1_53 = arith.constant 1 : index
    %c0_54 = arith.constant 0 : index
    %74 = vector.load %arg14[%c0_52, %c1_53, %c0_54] : memref<10x24x128xbf16, #tpu.memory_space<vmem>>, vector<1x16x128xbf16>
    tpu.vector_store %arg14[%c0_52, %c1_53, %c0_54], %73 {strides = array<i32>} : memref<10x24x128xbf16, #tpu.memory_space<vmem>>, vector<1x16x128xbf16>,
    %75 = vector.extract_strided_slice %62 {offsets = [1, 0, 0], sizes = [1, 16, 128], strides = [1, 1, 1]} : vector<2x16x128xbf16> to vector<1x16x128xbf16>
    %76 = vector.broadcast %70 : bf16 to vector<1x16x128xbf16>
    %77 = arith.mulf %75, %76 : vector<1x16x128xbf16>
    %c9 = arith.constant 9 : index
    %c1_55 = arith.constant 1 : index
    %c0_56 = arith.constant 0 : index
    %78 = vector.load %arg14[%c9, %c1_55, %c0_56] : memref<10x24x128xbf16, #tpu.memory_space<vmem>>, vector<1x16x128xbf16>
    tpu.vector_store %arg14[%c9, %c1_55, %c0_56], %77 {strides = array<i32>} : memref<10x24x128xbf16, #tpu.memory_space<vmem>>, vector<1x16x128xbf16>,
    %c0_57 = arith.constant 0 : index
    %c0_58 = arith.constant 0 : index
    %c0_59 = arith.constant 0 : index
    %79 = vector.load %arg14[%c0_57, %c0_58, %c0_59] : memref<10x24x128xbf16, #tpu.memory_space<vmem>>, vector<8x16x128xbf16>
    %80 = vector.shape_cast %79 : vector<8x16x128xbf16> to vector<128x128xbf16>
    %c0_60 = arith.constant 0 : index
    %c0_61 = arith.constant 0 : index
    %81 = vector.load %arg15[%c0_60, %c0_61] : memref<128x384xbf16, #tpu.memory_space<vmem>>, vector<128x128xbf16>
    tpu.vector_store %arg15[%c0_60, %c0_61], %80 {strides = array<i32>} : memref<128x384xbf16, #tpu.memory_space<vmem>>, vector<128x128xbf16>,
    %c0_62 = arith.constant 0 : index
    %c1_63 = arith.constant 1 : index
    %c0_64 = arith.constant 0 : index
    %82 = vector.load %arg14[%c0_62, %c1_63, %c0_64] : memref<10x24x128xbf16, #tpu.memory_space<vmem>>, vector<8x16x128xbf16>
    %83 = vector.shape_cast %82 : vector<8x16x128xbf16> to vector<128x128xbf16>
    %c0_65 = arith.constant 0 : index
    %c128 = arith.constant 128 : index
    %84 = vector.load %arg15[%c0_65, %c128] : memref<128x384xbf16, #tpu.memory_space<vmem>>, vector<128x128xbf16>
    tpu.vector_store %arg15[%c0_65, %c128], %83 {strides = array<i32>} : memref<128x384xbf16, #tpu.memory_space<vmem>>, vector<128x128xbf16>,
    %c0_66 = arith.constant 0 : index
    %c2 = arith.constant 2 : index
    %c0_67 = arith.constant 0 : index
    %85 = vector.load %arg14[%c0_66, %c2, %c0_67] : memref<10x24x128xbf16, #tpu.memory_space<vmem>>, vector<8x16x128xbf16>
    %86 = vector.shape_cast %85 : vector<8x16x128xbf16> to vector<128x128xbf16>
    %c0_68 = arith.constant 0 : index
    %c256 = arith.constant 256 : index
    %87 = vector.load %arg15[%c0_68, %c256] : memref<128x384xbf16, #tpu.memory_space<vmem>>, vector<128x128xbf16>
    tpu.vector_store %arg15[%c0_68, %c256], %86 {strides = array<i32>} : memref<128x384xbf16, #tpu.memory_space<vmem>>, vector<128x128xbf16>,
    %c0_69 = arith.constant 0 : index
    %c0_70 = arith.constant 0 : index
    %88 = vector.load %arg15[%c0_69, %c0_70] : memref<128x384xbf16, #tpu.memory_space<vmem>>, vector<128x384xbf16>
    %c0_71 = arith.constant 0 : index
    %c0_72 = arith.constant 0 : index
    %89 = vector.load %arg7[%c0_71, %c0_72] : memref<1152x128xbf16, #tpu.memory_space<vmem>>, vector<384x128xbf16>
    %cst_73 = arith.constant dense<0.000000e+00> : vector<128x128xf32>
    %90 = tpu.matmul %88, %89, %cst_73 {dimension_numbers = #tpu.dot_dimension_numbers<[1], [0], [0], [1], [0, 0, 1, 1], [], []>} : vector<128x384xbf16>, vector<384x128xbf16>, vector<128x128xf32> -> vector<128x128xf32>
    %c1_74 = arith.constant 1 : index
    %c0_75 = arith.constant 0 : index
    %c0_76 = arith.constant 0 : index
    %91 = vector.load %arg14[%c1_74, %c0_75, %c0_76] : memref<10x24x128xbf16, #tpu.memory_space<vmem>>, vector<8x16x128xbf16>
    %92 = vector.shape_cast %91 : vector<8x16x128xbf16> to vector<128x128xbf16>
    %c0_77 = arith.constant 0 : index
    %c0_78 = arith.constant 0 : index
    %93 = vector.load %arg15[%c0_77, %c0_78] : memref<128x384xbf16, #tpu.memory_space<vmem>>, vector<128x128xbf16>
    tpu.vector_store %arg15[%c0_77, %c0_78], %92 {strides = array<i32>} : memref<128x384xbf16, #tpu.memory_space<vmem>>, vector<128x128xbf16>,
    %c1_79 = arith.constant 1 : index
    %c1_80 = arith.constant 1 : index
    %c0_81 = arith.constant 0 : index
    %94 = vector.load %arg14[%c1_79, %c1_80, %c0_81] : memref<10x24x128xbf16, #tpu.memory_space<vmem>>, vector<8x16x128xbf16>
    %95 = vector.shape_cast %94 : vector<8x16x128xbf16> to vector<128x128xbf16>
    %c0_82 = arith.constant 0 : index
    %c128_83 = arith.constant 128 : index
    %96 = vector.load %arg15[%c0_82, %c128_83] : memref<128x384xbf16, #tpu.memory_space<vmem>>, vector<128x128xbf16>
    tpu.vector_store %arg15[%c0_82, %c128_83], %95 {strides = array<i32>} : memref<128x384xbf16, #tpu.memory_space<vmem>>, vector<128x128xbf16>,
    %c1_84 = arith.constant 1 : index
    %c2_85 = arith.constant 2 : index
    %c0_86 = arith.constant 0 : index
    %97 = vector.load %arg14[%c1_84, %c2_85, %c0_86] : memref<10x24x128xbf16, #tpu.memory_space<vmem>>, vector<8x16x128xbf16>
    %98 = vector.shape_cast %97 : vector<8x16x128xbf16> to vector<128x128xbf16>
    %c0_87 = arith.constant 0 : index
    %c256_88 = arith.constant 256 : index
    %99 = vector.load %arg15[%c0_87, %c256_88] : memref<128x384xbf16, #tpu.memory_space<vmem>>, vector<128x128xbf16>
    tpu.vector_store %arg15[%c0_87, %c256_88], %98 {strides = array<i32>} : memref<128x384xbf16, #tpu.memory_space<vmem>>, vector<128x128xbf16>,
    %c0_89 = arith.constant 0 : index
    %c0_90 = arith.constant 0 : index
    %100 = vector.load %arg15[%c0_89, %c0_90] : memref<128x384xbf16, #tpu.memory_space<vmem>>, vector<128x384xbf16>
    %c384 = arith.constant 384 : index
    %c0_91 = arith.constant 0 : index
    %101 = vector.load %arg7[%c384, %c0_91] : memref<1152x128xbf16, #tpu.memory_space<vmem>>, vector<384x128xbf16>
    %cst_92 = arith.constant dense<0.000000e+00> : vector<128x128xf32>
    %102 = tpu.matmul %100, %101, %cst_92 {dimension_numbers = #tpu.dot_dimension_numbers<[1], [0], [0], [1], [0, 0, 1, 1], [], []>} : vector<128x384xbf16>, vector<384x128xbf16>, vector<128x128xf32> -> vector<128x128xf32>
    %103 = arith.addf %90, %102 : vector<128x128xf32>
    %c2_93 = arith.constant 2 : index
    %c0_94 = arith.constant 0 : index
    %c0_95 = arith.constant 0 : index
    %104 = vector.load %arg14[%c2_93, %c0_94, %c0_95] : memref<10x24x128xbf16, #tpu.memory_space<vmem>>, vector<8x16x128xbf16>
    %105 = vector.shape_cast %104 : vector<8x16x128xbf16> to vector<128x128xbf16>
    %c0_96 = arith.constant 0 : index
    %c0_97 = arith.constant 0 : index
    %106 = vector.load %arg15[%c0_96, %c0_97] : memref<128x384xbf16, #tpu.memory_space<vmem>>, vector<128x128xbf16>
    tpu.vector_store %arg15[%c0_96, %c0_97], %105 {strides = array<i32>} : memref<128x384xbf16, #tpu.memory_space<vmem>>, vector<128x128xbf16>,
    %c2_98 = arith.constant 2 : index
    %c1_99 = arith.constant 1 : index
    %c0_100 = arith.constant 0 : index
    %107 = vector.load %arg14[%c2_98, %c1_99, %c0_100] : memref<10x24x128xbf16, #tpu.memory_space<vmem>>, vector<8x16x128xbf16>
    %108 = vector.shape_cast %107 : vector<8x16x128xbf16> to vector<128x128xbf16>
    %c0_101 = arith.constant 0 : index
    %c128_102 = arith.constant 128 : index
    %109 = vector.load %arg15[%c0_101, %c128_102] : memref<128x384xbf16, #tpu.memory_space<vmem>>, vector<128x128xbf16>
    tpu.vector_store %arg15[%c0_101, %c128_102], %108 {strides = array<i32>} : memref<128x384xbf16, #tpu.memory_space<vmem>>, vector<128x128xbf16>,
    %c2_103 = arith.constant 2 : index
    %c2_104 = arith.constant 2 : index
    %c0_105 = arith.constant 0 : index
    %110 = vector.load %arg14[%c2_103, %c2_104, %c0_105] : memref<10x24x128xbf16, #tpu.memory_space<vmem>>, vector<8x16x128xbf16>
    %111 = vector.shape_cast %110 : vector<8x16x128xbf16> to vector<128x128xbf16>
    %c0_106 = arith.constant 0 : index
    %c256_107 = arith.constant 256 : index
    %112 = vector.load %arg15[%c0_106, %c256_107] : memref<128x384xbf16, #tpu.memory_space<vmem>>, vector<128x128xbf16>
    tpu.vector_store %arg15[%c0_106, %c256_107], %111 {strides = array<i32>} : memref<128x384xbf16, #tpu.memory_space<vmem>>, vector<128x128xbf16>,
    %c0_108 = arith.constant 0 : index
    %c0_109 = arith.constant 0 : index
    %113 = vector.load %arg15[%c0_108, %c0_109] : memref<128x384xbf16, #tpu.memory_space<vmem>>, vector<128x384xbf16>
    %c768 = arith.constant 768 : index
    %c0_110 = arith.constant 0 : index
    %114 = vector.load %arg7[%c768, %c0_110] : memref<1152x128xbf16, #tpu.memory_space<vmem>>, vector<384x128xbf16>
    %cst_111 = arith.constant dense<0.000000e+00> : vector<128x128xf32>
    %115 = tpu.matmul %113, %114, %cst_111 {dimension_numbers = #tpu.dot_dimension_numbers<[1], [0], [0], [1], [0, 0, 1, 1], [], []>} : vector<128x384xbf16>, vector<384x128xbf16>, vector<128x128xf32> -> vector<128x128xf32>
    %116 = arith.addf %103, %115 : vector<128x128xf32>
    %c0_112 = arith.constant 0 : index
    %c0_113 = arith.constant 0 : index
    %117 = vector.load %arg8[%c0_112, %c0_113] : memref<1x128xf32, #tpu.memory_space<vmem>>, vector<1x128xf32>
    %118 = vector.broadcast %117 : vector<1x128xf32> to vector<128x128xf32>
    %119 = arith.mulf %116, %118 : vector<128x128xf32>
    %c0_114 = arith.constant 0 : index
    %c0_115 = arith.constant 0 : index
    %120 = vector.load %arg9[%c0_114, %c0_115] : memref<1x128xf32, #tpu.memory_space<vmem>>, vector<1x128xf32>
    %121 = vector.broadcast %120 : vector<1x128xf32> to vector<128x128xf32>
    %122 = arith.addf %119, %121 : vector<128x128xf32>
    %cst_116 = arith.constant 0.000000e+00 : f32
    %123 = vector.broadcast %cst_116 : f32 to vector<128x128xf32>
    %124 = arith.maximumf %122, %123 : vector<128x128xf32>
    %125 = arith.truncf %124 : vector<128x128xf32> to vector<128x128xbf16>
    %c0_117 = arith.constant 0 : index
    %c0_118 = arith.constant 0 : index
    %126 = vector.load %arg10[%c0_117, %c0_118] : memref<128x128xbf16, #tpu.memory_space<vmem>>, vector<128x128xbf16>
    %cst_119 = arith.constant dense<0.000000e+00> : vector<128x128xf32>
    %127 = tpu.matmul %125, %126, %cst_119 {dimension_numbers = #tpu.dot_dimension_numbers<[1], [0], [0], [1], [0, 0, 1, 1], [], []>} : vector<128x128xbf16>, vector<128x128xbf16>, vector<128x128xf32> -> vector<128x128xf32>
    %c0_120 = arith.constant 0 : index
    %c0_121 = arith.constant 0 : index
    %128 = vector.load %arg11[%c0_120, %c0_121] : memref<1x128xf32, #tpu.memory_space<vmem>>, vector<1x128xf32>
    %129 = vector.broadcast %128 : vector<1x128xf32> to vector<128x128xf32>
    %130 = arith.mulf %127, %129 : vector<128x128xf32>
    %c0_122 = arith.constant 0 : index
    %c0_123 = arith.constant 0 : index
    %131 = vector.load %arg12[%c0_122, %c0_123] : memref<1x128xf32, #tpu.memory_space<vmem>>, vector<1x128xf32>
    %132 = vector.broadcast %131 : vector<1x128xf32> to vector<128x128xf32>
    %133 = arith.addf %130, %132 : vector<128x128xf32>
    %134 = arith.extf %20 : vector<128x128xbf16> to vector<128x128xf32>
    %135 = arith.addf %133, %134 : vector<128x128xf32>
    %cst_124 = arith.constant 0.000000e+00 : f32
    %136 = vector.broadcast %cst_124 : f32 to vector<128x128xf32>
    %137 = arith.maximumf %135, %136 : vector<128x128xf32>
    %138 = arith.truncf %137 : vector<128x128xf32> to vector<128x128xbf16>
    %139 = vector.shape_cast %138 : vector<128x128xbf16> to vector<1x128x128xbf16>
    %c0_125 = arith.constant 0 : index
    %c0_126 = arith.constant 0 : index
    %c0_127 = arith.constant 0 : index
    %140 = vector.load %arg13[%c0_125, %c0_126, %c0_127] : memref<1x128x128xbf16, #tpu.memory_space<vmem>>, vector<1x128x128xbf16>
    tpu.vector_store %arg13[%c0_125, %c0_126, %c0_127], %139 {strides = array<i32>} : memref<1x128x128xbf16, #tpu.memory_space<vmem>>, vector<1x128x128xbf16>,
    return
  }
  func.func @transform_0(%arg0: i32, %arg1: i32) -> (i32, i32, i32) {
    %c0_i32 = arith.constant 0 : i32
    %c0_i32_0 = arith.constant 0 : i32
    return %arg0, %arg1, %c0_i32 : i32, i32, i32
  }
  func.func @transform_2(%arg0: i32, %arg1: i32) -> (i32, i32) {
    %c0_i32 = arith.constant 0 : i32
    %c0_i32_0 = arith.constant 0 : i32
    %c0_i32_1 = arith.constant 0 : i32
    return %c0_i32, %c0_i32_0 : i32, i32
  }
  func.func @transform_3(%arg0: i32, %arg1: i32) -> (i32, i32) {
    %c0_i32 = arith.constant 0 : i32
    %c0_i32_0 = arith.constant 0 : i32
    %c0_i32_1 = arith.constant 0 : i32
    return %c0_i32, %c0_i32_0 : i32, i32
  }
  func.func @transform_4(%arg0: i32, %arg1: i32) -> (i32, i32) {
    %c0_i32 = arith.constant 0 : i32
    %c0_i32_0 = arith.constant 0 : i32
    %c0_i32_1 = arith.constant 0 : i32
    return %c0_i32, %c0_i32_0 : i32, i32
  }
  func.func @transform_5(%arg0: i32, %arg1: i32) -> (i32, i32) {
    %c0_i32 = arith.constant 0 : i32
    %c0_i32_0 = arith.constant 0 : i32
    %c0_i32_1 = arith.constant 0 : i32
    return %c0_i32, %c0_i32_0 : i32, i32
  }
  func.func @transform_6(%arg0: i32, %arg1: i32) -> (i32, i32) {
    %c0_i32 = arith.constant 0 : i32
    %c0_i32_0 = arith.constant 0 : i32
    %c0_i32_1 = arith.constant 0 : i32
    return %c0_i32, %c0_i32_0 : i32, i32
  }
  func.func @transform_7(%arg0: i32, %arg1: i32) -> (i32, i32) {
    %c0_i32 = arith.constant 0 : i32
    %c0_i32_0 = arith.constant 0 : i32
    %c0_i32_1 = arith.constant 0 : i32
    return %c0_i32, %c0_i32_0 : i32, i32
  }
  func.func @transform_8(%arg0: i32, %arg1: i32) -> (i32, i32) {
    %c0_i32 = arith.constant 0 : i32
    %c0_i32_0 = arith.constant 0 : i32
    %c0_i32_1 = arith.constant 0 : i32
    return %c0_i32, %c0_i32_0 : i32, i32
  }
  func.func @transform_9(%arg0: i32, %arg1: i32) -> (i32, i32) {
    %c0_i32 = arith.constant 0 : i32
    %c0_i32_0 = arith.constant 0 : i32
    %c0_i32_1 = arith.constant 0 : i32
    return %c0_i32, %c0_i32_0 : i32, i32
  }
  func.func @transform_10(%arg0: i32, %arg1: i32) -> (i32, i32) {
    %c0_i32 = arith.constant 0 : i32
    %c0_i32_0 = arith.constant 0 : i32
    %c0_i32_1 = arith.constant 0 : i32
    return %c0_i32, %c0_i32_0 : i32, i32
  }
  func.func @transform_11(%arg0: i32, %arg1: i32) -> (i32, i32, i32) {
    %c0_i32 = arith.constant 0 : i32
    %c0_i32_0 = arith.constant 0 : i32
    return %arg0, %arg1, %c0_i32 : i32, i32, i32
  }
}

</mosaic_0001>

<bundles_post_ra>
// kernel: tpu_custom_call.1
= control target key start
LH: loop header
LB: loop body
LE: loop exit
PB: predicated region body
PF: predicated region fallthrough
CT: control target
= control target key end

     0   :  { %s7167_s0 = inlined_call_operand.hbm [shape: bf16[2,256,128], index: 0, kind: input, shape index: {}]   ;;  %s7168_s1 = inlined_call_operand.hbm [shape: bf16[2,256,128], index: 1, kind: input, shape index: {}]   ;;  %s7169_s2 = inlined_call_operand.hbm [shape: bf16[128,128], index: 2, kind: input, shape index: {}]   ;;  %s7170_s3 = inlined_call_operand.vmem [shape: f32[1,128], index: 3, kind: input, shape index: {}]   ;;  %s7171_s4 = inlined_call_operand.vmem [shape: f32[1,128], index: 4, kind: input, shape index: {}]   ;;  %s7172_s5 = inlined_call_operand.hbm [shape: bf16[1152,128], index: 5, kind: input, shape index: {}]   ;;  %s7173_s6 = inlined_call_operand.vmem [shape: f32[1,128], index: 6, kind: input, shape index: {}]   ;;  %s7174_s7 = inlined_call_operand.vmem [shape: f32[1,128], index: 7, kind: input, shape index: {}]   ;;  %s7175_s8 = inlined_call_operand.hbm [shape: bf16[128,128], index: 8, kind: input, shape index: {}]   ;;  %s7176_s9 = inlined_call_operand.vmem [shape: f32[1,128], index: 9, kind: input, shape index: {}]   ;;  %s7177_s10 = inlined_call_operand.vmem [shape: f32[1,128], index: 10, kind: input, shape index: {}]   ;;  %s7178_s11 = inlined_call_operand.hbm [shape: bf16[2,256,128], index: 11, kind: output, shape index: {}]  }
   0x1   :  { %7196 = sst [smem:[#allocation31_spill]] %s7167_s0 }
   0x2   :  { %7197 = sst [smem:[#allocation32_spill]] %s7168_s1 }
   0x3   :  { %7198 = sst [smem:[#allocation33_spill]] %s7169_s2 }
   0x4   :  { %7199 = sst [smem:[#allocation34_spill]] %s7170_s3 }
   0x5   :  { %7200 = sst [smem:[#allocation35_spill]] %s7171_s4 }
   0x6   :  { %7201 = sst [smem:[#allocation36_spill]] %s7172_s5 }
   0x7   :  { %7202 = sst [smem:[#allocation37_spill]] %s7173_s6 }
   0x8   :  { %7203 = sst [smem:[#allocation38_spill]] %s7174_s7 }
   0x9   :  { %7204 = sst [smem:[#allocation39_spill]] %s7175_s8 }
   0xa   :  { %7205 = sst [smem:[#allocation40_spill]] %s7176_s9 }
   0xb   :  { %7206 = sst [smem:[#allocation41_spill]] %s7177_s10 }
   0xc   :  { %7207 = sst [smem:[#allocation42_spill]] %s7178_s11 }
   0xd   :  { %16 = vsyncpa [#allocation7], 0 }
   0xe   :  { %18 = vsyncpa [#allocation7 + $0x1], 0 }
   0xf   :  { %19 = vsyncpa [#allocation10], 0 }
  0x10   :  { %20 = vsyncpa [#allocation13], 0 }
  0x11   :  { %21 = vsyncpa [#allocation8], 0 }
  0x12   :  { %23 = vsyncpa [#allocation8 + $0x1], 0  ;;  %s6082_s17 = smov 0   ;;  %s6084_s18 = smov 0  }
  0x13   :  { %s6086_s19 = smov 0   ;;  %s6088_s20 = smov 0  }
  0x14   :  { %s6090_s21 = smov 0   ;;  %s6092_s22 = smov 0  }
  0x15   :  { %s6094_s23 = smov 0   ;;  %s6096_s24 = smov 0  }
  0x16 LB: > { %7208 = sst [smem:[#allocation27_spill]] %s5981_s17  ;;  %s4589_s25 = sadd.s32 4294967295, %s6009_s24   ;;  %s6009_s24 = sphi %s6096_s24, %s29_s24   ;;  %s6005_s23 = sphi %s6094_s23, %s7264_s23   ;;  %s6001_s22 = sphi %s6092_s22, %s7263_s22   ;;  %s5997_s21 = sphi %s6090_s21, %s7262_s21   ;;  %s5993_s20 = sphi %s6088_s20, %s7261_s20   ;;  %s5989_s19 = sphi %s6086_s19, %s7260_s19   ;;  %s5985_s18 = sphi %s6084_s18, %s7259_s18   ;;  %s5981_s17 = sphi %s6082_s17, %s7258_s17  }
  0x17   : > { %s4590_s26 = sadd.s32 4294967294, %s6009_s24   ;;  %p63_p0 = scmp.ne.s32.totalorder %s5985_s18, %s5981_s17 }
  0x18   : > { %p6126_p1 = scmp.eq.s32.totalorder %s4589_s25, 0  ;;  %p6130_p2 = scmp.eq.s32.totalorder %s4589_s25, 3 }
  0x19   : > { %p284_p3 = scmp.eq.s32.totalorder %s4590_s26, 3  ;;  %p4591_p5 = scmp.ge.s32.totalorder %s6009_s24, 1 }
  0x1a   : > { %s7209_s27 = scalar_select %p6126_p1, 1, 0 }
  0x1b   : > { %s7210_s28 = scalar_select %p6130_p2, 1, 0 }
  0x1c   : > { %p6136_p4 = por %p6126_p1, %p63_p0  ;;  %p6141_p6 = por %p284_p3, %p63_p0 }
  0x1d   : > { %p291_p7 = scmp.lt.s32.totalorder %s6009_s24, 5  ;;  %s6011_s13 = smov [#allocation9]  }
  0x1e   : > { %s7211_s29 = scalar_select %p6136_p4, 1, 0 }
  0x1f   : > { %s7212_s30 = scalar_select %p6141_p6, 1, 0 }
  0x20   : > { %p6146_p8 = pnand %p4591_p5, %p291_p7  ;;  %s303_s14 = sshll.u32 %s6011_s13, 4  ;;  %s6150_s14 = int_to_ptr.vmem [resolvable:$true] %s303_s14 }
  0x21   : > { %7213 = sst [smem:[#allocation28_spill]] %s7212_s30  ;;  %s6012_s16 = smov [#allocation11]  }
  0x22   : > { %s7214_s12 = scalar_select %p6146_p8, 1, 0 }
  0x23   : > { %p5502_p9 = pneg %p6146_p8  ;;  %s322_s25 = sshll.u32 %s6012_s16, 4  ;;  %s6160_s25 = int_to_ptr.vmem [resolvable:$true] %s322_s25 }
  0x24   : > { %s6013_s26 = smov [#allocation12]   ;;  %s7216_s2 = sld [smem:[#allocation33_spill]] }
  0x25   : > { %p6156_p10 = pnand %p5502_p9, %p6126_p1  ;;  %s6162_s30 = sshll.u32 %s6013_s26, 4  ;;  %s342_s30 = int_to_ptr.vmem [resolvable:$true] %s6162_s30 }
  0x27   : > { %p6172_p12 = pneg %p6156_p10 }
  0x2a   : > { %s5737_s13 = scalar_lea.hbm %s7216_s2, 1024 }
  0x2b   : > { %p5738_p11 = scmp.ne.s32.totalorder %s7216_s2, %s5737_s13  ;;  %p5744_p3 = scmp.lt.u32.totalorder %s5737_s13, %s7216_s2 }
  0x2d   : > { %p5740_p13 = pnand %p6172_p12, %p5738_p11 }
  0x2f   : > { %p5741_p0 = pneg %p5740_p13 }
  0x31   : > { %p5746_p5 = pnand %p5744_p3, %p5741_p0 }
  0x33   : > { %5749 = shalt.err (!%p5746_p5)
}
  0x34   : > { %s5750_s9 = scalar_lea.vmem %s6150_s14, 1024  ;;  %p5758_p1 = scmp.lt.s32.totalorder %s6150_s14, %s6150_s14 }
  0x35   : > { %p5751_p7 = scmp.ne.s32.totalorder %s6150_s14, %s5750_s9  ;;  %p5759_p4 = scmp.lt.s32.totalorder %s5750_s9, %s5750_s9 }
  0x37   : > { %p5753_p9 = pnand %p5751_p7, %p6172_p12  ;;  %p5760_p11 = por %p5759_p4, %p5758_p1 }
  0x39   : > { %p5754_p6 = pneg %p5753_p9 }
  0x3b   : > { %p5761_p13 = pnand %p5760_p11, %p5754_p6 }
  0x3d   : > { %5764 = shalt.err (!%p5761_p13)
}
  0x3e   : > { %s7189_s10 = smov 64   ;;  %s7190_s11 = smov 4  }
  0x3f   : > { %5505 = dma.hbm_to_vmem [thread:$0]  (!%p6156_p10), %s7216_s2, 1024, %s6150_s14, [#allocation10], %s7189_s10, %s7189_s10, %s7190_s11  }
  0x40   : > { %s7218_s5 = sld [smem:[#allocation36_spill]] }
  0x46   : > { %s5765_s9 = scalar_lea.hbm %s7218_s5, 9216 }
  0x47   : > { %p5766_p1 = scmp.ne.s32.totalorder %s7218_s5, %s5765_s9  ;;  %p5772_p0 = scmp.lt.u32.totalorder %s5765_s9, %s7218_s5 }
  0x49   : > { %p5768_p4 = pnand %p5766_p1, %p6172_p12 }
  0x4b   : > { %p5769_p6 = pneg %p5768_p4 }
  0x4d   : > { %p5774_p3 = pnand %p5772_p0, %p5769_p6 }
  0x4f   : > { %5777 = shalt.err (!%p5774_p3)
}
  0x50   : > { %s5778_s14 = scalar_lea.vmem %s6160_s25, 9216  ;;  %p5786_p11 = scmp.lt.s32.totalorder %s6160_s25, %s6160_s25 }
  0x51   : > { %p5779_p5 = scmp.ne.s32.totalorder %s6160_s25, %s5778_s14  ;;  %p5787_p13 = scmp.lt.s32.totalorder %s5778_s14, %s5778_s14 }
  0x53   : > { %p5781_p7 = pnand %p5779_p5, %p6172_p12  ;;  %p5788_p1 = por %p5787_p13, %p5786_p11 }
  0x55   : > { %p5782_p9 = pneg %p5781_p7 }
  0x57   : > { %p5789_p4 = pnand %p5788_p1, %p5782_p9 }
  0x59   : > { %5792 = shalt.err (!%p5789_p4)
}
  0x5a   : > { %5508 = dma.hbm_to_vmem [thread:$0]  (!%p6156_p10), %s7218_s5, 9216, %s6160_s25, [#allocation10], %s7189_s10, %s7189_s10, %s7190_s11  }
  0x5b   : > { %s7219_s8 = sld [smem:[#allocation39_spill]] }
  0x61   : > { %s5793_s17 = scalar_lea.hbm %s7219_s8, 1024 }
  0x62   : > { %p5794_p6 = scmp.ne.s32.totalorder %s7219_s8, %s5793_s17  ;;  %p5800_p5 = scmp.lt.u32.totalorder %s5793_s17, %s7219_s8 }
  0x64   : > { %p5796_p0 = pnand %p5794_p6, %p6172_p12 }
  0x66   : > { %p5797_p3 = pneg %p5796_p0 }
  0x68   : > { %p5802_p7 = pnand %p5800_p5, %p5797_p3 }
  0x6a   : > { %5805 = shalt.err (!%p5802_p7)
}
  0x6b   : > { %s5806_s14 = scalar_lea.vmem %s342_s30, 1024  ;;  %p5814_p1 = scmp.lt.s32.totalorder %s342_s30, %s342_s30 }
  0x6c   : > { %p5807_p9 = scmp.ne.s32.totalorder %s342_s30, %s5806_s14  ;;  %p5815_p4 = scmp.lt.s32.totalorder %s5806_s14, %s5806_s14 }
  0x6e   : > { %p5809_p11 = pnand %p5807_p9, %p6172_p12  ;;  %p5816_p8 = por %p5815_p4, %p5814_p1 }
  0x70   : > { %p5810_p13 = pneg %p5809_p11 }
  0x72   : > { %p5817_p2 = pnand %p5816_p8, %p5810_p13 }
  0x74   : > { %5820 = shalt.err (!%p5817_p2)
}
  0x75   : > { %5511 = dma.hbm_to_vmem [thread:$0]  (!%p6156_p10), %s7219_s8, 1024, %s342_s30, [#allocation13], %s7189_s10, %s7189_s10, %s7190_s11  }
  0x76   : > { %s38_s7 = sadd.s32 1, %s6001_s22  ;;  %s41_s15 = sadd.s32 1, %s6005_s23 }
  0x77   : > { %p39_p2 = scmp.ge.s32.totalorder %s38_s7, 2  ;;  %s50_s3 = sadd.s32 1, %s5989_s19 }
  0x78   : > { %p57_p8 = scmp.ne.s32.totalorder %s5989_s19, %s5985_s18  ;;  %p58_p12 = scmp.eq.s32.totalorder %s6009_s24, 0 }
  0x79   : > { %s7266_s7 = smov (%p39_p2, %s38_s7), 0  ;;  %s7268_s15 = smov (!%p39_p2, %s41_s15), %s6005_s23 }
  0x7a   : > { %s46_s4 = ssub.s32 %s6001_s22, %s7266_s7  ;;  %p43_p6 = scmp.ge.s32.totalorder %s7268_s15, 2 }
  0x7b   : > { %p7220_p0 = scmp.ne.s32.totalorder %s7210_s28, 0  ;;  %p6261_p10 = por %p58_p12, %p57_p8 }
  0x7c   : > { %p5523_p5 = scmp.lt.s32.totalorder %s6009_s24, 4  ;;  %s7270_s15 = smov (%p43_p6, %s7268_s15), 0 }
  0x7d   : > { %p6257_p3 = por %p7220_p0, %p57_p8  ;;  %7223 = sst [smem:[#allocation29_spill]] %s7270_s15 }
  0x7e   : > { %s361_s17 = sand.u32 1, %s5989_s19   ;;  %s4597_s13 = sshll.u32 %s6001_s22, 4 }
  0x7f   : > { %s45_s16 = ssub.s32 %s6005_s23, %s7270_s15  ;;  %s4596_s9 = sshll.u32 %s361_s17, 6 }
  0x80   : > { %s47_s26 = sor.u32 %s46_s4, %s45_s16  ;;  %s4598_s28 = sshll.u32 %s6005_s23, 5 }
  0x81   : > { %p48_p7 = scmp.eq.s32.totalorder %s47_s26, 0  ;;  %s365_s14 = scalar_lea.vmem [#allocation6], %s4596_s9 }
  0x82   : > { %s374_s25 = sshll.u32 %s365_s14, 4  ;;  %s371_s10 = sadd.s32 %s4598_s28, %s4597_s13  ;;  %s6276_s25 = int_to_ptr.vmem [resolvable:$true] %s374_s25 }
  0x83   : > { %s6274_s1 = scalar_select %p48_p7, %s5989_s19, %s50_s3  }
  0x84   : > { %s4599_s11 = sshll.u32 %s371_s10, 6  ;;  %p6282_p9 = pnand %p5523_p5, %p6261_p10 }
  0x85   : > { %s7225_s0 = sld [smem:[#allocation31_spill]]  ;;  %s6291_s3 = scalar_lea.sflag [#allocation7], %s361_s17 }
  0x86   : > { %p5823_p13 = pneg %p6282_p9 }
  0x8b   : > { %s6289_s4 = scalar_lea.hbm %s7225_s0, %s4599_s11  ;;  %s5826_s8 = scalar_lea.hbm %s7225_s0, 4096 }
  0x8c   : > { %s5821_s10 = scalar_lea.hbm %s6289_s4, 1024  ;;  %p5827_p2 = scmp.lt.u32.totalorder %s6289_s4, %s7225_s0 }
  0x8d   : > { %p5822_p11 = scmp.ne.s32.totalorder %s6289_s4, %s5821_s10  ;;  %p5828_p8 = scmp.lt.u32.totalorder %s5826_s8, %s5821_s10 }
  0x8e   : > { %p5830_p6 = scmp.lt.u32.totalorder %s5821_s10, %s6289_s4 }
  0x8f   : > { %p5824_p1 = pnand %p5823_p13, %p5822_p11  ;;  %p5829_p12 = por %p5828_p8, %p5827_p2 }
  0x91   : > { %p5825_p4 = pneg %p5824_p1  ;;  %p5831_p0 = por %p5830_p6, %p5829_p12 }
  0x93   : > { %p5832_p10 = pnand %p5831_p0, %p5825_p4 }
  0x95   : > { %5835 = shalt.err (!%p5832_p10)
}
  0x96   : > { %s5836_s17 = scalar_lea.vmem %s6276_s25, 1024  ;;  %s6016_s16 = smov [#allocation6]  }
  0x97   : > { %p5837_p5 = scmp.ne.s32.totalorder %s6276_s25, %s5836_s17  ;;  %s5841_s26 = sshll.u32 %s6016_s16, 4  ;;  %s5842_s26 = int_to_ptr.vmem [resolvable:$false] %s5841_s26 }
  0x98   : > { %s5843_s9 = scalar_lea.vmem %s5842_s26, 2048  ;;  %p5844_p1 = scmp.lt.s32.totalorder %s6276_s25, %s5842_s26 }
  0x99   : > { %p5839_p7 = pnand %p5837_p5, %p5823_p13  ;;  %p5845_p2 = scmp.lt.s32.totalorder %s5843_s9, %s5836_s17 }
  0x9b   : > { %p5840_p11 = pneg %p5839_p7  ;;  %p5846_p8 = por %p5845_p2, %p5844_p1 }
  0x9d   : > { %p5847_p12 = pnand %p5846_p8, %p5840_p11 }
  0x9f   : > { %5850 = shalt.err (!%p5847_p12)
}
  0xa0   : > { %s7226_s28 = smov 4   ;;  %s7227_s14 = smov 64  }
  0xa1   : > { %5515 = dma.hbm_to_vmem [thread:$0]  (!%p6282_p9), %s6289_s4, 1024, %s6276_s25, %s6291_s3, %s7227_s14, %s7227_s14, %s7226_s28  }
  0xa2   : > { %p7228_p13 = scmp.ne.s32.totalorder %s7214_s12, 0 }
  0xa4   : > { %386 = sbr.rel (%p7228_p13) target bundleno = 1356 (0x54c), region = 60 }
  0xab   : > { %s6325_s10 = sand.u32 1, %s5985_s18   ;;  %p7229_p4 = scmp.ne.s32.totalorder %s7211_s29, 0 }
  0xac   : > { %s7191_s30 = sshll.u32 %s6325_s10, 6  ;;  %s389_s5 = scalar_lea.sflag [#allocation7], %s6325_s10 }
  0xad   : > { %s6331_s2 = scalar_lea.vmem [#allocation6], %s7191_s30 }
  0xae   : > { %5960 = dma.done.wait (%p7229_p4), %s389_s5, 1024  }
  0xaf   : > { %5962 = vsyncadd (%p7229_p4), %s389_s5, 4294966272  ;;  %p7230_p9 = scmp.ne.s32.totalorder %s7209_s27, 0 }
  0xb1   : > { %5964 = dma.done.wait (%p7230_p9), [#allocation10], 10240  }
  0xb2   : > { %5966 = vsyncadd (%p7230_p9), [#allocation10], 4294957056 }
  0xb3   : > { %5968 = dma.done.wait (%p7230_p9), [#allocation13], 1024  }
  0xb4   : > { %5970 = vsyncadd (%p7230_p9), [#allocation13], 4294966272  ;;  %v5601_v0 = vld [vmem:[#allocation9] sm:$0xff]   ;;  %v5602_v1 = vld [vmem:[#allocation9 + $0x8] sm:$0xff]   ;;  %vm783_vm0 = vcmask 1040384   ;;  %s4606_s27 = sshll.u32 %s5993_s20, 3 }
  0xb5   : > { %5226 = vmatprep.subr.bf16.mxu0 %v5601_v0  ;;  %v5603_v2 = vld [vmem:[#allocation9 + $0x10] sm:$0xff]   ;;  %v5604_v3 = vld [vmem:[#allocation9 + $0x18] sm:$0xff]   ;;  %v6346_v4 = vld [vmem:[%s6331_s2] sm:$0xff]   ;;  %vm784_vm1 = vsmask.f32 256  ;;  %s4607_s29 = sadd.s32 4294967295, %s4606_s27 }
  0xb6   : > { %5227 = vmatpush3.bf16.msra.mxu0 %v5601_v0  ;;  %5242 = vmatprep.mubr.bf16.mxu0 %v6346_v4  ;;  %v5605_v5 = vld [vmem:[#allocation9 + $0x20] sm:$0xff]   ;;  %v5606_v6 = vld [vmem:[#allocation9 + $0x28] sm:$0xff]   ;;  %v5607_v7 = vld [vmem:[#allocation9 + $0x30] sm:$0xff]   ;;  %vm816_vm3 = vsmask.f32 7938  ;;  %p446_p6 = scmp.gt.s32.totalorder %s4607_s29, 0 }
  0xb7   : > { %5228 = vmatprep.subr.bf16.mxu0 %v5602_v1  ;;  %v5608_v8 = vld [vmem:[#allocation9 + $0x38] sm:$0xff]   ;;  %v6350_v9 = vld [vmem:[%s6331_s2 + $0x8] sm:$0xff]   ;;  %v6353_v10 = vld [vmem:[%s6331_s2 + $0x10] sm:$0xff]   ;;  %s448_s12 = sadd.s32 8, %s4606_s27  ;;  %s6431_s3 = sshll.u32 %s5997_s21, 5 }
  0xb8   : > { %v6358_v11 = vld [vmem:[%s6331_s2 + $0x18] sm:$0xff]   ;;  %v6361_v12 = vld [vmem:[%s6331_s2 + $0x20] sm:$0xff]   ;;  %v6366_v13 = vld [vmem:[%s6331_s2 + $0x28] sm:$0xff]   ;;  %p449_p0 = scmp.lt.s32.totalorder %s448_s12, 15  ;;  %s7272_s29 = smov (!%p446_p6, %s4607_s29), 0 }
  0xb9   : > { %v6369_v14 = vld [vmem:[%s6331_s2 + $0x30] sm:$0xff]   ;;  %v6374_v15 = vld [vmem:[%s6331_s2 + $0x38] sm:$0xff]   ;;  %vm6378_vm2 = vmand %vm783_vm0, %vm784_vm1  ;;  %s4608_s25 = sshll.u32 %s7272_s29, 4  ;;  %s6017_s13 = smov [#allocation4]  }
  0xba   : > { %5229 = vmatpush3.bf16.msra.mxu0 %v5602_v1  ;;  %7231 = vst [vmem:[#allocation30_spill] sm:$0xff] %v6369_v14  ;;  %v786_v17 = vld [vmem:[#allocation2] sm:$0x1]  ;;  %v792_v18 = vld [vmem:[#allocation2 + $0x18] sm:$0x1]  ;;  %vm6387_vm4 = vmand %vm783_vm0, %vm816_vm3  ;;  %s7274_s12 = smov (!%p449_p0, %s448_s12), 15 }
  0xbb   : > { %5230 = vmatprep.subr.bf16.mxu0 %v5603_v2  ;;  %v787_v19 = vsel %vm6378_vm2, 0, %v786_v17  ;;  %v793_v20 = vsel %vm6378_vm2, 0, %v792_v18  ;;  %v813_v21 = vld [vmem:[#allocation2 + $0x6c] sm:$0x1]  ;;  %v818_v23 = vld [vmem:[#allocation2 + $0x8] sm:$0x1] }
  0xbc   : > { %788 = vst [vmem:[#allocation2] sm:$0x1] %v787_v19  ;;  %794 = vst [vmem:[#allocation2 + $0x18] sm:$0x1] %v793_v20  ;;  %v814_v24 = vsel %vm6378_vm2, 0, %v813_v21  ;;  %v819_v25 = vsel %vm6387_vm4, 0, %v818_v23 }
  0xbd   : > { %v845_v26 = vld [vmem:[#allocation2 + $0x74] sm:$0x1]  ;;  %v789_v27 = vld [vmem:[#allocation2 + $0xc] sm:$0x1]  ;;  %815 = vst [vmem:[#allocation2 + $0x6c] sm:$0x1] %v814_v24 }
  0xbe   : > { %5231 = vmatpush3.bf16.msra.mxu0 %v5603_v2  ;;  %820 = vst [vmem:[#allocation2 + $0x8] sm:$0x1] %v819_v25  ;;  %v846_v28 = vsel %vm6387_vm4, 0, %v845_v26  ;;  %v790_v29 = vsel %vm6378_vm2, 0, %v789_v27  ;;  %v824_v30 = vld [vmem:[#allocation2 + $0x20] sm:$0x1] }
  0xbf   : > { %5232 = vmatprep.subr.bf16.mxu0 %v5604_v3  ;;  %v821_v31 = vld [vmem:[#allocation2 + $0x14] sm:$0x1]  ;;  %847 = vst [vmem:[#allocation2 + $0x74] sm:$0x1] %v846_v28  ;;  %791 = vst [vmem:[#allocation2 + $0xc] sm:$0x1] %v790_v29 }
  0xc0   : > { %v825_v32 = vsel %vm6387_vm4, 0, %v824_v30  ;;  %v822_v33 = vsel %vm6387_vm4, 0, %v821_v31  ;;  %v798_v34 = vld [vmem:[#allocation2 + $0x30] sm:$0x1]  ;;  %v795_v36 = vld [vmem:[#allocation2 + $0x24] sm:$0x1] }
  0xc1   : > { %826 = vst [vmem:[#allocation2 + $0x20] sm:$0x1] %v825_v32  ;;  %823 = vst [vmem:[#allocation2 + $0x14] sm:$0x1] %v822_v33  ;;  %v799_v35 = vsel %vm6378_vm2, 0, %v798_v34  ;;  %v796_v37 = vsel %vm6378_vm2, 0, %v795_v36 }
  0xc2   : > { %5233 = vmatpush3.bf16.msra.mxu0 %v5604_v3  ;;  %800 = vst [vmem:[#allocation2 + $0x30] sm:$0x1] %v799_v35  ;;  %797 = vst [vmem:[#allocation2 + $0x24] sm:$0x1] %v796_v37  ;;  %v830_v38 = vld [vmem:[#allocation2 + $0x38] sm:$0x1] }
  0xc3   : > { %5234 = vmatprep.subr.bf16.mxu0 %v5605_v5  ;;  %v831_v39 = vsel %vm6387_vm4, 0, %v830_v38  ;;  %v827_v40 = vld [vmem:[#allocation2 + $0x2c] sm:$0x1]  ;;  %v804_v42 = vld [vmem:[#allocation2 + $0x48] sm:$0x1]  ;;  %s453_s4 = sshra.s32 %s4608_s25, 3 }
  0xc4   : > { %832 = vst [vmem:[#allocation2 + $0x38] sm:$0x1] %v831_v39  ;;  %v828_v41 = vsel %vm6387_vm4, 0, %v827_v40  ;;  %v805_v43 = vsel %vm6378_vm2, 0, %v804_v42  ;;  %v801_v44 = vld [vmem:[#allocation2 + $0x3c] sm:$0x1]  ;;  %s456_s8 = sadd.s32 %s6431_s3, %s453_s4 }
  0xc5   : > { %829 = vst [vmem:[#allocation2 + $0x2c] sm:$0x1] %v828_v41  ;;  %806 = vst [vmem:[#allocation2 + $0x48] sm:$0x1] %v805_v43  ;;  %v802_v45 = vsel %vm6378_vm2, 0, %v801_v44  ;;  %s4611_s11 = sshll.u32 %s456_s8, 6 }
  0xc6   : > { %5235 = vmatpush3.bf16.msra.mxu0 %v5605_v5  ;;  %v836_v46 = vld [vmem:[#allocation2 + $0x50] sm:$0x1]  ;;  %803 = vst [vmem:[#allocation2 + $0x3c] sm:$0x1] %v802_v45  ;;  %v833_v48 = vld [vmem:[#allocation2 + $0x44] sm:$0x1] }
  0xc7   : > { %5236 = vmatprep.subr.bf16.mxu0 %v5606_v6  ;;  %v837_v47 = vsel %vm6387_vm4, 0, %v836_v46  ;;  %v834_v49 = vsel %vm6387_vm4, 0, %v833_v48  ;;  %v810_v50 = vld [vmem:[#allocation2 + $0x60] sm:$0x1]  ;;  %v807_v52 = vld [vmem:[#allocation2 + $0x54] sm:$0x1] }
  0xc8   : > { %838 = vst [vmem:[#allocation2 + $0x50] sm:$0x1] %v837_v47  ;;  %835 = vst [vmem:[#allocation2 + $0x44] sm:$0x1] %v834_v49  ;;  %v811_v51 = vsel %vm6378_vm2, 0, %v810_v50  ;;  %v808_v53 = vsel %vm6378_vm2, 0, %v807_v52 }
  0xc9   : > { %812 = vst [vmem:[#allocation2 + $0x60] sm:$0x1] %v811_v51  ;;  %809 = vst [vmem:[#allocation2 + $0x54] sm:$0x1] %v808_v53  ;;  %v842_v54 = vld [vmem:[#allocation2 + $0x68] sm:$0x1] }
  0xca   : > { %5237 = vmatpush3.bf16.msra.mxu0 %v5606_v6  ;;  %v843_v55 = vsel %vm6387_vm4, 0, %v842_v54  ;;  %v839_v56 = vld [vmem:[#allocation2 + $0x5c] sm:$0x1]  ;;  %s466_s17 = sshll.u32 %s6017_s13, 4  ;;  %s7236_s9 = sld [smem:[#allocation32_spill]]  ;;  %s6437_s17 = int_to_ptr.vmem [resolvable:$true] %s466_s17 }
  0xcb   : > { %5238 = vmatprep.subr.bf16.mxu0 %v5607_v7  ;;  %844 = vst [vmem:[#allocation2 + $0x68] sm:$0x1] %v843_v55  ;;  %v840_v57 = vsel %vm6387_vm4, 0, %v839_v56 }
  0xcc   : > { %841 = vst [vmem:[#allocation2 + $0x5c] sm:$0x1] %v840_v57 }
  0xce   : > { %5239 = vmatpush3.bf16.msra.mxu0 %v5607_v7 }
  0xcf   : > { %5240 = vmatprep.subr.bf16.mxu0 %v5608_v8 }
  0xd0   : > { %s458_s28 = scalar_lea.hbm %s7236_s9, %s4611_s11  ;;  %s5853_s27 = scalar_lea.hbm %s7236_s9, 4096 }
  0xd1   : > { %s5851_s14 = scalar_lea.hbm %s458_s28, 128  ;;  %p5854_p5 = scmp.lt.u32.totalorder %s458_s28, %s7236_s9 }
  0xd2   : > { %5241 = vmatpush3.bf16.msra.mxu0 %v5608_v8  ;;  %p5852_p10 = scmp.ne.s32.totalorder %s458_s28, %s5851_s14  ;;  %p5855_p7 = scmp.lt.u32.totalorder %s5853_s27, %s5851_s14 }
  0xd3   : > { %p5857_p1 = scmp.lt.u32.totalorder %s5851_s14, %s458_s28 }
  0xd4   : > { %p5856_p11 = por %p5855_p7, %p5854_p5 }
  0xd5   : > { %5243 = vmatmul.mubr.bf16.vlgmr.msra.gmra.mrb[0].mxu0 %v6350_v9 }
  0xd6   : > { %5246 = vmatprep.mubr.bf16.mxu0 %v6353_v10  ;;  %p5858_p2 = por %p5857_p1, %p5856_p11 }
  0xd8   : > { %p5859_p8 = pnand %p5858_p2, %p5852_p10 }
  0xdd   : > { %5247 = vmatmul.mubr.bf16.gmra.mrb[4].mxu0 %v6358_v11 }
  0xde   : > { %5250 = vmatprep.mubr.bf16.mxu0 %v6361_v12 }
  0xe5   : > { %5251 = vmatmul.mubr.bf16.gmra.mrb[8].mxu0 %v6366_v13 }
  0xe6   : > { %5254 = vmatprep.mubr.bf16.mxu0 %v6369_v14 }
  0xed   : > { %5255 = vmatmul.mubr.bf16.gmra.mrb[12].mxu0 %v6374_v15 }
  0xee   : > { %5862 = shalt.err (!%p5859_p8)  }
  0xef   : > { %s5863_s25 = scalar_lea.vmem %s6437_s17, 128  ;;  %s5867_s4 = scalar_lea.vmem %s6437_s17, 256 }
  0xf0   : > { %p5864_p12 = scmp.ne.s32.totalorder %s6437_s17, %s5863_s25  ;;  %p5868_p13 = scmp.lt.s32.totalorder %s6437_s17, %s6437_s17 }
  0xf1   : > { %p5869_p4 = scmp.lt.s32.totalorder %s5867_s4, %s5863_s25 }
  0xf3   : > { %p5870_p9 = por %p5869_p4, %p5868_p13 }
  0xf5   : > { %p5871_p6 = pnand %p5870_p9, %p5864_p12 }
  0xf7   : > { %5874 = shalt.err (!%p5871_p6)  }
  0xf8   : > { %469 = dma.hbm_to_vmem [thread:$0]  %s458_s28, 128, %s6437_s17, [#allocation5] }
  0xf9   : > { %s4609_s8 = sshll.u32 %s7274_s12, 4  ;;  %s6018_s16 = smov [#allocation4 + $0x8]  }
  0xfa   : > { %s470_s11 = sshra.s32 %s4609_s8, 3  ;;  %s484_s26 = sshll.u32 %s6018_s16, 4  ;;  %s485_s26 = int_to_ptr.vmem [resolvable:$true] %s484_s26 }
  0xfb   : > { %s472_s13 = sadd.s32 %s6431_s3, %s470_s11 }
  0xfc   : > { %s4612_s14 = sshll.u32 %s472_s13, 6 }
  0xfd   : > { %s474_s29 = scalar_lea.hbm %s7236_s9, %s4612_s14 }
  0xfe   : > { %s5875_s21 = scalar_lea.hbm %s474_s29, 128  ;;  %p5878_p10 = scmp.lt.u32.totalorder %s474_s29, %s7236_s9 }
  0xff   : > { %p5876_p0 = scmp.ne.s32.totalorder %s474_s29, %s5875_s21  ;;  %p5879_p5 = scmp.lt.u32.totalorder %s5853_s27, %s5875_s21 }
 0x100   : > { %p5881_p11 = scmp.lt.u32.totalorder %s5875_s21, %s474_s29 }
 0x101   : > { %p5880_p7 = por %p5879_p5, %p5878_p10 }
 0x103   : > { %p5882_p1 = por %p5881_p11, %p5880_p7 }
 0x105   : > { %p5883_p2 = pnand %p5882_p1, %p5876_p0 }
 0x107   : > { %5886 = shalt.err (!%p5883_p2)  }
 0x108   : > { %s5887_s12 = scalar_lea.vmem %s485_s26, 128  ;;  %p5892_p12 = scmp.lt.s32.totalorder %s485_s26, %s6437_s17 }
 0x109   : > { %p5888_p8 = scmp.ne.s32.totalorder %s485_s26, %s5887_s12  ;;  %p5893_p13 = scmp.lt.s32.totalorder %s5867_s4, %s5887_s12 }
 0x10b   : > { %p5894_p4 = por %p5893_p13, %p5892_p12 }
 0x10d   : > { %p5895_p9 = pnand %p5894_p4, %p5888_p8 }
 0x10f   : > { %5898 = shalt.err (!%p5895_p9)  }
 0x110   : > { %487 = dma.hbm_to_vmem [thread:$0]  %s474_s29, 128, %s485_s26, [#allocation5 + $0x1]  ;;  %vm1051_vm5 = vcmask 1043456   ;;  %vm888_vm6 = vsmask.f32 4368 }
 0x111   : > { %s7237_s11 = sld [smem:[#allocation34_spill]]  ;;  %s7238_s13 = sld [smem:[#allocation35_spill]]  ;;  %vm6483_vm7 = vmand %vm1051_vm5, %vm816_vm3  ;;  %v1060_v40 = vld [vmem:[#allocation2 + $0x18] sm:$0xf]  ;;  %v1053_v47 = vld [vmem:[#allocation2 + $0xc] sm:$0xf] }
 0x112   : > { %vm6490_vm8 = vmor %vm784_vm1, %vm888_vm6  ;;  %v1064_v53 = vld [vmem:[#allocation2 + $0x20] sm:$0x1]  ;;  %s7243_s17 = sshll.u32 %s6325_s10, 6 }
 0x113   : > { %s6572_s4 = scalar_lea.vmem [#allocation14], %s7243_s17 }
 0x117   : > { %v6463_v58 = vld [vmem:[%s7237_s11] ss:$0 sm:$0xff] }
 0x118   : > { %v6468_v60 = vld [vmem:[%s7238_s13] ss:$0 sm:$0xff] }
 0x1a8   : > { %v5244_v59 = vpop.f32.mrb[0].mxu0 }
 0x1a9   : > { %v722_v61 = vmul.f32 %v5244_v59, %v6463_v58  ;;  %v650_v62 = vpop.f32.mrb[1].mxu0 }
 0x1aa   : > { %v720_v63 = vmul.f32 %v6463_v58, %v650_v62  ;;  %v5245_v0 = vpop.f32.mrb[2].mxu0 }
 0x1ab   : > { %v745_v1 = vadd.f32 %v6468_v60, %v722_v61  ;;  %v723_v2 = vmul.f32 %v5245_v0, %v6463_v58  ;;  %v653_v3 = vpop.f32.mrb[3].mxu0  ;;  %v1057_v61 = vld [vmem:[#allocation2 + $0x14] sm:$0x1] }
 0x1ac   : > { %v743_v5 = vadd.f32 %v6468_v60, %v720_v63  ;;  %v721_v6 = vmul.f32 %v6463_v58, %v653_v3 }
 0x1ad   : > { %v761_v7 = vmax.f32 %v745_v1, 0.0  ;;  %v746_v8 = vadd.f32 %v6468_v60, %v723_v2 }
 0x1ae   : > { %v759_v17 = vmax.f32 %v743_v5, 0.0  ;;  %v744_v18 = vadd.f32 %v6468_v60, %v721_v6 }
 0x1af   : > { %v4867_v19 = vpack.c.bf16 %v761_v7, %v761_v7  ;;  %v762_v20 = vmax.f32 %v746_v8, 0.0 }
 0x1b0   : > { %v4865_v21 = vpack.c.bf16 %v759_v17, %v759_v17  ;;  %v760_v22 = vmax.f32 %v744_v18, 0.0  ;;  %v5248_v23 = vpop.f32.mrb[4].mxu0 }
 0x1b1   : > { %v908_v24 = vshrl.u32 %v4867_v19, 16  ;;  %v911_v25 = vshll.u32 %v4867_v19, 16  ;;  %v4868_v26 = vpack.c.bf16 %v762_v20, %v762_v20  ;;  %v726_v27 = vmul.f32 %v5248_v23, %v6463_v58  ;;  %v666_v28 = vpop.f32.mrb[5].mxu0 }
 0x1b2   : > { %v891_v29 = vshrl.u32 %v4865_v21, 16  ;;  %v894_v30 = vshll.u32 %v4865_v21, 16  ;;  %v4866_v31 = vpack.c.bf16 %v760_v22, %v760_v22  ;;  %v724_v32 = vmul.f32 %v6463_v58, %v666_v28  ;;  %v5249_v33 = vpop.f32.mrb[6].mxu0  ;;  %v1074_v28 = vld [vmem:[#allocation2 + $0x30] sm:$0xf] }
 0x1b3   : > { %v910_v34 = vrot.slane %v908_v24, 7  ;;  %v916_v35 = vshrl.u32 %v4868_v26, 16  ;;  %v919_v36 = vshll.u32 %v4868_v26, 16  ;;  %v749_v37 = vadd.f32 %v6468_v60, %v726_v27  ;;  %v669_v38 = vpop.f32.mrb[7].mxu0 }
 0x1b4   : > { %v893_v41 = vrot.slane %v891_v29, 7  ;;  %v899_v42 = vshrl.u32 %v4866_v31, 16  ;;  %v902_v43 = vshll.u32 %v4866_v31, 16  ;;  %v747_v44 = vadd.f32 %v6468_v60, %v724_v32 }
 0x1b5   : > { %v913_v45 = vor.u32 %v911_v25, %v910_v34  ;;  %v914_v46 = vrot.slane %v910_v34, 4  ;;  %v918_v48 = vrot.slane %v916_v35, 7  ;;  %v765_v49 = vmax.f32 %v749_v37, 0.0 }
 0x1b6   : > { %v896_v50 = vor.u32 %v894_v30, %v893_v41  ;;  %v897_v51 = vrot.slane %v893_v41, 4  ;;  %v901_v54 = vrot.slane %v899_v42, 7  ;;  %v763_v55 = vmax.f32 %v747_v44, 0.0 }
 0x1b7   : > { %v1061_v56 = vsel %vm6483_vm7, %v913_v45, %v1060_v40  ;;  %v921_v57 = vor.u32 %v919_v36, %v918_v48  ;;  %v923_v59 = vrot.slane %v918_v48, 4  ;;  %v4871_v62 = vpack.c.bf16 %v765_v49, %v765_v49  ;;  %v1067_v36 = vld [vmem:[#allocation2 + $0x24] sm:$0xf] }
 0x1b8   : > { %1062 = vst [vmem:[#allocation2 + $0x18] sm:$0xf] %v1061_v56  ;;  %v1054_v63 = vsel %vm6483_vm7, %v896_v50, %v1053_v47  ;;  %v904_v0 = vor.u32 %v902_v43, %v901_v54  ;;  %v906_v1 = vrot.slane %v901_v54, 4  ;;  %v4869_v2 = vpack.c.bf16 %v763_v55, %v763_v55  ;;  %v5252_v3 = vpop.f32.mrb[8].mxu0 }
 0x1b9   : > { %1055 = vst [vmem:[#allocation2 + $0xc] sm:$0xf] %v1054_v63  ;;  %v922_v5 = vsel %vm6490_vm8, %v914_v46, %v921_v57  ;;  %v1065_v6 = vsel %vm6378_vm2, %v923_v59, %v1064_v53  ;;  %v942_v7 = vshrl.u32 %v4871_v62, 16  ;;  %v945_v8 = vshll.u32 %v4871_v62, 16  ;;  %v682_v17 = vpop.f32.mrb[9].mxu0 }
 0x1ba   : > { %1063 = vst [vmem:[#allocation2 + $0x1c] sm:$0xf] %v922_v5  ;;  %1066 = vst [vmem:[#allocation2 + $0x20] sm:$0x1] %v1065_v6  ;;  %v905_v18 = vsel %vm6490_vm8, %v897_v51, %v904_v0  ;;  %v1058_v19 = vsel %vm6378_vm2, %v906_v1, %v1057_v61  ;;  %v925_v20 = vshrl.u32 %v4869_v2, 16  ;;  %v928_v21 = vshll.u32 %v4869_v2, 16 }
 0x1bb   : > { %v5253_v22 = vpop.f32.mrb[10].mxu0  ;;  %1056 = vst [vmem:[#allocation2 + $0x10] sm:$0xf] %v905_v18  ;;  %1059 = vst [vmem:[#allocation2 + $0x14] sm:$0x1] %v1058_v19  ;;  %v6506_v23 = vrot.slane %v942_v7, 7  ;;  %v727_v24 = vmul.f32 %v5249_v33, %v6463_v58  ;;  %v725_v25 = vmul.f32 %v6463_v58, %v669_v38  ;;  %v730_v26 = vmul.f32 %v5252_v3, %v6463_v58 }
 0x1bc   : > { %v685_v27 = vpop.f32.mrb[11].mxu0  ;;  %v6511_v29 = vrot.slane %v925_v20, 7  ;;  %v728_v30 = vmul.f32 %v6463_v58, %v682_v17  ;;  %v731_v31 = vmul.f32 %v5253_v22, %v6463_v58 }
 0x1bd   : > { %v729_v32 = vmul.f32 %v6463_v58, %v685_v27  ;;  %v947_v34 = vor.u32 %v945_v8, %v6506_v23  ;;  %v948_v35 = vrot.slane %v6506_v23, 4  ;;  %v750_v33 = vadd.f32 %v6468_v60, %v727_v24  ;;  %v1078_v23 = vld [vmem:[#allocation2 + $0x38] sm:$0x1]  ;;  %v1071_v24 = vld [vmem:[#allocation2 + $0x2c] sm:$0x1] }
 0x1be   : > { %v748_v37 = vadd.f32 %v6468_v60, %v725_v25  ;;  %v930_v38 = vor.u32 %v928_v21, %v6511_v29  ;;  %v931_v40 = vrot.slane %v6511_v29, 4  ;;  %v753_v41 = vadd.f32 %v6468_v60, %v730_v26 }
 0x1bf   : > { %v751_v42 = vadd.f32 %v6468_v60, %v728_v30  ;;  %v1075_v43 = vsel %vm6483_vm7, %v947_v34, %v1074_v28  ;;  %v766_v44 = vmax.f32 %v750_v33, 0.0  ;;  %v754_v46 = vadd.f32 %v6468_v60, %v731_v31  ;;  %v1088_v34 = vld [vmem:[#allocation2 + $0x48] sm:$0xf] }
 0x1c0   : > { %v764_v45 = vmax.f32 %v748_v37, 0.0  ;;  %1076 = vst [vmem:[#allocation2 + $0x30] sm:$0xf] %v1075_v43  ;;  %v1068_v47 = vsel %vm6483_vm7, %v930_v38, %v1067_v36  ;;  %v769_v48 = vmax.f32 %v753_v41, 0.0  ;;  %v752_v50 = vadd.f32 %v6468_v60, %v729_v32  ;;  %v5256_v51 = vpop.f32.mrb[12].mxu0 }
 0x1c1   : > { %v767_v49 = vmax.f32 %v751_v42, 0.0  ;;  %1069 = vst [vmem:[#allocation2 + $0x24] sm:$0xf] %v1068_v47  ;;  %v4872_v53 = vpack.c.bf16 %v766_v44, %v766_v44  ;;  %v770_v55 = vmax.f32 %v754_v46, 0.0  ;;  %v734_v56 = vmul.f32 %v5256_v51, %v6463_v58  ;;  %v698_v57 = vpop.f32.mrb[13].mxu0 }
 0x1c2   : > { %v4870_v54 = vpack.c.bf16 %v764_v45, %v764_v45  ;;  %v4875_v59 = vpack.c.bf16 %v769_v48, %v769_v48  ;;  %v768_v62 = vmax.f32 %v752_v50, 0.0  ;;  %v732_v63 = vmul.f32 %v6463_v58, %v698_v57  ;;  %v5257_v0 = vpop.f32.mrb[14].mxu0  ;;  %v1081_v36 = vld [vmem:[#allocation2 + $0x3c] sm:$0xf] }
 0x1c3   : > { %v4873_v61 = vpack.c.bf16 %v767_v49, %v767_v49  ;;  %v950_v1 = vshrl.u32 %v4872_v53, 16  ;;  %v953_v2 = vshll.u32 %v4872_v53, 16  ;;  %v701_v6 = vpop.f32.mrb[15].mxu0  ;;  %v4876_v21 = vpack.c.bf16 %v770_v55, %v770_v55 }
 0x1c4   : > { %v933_v3 = vshrl.u32 %v4870_v54, 16  ;;  %v936_v5 = vshll.u32 %v4870_v54, 16  ;;  %v976_v7 = vshrl.u32 %v4875_v59, 16  ;;  %v979_v8 = vshll.u32 %v4875_v59, 16  ;;  %v1092_v54 = vld [vmem:[#allocation2 + $0x50] sm:$0x1] }
 0x1c5   : > { %v959_v17 = vshrl.u32 %v4873_v61, 16  ;;  %v962_v18 = vshll.u32 %v4873_v61, 16  ;;  %v952_v19 = vrot.slane %v950_v1, 7  ;;  %v4874_v22 = vpack.c.bf16 %v768_v62, %v768_v62 }
 0x1c6   : > { %v935_v20 = vrot.slane %v933_v3, 7  ;;  %v978_v25 = vrot.slane %v976_v7, 7  ;;  %v757_v27 = vadd.f32 %v6468_v60, %v734_v56  ;;  %v755_v28 = vadd.f32 %v6468_v60, %v732_v63  ;;  %v1085_v63 = vld [vmem:[#allocation2 + $0x44] sm:$0x1] }
 0x1c7   : > { %v961_v26 = vrot.slane %v959_v17, 7  ;;  %v955_v29 = vor.u32 %v953_v2, %v952_v19  ;;  %v957_v30 = vrot.slane %v952_v19, 4  ;;  %v967_v47 = vshrl.u32 %v4874_v22, 16 }
 0x1c8   : > { %v938_v31 = vor.u32 %v936_v5, %v935_v20  ;;  %v940_v32 = vrot.slane %v935_v20, 4  ;;  %v981_v33 = vor.u32 %v979_v8, %v978_v25  ;;  %v982_v46 = vrot.slane %v978_v25, 4 }
 0x1c9   : > { %v964_v37 = vor.u32 %v962_v18, %v961_v26  ;;  %v956_v38 = vsel %vm6490_vm8, %v948_v35, %v955_v29  ;;  %v1079_v41 = vsel %vm6378_vm2, %v957_v30, %v1078_v23  ;;  %v984_v35 = vshrl.u32 %v4876_v21, 16 }
 0x1ca   : > { %v939_v42 = vsel %vm6490_vm8, %v931_v40, %v938_v31  ;;  %v1072_v43 = vsel %vm6378_vm2, %v940_v32, %v1071_v24  ;;  %1077 = vst [vmem:[#allocation2 + $0x34] sm:$0xf] %v956_v38  ;;  %1080 = vst [vmem:[#allocation2 + $0x38] sm:$0x1] %v1079_v41  ;;  %v1089_v44 = vsel %vm6483_vm7, %v981_v33, %v1088_v34  ;;  %v773_v48 = vmax.f32 %v757_v27, 0.0 }
 0x1cb   : > { %1070 = vst [vmem:[#allocation2 + $0x28] sm:$0xf] %v939_v42  ;;  %1073 = vst [vmem:[#allocation2 + $0x2c] sm:$0x1] %v1072_v43  ;;  %v1082_v45 = vsel %vm6483_vm7, %v964_v37, %v1081_v36  ;;  %v771_v40 = vmax.f32 %v755_v28, 0.0  ;;  %v986_v49 = vrot.slane %v984_v35, 7  ;;  %v735_v51 = vmul.f32 %v5257_v0, %v6463_v58 }
 0x1cc   : > { %1090 = vst [vmem:[#allocation2 + $0x48] sm:$0xf] %v1089_v44  ;;  %1083 = vst [vmem:[#allocation2 + $0x3c] sm:$0xf] %v1082_v45  ;;  %v987_v50 = vshll.u32 %v4876_v21, 16  ;;  %v733_v53 = vmul.f32 %v6463_v58, %v701_v6  ;;  %v969_v55 = vrot.slane %v967_v47, 7  ;;  %v4879_v57 = vpack.c.bf16 %v773_v48, %v773_v48 }
 0x1cd   : > { %v970_v56 = vshll.u32 %v4874_v22, 16  ;;  %v4877_v59 = vpack.c.bf16 %v771_v40, %v771_v40  ;;  %v991_v62 = vrot.slane %v986_v49, 4  ;;  %v758_v1 = vadd.f32 %v6468_v60, %v735_v51  ;;  %v1102_v21 = vld [vmem:[#allocation2 + $0x60] sm:$0xf]  ;;  %v1106_v37 = vld [vmem:[#allocation2 + $0x68] sm:$0x1] }
 0x1ce   : > { %v989_v61 = vor.u32 %v987_v50, %v986_v49  ;;  %v756_v2 = vadd.f32 %v6468_v60, %v733_v53  ;;  %v965_v3 = vrot.slane %v961_v26, 4  ;;  %v974_v7 = vrot.slane %v969_v55, 4  ;;  %v1095_v26 = vld [vmem:[#allocation2 + $0x54] sm:$0xf]  ;;  %v1099_v45 = vld [vmem:[#allocation2 + $0x5c] sm:$0x1] }
 0x1cf   : > { %v972_v5 = vor.u32 %v970_v56, %v969_v55  ;;  %v1010_v8 = vshrl.u32 %v4879_v57, 16  ;;  %v1093_v58 = vsel %vm6378_vm2, %v991_v62, %v1092_v54  ;;  %v1013_v6 = vshll.u32 %v4879_v57, 16 }
 0x1d0   : > { %v990_v0 = vsel %vm6490_vm8, %v982_v46, %v989_v61  ;;  %v993_v17 = vshrl.u32 %v4877_v59, 16  ;;  %1094 = vst [vmem:[#allocation2 + $0x50] sm:$0x1] %v1093_v58  ;;  %v1086_v60 = vsel %vm6378_vm2, %v974_v7, %v1085_v63  ;;  %v774_v20 = vmax.f32 %v758_v1, 0.0 }
 0x1d1   : > { %1091 = vst [vmem:[#allocation2 + $0x4c] sm:$0xf] %v990_v0  ;;  %v973_v18 = vsel %vm6490_vm8, %v965_v3, %v972_v5  ;;  %v1012_v19 = vrot.slane %v1010_v8, 7  ;;  %1087 = vst [vmem:[#allocation2 + $0x44] sm:$0x1] %v1086_v60  ;;  %v996_v23 = vshll.u32 %v4877_v59, 16 }
 0x1d2   : > { %1084 = vst [vmem:[#allocation2 + $0x40] sm:$0xf] %v973_v18  ;;  %v995_v22 = vrot.slane %v993_v17, 7  ;;  %v772_v24 = vmax.f32 %v756_v2, 0.0  ;;  %v4880_v27 = vpack.c.bf16 %v774_v20, %v774_v20 }
 0x1d3   : > { %v1015_v25 = vor.u32 %v1013_v6, %v1012_v19  ;;  %v1016_v42 = vrot.slane %v1012_v19, 4 }
 0x1d4   : > { %v998_v28 = vor.u32 %v996_v23, %v995_v22  ;;  %v4878_v29 = vpack.c.bf16 %v772_v24, %v772_v24  ;;  %v1018_v31 = vshrl.u32 %v4880_v27, 16  ;;  %v1021_v33 = vshll.u32 %v4880_v27, 16 }
 0x1d5   : > { %v1103_v30 = vsel %vm6483_vm7, %v1015_v25, %v1102_v21  ;;  %v999_v35 = vrot.slane %v995_v22, 4 }
 0x1d6   : > { %1104 = vst [vmem:[#allocation2 + $0x60] sm:$0xf] %v1103_v30  ;;  %v1096_v32 = vsel %vm6483_vm7, %v998_v28, %v1095_v26  ;;  %v1001_v34 = vshrl.u32 %v4878_v29, 16  ;;  %v1020_v36 = vrot.slane %v1018_v31, 7  ;;  %v1004_v41 = vshll.u32 %v4878_v29, 16 }
 0x1d7   : > { %1097 = vst [vmem:[#allocation2 + $0x54] sm:$0xf] %v1096_v32 }
 0x1d8   : > { %v1003_v38 = vrot.slane %v1001_v34, 7  ;;  %v1023_v43 = vor.u32 %v1021_v33, %v1020_v36  ;;  %v1025_v44 = vrot.slane %v1020_v36, 4 }
 0x1da   : > { %v1006_v46 = vor.u32 %v1004_v41, %v1003_v38  ;;  %v1008_v47 = vrot.slane %v1003_v38, 4  ;;  %v1024_v48 = vsel %vm6490_vm8, %v1016_v42, %v1023_v43  ;;  %v1107_v40 = vsel %vm6378_vm2, %v1025_v44, %v1106_v37 }
 0x1db   : > { %1105 = vst [vmem:[#allocation2 + $0x64] sm:$0xf] %v1024_v48  ;;  %1108 = vst [vmem:[#allocation2 + $0x68] sm:$0x1] %v1107_v40 }
 0x1dc   : > { %v1007_v49 = vsel %vm6490_vm8, %v999_v35, %v1006_v46  ;;  %v1100_v50 = vsel %vm6378_vm2, %v1008_v47, %v1099_v45 }
 0x1dd   : > { %1098 = vst [vmem:[#allocation2 + $0x58] sm:$0xf] %v1007_v49  ;;  %1101 = vst [vmem:[#allocation2 + $0x5c] sm:$0x1] %v1100_v50 }
 0x1de   : > { %5971 = dma.done.wait [#allocation5], 128 }
 0x1df   : > { %5972 = vsyncadd [#allocation5], 4294967168 }
 0x1e0   : > { %5973 = dma.done.wait [#allocation5 + $0x1], 128 }
 0x1e1   : > { %5974 = vsyncadd [#allocation5 + $0x1], 4294967168  ;;  %v5625_v51 = vld [vmem:[#allocation9] sm:$0xff]   ;;  %v5626_v53 = vld [vmem:[#allocation9 + $0x8] sm:$0xff]   ;;  %vm1455_vm9 = vsmask.f32 3328 }
 0x1e2   : > { %5258 = vmatprep.subr.bf16.mxu1 %v5625_v51  ;;  %v5627_v54 = vld [vmem:[#allocation9 + $0x10] sm:$0xff]   ;;  %v5628_v55 = vld [vmem:[#allocation9 + $0x18] sm:$0xff]   ;;  %v5633_v57 = vld [vmem:[#allocation11 + $0x100] sm:$0xff]   ;;  %vm1456_vm10 = vsmask.f32 7440  ;;  %vm1738_vm12 = vcmask 1042432  }
 0x1e3   : > { %5259 = vmatpush3.bf16.msra.mxu1 %v5625_v51  ;;  %v1115_v56 = vld [vmem:[#allocation4] sm:$0xff]  ;;  %v5629_v59 = vld [vmem:[#allocation9 + $0x20] sm:$0xff]   ;;  %4970 = vmatprep.subr.bf16.mxu0 %v5633_v57  ;;  %v5635_v62 = vld [vmem:[#allocation11 + $0x108] sm:$0xff]   ;;  %vm1739_vm13 = vcmask 1046532   ;;  %p1271_p6 = scmp.lt.s32.totalorder %s5993_s20, 1  ;;  %p1258_p0 = scmp.gt.s32.totalorder %s5993_s20, 0 }
 0x1e4   : > { %5260 = vmatprep.subr.bf16.mxu1 %v5626_v53  ;;  %5274 = vmatprep.mubr.bf16.mxu1 %v1115_v56  ;;  %v5634_v61 = vld [vmem:[#allocation11 + $0xc0] sm:$0xff]   ;;  %v5636_v63 = vld [vmem:[#allocation11 + $0xc8] sm:$0xff]   ;;  %v5637_v1 = vld [vmem:[#allocation11 + $0x110] sm:$0xff]  }
 0x1e5   : > { %4971 = vmatpush3.bf16.msra.mxu0 %v5634_v61  ;;  %v5630_v2 = vld [vmem:[#allocation9 + $0x28] sm:$0xff]   ;;  %v5638_v3 = vld [vmem:[#allocation11 + $0xd0] sm:$0xff]   ;;  %v5639_v5 = vld [vmem:[#allocation11 + $0x118] sm:$0xff]   ;;  %s1272_s16 = scalar_select %p1271_p6, 1, 0 }
 0x1e6   : > { %4972 = vmatprep.subr.bf16.mxu0 %v5635_v62  ;;  %v5631_v7 = vld [vmem:[#allocation9 + $0x30] sm:$0xff]   ;;  %v5640_v8 = vld [vmem:[#allocation11 + $0xd8] sm:$0xff]   ;;  %v5641_v0 = vld [vmem:[#allocation11 + $0x120] sm:$0xff]   ;;  %s1259_s26 = scalar_select %p1258_p0, 1, 0 }
 0x1e7   : > { %5261 = vmatpush3.bf16.msra.mxu1 %v5626_v53  ;;  %v5632_v58 = vld [vmem:[#allocation9 + $0x38] sm:$0xff]   ;;  %v5642_v6 = vld [vmem:[#allocation11 + $0xe0] sm:$0xff]   ;;  %v5643_v17 = vld [vmem:[#allocation11 + $0x128] sm:$0xff]   ;;  %s1273_s14 = scvt.s32.f32 %s1272_s16 }
 0x1e8   : > { %5262 = vmatprep.subr.bf16.mxu1 %v5627_v54  ;;  %v1981_v18 = vld [vmem:[#allocation2 + $0xc] sm:$0xf]  ;;  %v1982_v60 = vld [vmem:[#allocation2 + $0x10] sm:$0xf]  ;;  %v1983_v19 = vld [vmem:[#allocation2 + $0x14] sm:$0x1]  ;;  %s1260_s5 = scvt.s32.f32 %s1259_s26 }
 0x1e9   : > { %4973 = vmatpush3.bf16.msra.mxu0 %v5636_v63  ;;  %v2006_v20 = vshrl.u32 %v1981_v18, 16  ;;  %v2009_v21 = vshll.u32 %v1981_v18, 16  ;;  %v5644_v22 = vld [vmem:[#allocation11 + $0xe8] sm:$0xff]   ;;  %v2015_v23 = vshll.u32 %v1982_v60, 16  ;;  %v2019_v24 = vshrl.u32 %v1982_v60, 16  ;;  %v1116_v36 = vld [vmem:[#allocation4 + $0x8] sm:$0xff]  ;;  %vm6576_vm11 = vmor %vm1455_vm9, %vm1456_vm10  ;;  %p1275_p10 = scmp.ne.f32.partialorder %s1273_s14, %s1273_s14 }
 0x1ea   : > { %4974 = vmatprep.subr.bf16.mxu0 %v5637_v1  ;;  %v2025_v25 = vshll.u32 %v1983_v19, 16  ;;  %v1984_v28 = vld [vmem:[#allocation2 + $0x18] sm:$0xf]  ;;  %v1985_v32 = vld [vmem:[#allocation2 + $0x1c] sm:$0xf]  ;;  %v5647_v57 = vld [vmem:[#allocation11 + $0x138] sm:$0xff]   ;;  %p1262_p5 = scmp.ne.f32.partialorder %s1260_s5, %s1260_s5 }
 0x1eb   : > { %5263 = vmatpush3.bf16.msra.mxu1 %v5627_v54  ;;  %v2008_v26 = vrot.slane %v2006_v20, 4  ;;  %v2011_v27 = vrot.slane %v2009_v21, 5  ;;  %v2017_v29 = vrot.slane %v2015_v23, 5  ;;  %v2021_v30 = vrot.slane %v2019_v24, 4  ;;  %v5645_v33 = vld [vmem:[#allocation11 + $0x130] sm:$0xff]   ;;  %vm6646_vm14 = vmor %vm1738_vm12, %vm1739_vm13  ;;  %s1276_s2 = sshrl.u32 %s1273_s14, 16 }
 0x1ec   : > { %5264 = vmatprep.subr.bf16.mxu1 %v5628_v55  ;;  %v2027_v31 = vrot.slane %v2025_v25, 5  ;;  %v2030_v34 = vshrl.u32 %v1984_v28, 16  ;;  %v1986_v38 = vld [vmem:[#allocation2 + $0x20] sm:$0x1]  ;;  %v2033_v41 = vshll.u32 %v1984_v28, 16  ;;  %v2039_v42 = vshll.u32 %v1985_v32, 16 }
 0x1ed   : > { %4975 = vmatpush3.bf16.msra.mxu0 %v5638_v3  ;;  %v2012_v37 = vor.u32 %v2011_v27, %v2008_v26  ;;  %v2043_v43 = vshrl.u32 %v1985_v32, 16  ;;  %v5646_v44 = vld [vmem:[#allocation11 + $0xf0] sm:$0xff]   ;;  %v2022_v35 = vor.u32 %v2021_v30, %v2017_v29  ;;  %v2049_v47 = vshll.u32 %v1986_v38, 16  ;;  %v1987_v51 = vld [vmem:[#allocation2 + $0x24] sm:$0xf]  ;;  %v5649_v26 = vld [vmem:[#allocation2 + $0xc] sm:$0xff]  }
 0x1ee   : > { %4976 = vmatprep.subr.bf16.mxu0 %v5639_v5  ;;  %v2032_v46 = vrot.slane %v2030_v34, 4  ;;  %v2035_v40 = vrot.slane %v2033_v41, 5  ;;  %v2041_v49 = vrot.slane %v2039_v42, 5  ;;  %v1989_v56 = vld [vmem:[#allocation2 + $0x2c] sm:$0x1]  ;;  %v2054_v63 = vshrl.u32 %v1987_v51, 16 }
 0x1ef   : > { %5265 = vmatpush3.bf16.msra.mxu1 %v5628_v55  ;;  %v2013_v48 = vrot.slane %v2012_v37, 4  ;;  %v2045_v50 = vrot.slane %v2043_v43, 4  ;;  %v2023_v53 = vrot.slane %v2022_v35, 4  ;;  %v2051_v54 = vrot.slane %v2049_v47, 5  ;;  %v1988_v55 = vld [vmem:[#allocation2 + $0x28] sm:$0xf] }
 0x1f0   : > { %5266 = vmatprep.subr.bf16.mxu1 %v5629_v59  ;;  %v2036_v61 = vor.u32 %v2035_v40, %v2032_v46  ;;  %v2063_v3 = vshll.u32 %v1988_v55, 16  ;;  %v2067_v5 = vshrl.u32 %v1988_v55, 16  ;;  %v2073_v20 = vshll.u32 %v1989_v56, 16  ;;  %v1991_v21 = vld [vmem:[#allocation2 + $0x34] sm:$0xf]  ;;  %v5655_v46 = vld [vmem:[#allocation11 + $0x180] sm:$0xff]  }
 0x1f1   : > { %4977 = vmatpush3.bf16.msra.mxu0 %v5640_v8  ;;  %v2046_v62 = vor.u32 %v2045_v50, %v2041_v49  ;;  %v2028_v1 = vsel %vm6576_vm11, %v2023_v53, %v2027_v31  ;;  %v5648_v8 = vld [vmem:[#allocation11 + $0xf8] sm:$0xff]   ;;  %v2087_v31 = vshll.u32 %v1991_v21, 16  ;;  %v2091_v32 = vshrl.u32 %v1991_v21, 16  ;;  %v1993_v34 = vld [vmem:[#allocation2 + $0x3c] sm:$0xf]  ;;  %s1263_s29 = sshrl.u32 %s1260_s5, 16 }
 0x1f2   : > { %4978 = vmatprep.subr.bf16.mxu0 %v5641_v0  ;;  %v2065_v60 = vrot.slane %v2063_v3, 5  ;;  %v2069_v19 = vrot.slane %v2067_v5, 4  ;;  %v2075_v38 = vrot.slane %v2073_v20, 5  ;;  %v1992_v41 = vld [vmem:[#allocation2 + $0x38] sm:$0x1]  ;;  %v2102_v47 = vshrl.u32 %v1993_v34, 16 }
 0x1f3   : > { %5267 = vmatpush3.bf16.msra.mxu1 %v5629_v59  ;;  %v2018_v59 = vsel %vm6576_vm11, %v2013_v48, %v2017_v29  ;;  %v5654_v29 = vld [vmem:[#allocation11 + $0x1c0] sm:$0xff]   ;;  %v2093_v35 = vrot.slane %v2091_v32, 4  ;;  %v2105_v48 = vshll.u32 %v1993_v34, 16  ;;  %v1995_v40 = vld [vmem:[#allocation2 + $0x44] sm:$0x1]  ;;  %s1277_s21 = sand.u32 1, %s1276_s2 }
 0x1f4   : > { %5268 = vmatprep.subr.bf16.mxu1 %v5630_v2  ;;  %v4701_v0 = vcombine.low %v2018_v59, %v2028_v1  ;;  %v2070_v28 = vor.u32 %v2069_v19, %v2065_v60  ;;  %v5657_v59 = vld [vmem:[#allocation11 + $0x188] sm:$0xff]   ;;  %v1996_v3 = vld [vmem:[#allocation2 + $0x48] sm:$0xf]  ;;  %v1997_v5 = vld [vmem:[#allocation2 + $0x4c] sm:$0xf]  ;;  %s1264_s25 = sand.u32 1, %s1263_s29 }
 0x1f5   : > { %4979 = vmatpush3.bf16.msra.mxu0 %v5642_v6  ;;  %v2047_v6 = vrot.slane %v2046_v62, 4  ;;  %v2104_v62 = vrot.slane %v2102_v47, 4  ;;  %v5660_v19 = vld [vmem:[#allocation11 + $0x190] sm:$0xff]   ;;  %v2135_v20 = vshll.u32 %v1997_v5, 16  ;;  %v2139_v21 = vshrl.u32 %v1997_v5, 16  ;;  %v5652_v5 = vld [vmem:[#allocation2 + $0x30] sm:$0xff]  }
 0x1f6   : > { %4980 = vmatprep.subr.bf16.mxu0 %v5643_v17  ;;  %v2056_v17 = vrot.slane %v2054_v63, 4  ;;  %2629 = vmatprep.mubr.bf16.mxu0 %v4701_v0  ;;  %v2071_v37 = vrot.slane %v2070_v28, 4  ;;  %v2107_v63 = vrot.slane %v2105_v48, 5  ;;  %v1998_v32 = vld [vmem:[#allocation2 + $0x50] sm:$0x1]  ;;  %s1278_s12 = sadd.s32 32767, %s1277_s21 }
 0x1f7   : > { %5269 = vmatpush3.bf16.msra.mxu1 %v5630_v2  ;;  %v2057_v2 = vshll.u32 %v1987_v51, 16  ;;  %v2052_v23 = vsel %vm6576_vm11, %v2047_v6, %v2051_v54  ;;  %v5656_v54 = vld [vmem:[#allocation11 + $0x1c8] sm:$0xff]   ;;  %v2129_v6 = vshll.u32 %v1996_v3, 16  ;;  %v6603_v34 = vrot.slane %v2135_v20, 5  ;;  %s1265_s28 = sadd.s32 32767, %s1264_s25  ;;  %s1279_s8 = sadd.s32 %s1278_s12, %s1273_s14 }
 0x1f8   : > { %5270 = vmatprep.subr.bf16.mxu1 %v5631_v7  ;;  %v2076_v50 = vsel %vm6576_vm11, %v2071_v37, %v2075_v38  ;;  %v2000_v37 = vld [vmem:[#allocation2 + $0x58] sm:$0xf]  ;;  %s1266_s30 = sadd.s32 %s1265_s28, %s1260_s5  ;;  %s1280_s27 = sand.u32 4294901760, %s1279_s8  ;;  %v1693_v45 = vld [vmem:[#allocation2 + $0xc] sm:$0xe] }
 0x1f9   : > { %4981 = vmatpush3.bf16.msra.mxu0 %v5644_v22  ;;  %v2059_v18 = vrot.slane %v2057_v2, 5  ;;  %v2121_v2 = vshll.u32 %v1995_v40, 16  ;;  %v2163_v48 = vshrl.u32 %v2000_v37, 16  ;;  %s1267_s17 = sand.u32 4294901760, %s1266_s30  ;;  %s7276_s27 = smov (%p1275_p10, %s1280_s27), 2143289344 }
 0x1fa   : > { %4982 = vmatprep.subr.bf16.mxu0 %v5645_v33  ;;  %s7278_s17 = smov (%p1262_p5, %s1267_s17), 2143289344  ;;  %s1283_s16 = sshrl.u32 %s7276_s27, 16 }
 0x1fb   : > { %5271 = vmatpush3.bf16.msra.mxu1 %v5631_v7  ;;  %v1990_v7 = vld [vmem:[#allocation2 + $0x30] sm:$0xf]  ;;  %v2060_v27 = vor.u32 %v2059_v18, %v2056_v17  ;;  %s1270_s2 = sshrl.u32 %s7278_s17, 16  ;;  %s1321_s14 = sshll.u32 %s1283_s16, 16 }
 0x1fc   : > { %5272 = vmatprep.subr.bf16.mxu1 %v5632_v58  ;;  %v2078_v24 = vshrl.u32 %v1990_v7, 16  ;;  %v2081_v25 = vshll.u32 %v1990_v7, 16  ;;  %v5659_v7 = vld [vmem:[#allocation11 + $0x1d0] sm:$0xff]   ;;  %s1284_s5 = sshll.u32 %s1270_s2, 16  ;;  %s1322_s0 = sor.u32 %s1321_s14, %s1283_s16 }
 0x1fd   : > { %4983 = vmatpush3.bf16.msra.mxu0 %v5646_v44  ;;  %v2061_v33 = vrot.slane %v2060_v27, 4  ;;  %v6588_v44 = vrot.slane %v2087_v31, 5  ;;  %v5662_v27 = vld [vmem:[#allocation11 + $0x198] sm:$0xff]   ;;  %s1285_s9 = sor.u32 %s1284_s5, %s1270_s2  ;;  %s7248_s21 = sld [smem:[#allocation37_spill]] }
 0x1fe   : > { %4984 = vmatprep.subr.bf16.mxu0 %v5647_v57  ;;  %v2080_v42 = vrot.slane %v2078_v24, 4  ;;  %v2083_v43 = vrot.slane %v2081_v25, 5  ;;  %v2097_v57 = vshll.u32 %v1992_v41, 16  ;;  %v2123_v24 = vrot.slane %v2121_v2, 5  ;;  %v2001_v41 = vld [vmem:[#allocation2 + $0x5c] sm:$0x1] }
 0x1ff   : > { %5273 = vmatpush3.bf16.msra.mxu1 %v5632_v58  ;;  %v2037_v58 = vrot.slane %v2036_v61, 4  ;;  %v2094_v56 = vor.u32 %v2093_v35, %v6588_v44  ;;  %v5650_v61 = vld [vmem:[#allocation2 + $0x18] sm:$0xff]   ;;  %v2159_v35 = vshll.u32 %v2000_v37, 16  ;;  %v5667_v2 = vld [vmem:[#allocation11 + $0x1a8] sm:$0xff]   ;;  %v5673_v37 = vld [vmem:[#allocation11 + $0x1f8] sm:$0xff]   ;;  %s7249_s28 = sld [smem:[#allocation38_spill]] }
 0x200   : > { %v2084_v55 = vor.u32 %v2083_v43, %v2080_v42  ;;  %s7250_s27 = sld [smem:[#allocation40_spill]]  ;;  %s7251_s26 = sld [smem:[#allocation41_spill]] }
 0x201   : > { %v2042_v22 = vsel %vm6576_vm11, %v2037_v58, %v2041_v49  ;;  %4985 = vmatpush3.bf16.msra.mxu0 %v5648_v8  ;;  %v2066_v49 = vsel %vm6576_vm11, %v2061_v33, %v2065_v60  ;;  %v2126_v58 = vshrl.u32 %v1996_v3, 16  ;;  %v2095_v18 = vrot.slane %v2094_v56, 4  ;;  %v1999_v33 = vld [vmem:[#allocation2 + $0x54] sm:$0xf]  ;;  %v2002_v3 = vld [vmem:[#allocation2 + $0x60] sm:$0xf] }
 0x202   : > { %5275 = vmatmul.mubr.bf16.vlgmr.msra.gmra.mrb[0].mxu1 %v1116_v36  ;;  %v4702_v30 = vcombine.low %v2042_v22, %v2052_v23  ;;  %v1994_v36 = vld [vmem:[#allocation2 + $0x40] sm:$0xf]  ;;  %5130 = vmatprep.subr.bf16.mxu0 %v5654_v29  ;;  %v4703_v1 = vcombine.low %v2066_v49, %v2076_v50  ;;  %v2085_v17 = vrot.slane %v2084_v55, 4  ;;  %v2099_v60 = vrot.slane %v2097_v57, 5  ;;  %v5651_v29 = vld [vmem:[#allocation2 + $0x24] sm:$0xff]   ;;  %s4858_s2 = sshll.u32 %s5993_s20, 4 }
 0x203   : > { %v2111_v51 = vshll.u32 %v1994_v36, 16  ;;  %v2115_v53 = vshrl.u32 %v1994_v36, 16  ;;  %v5661_v22 = vld [vmem:[#allocation11 + $0x1d8] sm:$0xff]   ;;  %v2108_v23 = vor.u32 %v2107_v63, %v2104_v62  ;;  %v2128_v25 = vrot.slane %v2126_v58, 4  ;;  %v5664_v50 = vld [vmem:[#allocation11 + $0x1e0] sm:$0xff]   ;;  %v5666_v62 = vld [vmem:[#allocation11 + $0x1e8] sm:$0xff]   ;;  %s4446_s20 = sadd.s32 %s4858_s2, %s6431_s3 }
 0x204   : > { %2630 = vmatmul.mubr.bf16.vlgmr.msra.gmra.mrb[16].mxu0 %v5649_v26  ;;  %v2131_v26 = vrot.slane %v2129_v6, 5  ;;  %v2100_v31 = vsel %vm6576_vm11, %v2095_v18, %v2099_v60  ;;  %v2141_v36 = vrot.slane %v2139_v21, 4  ;;  %v2150_v42 = vshrl.u32 %v1999_v33, 16  ;;  %v2003_v18 = vld [vmem:[#allocation2 + $0x64] sm:$0xf]  ;;  %s4860_s14 = sshll.u32 %s4446_s20, 6 }
 0x205   : > { %2637 = vmatprep.mubr.bf16.mxu0 %v4702_v30  ;;  %5131 = vmatpush3.bf16.msra.mxu0 %v5655_v46  ;;  %v6595_v8 = vrot.slane %v2111_v51, 5  ;;  %v2117_v0 = vrot.slane %v2115_v53, 4  ;;  %v2090_v30 = vsel %vm6576_vm11, %v2085_v17, %v6588_v44  ;;  %v2109_v38 = vrot.slane %v2108_v23, 4  ;;  %v2004_v21 = vld [vmem:[#allocation2 + $0x68] sm:$0x1]  ;;  %s4449_s5 = sshll.u32 %s6572_s4, 4  ;;  %s7111_s5 = int_to_ptr.vmem [resolvable:$true] %s4449_s5 }
 0x206   : > { %5132 = vmatprep.subr.bf16.mxu0 %v5656_v54  ;;  %v2153_v43 = vshll.u32 %v1999_v33, 16  ;;  %v4704_v46 = vcombine.low %v2090_v30, %v2100_v31  ;;  %v2152_v44 = vrot.slane %v2150_v42, 4  ;;  %v6605_v49 = vrot.slane %v2159_v35, 5  ;;  %v3202_v42 = vld [vmem:[#allocation2 + $0x18] sm:$0xf]  ;;  %s7253_s3 = sld [smem:[#allocation42_spill]] }
 0x207   : > { %v2118_v28 = vor.u32 %v2117_v0, %v6595_v8  ;;  %v2132_v51 = vor.u32 %v2131_v26, %v2128_v25  ;;  %v2142_v53 = vor.u32 %v2141_v36, %v6603_v34  ;;  %v2145_v54 = vshll.u32 %v1998_v32, 16  ;;  %v5671_v26 = vld [vmem:[#allocation11 + $0x1b0] sm:$0xff]   ;;  %s4434_s29 = scalar_lea.sflag [#allocation8], %s6325_s10  ;;  %s6019_s25 = smov [#allocation14]  }
 0x208   : > { %v2155_v40 = vrot.slane %v2153_v43, 5  ;;  %v2165_v55 = vrot.slane %v2163_v48, 4  ;;  %v2169_v57 = vshll.u32 %v2001_v41, 16  ;;  %v2114_v63 = vsel %vm6576_vm11, %v2109_v38, %v6595_v8  ;;  %v5674_v41 = vld [vmem:[#allocation11 + $0x1b8] sm:$0xff]   ;;  %v3203_v43 = vld [vmem:[#allocation2 + $0x1c] sm:$0xf] }
 0x209   : > { %5133 = vmatpush3.bf16.msra.mxu0 %v5657_v59  ;;  %v2119_v47 = vrot.slane %v2118_v28, 4  ;;  %v5665_v59 = vld [vmem:[#allocation11 + $0x1a0] sm:$0xff]   ;;  %v2143_v0 = vrot.slane %v2142_v53, 4  ;;  %v2147_v58 = vrot.slane %v2145_v54, 5  ;;  %v2174_v20 = vshrl.u32 %v2002_v3, 16  ;;  %v5672_v28 = vld [vmem:[#allocation11 + $0x148] sm:$0xff]  }
 0x20a   : > { %5134 = vmatprep.subr.bf16.mxu0 %v5659_v7  ;;  %v2156_v56 = vor.u32 %v2155_v40, %v2152_v44  ;;  %v2133_v7 = vrot.slane %v2132_v51, 4  ;;  %v2171_v17 = vrot.slane %v2169_v57, 5  ;;  %v2177_v8 = vshll.u32 %v2002_v3, 16  ;;  %v5675_v44 = vld [vmem:[#allocation11 + $0x150] sm:$0xff]   ;;  %v3207_v3 = vld [vmem:[#allocation2 + $0x2c] sm:$0x1] }
 0x20b   : > { %v2183_v23 = vshll.u32 %v2003_v18, 16  ;;  %v2187_v25 = vshrl.u32 %v2003_v18, 16  ;;  %v2148_v31 = vsel %vm6576_vm11, %v2143_v0, %v2147_v58  ;;  %v2193_v36 = vshll.u32 %v2004_v21, 16  ;;  %v5658_v0 = vld [vmem:[#allocation2 + $0x48] sm:$0xff]   ;;  %s5903_s12 = sshll.u32 %s6019_s25, 4  ;;  %s5904_s12 = int_to_ptr.vmem [resolvable:$false] %s5903_s12 }
 0x20c   : > { %2638 = vmatmul.mubr.bf16.gmra.mrb[20].mxu0 %v5650_v61  ;;  %v2166_v61 = vor.u32 %v2165_v55, %v6605_v49  ;;  %v2157_v6 = vrot.slane %v2156_v56, 4  ;;  %v2138_v30 = vsel %vm6576_vm11, %v2133_v7, %v6603_v34  ;;  %v2179_v32 = vrot.slane %v2177_v8, 5  ;;  %v5678_v8 = vld [vmem:[#allocation11 + $0x160] sm:$0xff]   ;;  %s7109_s15 = scalar_lea.hbm %s7253_s3, %s4860_s14  ;;  %p5906_p2 = scmp.lt.s32.totalorder %s7111_s5, %s5904_s12 }
 0x20d   : > { %2645 = vmatprep.mubr.bf16.mxu0 %v4703_v1  ;;  %5135 = vmatpush3.bf16.msra.mxu0 %v5660_v19  ;;  %v2124_v1 = vsel %vm6576_vm11, %v2119_v47, %v2123_v24  ;;  %v5670_v24 = vld [vmem:[#allocation11 + $0x1f0] sm:$0xff]   ;;  %v6619_v33 = vrot.slane %v2183_v23, 5  ;;  %v2189_v38 = vrot.slane %v2187_v25, 4  ;;  %v4706_v35 = vcombine.low %v2138_v30, %v2148_v31 }
 0x20e   : > { %5136 = vmatprep.subr.bf16.mxu0 %v5661_v22  ;;  %v4705_v60 = vcombine.low %v2114_v63, %v2124_v1  ;;  %v2167_v19 = vrot.slane %v2166_v61, 4  ;;  %v5669_v22 = vld [vmem:[#allocation11 + $0x140] sm:$0xff]   ;;  %v3227_v47 = vshrl.u32 %v3202_v42, 16  ;;  %v3230_v34 = vshll.u32 %v3202_v42, 16  ;;  %v5677_v63 = vld [vmem:[#allocation11 + $0x158] sm:$0xff]  }
 0x20f   : > { %5278 = vmatprep.subr.bf16.mxu1 %v5669_v22  ;;  %v3236_v48 = vshll.u32 %v3203_v43, 16  ;;  %v2162_v40 = vsel %vm6576_vm11, %v2157_v6, %v6605_v49  ;;  %v3240_v51 = vshrl.u32 %v3203_v43, 16  ;;  %v2195_v54 = vrot.slane %v2193_v36, 5  ;;  %v3205_v49 = vld [vmem:[#allocation2 + $0x24] sm:$0xf] }
 0x210   : > { %5279 = vmatpush3.bf16.msra.mxu1 %v5669_v22  ;;  %v3229_v55 = vrot.slane %v3227_v47, 4  ;;  %v3232_v56 = vrot.slane %v3230_v34, 5  ;;  %v2190_v61 = vor.u32 %v2189_v38, %v6619_v33  ;;  %v3254_v7 = vshll.u32 %v3205_v49, 16  ;;  %v5668_v43 = vld [vmem:[#allocation2 + $0x60] sm:$0xff]  }
 0x211   : > { %5137 = vmatpush3.bf16.msra.mxu0 %v5662_v27  ;;  %v2176_v27 = vrot.slane %v2174_v20, 4  ;;  %5280 = vmatprep.subr.bf16.mxu1 %v5672_v28  ;;  %v3238_v57 = vrot.slane %v3236_v48, 5  ;;  %v3270_v21 = vshll.u32 %v3207_v3, 16 }
 0x212   : > { %5138 = vmatprep.subr.bf16.mxu0 %v5664_v50  ;;  %v2172_v50 = vsel %vm6576_vm11, %v2167_v19, %v2171_v17  ;;  %v3233_v6 = vor.u32 %v3232_v56, %v3229_v55  ;;  %v3256_v20 = vrot.slane %v3254_v7, 5  ;;  %v2191_v22 = vrot.slane %v2190_v61, 4 }
 0x213   : > { %v2180_v53 = vor.u32 %v2179_v32, %v2176_v27  ;;  %v4707_v1 = vcombine.low %v2162_v40, %v2172_v50  ;;  %v3272_v31 = vrot.slane %v3270_v21, 5  ;;  %v3208_v40 = vld [vmem:[#allocation2 + $0x30] sm:$0xf]  ;;  %v3209_v50 = vld [vmem:[#allocation2 + $0x34] sm:$0xf] }
 0x214   : > { %2646 = vmatmul.mubr.bf16.gmra.mrb[24].mxu0 %v5651_v29  ;;  %v5653_v29 = vld [vmem:[#allocation2 + $0x3c] sm:$0xff]   ;;  %5281 = vmatpush3.bf16.msra.mxu1 %v5672_v28  ;;  %v3234_v27 = vrot.slane %v3233_v6, 4  ;;  %v3288_v55 = vshrl.u32 %v3209_v50, 16 }
 0x215   : > { %2653 = vmatprep.mubr.bf16.mxu0 %v4704_v46  ;;  %5139 = vmatpush3.bf16.msra.mxu0 %v5665_v59  ;;  %v3204_v46 = vld [vmem:[#allocation2 + $0x20] sm:$0x1]  ;;  %v3242_v59 = vrot.slane %v3240_v51, 4  ;;  %v2181_v58 = vrot.slane %v2180_v53, 4  ;;  %v3275_v51 = vshrl.u32 %v3208_v40, 16  ;;  %v3278_v53 = vshll.u32 %v3208_v40, 16 }
 0x216   : > { %5140 = vmatprep.subr.bf16.mxu0 %v5666_v62  ;;  %5282 = vmatprep.subr.bf16.mxu1 %v5675_v44  ;;  %v3246_v62 = vshll.u32 %v3204_v46, 16  ;;  %v3290_v61 = vrot.slane %v3288_v55, 4 }
 0x217   : > { %v2186_v38 = vsel %vm6576_vm11, %v2181_v58, %v6619_v33  ;;  %v5676_v33 = vld [vmem:[#allocation2 + $0x18] sm:$0xff]   ;;  %v3277_v56 = vrot.slane %v3275_v51, 4  ;;  %v3212_v58 = vld [vmem:[#allocation2 + $0x40] sm:$0xf] }
 0x218   : > { %5283 = vmatpush3.bf16.msra.mxu1 %v5675_v44  ;;  %v3248_v23 = vrot.slane %v3246_v62, 5  ;;  %v3210_v62 = vld [vmem:[#allocation2 + $0x38] sm:$0x1]  ;;  %v3312_v21 = vshrl.u32 %v3212_v58, 16 }
 0x219   : > { %5141 = vmatpush3.bf16.msra.mxu0 %v5667_v2  ;;  %v3206_v2 = vld [vmem:[#allocation2 + $0x28] sm:$0xf]  ;;  %5284 = vmatprep.subr.bf16.mxu1 %v5677_v63 }
 0x21a   : > { %5142 = vmatprep.subr.bf16.mxu0 %v5670_v24  ;;  %v3260_v17 = vshll.u32 %v3206_v2, 16  ;;  %v3264_v18 = vshrl.u32 %v3206_v2, 16  ;;  %v3294_v2 = vshll.u32 %v3210_v62, 16  ;;  %v3214_v62 = vld [vmem:[#allocation2 + $0x48] sm:$0xf] }
 0x21c   : > { %2654 = vmatmul.mubr.bf16.gmra.mrb[28].mxu0 %v5652_v5  ;;  %v3251_v5 = vshrl.u32 %v3205_v49, 16  ;;  %v3262_v24 = vrot.slane %v3260_v17, 5  ;;  %v3266_v25 = vrot.slane %v3264_v18, 4  ;;  %5285 = vmatpush3.bf16.msra.mxu1 %v5677_v63  ;;  %v5679_v63 = vld [vmem:[#allocation2 + $0x24] sm:$0xff]   ;;  %v3296_v7 = vrot.slane %v3294_v2, 5 }
 0x21d   : > { %2661 = vmatprep.mubr.bf16.mxu0 %v4705_v60  ;;  %5143 = vmatpush3.bf16.msra.mxu0 %v5671_v26  ;;  %v3243_v60 = vor.u32 %v3242_v59, %v3238_v57  ;;  %v5686_v2 = vld [vmem:[#allocation11] sm:$0xff]  }
 0x21e   : > { %5144 = vmatprep.subr.bf16.mxu0 %v5673_v37  ;;  %v3253_v19 = vrot.slane %v3251_v5, 4  ;;  %v3267_v28 = vor.u32 %v3266_v25, %v3262_v24  ;;  %5286 = vmatprep.subr.bf16.mxu1 %v5678_v8  ;;  %v5663_v37 = vld [vmem:[#allocation2 + $0x54] sm:$0xff]  }
 0x21f   : > { %v3244_v30 = vrot.slane %v3243_v60, 4  ;;  %v5682_v25 = vld [vmem:[#allocation2 + $0x30] sm:$0xff]  }
 0x220   : > { %v3257_v26 = vor.u32 %v3256_v20, %v3253_v19  ;;  %v3268_v36 = vrot.slane %v3267_v28, 4  ;;  %5287 = vmatpush3.bf16.msra.mxu1 %v5678_v8  ;;  %v3308_v20 = vshll.u32 %v3212_v58, 16  ;;  %v3314_v28 = vrot.slane %v3312_v21, 4 }
 0x221   : > { %5145 = vmatpush3.bf16.msra.mxu0 %v5674_v41  ;;  %v2196_v41 = vsel %vm6576_vm11, %v2191_v22, %v2195_v54  ;;  %v3249_v46 = vsel %vm6576_vm11, %v3244_v30, %v3248_v23  ;;  %v3284_v54 = vshll.u32 %v3209_v50, 16  ;;  %v5681_v23 = vld [vmem:[#allocation11 + $0x170] sm:$0xff]   ;;  %v2238_v30 = vld [vmem:[#allocation2 + $0x10] sm:$0xf] }
 0x222   : > { %v3258_v32 = vrot.slane %v3257_v26, 4  ;;  %v4708_v42 = vcombine.low %v2186_v38, %v2196_v41  ;;  %v3273_v48 = vsel %vm6576_vm11, %v3268_v36, %v3272_v31  ;;  %v3213_v26 = vld [vmem:[#allocation2 + $0x44] sm:$0x1]  ;;  %v2241_v31 = vld [vmem:[#allocation2 + $0x1c] sm:$0xf] }
 0x223   : > { %v3286_v59 = vrot.slane %v3284_v54, 5  ;;  %v2239_v38 = vld [vmem:[#allocation2 + $0x14] sm:$0x1]  ;;  %v5683_v41 = vld [vmem:[#allocation11 + $0x178] sm:$0xff]   ;;  %v2294_v50 = vrot.slane %v2241_v31, 5 }
 0x224   : > { %2662 = vmatmul.mubr.bf16.gmra.mrb[32].mxu0 %v5653_v29  ;;  %v5680_v29 = vld [vmem:[#allocation11 + $0x168] sm:$0xff]   ;;  %v3263_v34 = vsel %vm6576_vm11, %v3258_v32, %v3262_v24  ;;  %v3310_v24 = vrot.slane %v3308_v20, 5 }
 0x225   : > { %2669 = vmatprep.mubr.bf16.mxu0 %v4706_v35  ;;  %5288 = vmatprep.subr.bf16.mxu1 %v5680_v29  ;;  %v3239_v35 = vsel %vm6576_vm11, %v3234_v27, %v3238_v57  ;;  %v4782_v44 = vcombine.low %v3263_v34, %v3273_v48  ;;  %v3280_v57 = vrot.slane %v3278_v53, 5  ;;  %v2290_v34 = vrot.slane %v2239_v38, 5  ;;  %v2240_v48 = vld [vmem:[#allocation2 + $0x18] sm:$0xe]  ;;  %v2248_v38 = vld [vmem:[#allocation2 + $0x38] sm:$0x1] }
 0x226   : > { %5289 = vmatpush3.bf16.msra.mxu1 %v5680_v29  ;;  %v4781_v47 = vcombine.low %v3239_v35, %v3249_v46  ;;  %v3318_v29 = vshll.u32 %v3213_v26, 16  ;;  %v3315_v36 = vor.u32 %v3314_v28, %v3310_v24  ;;  %v4710_v40 = vrot.slane %v2240_v48, 9  ;;  %v2245_v26 = vld [vmem:[#allocation2 + $0x2c] sm:$0x1]  ;;  %v5689_v48 = vld [vmem:[#allocation11 + $0x50] sm:$0xff]  }
 0x227   : > { %v3281_v49 = vor.u32 %v3280_v57, %v3277_v56  ;;  %5290 = vmatprep.subr.bf16.mxu1 %v5681_v23  ;;  %v5684_v57 = vld [vmem:[#allocation11 + $0x40] sm:$0xff]  }
 0x228   : > { %v3316_v46 = vrot.slane %v3315_v36, 4 }
 0x229   : > { %v3282_v3 = vrot.slane %v3281_v49, 4 }
 0x22a   : > { %5291 = vmatpush3.bf16.msra.mxu1 %v5681_v23  ;;  %v5687_v23 = vld [vmem:[#allocation11 + $0x48] sm:$0xff]  }
 0x22b   : > { %v3287_v6 = vsel %vm6576_vm11, %v3282_v3, %v3286_v59  ;;  %5292 = vmatprep.subr.bf16.mxu1 %v5683_v41  ;;  %v3216_v3 = vld [vmem:[#allocation2 + $0x50] sm:$0x1] }
 0x22c   : > { %2670 = vmatmul.mubr.bf16.gmra.mrb[36].mxu0 %v5658_v0  ;;  %v3211_v0 = vld [vmem:[#allocation2 + $0x3c] sm:$0xf] }
 0x22d   : > { %2677 = vmatprep.mubr.bf16.mxu0 %v4707_v1  ;;  %v3291_v1 = vor.u32 %v3290_v61, %v3286_v59  ;;  %v3299_v18 = vshrl.u32 %v3211_v0, 16  ;;  %v3302_v60 = vshll.u32 %v3211_v0, 16  ;;  %v2295_v59 = vsel %vm6646_vm14, %v4710_v40, %v2294_v50  ;;  %v3218_v40 = vld [vmem:[#allocation2 + $0x58] sm:$0xf] }
 0x22e   : > { %5293 = vmatpush3.bf16.msra.mxu1 %v5683_v41  ;;  %v2296_v61 = vrot.slane %v2294_v50, 4 }
 0x22f   : > { %v3292_v5 = vrot.slane %v3291_v1, 4  ;;  %v3301_v8 = vrot.slane %v3299_v18, 4  ;;  %v3304_v22 = vrot.slane %v3302_v60, 5  ;;  %v5685_v1 = vld [vmem:[#allocation2 + $0x3c] sm:$0xff]   ;;  %5050 = vmatprep.subr.bf16.mxu1 %v5684_v57  ;;  %v2244_v18 = vld [vmem:[#allocation2 + $0x28] sm:$0xf] }
 0x230   : > { %v2247_v60 = vld [vmem:[#allocation2 + $0x34] sm:$0xf]  ;;  %v2301_v31 = vrot.slane %v2244_v18, 5 }
 0x231   : > { %v3297_v17 = vsel %vm6576_vm11, %v3292_v5, %v3296_v7  ;;  %v3305_v27 = vor.u32 %v3304_v22, %v3301_v8  ;;  %v3323_v5 = vshrl.u32 %v3214_v62, 16  ;;  %v3326_v7 = vshll.u32 %v3214_v62, 16  ;;  %v2243_v22 = vld [vmem:[#allocation2 + $0x24] sm:$0xe] }
 0x232   : > { %v4783_v19 = vcombine.low %v3287_v6, %v3297_v17  ;;  %v3342_v8 = vshll.u32 %v3216_v3, 16  ;;  %v3356_v3 = vshll.u32 %v3218_v40, 16 }
 0x233   : > { %v3306_v32 = vrot.slane %v3305_v27, 4  ;;  %v3325_v20 = vrot.slane %v3323_v5, 4  ;;  %v3328_v21 = vrot.slane %v3326_v7, 5  ;;  %v5688_v27 = vld [vmem:[#allocation11 + $0x8] sm:$0xff]   ;;  %v3360_v5 = vshrl.u32 %v3218_v40, 16 }
 0x234   : > { %2678 = vmatmul.mubr.bf16.gmra.mrb[40].mxu0 %v5663_v37  ;;  %v2237_v37 = vld [vmem:[#allocation2 + $0xc] sm:$0xe]  ;;  %v2250_v7 = vld [vmem:[#allocation2 + $0x40] sm:$0xf]  ;;  %v3358_v18 = vrot.slane %v3356_v3, 5 }
 0x235   : > { %2685 = vmatprep.mubr.bf16.mxu0 %v4708_v42  ;;  %v3320_v42 = vrot.slane %v3318_v29, 5  ;;  %v3311_v35 = vsel %vm6576_vm11, %v3306_v32, %v3310_v24  ;;  %v3329_v28 = vor.u32 %v3328_v21, %v3325_v20  ;;  %v3344_v29 = vrot.slane %v3342_v8, 5  ;;  %v2246_v32 = vld [vmem:[#allocation2 + $0x30] sm:$0xe]  ;;  %v2249_v20 = vld [vmem:[#allocation2 + $0x3c] sm:$0xe] }
 0x236   : > { %v4712_v41 = vrot.slane %v2246_v32, 9  ;;  %v5693_v21 = vld [vmem:[#allocation11 + $0x18] sm:$0xff]  }
 0x237   : > { %v3321_v51 = vsel %vm6576_vm11, %v3316_v46, %v3320_v42  ;;  %v3217_v42 = vld [vmem:[#allocation2 + $0x54] sm:$0xf]  ;;  %v2303_v46 = vrot.slane %v2301_v31, 4 }
 0x238   : > { %v4784_v56 = vcombine.low %v3311_v35, %v3321_v51  ;;  %v3347_v50 = vshrl.u32 %v3217_v42, 16 }
 0x23a   : > { %v3349_v62 = vrot.slane %v3347_v50, 4 }
 0x23c   : > { %2686 = vmatmul.mubr.bf16.gmra.mrb[44].mxu0 %v5668_v43  ;;  %v4709_v43 = vrot.slane %v2237_v37, 9  ;;  %v2304_v37 = vrot.slane %v2245_v26, 5 }
 0x23d   : > { %3850 = vmatprep.mubr.bf16.mxu0 %v4781_v47  ;;  %v5735_v47 = vld [vmem:[#allocation12 + $0x30] sm:$0xff]  }
 0x244   : > { %3851 = vmatmul.mubr.bf16.vlgmr.msra.gmra.mrb[48].mxu0 %v5676_v33  ;;  %v2287_v33 = vrot.slane %v2238_v30, 5  ;;  %v4711_v30 = vrot.slane %v2243_v22, 9  ;;  %v2251_v22 = vld [vmem:[#allocation2 + $0x44] sm:$0x1] }
 0x245   : > { %3858 = vmatprep.mubr.bf16.mxu0 %v4782_v44  ;;  %v2242_v44 = vld [vmem:[#allocation2 + $0x20] sm:$0x1] }
 0x246   : > { %v2288_v53 = vsel %vm6646_vm14, %v4709_v43, %v2287_v33  ;;  %v2289_v54 = vrot.slane %v2287_v33, 4  ;;  %v2297_v55 = vrot.slane %v2242_v44, 5  ;;  %v3330_v43 = vrot.slane %v3329_v28, 4  ;;  %v2252_v28 = vld [vmem:[#allocation2 + $0x48] sm:$0xe] }
 0x247   : > { %v2302_v35 = vsel %vm6646_vm14, %v4711_v30, %v2301_v31  ;;  %v2308_v33 = vrot.slane %v2247_v60, 5  ;;  %v2311_v44 = vrot.slane %v2248_v38, 5  ;;  %v3362_v60 = vrot.slane %v3360_v5, 4 }
 0x248   : > { %v2291_v49 = vsel %vm6646_vm14, %v2289_v54, %v2290_v34  ;;  %v2298_v58 = vsel %vm6646_vm14, %v2296_v61, %v2297_v55  ;;  %v5690_v54 = vld [vmem:[#allocation2 + $0x48] sm:$0xff]   ;;  %v3219_v61 = vld [vmem:[#allocation2 + $0x5c] sm:$0x1] }
 0x249   : > { %v4717_v0 = vcombine.low %v2288_v53, %v2291_v49  ;;  %v2305_v53 = vsel %vm6646_vm14, %v2303_v46, %v2304_v37  ;;  %v2309_v55 = vsel %vm6646_vm14, %v4712_v41, %v2308_v33  ;;  %v4714_v37 = vrot.slane %v2252_v28, 9  ;;  %v5695_v41 = vld [vmem:[#allocation2 + $0x54] sm:$0xff]  }
 0x24b   : > { %5294 = vmatprep.mubr.bf16.mxu1 %v4717_v0 }
 0x24c   : > { %3859 = vmatmul.mubr.bf16.gmra.mrb[52].mxu0 %v5679_v63  ;;  %v3215_v63 = vld [vmem:[#allocation2 + $0x4c] sm:$0xf] }
 0x24d   : > { %3866 = vmatprep.mubr.bf16.mxu0 %v4783_v19  ;;  %v3332_v6 = vshll.u32 %v3215_v63, 16  ;;  %v3336_v17 = vshrl.u32 %v3215_v63, 16  ;;  %v4718_v19 = vcombine.low %v2295_v59, %v2298_v58  ;;  %v4719_v59 = vcombine.low %v2302_v35, %v2305_v53  ;;  %v5692_v58 = vld [vmem:[#allocation11 + $0x58] sm:$0xff]  }
 0x24e   : > { %v3350_v63 = vshll.u32 %v3217_v42, 16  ;;  %v3220_v35 = vld [vmem:[#allocation2 + $0x60] sm:$0xf] }
 0x24f   : > { %v3334_v24 = vrot.slane %v3332_v6, 5  ;;  %5295 = vmatmul.mubr.bf16.vlgmr.msra.gmra.mrb[4].mxu1 %v4718_v19  ;;  %v3366_v19 = vshll.u32 %v3219_v61, 16  ;;  %v3374_v40 = vshll.u32 %v3220_v35, 16  ;;  %v5697_v61 = vld [vmem:[#allocation11 + $0x68] sm:$0xff]  }
 0x250   : > { %5051 = vmatpush3.bf16.msra.mxu1 %v5686_v2  ;;  %v5691_v2 = vld [vmem:[#allocation11 + $0x10] sm:$0xff]   ;;  %5298 = vmatprep.mubr.bf16.mxu1 %v4719_v59  ;;  %v3352_v6 = vrot.slane %v3350_v63, 5 }
 0x251   : > { %5052 = vmatprep.subr.bf16.mxu1 %v5687_v23  ;;  %v3335_v51 = vsel %vm6576_vm11, %v3330_v43, %v3334_v24  ;;  %v4713_v23 = vrot.slane %v2249_v20, 9  ;;  %v3368_v26 = vrot.slane %v3366_v19, 5  ;;  %v3376_v63 = vrot.slane %v3374_v40, 5  ;;  %v2260_v19 = vld [vmem:[#allocation2 + $0x68] sm:$0x1]  ;;  %v5698_v20 = vld [vmem:[#allocation11 + $0x28] sm:$0xff]  }
 0x252   : > { %v3353_v8 = vor.u32 %v3352_v6, %v3349_v62  ;;  %v6696_v40 = vld [vmem:[#allocation11 + $0x80] sm:$0xff]  }
 0x254   : > { %3867 = vmatmul.mubr.bf16.gmra.mrb[56].mxu0 %v5682_v25  ;;  %v3338_v25 = vrot.slane %v3336_v17, 4  ;;  %5053 = vmatpush3.bf16.msra.mxu1 %v5688_v27  ;;  %v2253_v17 = vld [vmem:[#allocation2 + $0x4c] sm:$0xf]  ;;  %v2318_v27 = vrot.slane %v2251_v22, 5  ;;  %v3354_v30 = vrot.slane %v3353_v8, 4 }
 0x255   : > { %3874 = vmatprep.mubr.bf16.mxu0 %v4784_v56  ;;  %v2310_v56 = vrot.slane %v2308_v33, 4  ;;  %5054 = vmatprep.subr.bf16.mxu1 %v5689_v48  ;;  %v2322_v42 = vrot.slane %v2253_v17, 5  ;;  %v3222_v48 = vld [vmem:[#allocation2 + $0x68] sm:$0x1] }
 0x256   : > { %v3339_v36 = vor.u32 %v3338_v25, %v3334_v24  ;;  %v2315_v24 = vrot.slane %v2250_v7, 5  ;;  %v3363_v25 = vor.u32 %v3362_v60, %v3358_v18  ;;  %v3359_v46 = vsel %vm6576_vm11, %v3354_v30, %v3358_v18  ;;  %v2259_v60 = vld [vmem:[#allocation2 + $0x64] sm:$0xf] }
 0x257   : > { %v2323_v53 = vsel %vm6646_vm14, %v4714_v37, %v2322_v42  ;;  %v3390_v5 = vshll.u32 %v3222_v48, 16  ;;  %v2339_v30 = vrot.slane %v2260_v19, 5  ;;  %v5701_v37 = vld [vmem:[#allocation11 + $0x30] sm:$0xff]   ;;  %v5703_v48 = vld [vmem:[#allocation11 + $0x38] sm:$0xff]  }
 0x258   : > { %v3340_v34 = vrot.slane %v3339_v36, 4  ;;  %5055 = vmatpush3.bf16.msra.mxu1 %v5691_v2  ;;  %v2316_v31 = vsel %vm6646_vm14, %v4713_v23, %v2315_v24  ;;  %v2317_v32 = vrot.slane %v2315_v24, 4  ;;  %v5694_v36 = vld [vmem:[#allocation11 + $0x60] sm:$0xff]   ;;  %v3364_v38 = vrot.slane %v3363_v25, 4 }
 0x259   : > { %5056 = vmatprep.subr.bf16.mxu1 %v5692_v58 }
 0x25a   : > { %v3345_v57 = vsel %vm6576_vm11, %v3340_v34, %v3344_v29  ;;  %v2254_v29 = vld [vmem:[#allocation2 + $0x50] sm:$0x1]  ;;  %v2319_v33 = vsel %vm6646_vm14, %v2317_v32, %v2318_v27  ;;  %v3221_v34 = vld [vmem:[#allocation2 + $0x64] sm:$0xf]  ;;  %v3369_v50 = vsel %vm6576_vm11, %v3364_v38, %v3368_v26  ;;  %v5699_v26 = vld [vmem:[#allocation11 + $0x70] sm:$0xff]   ;;  %v2336_v27 = vrot.slane %v2259_v60, 5 }
 0x25b   : > { %v4785_v49 = vcombine.low %v3335_v51, %v3345_v57  ;;  %v2325_v43 = vrot.slane %v2254_v29, 5  ;;  %v4721_v51 = vcombine.low %v2316_v31, %v2319_v33  ;;  %v2256_v57 = vld [vmem:[#allocation2 + $0x58] sm:$0xf]  ;;  %v4786_v59 = vcombine.low %v3359_v46, %v3369_v50  ;;  %v4655_v50 = vld [vmem:[%s7237_s11] ss:$0 sm:$0xff] }
 0x25c   : > { %3875 = vmatmul.mubr.bf16.gmra.mrb[60].mxu0 %v5685_v1  ;;  %v2312_v1 = vsel %vm6646_vm14, %v2310_v56, %v2311_v44  ;;  %v3371_v44 = vshrl.u32 %v3220_v35, 16  ;;  %5057 = vmatpush3.bf16.msra.mxu1 %v5693_v21  ;;  %v2255_v56 = vld [vmem:[#allocation2 + $0x54] sm:$0xe]  ;;  %v3384_v3 = vshrl.u32 %v3221_v34, 16  ;;  %v2329_v18 = vrot.slane %v2256_v57, 5  ;;  %v5702_v35 = vld [vmem:[#allocation11 + $0x78] sm:$0xff]  }
 0x25d   : > { %v4720_v0 = vcombine.low %v2309_v55, %v2312_v1  ;;  %3882 = vmatprep.mubr.bf16.mxu0 %v4785_v49  ;;  %v5696_v55 = vld [vmem:[#allocation11 + $0x20] sm:$0xff]   ;;  %5058 = vmatprep.subr.bf16.mxu1 %v5694_v36  ;;  %v3380_v49 = vshll.u32 %v3221_v34, 16  ;;  %v2257_v1 = vld [vmem:[#allocation2 + $0x5c] sm:$0x1]  ;;  %v4715_v7 = vrot.slane %v2255_v56, 9  ;;  %v3392_v29 = vrot.slane %v3390_v5, 5 }
 0x25e   : > { %v3373_v62 = vrot.slane %v3371_v44, 4  ;;  %v3386_v21 = vrot.slane %v3384_v3, 4  ;;  %v2332_v8 = vrot.slane %v2257_v1, 5  ;;  %v2331_v25 = vrot.slane %v2329_v18, 4  ;;  %v1435_v60 = vld [vmem:[#allocation2 + $0x10] sm:$0xf] }
 0x25f   : > { %5299 = vmatmul.mubr.bf16.gmra.mrb[8].mxu1 %v4720_v0  ;;  %v2258_v0 = vld [vmem:[#allocation2 + $0x60] sm:$0xe]  ;;  %v3382_v17 = vrot.slane %v3380_v49, 5  ;;  %v2330_v24 = vsel %vm6646_vm14, %v4715_v7, %v2329_v18  ;;  %v2338_v36 = vrot.slane %v2336_v27, 4  ;;  %v1286_v18 = vstv %s1285_s9 }
 0x260   : > { %5302 = vmatprep.mubr.bf16.mxu1 %v4721_v51  ;;  %v3377_v6 = vor.u32 %v3376_v63, %v3373_v62  ;;  %5059 = vmatpush3.bf16.msra.mxu1 %v5696_v55  ;;  %v4716_v22 = vrot.slane %v2258_v0, 9  ;;  %v2333_v31 = vsel %vm6646_vm14, %v2331_v25, %v2332_v8  ;;  %v1323_v0 = vstv %s1322_s0 }
 0x261   : > { %5060 = vmatprep.subr.bf16.mxu1 %v5697_v61  ;;  %v3387_v28 = vor.u32 %v3386_v21, %v3382_v17  ;;  %v2340_v46 = vsel %vm6646_vm14, %v2338_v36, %v2339_v30 }
 0x262   : > { %v3378_v23 = vrot.slane %v3377_v6, 4  ;;  %v2337_v32 = vsel %vm6646_vm14, %v4716_v22, %v2336_v27  ;;  %v1434_v6 = vld [vmem:[#allocation2 + $0xc] sm:$0xf] }
 0x263   : > { %v4724_v34 = vcombine.low %v2337_v32, %v2340_v46  ;;  %v1483_v21 = vshrl.u32 %v1434_v6, 16  ;;  %v1486_v8 = vshll.u32 %v1434_v6, 16 }
 0x264   : > { %3883 = vmatmul.mubr.bf16.gmra.mrb[64].mxu0 %v5690_v54  ;;  %v2324_v54 = vrot.slane %v2322_v42, 4  ;;  %5061 = vmatpush3.bf16.msra.mxu1 %v5698_v20  ;;  %v3383_v38 = vsel %vm6576_vm11, %v3378_v23, %v3382_v17  ;;  %v4723_v42 = vcombine.low %v2330_v24, %v2333_v31  ;;  %v1492_v23 = vshll.u32 %v1435_v60, 16 }
 0x265   : > { %3890 = vmatprep.mubr.bf16.mxu0 %v4786_v59  ;;  %5062 = vmatprep.subr.bf16.mxu1 %v5699_v26  ;;  %v1496_v24 = vshrl.u32 %v1435_v60, 16  ;;  %v1485_v31 = vrot.slane %v1483_v21, 4  ;;  %v1488_v32 = vrot.slane %v1486_v8, 5 }
 0x266   : > { %v2326_v2 = vsel %vm6646_vm14, %v2324_v54, %v2325_v43  ;;  %v5700_v43 = vld [vmem:[#allocation2 + $0x60] sm:$0xff]  }
 0x267   : > { %v4722_v58 = vcombine.low %v2323_v53, %v2326_v2  ;;  %v4656_v53 = vld [vmem:[%s7238_s13] ss:$0 sm:$0xff] }
 0x268   : > { %5063 = vmatpush3.bf16.msra.mxu1 %v5701_v37 }
 0x269   : > { %5303 = vmatmul.mubr.bf16.gmra.mrb[12].mxu1 %v4722_v58  ;;  %5064 = vmatprep.subr.bf16.mxu1 %v5702_v35 }
 0x26a   : > { %5306 = vmatprep.mubr.bf16.mxu1 %v4723_v42 }
 0x26c   : > { %3891 = vmatmul.mubr.bf16.gmra.mrb[68].mxu0 %v5695_v41  ;;  %v3388_v41 = vrot.slane %v3387_v28, 4  ;;  %5065 = vmatpush3.bf16.msra.mxu1 %v5703_v48 }
 0x26d   : > { %5310 = vmatprep.subr.bf16.mxu1 %v6696_v40 }
 0x26e   : > { %v3393_v33 = vsel %vm6576_vm11, %v3388_v41, %v3392_v29  ;;  %v1498_v41 = vrot.slane %v1496_v24, 4 }
 0x26f   : > { %v4787_v44 = vcombine.low %v3383_v38, %v3393_v33  ;;  %v6707_v38 = vrot.slane %v1492_v23, 5  ;;  %v1352_v33 = vld [vmem:[#allocation2 + $0x6c] sm:$0xf] }
 0x271   : > { %3898 = vmatprep.mubr.bf16.mxu0 %v4787_v44  ;;  %5307 = vmatmul.mubr.bf16.gmra.mrb[16].mxu1 %v4724_v34  ;;  %v1356_v34 = vld [vmem:[#allocation2 + $0x74] sm:$0x1]  ;;  %v1499_v60 = vor.u32 %v1498_v41, %v6707_v38 }
 0x273   : > { %v1500_v52 = vrot.slane %v1499_v60, 4 }
 0x274   : > { %3899 = vmatmul.mubr.bf16.gmra.mrb[72].mxu0 %v5700_v43 }
 0x2d5   : > { %v5276_v51 = vpop.f32.mrb[0].mxu1 }
 0x2d6   : > { %v1239_v54 = vmul.f32 %v5276_v51, %v4655_v50  ;;  %v1215_v55 = vpop.f32.mrb[1].mxu1 }
 0x2d7   : > { %v1237_v56 = vmul.f32 %v4655_v50, %v1215_v55  ;;  %v5277_v57 = vpop.f32.mrb[2].mxu1 }
 0x2d8   : > { %v1250_v59 = vadd.f32 %v4656_v53, %v1239_v54  ;;  %v1240_v61 = vmul.f32 %v5277_v57, %v4655_v50  ;;  %v1218_v62 = vpop.f32.mrb[3].mxu1  ;;  %v1314_v57 = vld [vmem:[#allocation2] sm:$0xf] }
 0x2d9   : > { %v1248_v63 = vadd.f32 %v4656_v53, %v1237_v56  ;;  %v1238_v49 = vmul.f32 %v4655_v50, %v1218_v62 }
 0x2da   : > { %v1251_v1 = vadd.f32 %v4656_v53, %v1240_v61  ;;  %v1254_v3 = vmax.f32 %v1250_v59, 0.0  ;;  %v1318_v59 = vld [vmem:[#allocation2 + $0x8] sm:$0x1] }
 0x2db   : > { %v1249_v2 = vadd.f32 %v4656_v53, %v1238_v49  ;;  %v1252_v7 = vmax.f32 %v1248_v63, 0.0 }
 0x2dc   : > { %v1255_v5 = vmax.f32 %v1251_v1, 0.0  ;;  %v1436_v1 = vld [vmem:[#allocation2 + $0x14] sm:$0x1] }
 0x2dd   : > { %v1253_v58 = vmax.f32 %v1249_v2, 0.0 }
 0x2de   : > { %v1257_v17 = vpack.c.bf16 %v1255_v5, %v1254_v3 }
 0x2df   : > { %v1256_v19 = vpack.c.bf16 %v1253_v58, %v1252_v7  ;;  %v1437_v7 = vld [vmem:[#allocation2 + $0x18] sm:$0xf] }
 0x2e0   : > { %v1325_v20 = vmul.bf16 %v1323_v0, %v1257_v17  ;;  %v1438_v0 = vld [vmem:[#allocation2 + $0x1c] sm:$0xf]  ;;  %v1510_v21 = vshll.u32 %v1437_v7, 16 }
 0x2e1   : > { %v1288_v22 = vmul.bf16 %v1286_v18, %v1256_v19  ;;  %v1489_v18 = vor.u32 %v1488_v32, %v1485_v31  ;;  %v1502_v19 = vshll.u32 %v1436_v1, 16  ;;  %v1516_v8 = vshll.u32 %v1438_v0, 16 }
 0x2e2   : > { %v4659_v25 = vcombine.low %v1325_v20, %v1325_v20  ;;  %v4660_v26 = vcombine.high %v1325_v20, %v1325_v20  ;;  %v1507_v20 = vshrl.u32 %v1437_v7, 16  ;;  %v6726_v39 = vrot.slane %v1510_v21, 5  ;;  %v1441_v7 = vld [vmem:[#allocation2 + $0x28] sm:$0xf] }
 0x2e3   : > { %v4657_v27 = vcombine.low %v1288_v22, %v1288_v22  ;;  %v4658_v28 = vcombine.high %v1288_v22, %v1288_v22  ;;  %v6722_v22 = vrot.slane %v1489_v18, 4  ;;  %v1504_v23 = vrot.slane %v1502_v19, 5 }
 0x2e4   : > { %v1332_v29 = vshrl.u32 %v4659_v25, 16  ;;  %v1340_v30 = vshrl.u32 %v4660_v26, 16  ;;  %v1335_v43 = vshll.u32 %v4659_v25, 16  ;;  %v1343_v46 = vshll.u32 %v4660_v26, 16 }
 0x2e5   : > { %v1295_v36 = vshrl.u32 %v4657_v27, 16  ;;  %v1303_v37 = vshrl.u32 %v4658_v28, 16  ;;  %v1298_v44 = vshll.u32 %v4657_v27, 16  ;;  %v1306_v51 = vshll.u32 %v4658_v28, 16 }
 0x2e6   : > { %v1334_v42 = vrot.slane %v1332_v29, 7  ;;  %v1342_v35 = vrot.slane %v1340_v30, 7  ;;  %v6724_v24 = vrot.slane %v1507_v20, 4  ;;  %v6728_v16 = vrot.slane %v1516_v8, 5  ;;  %v4986_v20 = vpop.f32.mrb[16].mxu0 }
 0x2e7   : > { %v1297_v48 = vrot.slane %v1295_v36, 7  ;;  %v1305_v50 = vrot.slane %v1303_v37, 7  ;;  %v1520_v25 = vshrl.u32 %v1438_v0, 16 }
 0x2e8   : > { %v1337_v53 = vor.u32 %v1335_v43, %v1334_v42  ;;  %v1338_v54 = vrot.slane %v1334_v42, 4  ;;  %v1345_v55 = vor.u32 %v1343_v46, %v1342_v35  ;;  %v1347_v56 = vrot.slane %v1342_v35, 4 }
 0x2e9   : > { %v1300_v61 = vor.u32 %v1298_v44, %v1297_v48  ;;  %v1301_v62 = vrot.slane %v1297_v48, 4  ;;  %v1308_v63 = vor.u32 %v1306_v51, %v1305_v50  ;;  %v1310_v49 = vrot.slane %v1305_v50, 4  ;;  %v1439_v48 = vld [vmem:[#allocation2 + $0x20] sm:$0x1] }
 0x2ea   : > { %v1346_v2 = vsel %vm6490_vm8, %v1338_v54, %v1345_v55  ;;  %v1353_v3 = vsel %vm6483_vm7, %v1337_v53, %v1352_v33  ;;  %v1357_v5 = vsel %vm6378_vm2, %v1347_v56, %v1356_v34  ;;  %v1522_v53 = vrot.slane %v1520_v25, 4 }
 0x2eb   : > { %1354 = vst [vmem:[#allocation2 + $0x6c] sm:$0xf] %v1353_v3  ;;  %1355 = vst [vmem:[#allocation2 + $0x70] sm:$0xf] %v1346_v2  ;;  %v1309_v58 = vsel %vm6490_vm8, %v1301_v62, %v1308_v63  ;;  %v1315_v6 = vsel %vm6483_vm7, %v1300_v61, %v1314_v57  ;;  %v1319_v17 = vsel %vm6378_vm2, %v1310_v49, %v1318_v59  ;;  %v1440_v59 = vld [vmem:[#allocation2 + $0x24] sm:$0xf] }
 0x2ec   : > { %1358 = vst [vmem:[#allocation2 + $0x74] sm:$0x1] %v1357_v5  ;;  %1316 = vst [vmem:[#allocation2] sm:$0xf] %v1315_v6  ;;  %v1495_v57 = vsel %vm6576_vm11, %v6722_v22, %v6707_v38  ;;  %v1505_v49 = vsel %vm6576_vm11, %v1500_v52, %v1504_v23  ;;  %v1523_v6 = vor.u32 %v1522_v53, %v6728_v16  ;;  %v1531_v19 = vshrl.u32 %v1440_v59, 16 }
 0x2ed   : > { %1317 = vst [vmem:[#allocation2 + $0x4] sm:$0xf] %v1309_v58  ;;  %1320 = vst [vmem:[#allocation2 + $0x8] sm:$0x1] %v1319_v17  ;;  %v1513_v58 = vor.u32 %v6726_v39, %v6724_v24  ;;  %v1526_v17 = vshll.u32 %v1439_v48, 16  ;;  %v1534_v22 = vshll.u32 %v1440_v59, 16 }
 0x2ee   : > { %v1540_v52 = vshll.u32 %v1441_v7, 16  ;;  %v1544_v24 = vshrl.u32 %v1441_v7, 16  ;;  %v4987_v39 = vpop.f32.mrb[17].mxu0  ;;  %v5709_v7 = vld [vmem:[#allocation11 + $0x90] sm:$0xff]  }
 0x2ef   : > { %v6749_v53 = vadd.f32 %v4987_v39, %v4986_v20  ;;  %v5708_v20 = vld [vmem:[#allocation2 + $0xc] sm:$0xff]  }
 0x2f2   : > { %v3223_v26 = vld [vmem:[#allocation2 + $0x6c] sm:$0xf]  ;;  %v3224_v27 = vld [vmem:[#allocation2 + $0x70] sm:$0xf] }
 0x2f3   : > { %v3225_v28 = vld [vmem:[#allocation2 + $0x74] sm:$0x1]  ;;  %v3395_v29 = vshrl.u32 %v3223_v26, 16  ;;  %v3398_v30 = vshll.u32 %v3223_v26, 16  ;;  %v3404_v31 = vshll.u32 %v3224_v27, 16  ;;  %v3408_v32 = vshrl.u32 %v3224_v27, 16 }
 0x2f4   : > { %v1431_v36 = vld [vmem:[#allocation2] sm:$0xf]  ;;  %v3414_v37 = vshll.u32 %v3225_v28, 16  ;;  %v1432_v41 = vld [vmem:[#allocation2 + $0x4] sm:$0xf]  ;;  %v5705_v26 = vld [vmem:[#allocation2 + $0x6c] sm:$0xff]   ;;  %v4670_v28 = vcombine.low %v1495_v57, %v1505_v49 }
 0x2f5   : > { %v1433_v42 = vld [vmem:[#allocation2 + $0x8] sm:$0x1]  ;;  %v1459_v43 = vshrl.u32 %v1431_v36, 16  ;;  %v3397_v35 = vrot.slane %v3395_v29, 4  ;;  %v3400_v46 = vrot.slane %v3398_v30, 5  ;;  %v3406_v33 = vrot.slane %v3404_v31, 5 }
 0x2f6   : > { %v3410_v34 = vrot.slane %v3408_v32, 4  ;;  %v1462_v50 = vshll.u32 %v1431_v36, 16  ;;  %v1468_v51 = vshll.u32 %v1432_v41, 16  ;;  %v1472_v56 = vshrl.u32 %v1432_v41, 16  ;;  %v1443_v29 = vld [vmem:[#allocation2 + $0x30] sm:$0xf] }
 0x2f7   : > { %v1461_v44 = vrot.slane %v1459_v43, 4  ;;  %v3401_v54 = vor.u32 %v3400_v46, %v3397_v35  ;;  %v3416_v61 = vrot.slane %v3414_v37, 5  ;;  %v1478_v5 = vshll.u32 %v1433_v42, 16  ;;  %v4989_v30 = vpop.f32.mrb[18].mxu0  ;;  %v1444_v41 = vld [vmem:[#allocation2 + $0x34] sm:$0xf] }
 0x2f8   : > { %v3411_v55 = vor.u32 %v3410_v34, %v3406_v33  ;;  %v1464_v62 = vrot.slane %v1462_v50, 5  ;;  %v1470_v63 = vrot.slane %v1468_v51, 5  ;;  %v1474_v3 = vrot.slane %v1472_v56, 4  ;;  %v4990_v42 = vpop.f32.mrb[19].mxu0  ;;  %v5706_v48 = vld [vmem:[#allocation2] sm:$0xff]  }
 0x2f9   : > { %v3402_v1 = vrot.slane %v3401_v54, 4  ;;  %v1480_v25 = vrot.slane %v1478_v5, 5  ;;  %v1514_v32 = vrot.slane %v1513_v58, 4  ;;  %v1524_v36 = vrot.slane %v1523_v6, 4  ;;  %v4992_v34 = vpop.f32.mrb[20].mxu0 }
 0x2fa   : > { %v3412_v2 = vrot.slane %v3411_v55, 4  ;;  %v1465_v0 = vor.u32 %v1464_v62, %v1461_v44  ;;  %v1475_v60 = vor.u32 %v1474_v3, %v1470_v63  ;;  %v1528_v37 = vrot.slane %v1526_v17, 5  ;;  %v5707_v44 = vld [vmem:[#allocation11 + $0x88] sm:$0xff]   ;;  %v4993_v55 = vpop.f32.mrb[21].mxu0  ;;  %v1442_v56 = vld [vmem:[#allocation2 + $0x2c] sm:$0x1] }
 0x2fb   : > { %v3407_v38 = vsel %vm6576_vm11, %v3402_v1, %v3406_v33  ;;  %v1533_v35 = vrot.slane %v1531_v19, 4  ;;  %v1536_v46 = vrot.slane %v1534_v22, 5  ;;  %v6747_v33 = vrot.slane %v1540_v52, 5  ;;  %v1446_v52 = vld [vmem:[#allocation2 + $0x3c] sm:$0xf] }
 0x2fc   : > { %v3417_v18 = vsel %vm6576_vm11, %v3412_v2, %v3416_v61  ;;  %v1466_v8 = vrot.slane %v1465_v0, 4  ;;  %v1476_v23 = vrot.slane %v1475_v60, 4  ;;  %v1546_v50 = vrot.slane %v1544_v24, 4 }
 0x2fd   : > { %v4788_v21 = vcombine.low %v3407_v38, %v3417_v18  ;;  %v1555_v51 = vshrl.u32 %v1443_v29, 16  ;;  %v6751_v54 = vadd.f32 %v4990_v42, %v4989_v30  ;;  %v1558_v57 = vshll.u32 %v1443_v29, 16 }
 0x2fe   : > { %v1471_v27 = vsel %vm6576_vm11, %v1466_v8, %v1470_v63  ;;  %v1481_v31 = vsel %vm6576_vm11, %v1476_v23, %v1480_v25  ;;  %v1564_v59 = vshll.u32 %v1444_v41, 16  ;;  %v1568_v61 = vshrl.u32 %v1444_v41, 16  ;;  %v4995_v63 = vpop.f32.mrb[22].mxu0  ;;  %v1447_v23 = vld [vmem:[#allocation2 + $0x40] sm:$0xf] }
 0x2ff   : > { %3906 = vmatprep.mubr.bf16.mxu0 %v4788_v21  ;;  %v4669_v43 = vcombine.low %v1471_v27, %v1481_v31  ;;  %v6753_v62 = vadd.f32 %v4993_v55, %v4992_v34  ;;  %v4996_v49 = vpop.f32.mrb[23].mxu0  ;;  %v1519_v1 = vsel %vm6576_vm11, %v1514_v32, %v6728_v16  ;;  %v1529_v2 = vsel %vm6576_vm11, %v1524_v36, %v1528_v37  ;;  %v1445_v21 = vld [vmem:[#allocation2 + $0x38] sm:$0x1] }
 0x300   : > { %3907 = vmatmul.mubr.bf16.gmra.mrb[76].mxu0 %v5705_v26  ;;  %v6761_v3 = vadd.f32 %v4996_v49, %v4995_v63  ;;  %v4998_v5 = vpop.f32.mrb[24].mxu0  ;;  %v1537_v0 = vor.u32 %v1536_v46, %v1533_v35  ;;  %v1547_v58 = vor.u32 %v1546_v50, %v6747_v33  ;;  %v1550_v6 = vshll.u32 %v1442_v56, 16  ;;  %v5710_v49 = vld [vmem:[#allocation2 + $0x18] sm:$0xff]  }
 0x301   : > { %2967 = vmatprep.mubr.bf16.mxu1 %v4669_v43  ;;  %v1557_v17 = vrot.slane %v1555_v51, 4  ;;  %v4999_v38 = vpop.f32.mrb[25].mxu0  ;;  %v6764_v18 = vrot.slane %v1564_v59, 5  ;;  %v1570_v60 = vrot.slane %v1568_v61, 4  ;;  %v4671_v22 = vcombine.low %v1519_v1, %v1529_v2  ;;  %v5713_v51 = vld [vmem:[#allocation11 + $0xa0] sm:$0xff]  }
 0x302   : > { %2968 = vmatmul.mubr.bf16.vlgmr.msra.gmra.mrb[20].mxu1 %v5706_v48  ;;  %v6766_v19 = vadd.f32 %v4999_v38, %v4998_v5  ;;  %v5001_v16 = vpop.f32.mrb[26].mxu0  ;;  %v1538_v24 = vrot.slane %v1537_v0, 4  ;;  %v1548_v39 = vrot.slane %v1547_v58, 4  ;;  %v1552_v27 = vrot.slane %v1550_v6, 5  ;;  %v1448_v58 = vld [vmem:[#allocation2 + $0x44] sm:$0x1] }
 0x303   : > { %5311 = vmatpush3.bf16.msra.mxu1 %v6696_v40  ;;  %2975 = vmatprep.mubr.bf16.mxu1 %v4670_v28  ;;  %v1560_v40 = vrot.slane %v1558_v57, 5  ;;  %v5002_v8 = vpop.f32.mrb[27].mxu0  ;;  %v5711_v28 = vld [vmem:[#allocation11 + $0x98] sm:$0xff]   ;;  %v1571_v31 = vor.u32 %v1570_v60, %v6764_v18  ;;  %v1574_v32 = vshll.u32 %v1445_v21, 16  ;;  %v1579_v41 = vshrl.u32 %v1446_v52, 16 }
 0x304   : > { %5312 = vmatprep.subr.bf16.mxu1 %v5707_v44  ;;  %v6768_v25 = vadd.f32 %v5002_v8, %v5001_v16  ;;  %v5004_v26 = vpop.f32.mrb[28].mxu0  ;;  %v1582_v42 = vshll.u32 %v1446_v52, 16  ;;  %v1588_v43 = vshll.u32 %v1447_v23, 16  ;;  %v1592_v35 = vshrl.u32 %v1447_v23, 16  ;;  %v1449_v6 = vld [vmem:[#allocation2 + $0x48] sm:$0xf] }
 0x305   : > { %v5005_v29 = vpop.f32.mrb[29].mxu0  ;;  %v1561_v30 = vor.u32 %v1560_v40, %v1557_v17  ;;  %v1553_v50 = vsel %vm6576_vm11, %v1548_v39, %v1552_v27  ;;  %v1572_v57 = vrot.slane %v1571_v31, 4  ;;  %v1576_v59 = vrot.slane %v1574_v32, 5  ;;  %v5715_v40 = vld [vmem:[#allocation11 + $0xa8] sm:$0xff]   ;;  %v1450_v60 = vld [vmem:[#allocation2 + $0x4c] sm:$0xf] }
 0x306   : > { %v6771_v36 = vadd.f32 %v5005_v29, %v5004_v26  ;;  %v5007_v37 = vpop.f32.mrb[30].mxu0  ;;  %v1581_v1 = vrot.slane %v1579_v41, 4  ;;  %v1584_v2 = vrot.slane %v1582_v42, 5  ;;  %v6782_v5 = vrot.slane %v1588_v43, 5  ;;  %v5717_v31 = vld [vmem:[#allocation11 + $0xb0] sm:$0xff]   ;;  %v5712_v43 = vld [vmem:[#allocation2 + $0x24] sm:$0xff]  }
 0x307   : > { %5313 = vmatpush3.bf16.msra.mxu1 %v5707_v44  ;;  %v5008_v46 = vpop.f32.mrb[31].mxu0  ;;  %v1543_v44 = vsel %vm6576_vm11, %v1538_v24, %v6747_v33  ;;  %v1562_v56 = vrot.slane %v1561_v30, 4  ;;  %v1577_v21 = vsel %vm6576_vm11, %v1572_v57, %v1576_v59  ;;  %v1598_v26 = vshll.u32 %v1448_v58, 16 }
 0x308   : > { %5314 = vmatprep.subr.bf16.mxu1 %v5709_v7  ;;  %v6773_v34 = vadd.f32 %v5008_v46, %v5007_v37  ;;  %v5010_v48 = vpop.f32.mrb[32].mxu0  ;;  %v4672_v33 = vcombine.low %v1543_v44, %v1553_v50  ;;  %v1585_v52 = vor.u32 %v1584_v2, %v1581_v1  ;;  %v1603_v24 = vshrl.u32 %v1449_v6, 16  ;;  %v1452_v2 = vld [vmem:[#allocation2 + $0x54] sm:$0xf] }
 0x309   : > { %v5011_v55 = vpop.f32.mrb[33].mxu0  ;;  %v1606_v27 = vshll.u32 %v1449_v6, 16  ;;  %v1616_v29 = vshrl.u32 %v1450_v60, 16 }
 0x30a   : > { %2976 = vmatmul.mubr.bf16.gmra.mrb[24].mxu1 %v5708_v20  ;;  %v6780_v61 = vadd.f32 %v5011_v55, %v5010_v48  ;;  %v5013_v63 = vpop.f32.mrb[34].mxu0  ;;  %v1567_v20 = vsel %vm6576_vm11, %v1562_v56, %v6764_v18  ;;  %v1600_v48 = vrot.slane %v1598_v26, 5  ;;  %v1605_v44 = vrot.slane %v1603_v24, 4  ;;  %v6809_v26 = vld [vmem:[#allocation11 + $0x200] sm:$0xff]  }
 0x30b   : > { %2983 = vmatprep.mubr.bf16.mxu1 %v4671_v22  ;;  %5315 = vmatpush3.bf16.msra.mxu1 %v5709_v7  ;;  %v1594_v7 = vrot.slane %v1592_v35, 4  ;;  %v5014_v0 = vpop.f32.mrb[35].mxu0  ;;  %v4673_v37 = vcombine.low %v1567_v20, %v1577_v21  ;;  %v1586_v35 = vrot.slane %v1585_v52, 4  ;;  %v1618_v56 = vrot.slane %v1616_v29, 4 }
 0x30c   : > { %5316 = vmatprep.subr.bf16.mxu1 %v5711_v28  ;;  %v6784_v17 = vadd.f32 %v5014_v0, %v5013_v63  ;;  %v5016_v38 = vpop.f32.mrb[36].mxu0  ;;  %v1451_v63 = vld [vmem:[#allocation2 + $0x50] sm:$0x1]  ;;  %v1627_v21 = vshrl.u32 %v1452_v2, 16 }
 0x30d   : > { %v5017_v16 = vpop.f32.mrb[37].mxu0  ;;  %v1595_v23 = vor.u32 %v1594_v7, %v6782_v5  ;;  %v1453_v7 = vld [vmem:[#allocation2 + $0x58] sm:$0xf]  ;;  %v1591_v58 = vsel %vm6576_vm11, %v1586_v35, %v6782_v5  ;;  %v5714_v5 = vld [vmem:[#allocation2 + $0x30] sm:$0xff]  }
 0x30e   : > { %v6791_v8 = vadd.f32 %v5017_v16, %v5016_v38  ;;  %v5019_v22 = vpop.f32.mrb[38].mxu0  ;;  %v1622_v16 = vshll.u32 %v1451_v63, 16  ;;  %v1636_v52 = vshll.u32 %v1453_v7, 16 }
 0x30f   : > { %5317 = vmatpush3.bf16.msra.mxu1 %v5711_v28  ;;  %v5020_v39 = vpop.f32.mrb[39].mxu0  ;;  %v1612_v28 = vshll.u32 %v1450_v60, 16  ;;  %v1596_v46 = vrot.slane %v1595_v23, 4  ;;  %v1640_v23 = vshrl.u32 %v1453_v7, 16 }
 0x310   : > { %5318 = vmatprep.subr.bf16.mxu1 %v5713_v51  ;;  %v6794_v30 = vadd.f32 %v5020_v39, %v5019_v22  ;;  %v5022_v18 = vpop.f32.mrb[40].mxu0  ;;  %v1630_v22 = vshll.u32 %v1452_v2, 16 }
 0x311   : > { %v5023_v32 = vpop.f32.mrb[41].mxu0  ;;  %v1614_v55 = vrot.slane %v1612_v28, 5  ;;  %v1601_v6 = vsel %vm6576_vm11, %v1596_v46, %v1600_v48  ;;  %v1642_v35 = vrot.slane %v1640_v23, 4  ;;  %v1454_v48 = vld [vmem:[#allocation2 + $0x5c] sm:$0x1]  ;;  %v5718_v23 = vld [vmem:[#allocation2 + $0x48] sm:$0xff]  }
 0x312   : > { %2984 = vmatmul.mubr.bf16.gmra.mrb[28].mxu1 %v5710_v49  ;;  %v6796_v41 = vadd.f32 %v5023_v32, %v5022_v18  ;;  %v5025_v42 = vpop.f32.mrb[42].mxu0  ;;  %v5719_v49 = vld [vmem:[#allocation11 + $0xb8] sm:$0xff]   ;;  %v4674_v39 = vcombine.low %v1591_v58, %v1601_v6  ;;  %v1624_v18 = vrot.slane %v1622_v16, 5  ;;  %v1646_v63 = vshll.u32 %v1454_v48, 16 }
 0x313   : > { %2991 = vmatprep.mubr.bf16.mxu1 %v4672_v33  ;;  %5319 = vmatpush3.bf16.msra.mxu1 %v5713_v51  ;;  %v5026_v50 = vpop.f32.mrb[43].mxu0  ;;  %v1608_v51 = vrot.slane %v1606_v27, 5  ;;  %v1619_v60 = vor.u32 %v1618_v56, %v1614_v55 }
 0x314   : > { %5320 = vmatprep.subr.bf16.mxu1 %v5715_v40  ;;  %v6798_v57 = vadd.f32 %v5026_v50, %v5025_v42  ;;  %v5028_v59 = vpop.f32.mrb[44].mxu0  ;;  %v1632_v42 = vrot.slane %v1630_v22, 5 }
 0x315   : > { %v5029_v1 = vpop.f32.mrb[45].mxu0  ;;  %v1620_v29 = vrot.slane %v1619_v60, 4 }
 0x316   : > { %v6800_v0 = vadd.f32 %v5029_v1, %v5028_v59  ;;  %v5031_v33 = vpop.f32.mrb[46].mxu0  ;;  %v5716_v1 = vld [vmem:[#allocation2 + $0x3c] sm:$0xff]  }
 0x317   : > { %5321 = vmatpush3.bf16.msra.mxu1 %v5715_v40  ;;  %v5032_v38 = vpop.f32.mrb[47].mxu0  ;;  %v1609_v40 = vor.u32 %v1608_v51, %v1605_v44  ;;  %v1625_v51 = vsel %vm6576_vm11, %v1620_v29, %v1624_v18  ;;  %v1694_v29 = vld [vmem:[#allocation2 + $0x10] sm:$0xf] }
 0x318   : > { %5322 = vmatprep.subr.bf16.mxu1 %v5717_v31  ;;  %v6807_v20 = vadd.f32 %v5032_v38, %v5031_v33  ;;  %v5146_v24 = vpop.f32.mrb[48].mxu0 }
 0x319   : > { %v5147_v27 = vpop.f32.mrb[49].mxu0  ;;  %v1610_v28 = vrot.slane %v1609_v40, 4  ;;  %v1648_v40 = vrot.slane %v1646_v63, 5  ;;  %v1698_v63 = vld [vmem:[#allocation2 + $0x20] sm:$0x1] }
 0x31a   : > { %2992 = vmatmul.mubr.bf16.gmra.mrb[32].mxu1 %v5712_v43  ;;  %v6811_v32 = vadd.f32 %v5147_v27, %v5146_v24  ;;  %v1638_v43 = vrot.slane %v1636_v52, 5 }
 0x31b   : > { %2999 = vmatprep.mubr.bf16.mxu1 %v4673_v37  ;;  %5323 = vmatpush3.bf16.msra.mxu1 %v5717_v31  ;;  %v5149_v31 = vpop.f32.mrb[50].mxu0  ;;  %v1629_v37 = vrot.slane %v1627_v21, 4  ;;  %v1615_v50 = vsel %vm6576_vm11, %v1610_v28, %v1614_v55  ;;  %v1691_v55 = vld [vmem:[#allocation2 + $0x4] sm:$0xf] }
 0x31c   : > { %5324 = vmatprep.subr.bf16.mxu1 %v5719_v49  ;;  %v5150_v46 = vpop.f32.mrb[51].mxu0  ;;  %v1643_v59 = vor.u32 %v1642_v35, %v1638_v43  ;;  %v4675_v7 = vcombine.low %v1615_v50, %v1625_v51  ;;  %v1743_v24 = vrot.slane %v1691_v55, 5  ;;  %v1695_v51 = vld [vmem:[#allocation2 + $0x14] sm:$0x1] }
 0x31d   : > { %v6814_v44 = vadd.f32 %v5150_v46, %v5149_v31  ;;  %v1633_v56 = vor.u32 %v1632_v42, %v1629_v37  ;;  %v1690_v31 = vld [vmem:[#allocation2] sm:$0xe]  ;;  %v1692_v37 = vld [vmem:[#allocation2 + $0x8] sm:$0x1]  ;;  %v1697_v42 = vld [vmem:[#allocation2 + $0x1c] sm:$0xf] }
 0x31e   : > { %v1644_v38 = vrot.slane %v1643_v59, 4  ;;  %v1750_v46 = vrot.slane %v1694_v29, 5  ;;  %v4677_v48 = vrot.slane %v1690_v31, 9  ;;  %v1746_v50 = vrot.slane %v1692_v37, 5  ;;  %v1696_v59 = vld [vmem:[#allocation2 + $0x18] sm:$0xe] }
 0x31f   : > { %5325 = vmatpush3.bf16.msra.mxu1 %v5719_v49  ;;  %v5152_v49 = vpop.f32.mrb[52].mxu0  ;;  %v1634_v6 = vrot.slane %v1633_v56, 4  ;;  %v1757_v56 = vrot.slane %v1697_v42, 5 }
 0x320   : > { %5342 = vmatprep.subr.bf16.mxu1 %v6809_v26  ;;  %v5153_v2 = vpop.f32.mrb[53].mxu0  ;;  %v1649_v22 = vsel %vm6576_vm11, %v1644_v38, %v1648_v40  ;;  %v1753_v38 = vrot.slane %v1695_v51, 5  ;;  %v1744_v55 = vsel %vm6646_vm14, %v4677_v48, %v1743_v24  ;;  %v1704_v51 = vld [vmem:[#allocation2 + $0x38] sm:$0x1] }
 0x321   : > { %v6820_v33 = vadd.f32 %v5153_v2, %v5152_v49  ;;  %v5155_v58 = vpop.f32.mrb[54].mxu0  ;;  %v1639_v21 = vsel %vm6576_vm11, %v1634_v6, %v1638_v43  ;;  %v1745_v43 = vrot.slane %v1743_v24, 4  ;;  %v1752_v6 = vrot.slane %v1750_v46, 4 }
 0x322   : > { %3000 = vmatmul.mubr.bf16.gmra.mrb[36].mxu1 %v5714_v5  ;;  %v5156_v60 = vpop.f32.mrb[55].mxu0 }
 0x323   : > { %3007 = vmatprep.mubr.bf16.mxu1 %v4674_v39  ;;  %v6822_v16 = vadd.f32 %v5156_v60, %v5155_v58  ;;  %v4676_v39 = vcombine.low %v1639_v21, %v1649_v22  ;;  %v1747_v2 = vsel %vm6646_vm14, %v1745_v43, %v1746_v50  ;;  %v4678_v58 = vrot.slane %v1693_v45, 9  ;;  %v1699_v43 = vld [vmem:[#allocation2 + $0x24] sm:$0xe]  ;;  %v1701_v45 = vld [vmem:[#allocation2 + $0x2c] sm:$0x1] }
 0x324   : > { %v4679_v21 = vrot.slane %v1696_v59, 9  ;;  %v1759_v22 = vrot.slane %v1757_v56, 4  ;;  %v1754_v31 = vsel %vm6646_vm14, %v1752_v6, %v1753_v38  ;;  %v1702_v50 = vld [vmem:[#allocation2 + $0x30] sm:$0xe] }
 0x325   : > { %v4681_v6 = vrot.slane %v1702_v50, 9  ;;  %v1710_v50 = vld [vmem:[#allocation2 + $0x50] sm:$0x1] }
 0x326   : > { %v1758_v24 = vsel %vm6646_vm14, %v4679_v21, %v1757_v56  ;;  %v1706_v56 = vld [vmem:[#allocation2 + $0x40] sm:$0xf] }
 0x327   : > { %v5158_v52 = vpop.f32.mrb[56].mxu0 }
 0x328   : > { %v5159_v5 = vpop.f32.mrb[57].mxu0 }
 0x329   : > { %v6828_v27 = vadd.f32 %v5159_v5, %v5158_v52  ;;  %v5161_v28 = vpop.f32.mrb[58].mxu0  ;;  %v1760_v52 = vrot.slane %v1698_v63, 5 }
 0x32a   : > { %3008 = vmatmul.mubr.bf16.gmra.mrb[40].mxu1 %v5716_v1  ;;  %v5162_v18 = vpop.f32.mrb[59].mxu0  ;;  %v5720_v1 = vld [vmem:[#allocation2 + $0x54] sm:$0xff]  }
 0x32b   : > { %3015 = vmatprep.mubr.bf16.mxu1 %v4675_v7  ;;  %v6830_v35 = vadd.f32 %v5162_v18, %v5161_v28  ;;  %v1703_v28 = vld [vmem:[#allocation2 + $0x34] sm:$0xf]  ;;  %v1751_v18 = vsel %vm6646_vm14, %v4678_v58, %v1750_v46  ;;  %v1761_v42 = vsel %vm6646_vm14, %v1759_v22, %v1760_v52  ;;  %v4680_v46 = vrot.slane %v1699_v43, 9  ;;  %v1709_v22 = vld [vmem:[#allocation2 + $0x4c] sm:$0xf] }
 0x32c   : > { %v1771_v48 = vrot.slane %v1703_v28, 5  ;;  %v4686_v59 = vcombine.low %v1751_v18, %v1754_v31  ;;  %v1778_v28 = vrot.slane %v1706_v56, 5  ;;  %v5723_v18 = vld [vmem:[#allocation11 + $0x210] sm:$0xff]   ;;  %v1707_v43 = vld [vmem:[#allocation2 + $0x44] sm:$0x1] }
 0x32e   : > { %v1773_v38 = vrot.slane %v1771_v48, 4  ;;  %v1772_v31 = vsel %vm6646_vm14, %v4681_v6, %v1771_v48  ;;  %v1788_v48 = vrot.slane %v1710_v50, 5  ;;  %v1712_v6 = vld [vmem:[#allocation2 + $0x58] sm:$0xf] }
 0x32f   : > { %v5164_v49 = vpop.f32.mrb[60].mxu0  ;;  %v3458_v50 = vld [vmem:[#allocation2 + $0x18] sm:$0xe] }
 0x330   : > { %v5165_v7 = vpop.f32.mrb[61].mxu0 }
 0x331   : > { %v6834_v40 = vadd.f32 %v5165_v7, %v5164_v49  ;;  %v5167_v60 = vpop.f32.mrb[62].mxu0  ;;  %v5722_v49 = vld [vmem:[#allocation11 + $0x208] sm:$0xff]   ;;  %v1767_v7 = vrot.slane %v1701_v45, 5  ;;  %v1785_v45 = vrot.slane %v1709_v22, 5 }
 0x332   : > { %3016 = vmatmul.mubr.bf16.gmra.mrb[44].mxu1 %v5718_v23  ;;  %v1700_v23 = vld [vmem:[#allocation2 + $0x28] sm:$0xf]  ;;  %v5168_v5 = vpop.f32.mrb[63].mxu0 }
 0x333   : > { %3023 = vmatprep.mubr.bf16.mxu1 %v4676_v39  ;;  %v4685_v39 = vcombine.low %v1744_v55, %v1747_v2  ;;  %v6838_v29 = vadd.f32 %v5168_v5, %v5167_v60  ;;  %v1764_v37 = vrot.slane %v1700_v23, 5  ;;  %v1774_v60 = vrot.slane %v1704_v51, 5 }
 0x335   : > { %v1766_v2 = vrot.slane %v1764_v37, 4  ;;  %v1765_v5 = vsel %vm6646_vm14, %v4680_v46, %v1764_v37  ;;  %v5724_v37 = vld [vmem:[#allocation11 + $0x218] sm:$0xff]   ;;  %v1781_v46 = vrot.slane %v1707_v43, 5  ;;  %v1711_v43 = vld [vmem:[#allocation2 + $0x54] sm:$0xe] }
 0x337   : > { %v5170_v63 = vpop.f32.mrb[64].mxu0 }
 0x338   : > { %v5171_v58 = vpop.f32.mrb[65].mxu0 }
 0x339   : > { %v6848_v55 = vadd.f32 %v5171_v58, %v5170_v63  ;;  %v5173_v21 = vpop.f32.mrb[66].mxu0  ;;  %v1787_v58 = vrot.slane %v1785_v45, 4 }
 0x33a   : > { %3024 = vmatmul.mubr.bf16.gmra.mrb[48].mxu1 %v5720_v1  ;;  %v4687_v1 = vcombine.low %v1758_v24, %v1761_v42  ;;  %v5174_v52 = vpop.f32.mrb[67].mxu0  ;;  %v1775_v24 = vsel %vm6646_vm14, %v1773_v38, %v1774_v60  ;;  %v1705_v42 = vld [vmem:[#allocation2 + $0x3c] sm:$0xe] }
 0x33b   : > { %5326 = vmatprep.mubr.bf16.mxu1 %v4685_v39  ;;  %v6850_v23 = vadd.f32 %v5174_v52, %v5173_v21  ;;  %v1768_v39 = vsel %vm6646_vm14, %v1766_v2, %v1767_v7  ;;  %v4682_v63 = vrot.slane %v1705_v42, 9  ;;  %v3459_v38 = vld [vmem:[#allocation2 + $0x1c] sm:$0xf]  ;;  %v1789_v42 = vsel %vm6646_vm14, %v1787_v58, %v1788_v48 }
 0x33c   : > { %v4688_v51 = vcombine.low %v1765_v5, %v1768_v39  ;;  %v1792_v5 = vrot.slane %v1712_v6, 5  ;;  %v4789_v6 = vrot.slane %v3458_v50, 9  ;;  %v5727_v48 = vld [vmem:[#allocation11 + $0x230] sm:$0xff]  }
 0x33f   : > { %v5176_v2 = vpop.f32.mrb[68].mxu0 }
 0x340   : > { %v5177_v56 = vpop.f32.mrb[69].mxu0 }
 0x341   : > { %v6861_v60 = vadd.f32 %v5177_v56, %v5176_v2  ;;  %v5179_v21 = vpop.f32.mrb[70].mxu0  ;;  %v5726_v2 = vld [vmem:[#allocation11 + $0x228] sm:$0xff]  }
 0x342   : > { %5327 = vmatmul.mubr.bf16.vlgmr.msra.gmra.mrb[4].mxu1 %v4686_v59  ;;  %v4689_v59 = vcombine.low %v1772_v31, %v1775_v24  ;;  %v5180_v22 = vpop.f32.mrb[71].mxu0  ;;  %v5725_v31 = vld [vmem:[#allocation11 + $0x220] sm:$0xff]  }
 0x343   : > { %5343 = vmatpush3.bf16.msra.mxu1 %v6809_v26  ;;  %5330 = vmatprep.mubr.bf16.mxu1 %v4687_v1  ;;  %v1708_v26 = vld [vmem:[#allocation2 + $0x48] sm:$0xe]  ;;  %v1780_v1 = vrot.slane %v1778_v28, 4  ;;  %v6867_v39 = vadd.f32 %v5180_v22, %v5179_v21 }
 0x344   : > { %5344 = vmatprep.subr.bf16.mxu1 %v5722_v49  ;;  %v4683_v7 = vrot.slane %v1708_v26, 9  ;;  %v3508_v26 = vrot.slane %v3459_v38, 5 }
 0x345   : > { %v1782_v52 = vsel %vm6646_vm14, %v1780_v1, %v1781_v46  ;;  %v1794_v1 = vrot.slane %v1792_v5, 4 }
 0x346   : > { %v1786_v24 = vsel %vm6646_vm14, %v4683_v7, %v1785_v45  ;;  %v3510_v56 = vrot.slane %v3508_v26, 4  ;;  %v3462_v45 = vld [vmem:[#allocation2 + $0x28] sm:$0xf]  ;;  %v3465_v7 = vld [vmem:[#allocation2 + $0x34] sm:$0xf] }
 0x347   : > { %5345 = vmatpush3.bf16.msra.mxu1 %v5722_v49  ;;  %v1779_v49 = vsel %vm6646_vm14, %v4682_v63, %v1778_v28  ;;  %v4684_v63 = vrot.slane %v1711_v43, 9  ;;  %v5182_v22 = vpop.f32.mrb[72].mxu0  ;;  %v3522_v50 = vrot.slane %v3465_v7, 5 }
 0x348   : > { %5346 = vmatprep.subr.bf16.mxu1 %v5723_v18  ;;  %v4690_v28 = vcombine.low %v1779_v49, %v1782_v52  ;;  %v5183_v58 = vpop.f32.mrb[73].mxu0  ;;  %v3515_v49 = vrot.slane %v3462_v45, 5 }
 0x349   : > { %v6877_v52 = vadd.f32 %v5183_v58, %v5182_v22  ;;  %v5728_v58 = vld [vmem:[#allocation11 + $0x238] sm:$0xff]  }
 0x34a   : > { %5331 = vmatmul.mubr.bf16.gmra.mrb[8].mxu1 %v4688_v51  ;;  %v3460_v51 = vld [vmem:[#allocation2 + $0x20] sm:$0x1]  ;;  %v3517_v45 = vrot.slane %v3515_v49, 4 }
 0x34b   : > { %5347 = vmatpush3.bf16.msra.mxu1 %v5723_v18  ;;  %5334 = vmatprep.mubr.bf16.mxu1 %v4689_v59  ;;  %v1713_v18 = vld [vmem:[#allocation2 + $0x5c] sm:$0x1]  ;;  %v4691_v59 = vcombine.low %v1786_v24, %v1789_v42  ;;  %v3511_v21 = vrot.slane %v3460_v51, 5  ;;  %v5185_v24 = vpop.f32.mrb[74].mxu0  ;;  %v3509_v42 = vsel %vm6646_vm14, %v4789_v6, %v3508_v26  ;;  %v3524_v6 = vrot.slane %v3522_v50, 4 }
 0x34c   : > { %5348 = vmatprep.subr.bf16.mxu1 %v5724_v37  ;;  %v1795_v46 = vrot.slane %v1713_v18, 5  ;;  %v3463_v18 = vld [vmem:[#allocation2 + $0x2c] sm:$0x1]  ;;  %v5186_v51 = vpop.f32.mrb[75].mxu0 }
 0x34d   : > { %v3512_v43 = vsel %vm6646_vm14, %v3510_v56, %v3511_v21  ;;  %v3518_v22 = vrot.slane %v3463_v18, 5  ;;  %v3468_v56 = vld [vmem:[#allocation2 + $0x40] sm:$0xf]  ;;  %v3471_v21 = vld [vmem:[#allocation2 + $0x4c] sm:$0xf] }
 0x34e   : > { %v1796_v38 = vsel %vm6646_vm14, %v1794_v1, %v1795_v46  ;;  %v4797_v1 = vcombine.low %v3509_v42, %v3512_v43  ;;  %v3467_v42 = vld [vmem:[#allocation2 + $0x3c] sm:$0xe]  ;;  %v3469_v43 = vld [vmem:[#allocation2 + $0x44] sm:$0x1]  ;;  %v3470_v18 = vld [vmem:[#allocation2 + $0x48] sm:$0xe] }
 0x34f   : > { %5349 = vmatpush3.bf16.msra.mxu1 %v5724_v37  ;;  %v1793_v37 = vsel %vm6646_vm14, %v4684_v63, %v1792_v5  ;;  %v3466_v5 = vld [vmem:[#allocation2 + $0x38] sm:$0x1] }
 0x350   : > { %5350 = vmatprep.subr.bf16.mxu1 %v5725_v31  ;;  %v4692_v63 = vcombine.low %v1793_v37, %v1796_v38  ;;  %v3525_v14 = vrot.slane %v3466_v5, 5  ;;  %v3529_v37 = vrot.slane %v3468_v56, 5  ;;  %v3477_v56 = vld [vmem:[#allocation2 + $0x64] sm:$0xf] }
 0x352   : > { %5335 = vmatmul.mubr.bf16.gmra.mrb[12].mxu1 %v4690_v28  ;;  %v3464_v28 = vld [vmem:[#allocation2 + $0x30] sm:$0xe]  ;;  %v3531_v5 = vrot.slane %v3529_v37, 4 }
 0x353   : > { %5351 = vmatpush3.bf16.msra.mxu1 %v5725_v31  ;;  %5338 = vmatprep.mubr.bf16.mxu1 %v4691_v59  ;;  %v3461_v31 = vld [vmem:[#allocation2 + $0x24] sm:$0xe]  ;;  %v6883_v59 = vadd.f32 %v5186_v51, %v5185_v24  ;;  %v4791_v26 = vrot.slane %v3464_v28, 9  ;;  %v3526_v24 = vsel %vm6646_vm14, %v3524_v6, %v3525_v14 }
 0x354   : > { %5352 = vmatprep.subr.bf16.mxu1 %v5726_v2  ;;  %v4790_v46 = vrot.slane %v3461_v31, 9  ;;  %v3536_v31 = vrot.slane %v3471_v21, 5  ;;  %v3473_v21 = vld [vmem:[#allocation2 + $0x54] sm:$0xe] }
 0x355   : > { %v3523_v38 = vsel %vm6646_vm14, %v4791_v26, %v3522_v50 }
 0x356   : > { %v3516_v7 = vsel %vm6646_vm14, %v4790_v46, %v3515_v49  ;;  %v4799_v28 = vcombine.low %v3523_v38, %v3526_v24  ;;  %v4792_v49 = vrot.slane %v3467_v42, 9  ;;  %v3538_v46 = vrot.slane %v3536_v31, 4  ;;  %v3476_v38 = vld [vmem:[#allocation2 + $0x60] sm:$0xe]  ;;  %v3478_v24 = vld [vmem:[#allocation2 + $0x68] sm:$0x1] }
 0x357   : > { %5353 = vmatpush3.bf16.msra.mxu1 %v5726_v2  ;;  %v3519_v2 = vsel %vm6646_vm14, %v3517_v45, %v3518_v22  ;;  %v3474_v22 = vld [vmem:[#allocation2 + $0x58] sm:$0xf] }
 0x358   : > { %5354 = vmatprep.subr.bf16.mxu1 %v5727_v48  ;;  %v4798_v51 = vcombine.low %v3516_v7, %v3519_v2  ;;  %v3530_v14 = vsel %vm6646_vm14, %v4792_v49, %v3529_v37  ;;  %v3543_v26 = vrot.slane %v3474_v22, 5  ;;  %v3475_v7 = vld [vmem:[#allocation2 + $0x5c] sm:$0x1]  ;;  %v3550_v2 = vrot.slane %v3477_v56, 5 }
 0x359   : > { %v3546_v37 = vrot.slane %v3475_v7, 5  ;;  %v3553_v49 = vrot.slane %v3478_v24, 5  ;;  %v5730_v24 = vld [vmem:[#allocation12 + $0x8] sm:$0xff]  }
 0x35a   : > { %5339 = vmatmul.mubr.bf16.gmra.mrb[16].mxu1 %v4692_v63  ;;  %v3532_v63 = vrot.slane %v3469_v43, 5 }
 0x35b   : > { %5355 = vmatpush3.bf16.msra.mxu1 %v5727_v48  ;;  %5358 = vmatprep.mubr.bf16.mxu1 %v4797_v1  ;;  %v3472_v48 = vld [vmem:[#allocation2 + $0x50] sm:$0x1]  ;;  %v4793_v1 = vrot.slane %v3470_v18, 9  ;;  %v4794_v18 = vrot.slane %v3473_v21, 9 }
 0x35c   : > { %5356 = vmatprep.subr.bf16.mxu1 %v5728_v58  ;;  %v3539_v45 = vrot.slane %v3472_v48, 5  ;;  %v3533_v50 = vsel %vm6646_vm14, %v3531_v5, %v3532_v63  ;;  %v3545_v48 = vrot.slane %v3543_v26, 4  ;;  %v3480_v5 = vld [vmem:[#allocation2 + $0x70] sm:$0xf] }
 0x35d   : > { %v4800_v42 = vcombine.low %v3530_v14, %v3533_v50  ;;  %v3479_v14 = vld [vmem:[#allocation2 + $0x6c] sm:$0xe]  ;;  %v3481_v50 = vld [vmem:[#allocation2 + $0x74] sm:$0x1] }
 0x35e   : > { %v3540_v6 = vsel %vm6646_vm14, %v3538_v46, %v3539_v45  ;;  %v3547_v63 = vsel %vm6646_vm14, %v3545_v48, %v3546_v37  ;;  %v3557_v45 = vrot.slane %v3480_v5, 5  ;;  %v3560_v21 = vrot.slane %v3481_v50, 5  ;;  %v5734_v48 = vld [vmem:[#allocation12 + $0x28] sm:$0xff]   ;;  %v5736_v37 = vld [vmem:[#allocation12 + $0x38] sm:$0xff]  }
 0x35f   : > { %5357 = vmatpush3.bf16.msra.mxu1 %v5728_v58  ;;  %v3537_v58 = vsel %vm6646_vm14, %v4793_v1, %v3536_v31  ;;  %v3544_v31 = vsel %vm6646_vm14, %v4794_v18, %v3543_v26  ;;  %v5733_v18 = vld [vmem:[#allocation12 + $0x20] sm:$0xff]  }
 0x360   : > { %v4801_v43 = vcombine.low %v3537_v58, %v3540_v6  ;;  %v4802_v22 = vcombine.low %v3544_v31, %v3547_v63  ;;  %v3559_v58 = vrot.slane %v3557_v45, 4  ;;  %v4796_v6 = vrot.slane %v3479_v14, 9 }
 0x362   : > { %5359 = vmatmul.mubr.bf16.vlgmr.msra.gmra.mrb[4].mxu1 %v4798_v51  ;;  %v4795_v51 = vrot.slane %v3476_v38, 9  ;;  %v3561_v26 = vsel %vm6646_vm14, %v3559_v58, %v3560_v21  ;;  %v3558_v7 = vsel %vm6646_vm14, %v4796_v6, %v3557_v45  ;;  %v5729_v38 = vld [vmem:[#allocation12] sm:$0xff]  }
 0x363   : > { %5362 = vmatprep.mubr.bf16.mxu1 %v4799_v28  ;;  %v3552_v28 = vrot.slane %v3550_v2, 4  ;;  %5374 = vmatprep.subr.bf16.mxu0 %v5729_v38 }
 0x364   : > { %v3551_v1 = vsel %vm6646_vm14, %v4795_v51, %v3550_v2  ;;  %v4804_v2 = vcombine.low %v3558_v7, %v3561_v26  ;;  %5375 = vmatpush3.bf16.msra.mxu0 %v5729_v38 }
 0x365   : > { %v3554_v46 = vsel %vm6646_vm14, %v3552_v28, %v3553_v49  ;;  %5376 = vmatprep.subr.bf16.mxu0 %v5730_v24 }
 0x366   : > { %v4803_v56 = vcombine.low %v3551_v1, %v3554_v46 }
 0x368   : > { %5377 = vmatpush3.bf16.msra.mxu0 %v5730_v24 }
 0x36a   : > { %5363 = vmatmul.mubr.bf16.gmra.mrb[8].mxu1 %v4800_v42  ;;  %v5731_v42 = vld [vmem:[#allocation12 + $0x10] sm:$0xff]  }
 0x36b   : > { %5366 = vmatprep.mubr.bf16.mxu1 %v4801_v43  ;;  %v5732_v43 = vld [vmem:[#allocation12 + $0x18] sm:$0xff]   ;;  %5378 = vmatprep.subr.bf16.mxu0 %v5731_v42 }
 0x36c   : > { %5379 = vmatpush3.bf16.msra.mxu0 %v5731_v42 }
 0x36d   : > { %5380 = vmatprep.subr.bf16.mxu0 %v5732_v43 }
 0x370   : > { %5381 = vmatpush3.bf16.msra.mxu0 %v5732_v43 }
 0x371   : > { %5382 = vmatprep.subr.bf16.mxu0 %v5733_v18 }
 0x372   : > { %5367 = vmatmul.mubr.bf16.gmra.mrb[12].mxu1 %v4802_v22 }
 0x373   : > { %5370 = vmatprep.mubr.bf16.mxu1 %v4803_v56 }
 0x374   : > { %5383 = vmatpush3.bf16.msra.mxu0 %v5733_v18 }
 0x375   : > { %5384 = vmatprep.subr.bf16.mxu0 %v5734_v48 }
 0x378   : > { %5385 = vmatpush3.bf16.msra.mxu0 %v5734_v48 }
 0x379   : > { %5386 = vmatprep.subr.bf16.mxu0 %v5735_v47 }
 0x37a   : > { %5371 = vmatmul.mubr.bf16.gmra.mrb[16].mxu1 %v4804_v2 }
 0x37c   : > { %5387 = vmatpush3.bf16.msra.mxu0 %v5735_v47 }
 0x37d   : > { %5388 = vmatprep.subr.bf16.mxu0 %v5736_v37 }
 0x380   : > { %5389 = vmatpush3.bf16.msra.mxu0 %v5736_v37 }
 0x3d3   : > { %v5188_v51 = vpop.f32.mrb[76].mxu0 }
 0x3d4   : > { %v5189_v28 = vpop.f32.mrb[77].mxu0 }
 0x3d5   : > { %v6913_v49 = vadd.f32 %v5189_v28, %v5188_v51  ;;  %v5191_v5 = vpop.f32.mrb[78].mxu0  ;;  %v5066_v63 = vpop.f32.mrb[20].mxu1 }
 0x3d6   : > { %v5192_v31 = vpop.f32.mrb[79].mxu0  ;;  %v5067_v46 = vpop.f32.mrb[21].mxu1 }
 0x3d7   : > { %v6915_v1 = vadd.f32 %v5192_v31, %v5191_v5  ;;  %v5068_v45 = vadd.f32 %v5067_v46, %v5066_v63  ;;  %v5069_v22 = vpop.f32.mrb[22].mxu1 }
 0x3d8   : > { %v5070_v56 = vpop.f32.mrb[23].mxu1 }
 0x3d9   : > { %v5409_v14 = vadd.f32 %v5068_v45, %v6749_v53  ;;  %v5071_v50 = vadd.f32 %v5070_v56, %v5069_v22 }
 0x3db   : > { %v5415_v58 = vadd.f32 %v5071_v50, %v6751_v54  ;;  %v6920_v6 = vadd.f32 %v5409_v14, %v6811_v32 }
 0x3dd   : > { %v5072_v21 = vpop.f32.mrb[24].mxu1  ;;  %v6923_v26 = vadd.f32 %v5415_v58, %v6814_v44 }
 0x3de   : > { %v5073_v7 = vpop.f32.mrb[25].mxu1 }
 0x3df   : > { %v5074_v2 = vadd.f32 %v5073_v7, %v5072_v21  ;;  %v5075_v38 = vpop.f32.mrb[26].mxu1 }
 0x3e0   : > { %v5076_v24 = vpop.f32.mrb[27].mxu1 }
 0x3e1   : > { %v5406_v42 = vadd.f32 %v5074_v2, %v6753_v62  ;;  %v5077_v43 = vadd.f32 %v5076_v24, %v5075_v38 }
 0x3e3   : > { %v5412_v18 = vadd.f32 %v5077_v43, %v6761_v3  ;;  %v6928_v53 = vadd.f32 %v5406_v42, %v6820_v33 }
 0x3e5   : > { %v5078_v54 = vpop.f32.mrb[28].mxu1  ;;  %v6931_v32 = vadd.f32 %v5412_v18, %v6822_v16 }
 0x3e6   : > { %v5079_v48 = vpop.f32.mrb[29].mxu1 }
 0x3e7   : > { %v5080_v47 = vadd.f32 %v5079_v48, %v5078_v54  ;;  %v5081_v44 = vpop.f32.mrb[30].mxu1 }
 0x3e8   : > { %v5082_v37 = vpop.f32.mrb[31].mxu1 }
 0x3e9   : > { %v5421_v51 = vadd.f32 %v5080_v47, %v6766_v19  ;;  %v5083_v28 = vadd.f32 %v5082_v37, %v5081_v44 }
 0x3eb   : > { %v5427_v5 = vadd.f32 %v5083_v28, %v6768_v25  ;;  %v6936_v62 = vadd.f32 %v5421_v51, %v6828_v27 }
 0x3ed   : > { %v5084_v3 = vpop.f32.mrb[32].mxu1  ;;  %v6939_v33 = vadd.f32 %v5427_v5, %v6830_v35 }
 0x3ee   : > { %v5085_v31 = vpop.f32.mrb[33].mxu1 }
 0x3ef   : > { %v5086_v63 = vadd.f32 %v5085_v31, %v5084_v3  ;;  %v5087_v16 = vpop.f32.mrb[34].mxu1 }
 0x3f0   : > { %v5088_v46 = vpop.f32.mrb[35].mxu1 }
 0x3f1   : > { %v5418_v45 = vadd.f32 %v5086_v63, %v6771_v36  ;;  %v5089_v22 = vadd.f32 %v5088_v46, %v5087_v16 }
 0x3f3   : > { %v5424_v56 = vadd.f32 %v5089_v22, %v6773_v34  ;;  %v6944_v19 = vadd.f32 %v5418_v45, %v6834_v40 }
 0x3f5   : > { %v5090_v25 = vpop.f32.mrb[36].mxu1  ;;  %v6947_v27 = vadd.f32 %v5424_v56, %v6838_v29 }
 0x3f6   : > { %v5091_v14 = vpop.f32.mrb[37].mxu1 }
 0x3f7   : > { %v5092_v50 = vadd.f32 %v5091_v14, %v5090_v25  ;;  %v5093_v35 = vpop.f32.mrb[38].mxu1 }
 0x3f8   : > { %v5094_v58 = vpop.f32.mrb[39].mxu1 }
 0x3f9   : > { %v5433_v21 = vadd.f32 %v5092_v50, %v6780_v61  ;;  %v5095_v7 = vadd.f32 %v5094_v58, %v5093_v35 }
 0x3fb   : > { %v5439_v2 = vadd.f32 %v5095_v7, %v6784_v17  ;;  %v6952_v36 = vadd.f32 %v5433_v21, %v6848_v55 }
 0x3fd   : > { %v5096_v34 = vpop.f32.mrb[40].mxu1  ;;  %v6955_v40 = vadd.f32 %v5439_v2, %v6850_v23 }
 0x3fe   : > { %v5097_v38 = vpop.f32.mrb[41].mxu1 }
 0x3ff   : > { %v5098_v24 = vadd.f32 %v5097_v38, %v5096_v34  ;;  %v5099_v29 = vpop.f32.mrb[42].mxu1 }
 0x400   : > { %v5100_v42 = vpop.f32.mrb[43].mxu1 }
 0x401   : > { %v5430_v43 = vadd.f32 %v5098_v24, %v6791_v8  ;;  %v5101_v18 = vadd.f32 %v5100_v42, %v5099_v29 }
 0x403   : > { %v5436_v54 = vadd.f32 %v5101_v18, %v6794_v30  ;;  %v6960_v61 = vadd.f32 %v5430_v43, %v6861_v60 }
 0x405   : > { %v5102_v17 = vpop.f32.mrb[44].mxu1  ;;  %v6963_v55 = vadd.f32 %v5436_v54, %v6867_v39 }
 0x406   : > { %v5103_v48 = vpop.f32.mrb[45].mxu1 }
 0x407   : > { %v5104_v47 = vadd.f32 %v5103_v48, %v5102_v17  ;;  %v5105_v23 = vpop.f32.mrb[46].mxu1 }
 0x408   : > { %v5106_v44 = vpop.f32.mrb[47].mxu1 }
 0x409   : > { %v5445_v37 = vadd.f32 %v5104_v47, %v6796_v41  ;;  %v5107_v51 = vadd.f32 %v5106_v44, %v5105_v23 }
 0x40b   : > { %v5451_v28 = vadd.f32 %v5107_v51, %v6798_v57  ;;  %v6968_v8 = vadd.f32 %v5445_v37, %v6877_v52 }
 0x40d   : > { %v5108_v30 = vpop.f32.mrb[48].mxu1  ;;  %v6971_v60 = vadd.f32 %v5451_v28, %v6883_v59  ;;  %v6984_v59 = vld [vmem:[%s7248_s21] ss:$0 sm:$0xff]  ;;  %s5899_s21 = scalar_lea.vmem %s7111_s5, 1024 }
 0x40e   : > { %v5109_v5 = vpop.f32.mrb[49].mxu1  ;;  %p5900_p7 = scmp.ne.s32.totalorder %s7111_s5, %s5899_s21 }
 0x40f   : > { %v5110_v3 = vadd.f32 %v5109_v5, %v5108_v30  ;;  %v5111_v39 = vpop.f32.mrb[50].mxu1 }
 0x410   : > { %v5112_v31 = vpop.f32.mrb[51].mxu1  ;;  %p5901_p11 = pnand %p5900_p7, %p6257_p3 }
 0x411   : > { %v5442_v63 = vadd.f32 %v5110_v3, %v6800_v0  ;;  %v5113_v16 = vadd.f32 %v5112_v31, %v5111_v39  ;;  %v6990_v0 = vld [vmem:[%s7249_s28] ss:$0 sm:$0xff]  ;;  %s5905_s28 = scalar_lea.vmem %s5904_s12, 2048 }
 0x412   : > { %p5902_p1 = pneg %p5901_p11  ;;  %p5907_p8 = scmp.lt.s32.totalorder %s5905_s28, %s5899_s21 }
 0x413   : > { %v5448_v46 = vadd.f32 %v5113_v16, %v6807_v20  ;;  %v6976_v41 = vadd.f32 %v5442_v63, %v6913_v49 }
 0x414   : > { %p5908_p12 = por %p5907_p8, %p5906_p2 }
 0x415   : > { %v6979_v57 = vadd.f32 %v5448_v46, %v6915_v1 }
 0x416   : > { %p5909_p13 = pnand %p5908_p12, %p5902_p1 }
 0x435   : > { %v5360_v52 = vpop.f32.mrb[4].mxu1 }
 0x436   : > { %v5408_v45 = vadd.f32 %v6928_v53, %v5360_v52  ;;  %v3949_v22 = vpop.f32.mrb[5].mxu1 }
 0x437   : > { %v5411_v20 = vadd.f32 %v6920_v6, %v3949_v22  ;;  %v5361_v49 = vpop.f32.mrb[6].mxu1 }
 0x438   : > { %v4037_v1 = vmul.f32 %v5408_v45, %v6984_v59  ;;  %v5414_v56 = vadd.f32 %v6931_v32, %v5361_v49  ;;  %v3952_v25 = vpop.f32.mrb[7].mxu1 }
 0x439   : > { %v4035_v14 = vmul.f32 %v5411_v20, %v6984_v59  ;;  %v5417_v50 = vadd.f32 %v6923_v26, %v3952_v25 }
 0x43a   : > { %v4060_v53 = vadd.f32 %v6990_v0, %v4037_v1  ;;  %v4038_v35 = vmul.f32 %v5414_v56, %v6984_v59 }
 0x43b   : > { %v4058_v58 = vadd.f32 %v6990_v0, %v4035_v14  ;;  %v4036_v21 = vmul.f32 %v5417_v50, %v6984_v59 }
 0x43c   : > { %v4061_v6 = vadd.f32 %v6990_v0, %v4038_v35  ;;  %v4076_v34 = vmax.f32 %v4060_v53, 0.0 }
 0x43d   : > { %v4059_v7 = vadd.f32 %v6990_v0, %v4036_v21  ;;  %v5364_v2 = vpop.f32.mrb[8].mxu1  ;;  %v4074_v29 = vmax.f32 %v4058_v58, 0.0 }
 0x43e   : > { %v4077_v32 = vmax.f32 %v4061_v6, 0.0  ;;  %v5420_v38 = vadd.f32 %v6944_v19, %v5364_v2  ;;  %v3965_v24 = vpop.f32.mrb[9].mxu1 }
 0x43f   : > { %v4075_v26 = vmax.f32 %v4059_v7, 0.0  ;;  %v5423_v42 = vadd.f32 %v6936_v62, %v3965_v24  ;;  %v5365_v43 = vpop.f32.mrb[10].mxu1 }
 0x440   : > { %v4091_v18 = vpack.c.bf16 %v4077_v32, %v4076_v34  ;;  %v4041_v54 = vmul.f32 %v5420_v38, %v6984_v59  ;;  %v5426_v17 = vadd.f32 %v6947_v27, %v5365_v43  ;;  %v3968_v48 = vpop.f32.mrb[11].mxu1 }
 0x441   : > { %v4039_v47 = vmul.f32 %v5423_v42, %v6984_v59  ;;  %v5429_v23 = vadd.f32 %v6939_v33, %v3968_v48  ;;  %v4090_v44 = vpack.c.bf16 %v4075_v26, %v4074_v29 }
 0x442   : > { %v4064_v37 = vadd.f32 %v6990_v0, %v4041_v54  ;;  %v4042_v19 = vmul.f32 %v5426_v17, %v6984_v59 }
 0x443   : > { %v4062_v51 = vadd.f32 %v6990_v0, %v4039_v47  ;;  %v4040_v62 = vmul.f32 %v5429_v23, %v6984_v59  ;;  %5390 = vmatprep.mubr.bf16.mxu0 %v4090_v44 }
 0x444   : > { %v4065_v28 = vadd.f32 %v6990_v0, %v4042_v19  ;;  %5391 = vmatmul.mubr.bf16.vlgmr.msra.gmra.mrb[80].mxu0 %v4091_v18  ;;  %v4080_v5 = vmax.f32 %v4064_v37, 0.0  ;;  %v7042_v19 = vld [vmem:[%s7250_s27] ss:$0 sm:$0xff] }
 0x445   : > { %v4063_v27 = vadd.f32 %v6990_v0, %v4040_v62  ;;  %v5368_v30 = vpop.f32.mrb[12].mxu1  ;;  %v4078_v31 = vmax.f32 %v4062_v51, 0.0  ;;  %v7047_v51 = vld [vmem:[%s7251_s26] ss:$0 sm:$0xff]  ;;  %v4307_v62 = vunpack.c.l.bf16 %v6350_v9 }
 0x446   : > { %v4081_v3 = vmax.f32 %v4065_v28, 0.0  ;;  %v5432_v33 = vadd.f32 %v6960_v61, %v5368_v30  ;;  %v3981_v39 = vpop.f32.mrb[13].mxu1  ;;  %v4305_v30 = vunpack.c.l.bf16 %v6346_v4 }
 0x447   : > { %v4079_v63 = vmax.f32 %v4063_v27, 0.0  ;;  %v5435_v16 = vadd.f32 %v6952_v36, %v3981_v39  ;;  %v5369_v46 = vpop.f32.mrb[14].mxu1  ;;  %v4308_v39 = vunpack.c.h.bf16 %v6350_v9 }
 0x448   : > { %v4045_v52 = vmul.f32 %v5432_v33, %v6984_v59  ;;  %v5438_v45 = vadd.f32 %v6963_v55, %v5369_v46  ;;  %v3984_v22 = vpop.f32.mrb[15].mxu1  ;;  %v4093_v20 = vpack.c.bf16 %v4081_v3, %v4080_v5  ;;  %v4306_v46 = vunpack.c.h.bf16 %v6346_v4 }
 0x449   : > { %v4043_v49 = vmul.f32 %v5435_v16, %v6984_v59  ;;  %v5441_v1 = vadd.f32 %v6955_v40, %v3984_v22  ;;  %v4092_v56 = vpack.c.bf16 %v4079_v63, %v4078_v31 }
 0x44a   : > { %v4068_v25 = vadd.f32 %v6990_v0, %v4045_v52  ;;  %v4046_v61 = vmul.f32 %v5438_v45, %v6984_v59 }
 0x44b   : > { %v4066_v14 = vadd.f32 %v6990_v0, %v4043_v49  ;;  %v4044_v36 = vmul.f32 %v5441_v1, %v6984_v59  ;;  %5394 = vmatprep.mubr.bf16.mxu0 %v4092_v56 }
 0x44c   : > { %v4069_v50 = vadd.f32 %v6990_v0, %v4046_v61  ;;  %5395 = vmatmul.mubr.bf16.gmra.mrb[84].mxu0 %v4093_v20  ;;  %v4084_v35 = vmax.f32 %v4068_v25, 0.0 }
 0x44d   : > { %v4067_v55 = vadd.f32 %v6990_v0, %v4044_v36  ;;  %v5372_v53 = vpop.f32.mrb[16].mxu1  ;;  %v4082_v6 = vmax.f32 %v4066_v14, 0.0  ;;  %v4311_v14 = vunpack.c.l.bf16 %v6358_v11 }
 0x44e   : > { %v4085_v58 = vmax.f32 %v4069_v50, 0.0  ;;  %v5444_v40 = vadd.f32 %v6976_v41, %v5372_v53  ;;  %v3997_v21 = vpop.f32.mrb[17].mxu1  ;;  %v4309_v53 = vunpack.c.l.bf16 %v6353_v10 }
 0x44f   : > { %v4083_v7 = vmax.f32 %v4067_v55, 0.0  ;;  %v5447_v2 = vadd.f32 %v6968_v8, %v3997_v21  ;;  %v5373_v34 = vpop.f32.mrb[18].mxu1 }
 0x450   : > { %v4049_v32 = vmul.f32 %v5444_v40, %v6984_v59  ;;  %v5450_v38 = vadd.f32 %v6979_v57, %v5373_v34  ;;  %v4000_v24 = vpop.f32.mrb[19].mxu1  ;;  %v4095_v29 = vpack.c.bf16 %v4085_v58, %v4084_v35 }
 0x451   : > { %v4047_v26 = vmul.f32 %v5447_v2, %v6984_v59  ;;  %v5453_v42 = vadd.f32 %v6971_v60, %v4000_v24  ;;  %v4094_v43 = vpack.c.bf16 %v4083_v7, %v4082_v6  ;;  %v4312_v6 = vunpack.c.h.bf16 %v6358_v11 }
 0x452   : > { %v4072_v18 = vadd.f32 %v6990_v0, %v4049_v32  ;;  %v4050_v41 = vmul.f32 %v5450_v38, %v6984_v59  ;;  %v4310_v38 = vunpack.c.h.bf16 %v6353_v10 }
 0x453   : > { %v4070_v54 = vadd.f32 %v6990_v0, %v4047_v26  ;;  %v4048_v8 = vmul.f32 %v5453_v42, %v6984_v59  ;;  %5398 = vmatprep.mubr.bf16.mxu0 %v4094_v43 }
 0x454   : > { %v4073_v17 = vadd.f32 %v6990_v0, %v4050_v41  ;;  %5399 = vmatmul.mubr.bf16.gmra.mrb[88].mxu0 %v4095_v29  ;;  %v4088_v48 = vmax.f32 %v4072_v18, 0.0 }
 0x455   : > { %v4071_v57 = vadd.f32 %v6990_v0, %v4048_v8  ;;  %v4086_v23 = vmax.f32 %v4070_v54, 0.0 }
 0x456   : > { %v4089_v47 = vmax.f32 %v4073_v17, 0.0  ;;  %v4315_v17 = vunpack.c.l.bf16 %v6366_v13 }
 0x457   : > { %v4087_v44 = vmax.f32 %v4071_v57, 0.0 }
 0x458   : > { %v4097_v60 = vpack.c.bf16 %v4089_v47, %v4088_v48 }
 0x459   : > { %v4096_v37 = vpack.c.bf16 %v4087_v44, %v4086_v23  ;;  %v4313_v23 = vunpack.c.l.bf16 %v6361_v12 }
 0x45b   : > { %5402 = vmatprep.mubr.bf16.mxu0 %v4096_v37 }
 0x45c   : > { %5403 = vmatmul.mubr.bf16.gmra.mrb[92].mxu0 %v4097_v60 }
 0x517   : > { %v5392_v59 = vpop.f32.mrb[80].mxu0 }
 0x518   : > { %v4268_v0 = vmul.f32 %v5392_v59, %v7042_v19  ;;  %v4196_v28 = vpop.f32.mrb[81].mxu0 }
 0x519   : > { %v4266_v27 = vmul.f32 %v7042_v19, %v4196_v28  ;;  %v5393_v5 = vpop.f32.mrb[82].mxu0 }
 0x51a   : > { %v4291_v3 = vadd.f32 %v7047_v51, %v4268_v0  ;;  %v4269_v33 = vmul.f32 %v5393_v5, %v7042_v19  ;;  %v4199_v31 = vpop.f32.mrb[83].mxu0  ;;  %v4316_v0 = vunpack.c.h.bf16 %v6366_v13  ;;  %v4314_v5 = vunpack.c.h.bf16 %v6361_v12 }
 0x51b   : > { %v4289_v63 = vadd.f32 %v7047_v51, %v4266_v27  ;;  %v4267_v16 = vmul.f32 %v7042_v19, %v4199_v31 }
 0x51c   : > { %v4323_v52 = vadd.f32 %v4307_v62, %v4291_v3  ;;  %v4292_v45 = vadd.f32 %v7047_v51, %v4269_v33 }
 0x51d   : > { %v4321_v22 = vadd.f32 %v4305_v30, %v4289_v63  ;;  %v4290_v20 = vadd.f32 %v7047_v51, %v4267_v16 }
 0x51e   : > { %v4324_v49 = vadd.f32 %v4308_v39, %v4292_v45  ;;  %v4339_v25 = vmax.f32 %v4323_v52, 0.0 }
 0x51f   : > { %v4322_v1 = vadd.f32 %v4306_v46, %v4290_v20  ;;  %v5396_v56 = vpop.f32.mrb[84].mxu0  ;;  %v4337_v50 = vmax.f32 %v4321_v22, 0.0  ;;  %v4319_v22 = vunpack.c.l.bf16 %v6374_v15 }
 0x520   : > { %v4340_v61 = vmax.f32 %v4324_v49, 0.0  ;;  %v4272_v9 = vmul.f32 %v5396_v56, %v7042_v19  ;;  %v4212_v36 = vpop.f32.mrb[85].mxu0  ;;  %v7252_v56 = vld [vmem:[#allocation30_spill] sm:$0xff] }
 0x521   : > { %v4338_v55 = vmax.f32 %v4322_v1, 0.0  ;;  %v4270_v4 = vmul.f32 %v7042_v19, %v4212_v36  ;;  %v5397_v35 = vpop.f32.mrb[86].mxu0 }
 0x522   : > { %v4905_v58 = vpack.c.bf16 %v4340_v61, %v4339_v25  ;;  %v4295_v40 = vadd.f32 %v7047_v51, %v4272_v9  ;;  %v4273_v21 = vmul.f32 %v5397_v35, %v7042_v19  ;;  %v4215_v7 = vpop.f32.mrb[87].mxu0  ;;  %v4317_v25 = vunpack.c.l.bf16 %v7252_v56 }
 0x523   : > { %v4900_v2 = vpack.c.bf16 %v4338_v55, %v4337_v50  ;;  %v4293_v34 = vadd.f32 %v7047_v51, %v4270_v4  ;;  %v4271_v32 = vmul.f32 %v7042_v19, %v4215_v7  ;;  %v4320_v50 = vunpack.c.h.bf16 %v6374_v15 }
 0x524   : > { %4937 = vst [vmem:[%s6572_s4 + $0x8] sm:$0xff] %v4905_v58   ;;  %v4327_v24 = vadd.f32 %v4311_v14, %v4295_v40  ;;  %v4296_v29 = vadd.f32 %v7047_v51, %v4273_v21  ;;  %v4318_v58 = vunpack.c.h.bf16 %v7252_v56 }
 0x525   : > { %4901 = vst [vmem:[%s6572_s4] sm:$0xff] %v4900_v2   ;;  %v4325_v26 = vadd.f32 %v4309_v53, %v4293_v34  ;;  %v4294_v42 = vadd.f32 %v7047_v51, %v4271_v32 }
 0x526   : > { %v4328_v43 = vadd.f32 %v4312_v6, %v4296_v29  ;;  %v4343_v11 = vmax.f32 %v4327_v24, 0.0 }
 0x527   : > { %v4326_v18 = vadd.f32 %v4310_v38, %v4294_v42  ;;  %v5400_v41 = vpop.f32.mrb[88].mxu0  ;;  %v4341_v10 = vmax.f32 %v4325_v26, 0.0 }
 0x528   : > { %v4344_v54 = vmax.f32 %v4328_v43, 0.0  ;;  %v4276_v8 = vmul.f32 %v5400_v41, %v7042_v19  ;;  %v4228_v57 = vpop.f32.mrb[89].mxu0 }
 0x529   : > { %v4342_v48 = vmax.f32 %v4326_v18, 0.0  ;;  %v4274_v47 = vmul.f32 %v7042_v19, %v4228_v57  ;;  %v5401_v44 = vpop.f32.mrb[90].mxu0 }
 0x52a   : > { %v4915_v60 = vpack.c.bf16 %v4344_v54, %v4343_v11  ;;  %v4299_v37 = vadd.f32 %v7047_v51, %v4276_v8  ;;  %v4277_v59 = vmul.f32 %v5401_v44, %v7042_v19  ;;  %v4231_v62 = vpop.f32.mrb[91].mxu0 }
 0x52b   : > { %v4910_v28 = vpack.c.bf16 %v4342_v48, %v4341_v10  ;;  %v4297_v27 = vadd.f32 %v7047_v51, %v4274_v47  ;;  %v4275_v30 = vmul.f32 %v7042_v19, %v4231_v62 }
 0x52c   : > { %4939 = vst [vmem:[%s6572_s4 + $0x18] sm:$0xff] %v4915_v60   ;;  %v4331_v3 = vadd.f32 %v4315_v17, %v4299_v37  ;;  %v4300_v33 = vadd.f32 %v7047_v51, %v4277_v59 }
 0x52d   : > { %4938 = vst [vmem:[%s6572_s4 + $0x10] sm:$0xff] %v4910_v28   ;;  %v4329_v39 = vadd.f32 %v4313_v23, %v4297_v27  ;;  %v4298_v31 = vadd.f32 %v7047_v51, %v4275_v30 }
 0x52e   : > { %v4332_v63 = vadd.f32 %v4316_v0, %v4300_v33  ;;  %v4347_v46 = vmax.f32 %v4331_v3, 0.0 }
 0x52f   : > { %v4330_v16 = vadd.f32 %v4314_v5, %v4298_v31  ;;  %v5404_v13 = vpop.f32.mrb[92].mxu0  ;;  %v4345_v12 = vmax.f32 %v4329_v39, 0.0 }
 0x530   : > { %v4348_v52 = vmax.f32 %v4332_v63, 0.0  ;;  %v4280_v45 = vmul.f32 %v5404_v13, %v7042_v19  ;;  %v4244_v20 = vpop.f32.mrb[93].mxu0 }
 0x531   : > { %v4346_v49 = vmax.f32 %v4330_v16, 0.0  ;;  %v4278_v1 = vmul.f32 %v7042_v19, %v4244_v20  ;;  %v5405_v61 = vpop.f32.mrb[94].mxu0 }
 0x532   : > { %v4925_v9 = vpack.c.bf16 %v4348_v52, %v4347_v46  ;;  %v4303_v14 = vadd.f32 %v7047_v51, %v4280_v45  ;;  %v4281_v36 = vmul.f32 %v5405_v61, %v7042_v19  ;;  %v4247_v55 = vpop.f32.mrb[95].mxu0 }
 0x533   : > { %v4920_v4 = vpack.c.bf16 %v4346_v49, %v4345_v12  ;;  %v4301_v53 = vadd.f32 %v7047_v51, %v4278_v1  ;;  %v4279_v35 = vmul.f32 %v7042_v19, %v4247_v55 }
 0x534   : > { %4941 = vst [vmem:[%s6572_s4 + $0x28] sm:$0xff] %v4925_v9   ;;  %v4335_v40 = vadd.f32 %v4319_v22, %v4303_v14  ;;  %v4304_v21 = vadd.f32 %v7047_v51, %v4281_v36 }
 0x535   : > { %4940 = vst [vmem:[%s6572_s4 + $0x20] sm:$0xff] %v4920_v4   ;;  %v4333_v6 = vadd.f32 %v4317_v25, %v4301_v53  ;;  %v4302_v15 = vadd.f32 %v7047_v51, %v4279_v35 }
 0x536   : > { %v4336_v7 = vadd.f32 %v4320_v50, %v4304_v21  ;;  %v4351_v19 = vmax.f32 %v4335_v40, 0.0 }
 0x537   : > { %v4334_v2 = vadd.f32 %v4318_v58, %v4302_v15  ;;  %v4349_v32 = vmax.f32 %v4333_v6, 0.0 }
 0x538   : > { %v4352_v34 = vmax.f32 %v4336_v7, 0.0 }
 0x539   : > { %v4350_v38 = vmax.f32 %v4334_v2, 0.0 }
 0x53a   : > { %v4935_v24 = vpack.c.bf16 %v4352_v34, %v4351_v19 }
 0x53b   : > { %v4930_v51 = vpack.c.bf16 %v4350_v38, %v4349_v32 }
 0x53c   : > { %4943 = vst [vmem:[%s6572_s4 + $0x38] sm:$0xff] %v4935_v24  }
 0x53d   : > { %4942 = vst [vmem:[%s6572_s4 + $0x30] sm:$0xff] %v4930_v51  }
 0x53e   : > { %5912 = shalt.err (!%p5909_p13)
}
 0x53f   : > { %s5913_s4 = scalar_lea.hbm %s7109_s15, 1024  ;;  %s5917_s27 = scalar_lea.hbm %s7253_s3, 4096 }
 0x540   : > { %p5914_p4 = scmp.ne.s32.totalorder %s7109_s15, %s5913_s4  ;;  %p5918_p0 = scmp.lt.u32.totalorder %s7109_s15, %s7253_s3 }
 0x541   : > { %p5919_p10 = scmp.lt.u32.totalorder %s5917_s27, %s5913_s4  ;;  %p5921_p7 = scmp.lt.u32.totalorder %s5913_s4, %s7109_s15 }
 0x542   : > { %p5915_p9 = pnand %p5914_p4, %p6257_p3 }
 0x543   : > { %p5920_p5 = por %p5919_p10, %p5918_p0 }
 0x544   : > { %p5916_p6 = pneg %p5915_p9 }
 0x545   : > { %p5922_p11 = por %p5921_p7, %p5920_p5 }
 0x547   : > { %p5923_p1 = pnand %p5922_p11, %p5916_p6 }
 0x549   : > { %5926 = shalt.err (!%p5923_p1)
}
 0x54a   : > { %s6020_s26 = smov 64   ;;  %s6021_s2 = smov 4  }
 0x54b   : > { %5500 = dma.vmem_to_hbm [thread:$0]  (%p6257_p3), %s7111_s5, 1024, %s7109_s15, %s4434_s29, %s6020_s26, %s6020_s26, %s6021_s2  }
 0x54c PF: > { %s7254_s20 = sld [smem:[#allocation27_spill]]  ;;  %s7255_s14 = sld [smem:[#allocation28_spill]] }
 0x54d   : > { %p5527_p2 = scmp.ge.s32.totalorder %s6009_s24, 2 }
 0x552   : > { %s4464_s0 = sand.u32 1, %s7254_s20   ;;  %p7256_p8 = scmp.ne.s32.totalorder %s7255_s14, 0 }
 0x553   : > { %s4465_s9 = scalar_lea.sflag [#allocation8], %s4464_s0 }
 0x554   : > { %p5517_p12 = pnand %p5527_p2, %p7256_p8 }
 0x556   : > { %5976 = dma.done.wait (!%p5517_p12), %s4465_s9, 1024  }
 0x557   : > { %5978 = vsyncadd (!%p5517_p12), %s4465_s9, 4294966272  ;;  %s29_s24 = sadd.s32 1, %s6009_s24   ;;  %s7257_s6 = sld [smem:[#allocation29_spill]] }
 0x558   : > { %p26_p13 = scmp.ge.s32.totalorder %s29_s24, 6   ;;  %s7258_s17 = smov %s5985_s18 }
 0x559   : > { %s7259_s18 = smov %s5989_s19  ;;  %s7260_s19 = smov %s6274_s1 }
 0x55a   : > { %s7261_s20 = smov %s6001_s22  ;;  %s7262_s21 = smov %s6005_s23 }
 0x55b   : > { %s7263_s22 = smov %s7266_s7  ;;  %28 = sbr.rel (!%p26_p13) target bundleno = 22 (0x16), region = 133 }
 0x55d   : > { %s7264_s23 = smov %s7257_s6 }
 0x562   :  { %4470 = vsyncpa [#allocation7], 1 }
 0x563   :  { %4472 = vsyncpa [#allocation7 + $0x1], 1 }
 0x564   :  { %4473 = vsyncpa [#allocation10], 1 }
 0x565   :  { %4474 = vsyncpa [#allocation13], 1 }
 0x566   :  { %4475 = vsyncpa [#allocation8], 1 }
 0x567   :  { %4477 = vsyncpa [#allocation8 + $0x1], 1 }
 0x568   :  { %4478 = vsyncmov [#allocation5] }
 0x56b   :  { %s4479_s10 = vpop.sfrf %4478 }
 0x56c   :  { %p4863_p3 = scmp.ne.s32.totalorder %s4479_s10, 0 }
 0x56e   :  { %4483 = shalt.err (%p4863_p3)  }
 0x56f   :  { %4485 = vsyncmov [#allocation5 + $0x1] }
 0x572   :  { %s4486_s1 = vpop.sfrf %4485 }
 0x573   :  { %p4864_p4 = scmp.ne.s32.totalorder %s4486_s1, 0 }
 0x575   :  { %4490 = shalt.err (%p4864_p4)  }

// kernel: tpu_custom_call.1
= control target key start
LH: loop header
LB: loop body
LE: loop exit
PB: predicated region body
PF: predicated region fallthrough
CT: control target
= control target key end

     0   :  { %s7167_s0 = inlined_call_operand.hbm [shape: bf16[2,256,128], index: 0, kind: input, shape index: {}]   ;;  %s7168_s1 = inlined_call_operand.hbm [shape: bf16[2,256,128], index: 1, kind: input, shape index: {}]   ;;  %s7169_s2 = inlined_call_operand.hbm [shape: bf16[128,128], index: 2, kind: input, shape index: {}]   ;;  %s7170_s3 = inlined_call_operand.vmem [shape: f32[1,128], index: 3, kind: input, shape index: {}]   ;;  %s7171_s4 = inlined_call_operand.vmem [shape: f32[1,128], index: 4, kind: input, shape index: {}]   ;;  %s7172_s5 = inlined_call_operand.hbm [shape: bf16[1152,128], index: 5, kind: input, shape index: {}]   ;;  %s7173_s6 = inlined_call_operand.vmem [shape: f32[1,128], index: 6, kind: input, shape index: {}]   ;;  %s7174_s7 = inlined_call_operand.vmem [shape: f32[1,128], index: 7, kind: input, shape index: {}]   ;;  %s7175_s8 = inlined_call_operand.hbm [shape: bf16[128,128], index: 8, kind: input, shape index: {}]   ;;  %s7176_s9 = inlined_call_operand.vmem [shape: f32[1,128], index: 9, kind: input, shape index: {}]   ;;  %s7177_s10 = inlined_call_operand.vmem [shape: f32[1,128], index: 10, kind: input, shape index: {}]   ;;  %s7178_s11 = inlined_call_operand.hbm [shape: bf16[2,256,128], index: 11, kind: output, shape index: {}]  }
   0x1   :  { %7196 = sst [smem:[#allocation31_spill]] %s7167_s0 }
   0x2   :  { %7197 = sst [smem:[#allocation32_spill]] %s7168_s1 }
   0x3   :  { %7198 = sst [smem:[#allocation33_spill]] %s7169_s2 }
   0x4   :  { %7199 = sst [smem:[#allocation34_spill]] %s7170_s3 }
   0x5   :  { %7200 = sst [smem:[#allocation35_spill]] %s7171_s4 }
   0x6   :  { %7201 = sst [smem:[#allocation36_spill]] %s7172_s5 }
   0x7   :  { %7202 = sst [smem:[#allocation37_spill]] %s7173_s6 }
   0x8   :  { %7203 = sst [smem:[#allocation38_spill]] %s7174_s7 }
   0x9   :  { %7204 = sst [smem:[#allocation39_spill]] %s7175_s8 }
   0xa   :  { %7205 = sst [smem:[#allocation40_spill]] %s7176_s9 }
   0xb   :  { %7206 = sst [smem:[#allocation41_spill]] %s7177_s10 }
   0xc   :  { %7207 = sst [smem:[#allocation42_spill]] %s7178_s11 }
   0xd   :  { %16 = vsyncpa [#allocation7], 0 }
   0xe   :  { %18 = vsyncpa [#allocation7 + $0x1], 0 }
   0xf   :  { %19 = vsyncpa [#allocation10], 0 }
  0x10   :  { %20 = vsyncpa [#allocation13], 0 }
  0x11   :  { %21 = vsyncpa [#allocation8], 0 }
  0x12   :  { %23 = vsyncpa [#allocation8 + $0x1], 0  ;;  %s6082_s17 = smov 0   ;;  %s6084_s18 = smov 0  }
  0x13   :  { %s6086_s19 = smov 0   ;;  %s6088_s20 = smov 0  }
  0x14   :  { %s6090_s21 = smov 0   ;;  %s6092_s22 = smov 0  }
  0x15   :  { %s6094_s23 = smov 0   ;;  %s6096_s24 = smov 0  }
  0x16 LB: > { %7208 = sst [smem:[#allocation27_spill]] %s5981_s17  ;;  %s4589_s25 = sadd.s32 4294967295, %s6009_s24   ;;  %s6009_s24 = sphi %s6096_s24, %s29_s24   ;;  %s6005_s23 = sphi %s6094_s23, %s7264_s23   ;;  %s6001_s22 = sphi %s6092_s22, %s7263_s22   ;;  %s5997_s21 = sphi %s6090_s21, %s7262_s21   ;;  %s5993_s20 = sphi %s6088_s20, %s7261_s20   ;;  %s5989_s19 = sphi %s6086_s19, %s7260_s19   ;;  %s5985_s18 = sphi %s6084_s18, %s7259_s18   ;;  %s5981_s17 = sphi %s6082_s17, %s7258_s17  }
  0x17   : > { %s4590_s26 = sadd.s32 4294967294, %s6009_s24   ;;  %p63_p0 = scmp.ne.s32.totalorder %s5985_s18, %s5981_s17 }
  0x18   : > { %p6126_p1 = scmp.eq.s32.totalorder %s4589_s25, 0  ;;  %p6130_p2 = scmp.eq.s32.totalorder %s4589_s25, 3 }
  0x19   : > { %p284_p3 = scmp.eq.s32.totalorder %s4590_s26, 3  ;;  %p4591_p5 = scmp.ge.s32.totalorder %s6009_s24, 1 }
  0x1a   : > { %s7209_s27 = scalar_select %p6126_p1, 1, 0 }
  0x1b   : > { %s7210_s28 = scalar_select %p6130_p2, 1, 0 }
  0x1c   : > { %p6136_p4 = por %p6126_p1, %p63_p0  ;;  %p6141_p6 = por %p284_p3, %p63_p0 }
  0x1d   : > { %p291_p7 = scmp.lt.s32.totalorder %s6009_s24, 5  ;;  %s6011_s13 = smov [#allocation9]  }
  0x1e   : > { %s7211_s29 = scalar_select %p6136_p4, 1, 0 }
  0x1f   : > { %s7212_s30 = scalar_select %p6141_p6, 1, 0 }
  0x20   : > { %p6146_p8 = pnand %p4591_p5, %p291_p7  ;;  %s303_s14 = sshll.u32 %s6011_s13, 4  ;;  %s6150_s14 = int_to_ptr.vmem [resolvable:$true] %s303_s14 }
  0x21   : > { %7213 = sst [smem:[#allocation28_spill]] %s7212_s30  ;;  %s6012_s16 = smov [#allocation11]  }
  0x22   : > { %s7214_s12 = scalar_select %p6146_p8, 1, 0 }
  0x23   : > { %p5502_p9 = pneg %p6146_p8  ;;  %s322_s25 = sshll.u32 %s6012_s16, 4  ;;  %s6160_s25 = int_to_ptr.vmem [resolvable:$true] %s322_s25 }
  0x24   : > { %s6013_s26 = smov [#allocation12]   ;;  %s7216_s2 = sld [smem:[#allocation33_spill]] }
  0x25   : > { %p6156_p10 = pnand %p5502_p9, %p6126_p1  ;;  %s6162_s30 = sshll.u32 %s6013_s26, 4  ;;  %s342_s30 = int_to_ptr.vmem [resolvable:$true] %s6162_s30 }
  0x27   : > { %p6172_p12 = pneg %p6156_p10 }
  0x2a   : > { %s5737_s13 = scalar_lea.hbm %s7216_s2, 1024 }
  0x2b   : > { %p5738_p11 = scmp.ne.s32.totalorder %s7216_s2, %s5737_s13  ;;  %p5744_p3 = scmp.lt.u32.totalorder %s5737_s13, %s7216_s2 }
  0x2d   : > { %p5740_p13 = pnand %p6172_p12, %p5738_p11 }
  0x2f   : > { %p5741_p0 = pneg %p5740_p13 }
  0x31   : > { %p5746_p5 = pnand %p5744_p3, %p5741_p0 }
  0x33   : > { %5749 = shalt.err (!%p5746_p5)
}
  0x34   : > { %s5750_s9 = scalar_lea.vmem %s6150_s14, 1024  ;;  %p5758_p1 = scmp.lt.s32.totalorder %s6150_s14, %s6150_s14 }
  0x35   : > { %p5751_p7 = scmp.ne.s32.totalorder %s6150_s14, %s5750_s9  ;;  %p5759_p4 = scmp.lt.s32.totalorder %s5750_s9, %s5750_s9 }
  0x37   : > { %p5753_p9 = pnand %p5751_p7, %p6172_p12  ;;  %p5760_p11 = por %p5759_p4, %p5758_p1 }
  0x39   : > { %p5754_p6 = pneg %p5753_p9 }
  0x3b   : > { %p5761_p13 = pnand %p5760_p11, %p5754_p6 }
  0x3d   : > { %5764 = shalt.err (!%p5761_p13)
}
  0x3e   : > { %s7189_s10 = smov 64   ;;  %s7190_s11 = smov 4  }
  0x3f   : > { %5505 = dma.hbm_to_vmem [thread:$0]  (!%p6156_p10), %s7216_s2, 1024, %s6150_s14, [#allocation10], %s7189_s10, %s7189_s10, %s7190_s11  }
  0x40   : > { %s7218_s5 = sld [smem:[#allocation36_spill]] }
  0x46   : > { %s5765_s9 = scalar_lea.hbm %s7218_s5, 9216 }
  0x47   : > { %p5766_p1 = scmp.ne.s32.totalorder %s7218_s5, %s5765_s9  ;;  %p5772_p0 = scmp.lt.u32.totalorder %s5765_s9, %s7218_s5 }
  0x49   : > { %p5768_p4 = pnand %p5766_p1, %p6172_p12 }
  0x4b   : > { %p5769_p6 = pneg %p5768_p4 }
  0x4d   : > { %p5774_p3 = pnand %p5772_p0, %p5769_p6 }
  0x4f   : > { %5777 = shalt.err (!%p5774_p3)
}
  0x50   : > { %s5778_s14 = scalar_lea.vmem %s6160_s25, 9216  ;;  %p5786_p11 = scmp.lt.s32.totalorder %s6160_s25, %s6160_s25 }
  0x51   : > { %p5779_p5 = scmp.ne.s32.totalorder %s6160_s25, %s5778_s14  ;;  %p5787_p13 = scmp.lt.s32.totalorder %s5778_s14, %s5778_s14 }
  0x53   : > { %p5781_p7 = pnand %p5779_p5, %p6172_p12  ;;  %p5788_p1 = por %p5787_p13, %p5786_p11 }
  0x55   : > { %p5782_p9 = pneg %p5781_p7 }
  0x57   : > { %p5789_p4 = pnand %p5788_p1, %p5782_p9 }
  0x59   : > { %5792 = shalt.err (!%p5789_p4)
}
  0x5a   : > { %5508 = dma.hbm_to_vmem [thread:$0]  (!%p6156_p10), %s7218_s5, 9216, %s6160_s25, [#allocation10], %s7189_s10, %s7189_s10, %s7190_s11  }
  0x5b   : > { %s7219_s8 = sld [smem:[#allocation39_spill]] }
  0x61   : > { %s5793_s17 = scalar_lea.hbm %s7219_s8, 1024 }
  0x62   : > { %p5794_p6 = scmp.ne.s32.totalorder %s7219_s8, %s5793_s17  ;;  %p5800_p5 = scmp.lt.u32.totalorder %s5793_s17, %s7219_s8 }
  0x64   : > { %p5796_p0 = pnand %p5794_p6, %p6172_p12 }
  0x66   : > { %p5797_p3 = pneg %p5796_p0 }
  0x68   : > { %p5802_p7 = pnand %p5800_p5, %p5797_p3 }
  0x6a   : > { %5805 = shalt.err (!%p5802_p7)
}
  0x6b   : > { %s5806_s14 = scalar_lea.vmem %s342_s30, 1024  ;;  %p5814_p1 = scmp.lt.s32.totalorder %s342_s30, %s342_s30 }
  0x6c   : > { %p5807_p9 = scmp.ne.s32.totalorder %s342_s30, %s5806_s14  ;;  %p5815_p4 = scmp.lt.s32.totalorder %s5806_s14, %s5806_s14 }
  0x6e   : > { %p5809_p11 = pnand %p5807_p9, %p6172_p12  ;;  %p5816_p8 = por %p5815_p4, %p5814_p1 }
  0x70   : > { %p5810_p13 = pneg %p5809_p11 }
  0x72   : > { %p5817_p2 = pnand %p5816_p8, %p5810_p13 }
  0x74   : > { %5820 = shalt.err (!%p5817_p2)
}
  0x75   : > { %5511 = dma.hbm_to_vmem [thread:$0]  (!%p6156_p10), %s7219_s8, 1024, %s342_s30, [#allocation13], %s7189_s10, %s7189_s10, %s7190_s11  }
  0x76   : > { %s38_s7 = sadd.s32 1, %s6001_s22  ;;  %s41_s15 = sadd.s32 1, %s6005_s23 }
  0x77   : > { %p39_p2 = scmp.ge.s32.totalorder %s38_s7, 2  ;;  %s50_s3 = sadd.s32 1, %s5989_s19 }
  0x78   : > { %p57_p8 = scmp.ne.s32.totalorder %s5989_s19, %s5985_s18  ;;  %p58_p12 = scmp.eq.s32.totalorder %s6009_s24, 0 }
  0x79   : > { %s7266_s7 = smov (%p39_p2, %s38_s7), 0  ;;  %s7268_s15 = smov (!%p39_p2, %s41_s15), %s6005_s23 }
  0x7a   : > { %s46_s4 = ssub.s32 %s6001_s22, %s7266_s7  ;;  %p43_p6 = scmp.ge.s32.totalorder %s7268_s15, 2 }
  0x7b   : > { %p7220_p0 = scmp.ne.s32.totalorder %s7210_s28, 0  ;;  %p6261_p10 = por %p58_p12, %p57_p8 }
  0x7c   : > { %p5523_p5 = scmp.lt.s32.totalorder %s6009_s24, 4  ;;  %s7270_s15 = smov (%p43_p6, %s7268_s15), 0 }
  0x7d   : > { %p6257_p3 = por %p7220_p0, %p57_p8  ;;  %7223 = sst [smem:[#allocation29_spill]] %s7270_s15 }
  0x7e   : > { %s361_s17 = sand.u32 1, %s5989_s19   ;;  %s4597_s13 = sshll.u32 %s6001_s22, 4 }
  0x7f   : > { %s45_s16 = ssub.s32 %s6005_s23, %s7270_s15  ;;  %s4596_s9 = sshll.u32 %s361_s17, 6 }
  0x80   : > { %s47_s26 = sor.u32 %s46_s4, %s45_s16  ;;  %s4598_s28 = sshll.u32 %s6005_s23, 5 }
  0x81   : > { %p48_p7 = scmp.eq.s32.totalorder %s47_s26, 0  ;;  %s365_s14 = scalar_lea.vmem [#allocation6], %s4596_s9 }
  0x82   : > { %s374_s25 = sshll.u32 %s365_s14, 4  ;;  %s371_s10 = sadd.s32 %s4598_s28, %s4597_s13  ;;  %s6276_s25 = int_to_ptr.vmem [resolvable:$true] %s374_s25 }
  0x83   : > { %s6274_s1 = scalar_select %p48_p7, %s5989_s19, %s50_s3  }
  0x84   : > { %s4599_s11 = sshll.u32 %s371_s10, 6  ;;  %p6282_p9 = pnand %p5523_p5, %p6261_p10 }
  0x85   : > { %s7225_s0 = sld [smem:[#allocation31_spill]]  ;;  %s6291_s3 = scalar_lea.sflag [#allocation7], %s361_s17 }
  0x86   : > { %p5823_p13 = pneg %p6282_p9 }
  0x8b   : > { %s6289_s4 = scalar_lea.hbm %s7225_s0, %s4599_s11  ;;  %s5826_s8 = scalar_lea.hbm %s7225_s0, 4096 }
  0x8c   : > { %s5821_s10 = scalar_lea.hbm %s6289_s4, 1024  ;;  %p5827_p2 = scmp.lt.u32.totalorder %s6289_s4, %s7225_s0 }
  0x8d   : > { %p5822_p11 = scmp.ne.s32.totalorder %s6289_s4, %s5821_s10  ;;  %p5828_p8 = scmp.lt.u32.totalorder %s5826_s8, %s5821_s10 }
  0x8e   : > { %p5830_p6 = scmp.lt.u32.totalorder %s5821_s10, %s6289_s4 }
  0x8f   : > { %p5824_p1 = pnand %p5823_p13, %p5822_p11  ;;  %p5829_p12 = por %p5828_p8, %p5827_p2 }
  0x91   : > { %p5825_p4 = pneg %p5824_p1  ;;  %p5831_p0 = por %p5830_p6, %p5829_p12 }
  0x93   : > { %p5832_p10 = pnand %p5831_p0, %p5825_p4 }
  0x95   : > { %5835 = shalt.err (!%p5832_p10)
}
  0x96   : > { %s5836_s17 = scalar_lea.vmem %s6276_s25, 1024  ;;  %s6016_s16 = smov [#allocation6]  }
  0x97   : > { %p5837_p5 = scmp.ne.s32.totalorder %s6276_s25, %s5836_s17  ;;  %s5841_s26 = sshll.u32 %s6016_s16, 4  ;;  %s5842_s26 = int_to_ptr.vmem [resolvable:$false] %s5841_s26 }
  0x98   : > { %s5843_s9 = scalar_lea.vmem %s5842_s26, 2048  ;;  %p5844_p1 = scmp.lt.s32.totalorder %s6276_s25, %s5842_s26 }
  0x99   : > { %p5839_p7 = pnand %p5837_p5, %p5823_p13  ;;  %p5845_p2 = scmp.lt.s32.totalorder %s5843_s9, %s5836_s17 }
  0x9b   : > { %p5840_p11 = pneg %p5839_p7  ;;  %p5846_p8 = por %p5845_p2, %p5844_p1 }
  0x9d   : > { %p5847_p12 = pnand %p5846_p8, %p5840_p11 }
  0x9f   : > { %5850 = shalt.err (!%p5847_p12)
}
  0xa0   : > { %s7226_s28 = smov 4   ;;  %s7227_s14 = smov 64  }
  0xa1   : > { %5515 = dma.hbm_to_vmem [thread:$0]  (!%p6282_p9), %s6289_s4, 1024, %s6276_s25, %s6291_s3, %s7227_s14, %s7227_s14, %s7226_s28  }
  0xa2   : > { %p7228_p13 = scmp.ne.s32.totalorder %s7214_s12, 0 }
  0xa4   : > { %386 = sbr.rel (%p7228_p13) target bundleno = 1356 (0x54c), region = 60 }
  0xab   : > { %s6325_s10 = sand.u32 1, %s5985_s18   ;;  %p7229_p4 = scmp.ne.s32.totalorder %s7211_s29, 0 }
  0xac   : > { %s7191_s30 = sshll.u32 %s6325_s10, 6  ;;  %s389_s5 = scalar_lea.sflag [#allocation7], %s6325_s10 }
  0xad   : > { %s6331_s2 = scalar_lea.vmem [#allocation6], %s7191_s30 }
  0xae   : > { %5960 = dma.done.wait (%p7229_p4), %s389_s5, 1024  }
  0xaf   : > { %5962 = vsyncadd (%p7229_p4), %s389_s5, 4294966272  ;;  %p7230_p9 = scmp.ne.s32.totalorder %s7209_s27, 0 }
  0xb1   : > { %5964 = dma.done.wait (%p7230_p9), [#allocation10], 10240  }
  0xb2   : > { %5966 = vsyncadd (%p7230_p9), [#allocation10], 4294957056 }
  0xb3   : > { %5968 = dma.done.wait (%p7230_p9), [#allocation13], 1024  }
  0xb4   : > { %5970 = vsyncadd (%p7230_p9), [#allocation13], 4294966272  ;;  %v5601_v0 = vld [vmem:[#allocation9] sm:$0xff]   ;;  %v5602_v1 = vld [vmem:[#allocation9 + $0x8] sm:$0xff]   ;;  %vm783_vm0 = vcmask 1040384   ;;  %s4606_s27 = sshll.u32 %s5993_s20, 3 }
  0xb5   : > { %5226 = vmatprep.subr.bf16.mxu0 %v5601_v0  ;;  %v5603_v2 = vld [vmem:[#allocation9 + $0x10] sm:$0xff]   ;;  %v5604_v3 = vld [vmem:[#allocation9 + $0x18] sm:$0xff]   ;;  %v6346_v4 = vld [vmem:[%s6331_s2] sm:$0xff]   ;;  %vm784_vm1 = vsmask.f32 256  ;;  %s4607_s29 = sadd.s32 4294967295, %s4606_s27 }
  0xb6   : > { %5227 = vmatpush3.bf16.msra.mxu0 %v5601_v0  ;;  %5242 = vmatprep.mubr.bf16.mxu0 %v6346_v4  ;;  %v5605_v5 = vld [vmem:[#allocation9 + $0x20] sm:$0xff]   ;;  %v5606_v6 = vld [vmem:[#allocation9 + $0x28] sm:$0xff]   ;;  %v5607_v7 = vld [vmem:[#allocation9 + $0x30] sm:$0xff]   ;;  %vm816_vm3 = vsmask.f32 7938  ;;  %p446_p6 = scmp.gt.s32.totalorder %s4607_s29, 0 }
  0xb7   : > { %5228 = vmatprep.subr.bf16.mxu0 %v5602_v1  ;;  %v5608_v8 = vld [vmem:[#allocation9 + $0x38] sm:$0xff]   ;;  %v6350_v9 = vld [vmem:[%s6331_s2 + $0x8] sm:$0xff]   ;;  %v6353_v10 = vld [vmem:[%s6331_s2 + $0x10] sm:$0xff]   ;;  %s448_s12 = sadd.s32 8, %s4606_s27  ;;  %s6431_s3 = sshll.u32 %s5997_s21, 5 }
  0xb8   : > { %v6358_v11 = vld [vmem:[%s6331_s2 + $0x18] sm:$0xff]   ;;  %v6361_v12 = vld [vmem:[%s6331_s2 + $0x20] sm:$0xff]   ;;  %v6366_v13 = vld [vmem:[%s6331_s2 + $0x28] sm:$0xff]   ;;  %p449_p0 = scmp.lt.s32.totalorder %s448_s12, 15  ;;  %s7272_s29 = smov (!%p446_p6, %s4607_s29), 0 }
  0xb9   : > { %v6369_v14 = vld [vmem:[%s6331_s2 + $0x30] sm:$0xff]   ;;  %v6374_v15 = vld [vmem:[%s6331_s2 + $0x38] sm:$0xff]   ;;  %vm6378_vm2 = vmand %vm783_vm0, %vm784_vm1  ;;  %s4608_s25 = sshll.u32 %s7272_s29, 4  ;;  %s6017_s13 = smov [#allocation4]  }
  0xba   : > { %5229 = vmatpush3.bf16.msra.mxu0 %v5602_v1  ;;  %7231 = vst [vmem:[#allocation30_spill] sm:$0xff] %v6369_v14  ;;  %v786_v17 = vld [vmem:[#allocation2] sm:$0x1]  ;;  %v792_v18 = vld [vmem:[#allocation2 + $0x18] sm:$0x1]  ;;  %vm6387_vm4 = vmand %vm783_vm0, %vm816_vm3  ;;  %s7274_s12 = smov (!%p449_p0, %s448_s12), 15 }
  0xbb   : > { %5230 = vmatprep.subr.bf16.mxu0 %v5603_v2  ;;  %v787_v19 = vsel %vm6378_vm2, 0, %v786_v17  ;;  %v793_v20 = vsel %vm6378_vm2, 0, %v792_v18  ;;  %v813_v21 = vld [vmem:[#allocation2 + $0x6c] sm:$0x1]  ;;  %v818_v23 = vld [vmem:[#allocation2 + $0x8] sm:$0x1] }
  0xbc   : > { %788 = vst [vmem:[#allocation2] sm:$0x1] %v787_v19  ;;  %794 = vst [vmem:[#allocation2 + $0x18] sm:$0x1] %v793_v20  ;;  %v814_v24 = vsel %vm6378_vm2, 0, %v813_v21  ;;  %v819_v25 = vsel %vm6387_vm4, 0, %v818_v23 }
  0xbd   : > { %v845_v26 = vld [vmem:[#allocation2 + $0x74] sm:$0x1]  ;;  %v789_v27 = vld [vmem:[#allocation2 + $0xc] sm:$0x1]  ;;  %815 = vst [vmem:[#allocation2 + $0x6c] sm:$0x1] %v814_v24 }
  0xbe   : > { %5231 = vmatpush3.bf16.msra.mxu0 %v5603_v2  ;;  %820 = vst [vmem:[#allocation2 + $0x8] sm:$0x1] %v819_v25  ;;  %v846_v28 = vsel %vm6387_vm4, 0, %v845_v26  ;;  %v790_v29 = vsel %vm6378_vm2, 0, %v789_v27  ;;  %v824_v30 = vld [vmem:[#allocation2 + $0x20] sm:$0x1] }
  0xbf   : > { %5232 = vmatprep.subr.bf16.mxu0 %v5604_v3  ;;  %v821_v31 = vld [vmem:[#allocation2 + $0x14] sm:$0x1]  ;;  %847 = vst [vmem:[#allocation2 + $0x74] sm:$0x1] %v846_v28  ;;  %791 = vst [vmem:[#allocation2 + $0xc] sm:$0x1] %v790_v29 }
  0xc0   : > { %v825_v32 = vsel %vm6387_vm4, 0, %v824_v30  ;;  %v822_v33 = vsel %vm6387_vm4, 0, %v821_v31  ;;  %v798_v34 = vld [vmem:[#allocation2 + $0x30] sm:$0x1]  ;;  %v795_v36 = vld [vmem:[#allocation2 + $0x24] sm:$0x1] }
  0xc1   : > { %826 = vst [vmem:[#allocation2 + $0x20] sm:$0x1] %v825_v32  ;;  %823 = vst [vmem:[#allocation2 + $0x14] sm:$0x1] %v822_v33  ;;  %v799_v35 = vsel %vm6378_vm2, 0, %v798_v34  ;;  %v796_v37 = vsel %vm6378_vm2, 0, %v795_v36 }
  0xc2   : > { %5233 = vmatpush3.bf16.msra.mxu0 %v5604_v3  ;;  %800 = vst [vmem:[#allocation2 + $0x30] sm:$0x1] %v799_v35  ;;  %797 = vst [vmem:[#allocation2 + $0x24] sm:$0x1] %v796_v37  ;;  %v830_v38 = vld [vmem:[#allocation2 + $0x38] sm:$0x1] }
  0xc3   : > { %5234 = vmatprep.subr.bf16.mxu0 %v5605_v5  ;;  %v831_v39 = vsel %vm6387_vm4, 0, %v830_v38  ;;  %v827_v40 = vld [vmem:[#allocation2 + $0x2c] sm:$0x1]  ;;  %v804_v42 = vld [vmem:[#allocation2 + $0x48] sm:$0x1]  ;;  %s453_s4 = sshra.s32 %s4608_s25, 3 }
  0xc4   : > { %832 = vst [vmem:[#allocation2 + $0x38] sm:$0x1] %v831_v39  ;;  %v828_v41 = vsel %vm6387_vm4, 0, %v827_v40  ;;  %v805_v43 = vsel %vm6378_vm2, 0, %v804_v42  ;;  %v801_v44 = vld [vmem:[#allocation2 + $0x3c] sm:$0x1]  ;;  %s456_s8 = sadd.s32 %s6431_s3, %s453_s4 }
  0xc5   : > { %829 = vst [vmem:[#allocation2 + $0x2c] sm:$0x1] %v828_v41  ;;  %806 = vst [vmem:[#allocation2 + $0x48] sm:$0x1] %v805_v43  ;;  %v802_v45 = vsel %vm6378_vm2, 0, %v801_v44  ;;  %s4611_s11 = sshll.u32 %s456_s8, 6 }
  0xc6   : > { %5235 = vmatpush3.bf16.msra.mxu0 %v5605_v5  ;;  %v836_v46 = vld [vmem:[#allocation2 + $0x50] sm:$0x1]  ;;  %803 = vst [vmem:[#allocation2 + $0x3c] sm:$0x1] %v802_v45  ;;  %v833_v48 = vld [vmem:[#allocation2 + $0x44] sm:$0x1] }
  0xc7   : > { %5236 = vmatprep.subr.bf16.mxu0 %v5606_v6  ;;  %v837_v47 = vsel %vm6387_vm4, 0, %v836_v46  ;;  %v834_v49 = vsel %vm6387_vm4, 0, %v833_v48  ;;  %v810_v50 = vld [vmem:[#allocation2 + $0x60] sm:$0x1]  ;;  %v807_v52 = vld [vmem:[#allocation2 + $0x54] sm:$0x1] }
  0xc8   : > { %838 = vst [vmem:[#allocation2 + $0x50] sm:$0x1] %v837_v47  ;;  %835 = vst [vmem:[#allocation2 + $0x44] sm:$0x1] %v834_v49  ;;  %v811_v51 = vsel %vm6378_vm2, 0, %v810_v50  ;;  %v808_v53 = vsel %vm6378_vm2, 0, %v807_v52 }
  0xc9   : > { %812 = vst [vmem:[#allocation2 + $0x60] sm:$0x1] %v811_v51  ;;  %809 = vst [vmem:[#allocation2 + $0x54] sm:$0x1] %v808_v53  ;;  %v842_v54 = vld [vmem:[#allocation2 + $0x68] sm:$0x1] }
  0xca   : > { %5237 = vmatpush3.bf16.msra.mxu0 %v5606_v6  ;;  %v843_v55 = vsel %vm6387_vm4, 0, %v842_v54  ;;  %v839_v56 = vld [vmem:[#allocation2 + $0x5c] sm:$0x1]  ;;  %s466_s17 = sshll.u32 %s6017_s13, 4  ;;  %s7236_s9 = sld [smem:[#allocation32_spill]]  ;;  %s6437_s17 = int_to_ptr.vmem [resolvable:$true] %s466_s17 }
  0xcb   : > { %5238 = vmatprep.subr.bf16.mxu0 %v5607_v7  ;;  %844 = vst [vmem:[#allocation2 + $0x68] sm:$0x1] %v843_v55  ;;  %v840_v57 = vsel %vm6387_vm4, 0, %v839_v56 }
  0xcc   : > { %841 = vst [vmem:[#allocation2 + $0x5c] sm:$0x1] %v840_v57 }
  0xce   : > { %5239 = vmatpush3.bf16.msra.mxu0 %v5607_v7 }
  0xcf   : > { %5240 = vmatprep.subr.bf16.mxu0 %v5608_v8 }
  0xd0   : > { %s458_s28 = scalar_lea.hbm %s7236_s9, %s4611_s11  ;;  %s5853_s27 = scalar_lea.hbm %s7236_s9, 4096 }
  0xd1   : > { %s5851_s14 = scalar_lea.hbm %s458_s28, 128  ;;  %p5854_p5 = scmp.lt.u32.totalorder %s458_s28, %s7236_s9 }
  0xd2   : > { %5241 = vmatpush3.bf16.msra.mxu0 %v5608_v8  ;;  %p5852_p10 = scmp.ne.s32.totalorder %s458_s28, %s5851_s14  ;;  %p5855_p7 = scmp.lt.u32.totalorder %s5853_s27, %s5851_s14 }
  0xd3   : > { %p5857_p1 = scmp.lt.u32.totalorder %s5851_s14, %s458_s28 }
  0xd4   : > { %p5856_p11 = por %p5855_p7, %p5854_p5 }
  0xd5   : > { %5243 = vmatmul.mubr.bf16.vlgmr.msra.gmra.mrb[0].mxu0 %v6350_v9 }
  0xd6   : > { %5246 = vmatprep.mubr.bf16.mxu0 %v6353_v10  ;;  %p5858_p2 = por %p5857_p1, %p5856_p11 }
  0xd8   : > { %p5859_p8 = pnand %p5858_p2, %p5852_p10 }
  0xdd   : > { %5247 = vmatmul.mubr.bf16.gmra.mrb[4].mxu0 %v6358_v11 }
  0xde   : > { %5250 = vmatprep.mubr.bf16.mxu0 %v6361_v12 }
  0xe5   : > { %5251 = vmatmul.mubr.bf16.gmra.mrb[8].mxu0 %v6366_v13 }
  0xe6   : > { %5254 = vmatprep.mubr.bf16.mxu0 %v6369_v14 }
  0xed   : > { %5255 = vmatmul.mubr.bf16.gmra.mrb[12].mxu0 %v6374_v15 }
  0xee   : > { %5862 = shalt.err (!%p5859_p8)  }
  0xef   : > { %s5863_s25 = scalar_lea.vmem %s6437_s17, 128  ;;  %s5867_s4 = scalar_lea.vmem %s6437_s17, 256 }
  0xf0   : > { %p5864_p12 = scmp.ne.s32.totalorder %s6437_s17, %s5863_s25  ;;  %p5868_p13 = scmp.lt.s32.totalorder %s6437_s17, %s6437_s17 }
  0xf1   : > { %p5869_p4 = scmp.lt.s32.totalorder %s5867_s4, %s5863_s25 }
  0xf3   : > { %p5870_p9 = por %p5869_p4, %p5868_p13 }
  0xf5   : > { %p5871_p6 = pnand %p5870_p9, %p5864_p12 }
  0xf7   : > { %5874 = shalt.err (!%p5871_p6)  }
  0xf8   : > { %469 = dma.hbm_to_vmem [thread:$0]  %s458_s28, 128, %s6437_s17, [#allocation5] }
  0xf9   : > { %s4609_s8 = sshll.u32 %s7274_s12, 4  ;;  %s6018_s16 = smov [#allocation4 + $0x8]  }
  0xfa   : > { %s470_s11 = sshra.s32 %s4609_s8, 3  ;;  %s484_s26 = sshll.u32 %s6018_s16, 4  ;;  %s485_s26 = int_to_ptr.vmem [resolvable:$true] %s484_s26 }
  0xfb   : > { %s472_s13 = sadd.s32 %s6431_s3, %s470_s11 }
  0xfc   : > { %s4612_s14 = sshll.u32 %s472_s13, 6 }
  0xfd   : > { %s474_s29 = scalar_lea.hbm %s7236_s9, %s4612_s14 }
  0xfe   : > { %s5875_s21 = scalar_lea.hbm %s474_s29, 128  ;;  %p5878_p10 = scmp.lt.u32.totalorder %s474_s29, %s7236_s9 }
  0xff   : > { %p5876_p0 = scmp.ne.s32.totalorder %s474_s29, %s5875_s21  ;;  %p5879_p5 = scmp.lt.u32.totalorder %s5853_s27, %s5875_s21 }
 0x100   : > { %p5881_p11 = scmp.lt.u32.totalorder %s5875_s21, %s474_s29 }
 0x101   : > { %p5880_p7 = por %p5879_p5, %p5878_p10 }
 0x103   : > { %p5882_p1 = por %p5881_p11, %p5880_p7 }
 0x105   : > { %p5883_p2 = pnand %p5882_p1, %p5876_p0 }
 0x107   : > { %5886 = shalt.err (!%p5883_p2)  }
 0x108   : > { %s5887_s12 = scalar_lea.vmem %s485_s26, 128  ;;  %p5892_p12 = scmp.lt.s32.totalorder %s485_s26, %s6437_s17 }
 0x109   : > { %p5888_p8 = scmp.ne.s32.totalorder %s485_s26, %s5887_s12  ;;  %p5893_p13 = scmp.lt.s32.totalorder %s5867_s4, %s5887_s12 }
 0x10b   : > { %p5894_p4 = por %p5893_p13, %p5892_p12 }
 0x10d   : > { %p5895_p9 = pnand %p5894_p4, %p5888_p8 }
 0x10f   : > { %5898 = shalt.err (!%p5895_p9)  }
 0x110   : > { %487 = dma.hbm_to_vmem [thread:$0]  %s474_s29, 128, %s485_s26, [#allocation5 + $0x1]  ;;  %vm1051_vm5 = vcmask 1043456   ;;  %vm888_vm6 = vsmask.f32 4368 }
 0x111   : > { %s7237_s11 = sld [smem:[#allocation34_spill]]  ;;  %s7238_s13 = sld [smem:[#allocation35_spill]]  ;;  %vm6483_vm7 = vmand %vm1051_vm5, %vm816_vm3  ;;  %v1060_v40 = vld [vmem:[#allocation2 + $0x18] sm:$0xf]  ;;  %v1053_v47 = vld [vmem:[#allocation2 + $0xc] sm:$0xf] }
 0x112   : > { %vm6490_vm8 = vmor %vm784_vm1, %vm888_vm6  ;;  %v1064_v53 = vld [vmem:[#allocation2 + $0x20] sm:$0x1]  ;;  %s7243_s17 = sshll.u32 %s6325_s10, 6 }
 0x113   : > { %s6572_s4 = scalar_lea.vmem [#allocation14], %s7243_s17 }
 0x117   : > { %v6463_v58 = vld [vmem:[%s7237_s11] ss:$0 sm:$0xff] }
 0x118   : > { %v6468_v60 = vld [vmem:[%s7238_s13] ss:$0 sm:$0xff] }
 0x1a8   : > { %v5244_v59 = vpop.f32.mrb[0].mxu0 }
 0x1a9   : > { %v722_v61 = vmul.f32 %v5244_v59, %v6463_v58  ;;  %v650_v62 = vpop.f32.mrb[1].mxu0 }
 0x1aa   : > { %v720_v63 = vmul.f32 %v6463_v58, %v650_v62  ;;  %v5245_v0 = vpop.f32.mrb[2].mxu0 }
 0x1ab   : > { %v745_v1 = vadd.f32 %v6468_v60, %v722_v61  ;;  %v723_v2 = vmul.f32 %v5245_v0, %v6463_v58  ;;  %v653_v3 = vpop.f32.mrb[3].mxu0  ;;  %v1057_v61 = vld [vmem:[#allocation2 + $0x14] sm:$0x1] }
 0x1ac   : > { %v743_v5 = vadd.f32 %v6468_v60, %v720_v63  ;;  %v721_v6 = vmul.f32 %v6463_v58, %v653_v3 }
 0x1ad   : > { %v761_v7 = vmax.f32 %v745_v1, 0.0  ;;  %v746_v8 = vadd.f32 %v6468_v60, %v723_v2 }
 0x1ae   : > { %v759_v17 = vmax.f32 %v743_v5, 0.0  ;;  %v744_v18 = vadd.f32 %v6468_v60, %v721_v6 }
 0x1af   : > { %v4867_v19 = vpack.c.bf16 %v761_v7, %v761_v7  ;;  %v762_v20 = vmax.f32 %v746_v8, 0.0 }
 0x1b0   : > { %v4865_v21 = vpack.c.bf16 %v759_v17, %v759_v17  ;;  %v760_v22 = vmax.f32 %v744_v18, 0.0  ;;  %v5248_v23 = vpop.f32.mrb[4].mxu0 }
 0x1b1   : > { %v908_v24 = vshrl.u32 %v4867_v19, 16  ;;  %v911_v25 = vshll.u32 %v4867_v19, 16  ;;  %v4868_v26 = vpack.c.bf16 %v762_v20, %v762_v20  ;;  %v726_v27 = vmul.f32 %v5248_v23, %v6463_v58  ;;  %v666_v28 = vpop.f32.mrb[5].mxu0 }
 0x1b2   : > { %v891_v29 = vshrl.u32 %v4865_v21, 16  ;;  %v894_v30 = vshll.u32 %v4865_v21, 16  ;;  %v4866_v31 = vpack.c.bf16 %v760_v22, %v760_v22  ;;  %v724_v32 = vmul.f32 %v6463_v58, %v666_v28  ;;  %v5249_v33 = vpop.f32.mrb[6].mxu0  ;;  %v1074_v28 = vld [vmem:[#allocation2 + $0x30] sm:$0xf] }
 0x1b3   : > { %v910_v34 = vrot.slane %v908_v24, 7  ;;  %v916_v35 = vshrl.u32 %v4868_v26, 16  ;;  %v919_v36 = vshll.u32 %v4868_v26, 16  ;;  %v749_v37 = vadd.f32 %v6468_v60, %v726_v27  ;;  %v669_v38 = vpop.f32.mrb[7].mxu0 }
 0x1b4   : > { %v893_v41 = vrot.slane %v891_v29, 7  ;;  %v899_v42 = vshrl.u32 %v4866_v31, 16  ;;  %v902_v43 = vshll.u32 %v4866_v31, 16  ;;  %v747_v44 = vadd.f32 %v6468_v60, %v724_v32 }
 0x1b5   : > { %v913_v45 = vor.u32 %v911_v25, %v910_v34  ;;  %v914_v46 = vrot.slane %v910_v34, 4  ;;  %v918_v48 = vrot.slane %v916_v35, 7  ;;  %v765_v49 = vmax.f32 %v749_v37, 0.0 }
 0x1b6   : > { %v896_v50 = vor.u32 %v894_v30, %v893_v41  ;;  %v897_v51 = vrot.slane %v893_v41, 4  ;;  %v901_v54 = vrot.slane %v899_v42, 7  ;;  %v763_v55 = vmax.f32 %v747_v44, 0.0 }
 0x1b7   : > { %v1061_v56 = vsel %vm6483_vm7, %v913_v45, %v1060_v40  ;;  %v921_v57 = vor.u32 %v919_v36, %v918_v48  ;;  %v923_v59 = vrot.slane %v918_v48, 4  ;;  %v4871_v62 = vpack.c.bf16 %v765_v49, %v765_v49  ;;  %v1067_v36 = vld [vmem:[#allocation2 + $0x24] sm:$0xf] }
 0x1b8   : > { %1062 = vst [vmem:[#allocation2 + $0x18] sm:$0xf] %v1061_v56  ;;  %v1054_v63 = vsel %vm6483_vm7, %v896_v50, %v1053_v47  ;;  %v904_v0 = vor.u32 %v902_v43, %v901_v54  ;;  %v906_v1 = vrot.slane %v901_v54, 4  ;;  %v4869_v2 = vpack.c.bf16 %v763_v55, %v763_v55  ;;  %v5252_v3 = vpop.f32.mrb[8].mxu0 }
 0x1b9   : > { %1055 = vst [vmem:[#allocation2 + $0xc] sm:$0xf] %v1054_v63  ;;  %v922_v5 = vsel %vm6490_vm8, %v914_v46, %v921_v57  ;;  %v1065_v6 = vsel %vm6378_vm2, %v923_v59, %v1064_v53  ;;  %v942_v7 = vshrl.u32 %v4871_v62, 16  ;;  %v945_v8 = vshll.u32 %v4871_v62, 16  ;;  %v682_v17 = vpop.f32.mrb[9].mxu0 }
 0x1ba   : > { %1063 = vst [vmem:[#allocation2 + $0x1c] sm:$0xf] %v922_v5  ;;  %1066 = vst [vmem:[#allocation2 + $0x20] sm:$0x1] %v1065_v6  ;;  %v905_v18 = vsel %vm6490_vm8, %v897_v51, %v904_v0  ;;  %v1058_v19 = vsel %vm6378_vm2, %v906_v1, %v1057_v61  ;;  %v925_v20 = vshrl.u32 %v4869_v2, 16  ;;  %v928_v21 = vshll.u32 %v4869_v2, 16 }
 0x1bb   : > { %v5253_v22 = vpop.f32.mrb[10].mxu0  ;;  %1056 = vst [vmem:[#allocation2 + $0x10] sm:$0xf] %v905_v18  ;;  %1059 = vst [vmem:[#allocation2 + $0x14] sm:$0x1] %v1058_v19  ;;  %v6506_v23 = vrot.slane %v942_v7, 7  ;;  %v727_v24 = vmul.f32 %v5249_v33, %v6463_v58  ;;  %v725_v25 = vmul.f32 %v6463_v58, %v669_v38  ;;  %v730_v26 = vmul.f32 %v5252_v3, %v6463_v58 }
 0x1bc   : > { %v685_v27 = vpop.f32.mrb[11].mxu0  ;;  %v6511_v29 = vrot.slane %v925_v20, 7  ;;  %v728_v30 = vmul.f32 %v6463_v58, %v682_v17  ;;  %v731_v31 = vmul.f32 %v5253_v22, %v6463_v58 }
 0x1bd   : > { %v729_v32 = vmul.f32 %v6463_v58, %v685_v27  ;;  %v947_v34 = vor.u32 %v945_v8, %v6506_v23  ;;  %v948_v35 = vrot.slane %v6506_v23, 4  ;;  %v750_v33 = vadd.f32 %v6468_v60, %v727_v24  ;;  %v1078_v23 = vld [vmem:[#allocation2 + $0x38] sm:$0x1]  ;;  %v1071_v24 = vld [vmem:[#allocation2 + $0x2c] sm:$0x1] }
 0x1be   : > { %v748_v37 = vadd.f32 %v6468_v60, %v725_v25  ;;  %v930_v38 = vor.u32 %v928_v21, %v6511_v29  ;;  %v931_v40 = vrot.slane %v6511_v29, 4  ;;  %v753_v41 = vadd.f32 %v6468_v60, %v730_v26 }
 0x1bf   : > { %v751_v42 = vadd.f32 %v6468_v60, %v728_v30  ;;  %v1075_v43 = vsel %vm6483_vm7, %v947_v34, %v1074_v28  ;;  %v766_v44 = vmax.f32 %v750_v33, 0.0  ;;  %v754_v46 = vadd.f32 %v6468_v60, %v731_v31  ;;  %v1088_v34 = vld [vmem:[#allocation2 + $0x48] sm:$0xf] }
 0x1c0   : > { %v764_v45 = vmax.f32 %v748_v37, 0.0  ;;  %1076 = vst [vmem:[#allocation2 + $0x30] sm:$0xf] %v1075_v43  ;;  %v1068_v47 = vsel %vm6483_vm7, %v930_v38, %v1067_v36  ;;  %v769_v48 = vmax.f32 %v753_v41, 0.0  ;;  %v752_v50 = vadd.f32 %v6468_v60, %v729_v32  ;;  %v5256_v51 = vpop.f32.mrb[12].mxu0 }
 0x1c1   : > { %v767_v49 = vmax.f32 %v751_v42, 0.0  ;;  %1069 = vst [vmem:[#allocation2 + $0x24] sm:$0xf] %v1068_v47  ;;  %v4872_v53 = vpack.c.bf16 %v766_v44, %v766_v44  ;;  %v770_v55 = vmax.f32 %v754_v46, 0.0  ;;  %v734_v56 = vmul.f32 %v5256_v51, %v6463_v58  ;;  %v698_v57 = vpop.f32.mrb[13].mxu0 }
 0x1c2   : > { %v4870_v54 = vpack.c.bf16 %v764_v45, %v764_v45  ;;  %v4875_v59 = vpack.c.bf16 %v769_v48, %v769_v48  ;;  %v768_v62 = vmax.f32 %v752_v50, 0.0  ;;  %v732_v63 = vmul.f32 %v6463_v58, %v698_v57  ;;  %v5257_v0 = vpop.f32.mrb[14].mxu0  ;;  %v1081_v36 = vld [vmem:[#allocation2 + $0x3c] sm:$0xf] }
 0x1c3   : > { %v4873_v61 = vpack.c.bf16 %v767_v49, %v767_v49  ;;  %v950_v1 = vshrl.u32 %v4872_v53, 16  ;;  %v953_v2 = vshll.u32 %v4872_v53, 16  ;;  %v701_v6 = vpop.f32.mrb[15].mxu0  ;;  %v4876_v21 = vpack.c.bf16 %v770_v55, %v770_v55 }
 0x1c4   : > { %v933_v3 = vshrl.u32 %v4870_v54, 16  ;;  %v936_v5 = vshll.u32 %v4870_v54, 16  ;;  %v976_v7 = vshrl.u32 %v4875_v59, 16  ;;  %v979_v8 = vshll.u32 %v4875_v59, 16  ;;  %v1092_v54 = vld [vmem:[#allocation2 + $0x50] sm:$0x1] }
 0x1c5   : > { %v959_v17 = vshrl.u32 %v4873_v61, 16  ;;  %v962_v18 = vshll.u32 %v4873_v61, 16  ;;  %v952_v19 = vrot.slane %v950_v1, 7  ;;  %v4874_v22 = vpack.c.bf16 %v768_v62, %v768_v62 }
 0x1c6   : > { %v935_v20 = vrot.slane %v933_v3, 7  ;;  %v978_v25 = vrot.slane %v976_v7, 7  ;;  %v757_v27 = vadd.f32 %v6468_v60, %v734_v56  ;;  %v755_v28 = vadd.f32 %v6468_v60, %v732_v63  ;;  %v1085_v63 = vld [vmem:[#allocation2 + $0x44] sm:$0x1] }
 0x1c7   : > { %v961_v26 = vrot.slane %v959_v17, 7  ;;  %v955_v29 = vor.u32 %v953_v2, %v952_v19  ;;  %v957_v30 = vrot.slane %v952_v19, 4  ;;  %v967_v47 = vshrl.u32 %v4874_v22, 16 }
 0x1c8   : > { %v938_v31 = vor.u32 %v936_v5, %v935_v20  ;;  %v940_v32 = vrot.slane %v935_v20, 4  ;;  %v981_v33 = vor.u32 %v979_v8, %v978_v25  ;;  %v982_v46 = vrot.slane %v978_v25, 4 }
 0x1c9   : > { %v964_v37 = vor.u32 %v962_v18, %v961_v26  ;;  %v956_v38 = vsel %vm6490_vm8, %v948_v35, %v955_v29  ;;  %v1079_v41 = vsel %vm6378_vm2, %v957_v30, %v1078_v23  ;;  %v984_v35 = vshrl.u32 %v4876_v21, 16 }
 0x1ca   : > { %v939_v42 = vsel %vm6490_vm8, %v931_v40, %v938_v31  ;;  %v1072_v43 = vsel %vm6378_vm2, %v940_v32, %v1071_v24  ;;  %1077 = vst [vmem:[#allocation2 + $0x34] sm:$0xf] %v956_v38  ;;  %1080 = vst [vmem:[#allocation2 + $0x38] sm:$0x1] %v1079_v41  ;;  %v1089_v44 = vsel %vm6483_vm7, %v981_v33, %v1088_v34  ;;  %v773_v48 = vmax.f32 %v757_v27, 0.0 }
 0x1cb   : > { %1070 = vst [vmem:[#allocation2 + $0x28] sm:$0xf] %v939_v42  ;;  %1073 = vst [vmem:[#allocation2 + $0x2c] sm:$0x1] %v1072_v43  ;;  %v1082_v45 = vsel %vm6483_vm7, %v964_v37, %v1081_v36  ;;  %v771_v40 = vmax.f32 %v755_v28, 0.0  ;;  %v986_v49 = vrot.slane %v984_v35, 7  ;;  %v735_v51 = vmul.f32 %v5257_v0, %v6463_v58 }
 0x1cc   : > { %1090 = vst [vmem:[#allocation2 + $0x48] sm:$0xf] %v1089_v44  ;;  %1083 = vst [vmem:[#allocation2 + $0x3c] sm:$0xf] %v1082_v45  ;;  %v987_v50 = vshll.u32 %v4876_v21, 16  ;;  %v733_v53 = vmul.f32 %v6463_v58, %v701_v6  ;;  %v969_v55 = vrot.slane %v967_v47, 7  ;;  %v4879_v57 = vpack.c.bf16 %v773_v48, %v773_v48 }
 0x1cd   : > { %v970_v56 = vshll.u32 %v4874_v22, 16  ;;  %v4877_v59 = vpack.c.bf16 %v771_v40, %v771_v40  ;;  %v991_v62 = vrot.slane %v986_v49, 4  ;;  %v758_v1 = vadd.f32 %v6468_v60, %v735_v51  ;;  %v1102_v21 = vld [vmem:[#allocation2 + $0x60] sm:$0xf]  ;;  %v1106_v37 = vld [vmem:[#allocation2 + $0x68] sm:$0x1] }
 0x1ce   : > { %v989_v61 = vor.u32 %v987_v50, %v986_v49  ;;  %v756_v2 = vadd.f32 %v6468_v60, %v733_v53  ;;  %v965_v3 = vrot.slane %v961_v26, 4  ;;  %v974_v7 = vrot.slane %v969_v55, 4  ;;  %v1095_v26 = vld [vmem:[#allocation2 + $0x54] sm:$0xf]  ;;  %v1099_v45 = vld [vmem:[#allocation2 + $0x5c] sm:$0x1] }
 0x1cf   : > { %v972_v5 = vor.u32 %v970_v56, %v969_v55  ;;  %v1010_v8 = vshrl.u32 %v4879_v57, 16  ;;  %v1093_v58 = vsel %vm6378_vm2, %v991_v62, %v1092_v54  ;;  %v1013_v6 = vshll.u32 %v4879_v57, 16 }
 0x1d0   : > { %v990_v0 = vsel %vm6490_vm8, %v982_v46, %v989_v61  ;;  %v993_v17 = vshrl.u32 %v4877_v59, 16  ;;  %1094 = vst [vmem:[#allocation2 + $0x50] sm:$0x1] %v1093_v58  ;;  %v1086_v60 = vsel %vm6378_vm2, %v974_v7, %v1085_v63  ;;  %v774_v20 = vmax.f32 %v758_v1, 0.0 }
 0x1d1   : > { %1091 = vst [vmem:[#allocation2 + $0x4c] sm:$0xf] %v990_v0  ;;  %v973_v18 = vsel %vm6490_vm8, %v965_v3, %v972_v5  ;;  %v1012_v19 = vrot.slane %v1010_v8, 7  ;;  %1087 = vst [vmem:[#allocation2 + $0x44] sm:$0x1] %v1086_v60  ;;  %v996_v23 = vshll.u32 %v4877_v59, 16 }
 0x1d2   : > { %1084 = vst [vmem:[#allocation2 + $0x40] sm:$0xf] %v973_v18  ;;  %v995_v22 = vrot.slane %v993_v17, 7  ;;  %v772_v24 = vmax.f32 %v756_v2, 0.0  ;;  %v4880_v27 = vpack.c.bf16 %v774_v20, %v774_v20 }
 0x1d3   : > { %v1015_v25 = vor.u32 %v1013_v6, %v1012_v19  ;;  %v1016_v42 = vrot.slane %v1012_v19, 4 }
 0x1d4   : > { %v998_v28 = vor.u32 %v996_v23, %v995_v22  ;;  %v4878_v29 = vpack.c.bf16 %v772_v24, %v772_v24  ;;  %v1018_v31 = vshrl.u32 %v4880_v27, 16  ;;  %v1021_v33 = vshll.u32 %v4880_v27, 16 }
 0x1d5   : > { %v1103_v30 = vsel %vm6483_vm7, %v1015_v25, %v1102_v21  ;;  %v999_v35 = vrot.slane %v995_v22, 4 }
 0x1d6   : > { %1104 = vst [vmem:[#allocation2 + $0x60] sm:$0xf] %v1103_v30  ;;  %v1096_v32 = vsel %vm6483_vm7, %v998_v28, %v1095_v26  ;;  %v1001_v34 = vshrl.u32 %v4878_v29, 16  ;;  %v1020_v36 = vrot.slane %v1018_v31, 7  ;;  %v1004_v41 = vshll.u32 %v4878_v29, 16 }
 0x1d7   : > { %1097 = vst [vmem:[#allocation2 + $0x54] sm:$0xf] %v1096_v32 }
 0x1d8   : > { %v1003_v38 = vrot.slane %v1001_v34, 7  ;;  %v1023_v43 = vor.u32 %v1021_v33, %v1020_v36  ;;  %v1025_v44 = vrot.slane %v1020_v36, 4 }
 0x1da   : > { %v1006_v46 = vor.u32 %v1004_v41, %v1003_v38  ;;  %v1008_v47 = vrot.slane %v1003_v38, 4  ;;  %v1024_v48 = vsel %vm6490_vm8, %v1016_v42, %v1023_v43  ;;  %v1107_v40 = vsel %vm6378_vm2, %v1025_v44, %v1106_v37 }
 0x1db   : > { %1105 = vst [vmem:[#allocation2 + $0x64] sm:$0xf] %v1024_v48  ;;  %1108 = vst [vmem:[#allocation2 + $0x68] sm:$0x1] %v1107_v40 }
 0x1dc   : > { %v1007_v49 = vsel %vm6490_vm8, %v999_v35, %v1006_v46  ;;  %v1100_v50 = vsel %vm6378_vm2, %v1008_v47, %v1099_v45 }
 0x1dd   : > { %1098 = vst [vmem:[#allocation2 + $0x58] sm:$0xf] %v1007_v49  ;;  %1101 = vst [vmem:[#allocation2 + $0x5c] sm:$0x1] %v1100_v50 }
 0x1de   : > { %5971 = dma.done.wait [#allocation5], 128 }
 0x1df   : > { %5972 = vsyncadd [#allocation5], 4294967168 }
 0x1e0   : > { %5973 = dma.done.wait [#allocation5 + $0x1], 128 }
 0x1e1   : > { %5974 = vsyncadd [#allocation5 + $0x1], 4294967168  ;;  %v5625_v51 = vld [vmem:[#allocation9] sm:$0xff]   ;;  %v5626_v53 = vld [vmem:[#allocation9 + $0x8] sm:$0xff]   ;;  %vm1455_vm9 = vsmask.f32 3328 }
 0x1e2   : > { %5258 = vmatprep.subr.bf16.mxu1 %v5625_v51  ;;  %v5627_v54 = vld [vmem:[#allocation9 + $0x10] sm:$0xff]   ;;  %v5628_v55 = vld [vmem:[#allocation9 + $0x18] sm:$0xff]   ;;  %v5633_v57 = vld [vmem:[#allocation11 + $0x100] sm:$0xff]   ;;  %vm1456_vm10 = vsmask.f32 7440  ;;  %vm1738_vm12 = vcmask 1042432  }
 0x1e3   : > { %5259 = vmatpush3.bf16.msra.mxu1 %v5625_v51  ;;  %v1115_v56 = vld [vmem:[#allocation4] sm:$0xff]  ;;  %v5629_v59 = vld [vmem:[#allocation9 + $0x20] sm:$0xff]   ;;  %4970 = vmatprep.subr.bf16.mxu0 %v5633_v57  ;;  %v5635_v62 = vld [vmem:[#allocation11 + $0x108] sm:$0xff]   ;;  %vm1739_vm13 = vcmask 1046532   ;;  %p1271_p6 = scmp.lt.s32.totalorder %s5993_s20, 1  ;;  %p1258_p0 = scmp.gt.s32.totalorder %s5993_s20, 0 }
 0x1e4   : > { %5260 = vmatprep.subr.bf16.mxu1 %v5626_v53  ;;  %5274 = vmatprep.mubr.bf16.mxu1 %v1115_v56  ;;  %v5634_v61 = vld [vmem:[#allocation11 + $0xc0] sm:$0xff]   ;;  %v5636_v63 = vld [vmem:[#allocation11 + $0xc8] sm:$0xff]   ;;  %v5637_v1 = vld [vmem:[#allocation11 + $0x110] sm:$0xff]  }
 0x1e5   : > { %4971 = vmatpush3.bf16.msra.mxu0 %v5634_v61  ;;  %v5630_v2 = vld [vmem:[#allocation9 + $0x28] sm:$0xff]   ;;  %v5638_v3 = vld [vmem:[#allocation11 + $0xd0] sm:$0xff]   ;;  %v5639_v5 = vld [vmem:[#allocation11 + $0x118] sm:$0xff]   ;;  %s1272_s16 = scalar_select %p1271_p6, 1, 0 }
 0x1e6   : > { %4972 = vmatprep.subr.bf16.mxu0 %v5635_v62  ;;  %v5631_v7 = vld [vmem:[#allocation9 + $0x30] sm:$0xff]   ;;  %v5640_v8 = vld [vmem:[#allocation11 + $0xd8] sm:$0xff]   ;;  %v5641_v0 = vld [vmem:[#allocation11 + $0x120] sm:$0xff]   ;;  %s1259_s26 = scalar_select %p1258_p0, 1, 0 }
 0x1e7   : > { %5261 = vmatpush3.bf16.msra.mxu1 %v5626_v53  ;;  %v5632_v58 = vld [vmem:[#allocation9 + $0x38] sm:$0xff]   ;;  %v5642_v6 = vld [vmem:[#allocation11 + $0xe0] sm:$0xff]   ;;  %v5643_v17 = vld [vmem:[#allocation11 + $0x128] sm:$0xff]   ;;  %s1273_s14 = scvt.s32.f32 %s1272_s16 }
 0x1e8   : > { %5262 = vmatprep.subr.bf16.mxu1 %v5627_v54  ;;  %v1981_v18 = vld [vmem:[#allocation2 + $0xc] sm:$0xf]  ;;  %v1982_v60 = vld [vmem:[#allocation2 + $0x10] sm:$0xf]  ;;  %v1983_v19 = vld [vmem:[#allocation2 + $0x14] sm:$0x1]  ;;  %s1260_s5 = scvt.s32.f32 %s1259_s26 }
 0x1e9   : > { %4973 = vmatpush3.bf16.msra.mxu0 %v5636_v63  ;;  %v2006_v20 = vshrl.u32 %v1981_v18, 16  ;;  %v2009_v21 = vshll.u32 %v1981_v18, 16  ;;  %v5644_v22 = vld [vmem:[#allocation11 + $0xe8] sm:$0xff]   ;;  %v2015_v23 = vshll.u32 %v1982_v60, 16  ;;  %v2019_v24 = vshrl.u32 %v1982_v60, 16  ;;  %v1116_v36 = vld [vmem:[#allocation4 + $0x8] sm:$0xff]  ;;  %vm6576_vm11 = vmor %vm1455_vm9, %vm1456_vm10  ;;  %p1275_p10 = scmp.ne.f32.partialorder %s1273_s14, %s1273_s14 }
 0x1ea   : > { %4974 = vmatprep.subr.bf16.mxu0 %v5637_v1  ;;  %v2025_v25 = vshll.u32 %v1983_v19, 16  ;;  %v1984_v28 = vld [vmem:[#allocation2 + $0x18] sm:$0xf]  ;;  %v1985_v32 = vld [vmem:[#allocation2 + $0x1c] sm:$0xf]  ;;  %v5647_v57 = vld [vmem:[#allocation11 + $0x138] sm:$0xff]   ;;  %p1262_p5 = scmp.ne.f32.partialorder %s1260_s5, %s1260_s5 }
 0x1eb   : > { %5263 = vmatpush3.bf16.msra.mxu1 %v5627_v54  ;;  %v2008_v26 = vrot.slane %v2006_v20, 4  ;;  %v2011_v27 = vrot.slane %v2009_v21, 5  ;;  %v2017_v29 = vrot.slane %v2015_v23, 5  ;;  %v2021_v30 = vrot.slane %v2019_v24, 4  ;;  %v5645_v33 = vld [vmem:[#allocation11 + $0x130] sm:$0xff]   ;;  %vm6646_vm14 = vmor %vm1738_vm12, %vm1739_vm13  ;;  %s1276_s2 = sshrl.u32 %s1273_s14, 16 }
 0x1ec   : > { %5264 = vmatprep.subr.bf16.mxu1 %v5628_v55  ;;  %v2027_v31 = vrot.slane %v2025_v25, 5  ;;  %v2030_v34 = vshrl.u32 %v1984_v28, 16  ;;  %v1986_v38 = vld [vmem:[#allocation2 + $0x20] sm:$0x1]  ;;  %v2033_v41 = vshll.u32 %v1984_v28, 16  ;;  %v2039_v42 = vshll.u32 %v1985_v32, 16 }
 0x1ed   : > { %4975 = vmatpush3.bf16.msra.mxu0 %v5638_v3  ;;  %v2012_v37 = vor.u32 %v2011_v27, %v2008_v26  ;;  %v2043_v43 = vshrl.u32 %v1985_v32, 16  ;;  %v5646_v44 = vld [vmem:[#allocation11 + $0xf0] sm:$0xff]   ;;  %v2022_v35 = vor.u32 %v2021_v30, %v2017_v29  ;;  %v2049_v47 = vshll.u32 %v1986_v38, 16  ;;  %v1987_v51 = vld [vmem:[#allocation2 + $0x24] sm:$0xf]  ;;  %v5649_v26 = vld [vmem:[#allocation2 + $0xc] sm:$0xff]  }
 0x1ee   : > { %4976 = vmatprep.subr.bf16.mxu0 %v5639_v5  ;;  %v2032_v46 = vrot.slane %v2030_v34, 4  ;;  %v2035_v40 = vrot.slane %v2033_v41, 5  ;;  %v2041_v49 = vrot.slane %v2039_v42, 5  ;;  %v1989_v56 = vld [vmem:[#allocation2 + $0x2c] sm:$0x1]  ;;  %v2054_v63 = vshrl.u32 %v1987_v51, 16 }
 0x1ef   : > { %5265 = vmatpush3.bf16.msra.mxu1 %v5628_v55  ;;  %v2013_v48 = vrot.slane %v2012_v37, 4  ;;  %v2045_v50 = vrot.slane %v2043_v43, 4  ;;  %v2023_v53 = vrot.slane %v2022_v35, 4  ;;  %v2051_v54 = vrot.slane %v2049_v47, 5  ;;  %v1988_v55 = vld [vmem:[#allocation2 + $0x28] sm:$0xf] }
 0x1f0   : > { %5266 = vmatprep.subr.bf16.mxu1 %v5629_v59  ;;  %v2036_v61 = vor.u32 %v2035_v40, %v2032_v46  ;;  %v2063_v3 = vshll.u32 %v1988_v55, 16  ;;  %v2067_v5 = vshrl.u32 %v1988_v55, 16  ;;  %v2073_v20 = vshll.u32 %v1989_v56, 16  ;;  %v1991_v21 = vld [vmem:[#allocation2 + $0x34] sm:$0xf]  ;;  %v5655_v46 = vld [vmem:[#allocation11 + $0x180] sm:$0xff]  }
 0x1f1   : > { %4977 = vmatpush3.bf16.msra.mxu0 %v5640_v8  ;;  %v2046_v62 = vor.u32 %v2045_v50, %v2041_v49  ;;  %v2028_v1 = vsel %vm6576_vm11, %v2023_v53, %v2027_v31  ;;  %v5648_v8 = vld [vmem:[#allocation11 + $0xf8] sm:$0xff]   ;;  %v2087_v31 = vshll.u32 %v1991_v21, 16  ;;  %v2091_v32 = vshrl.u32 %v1991_v21, 16  ;;  %v1993_v34 = vld [vmem:[#allocation2 + $0x3c] sm:$0xf]  ;;  %s1263_s29 = sshrl.u32 %s1260_s5, 16 }
 0x1f2   : > { %4978 = vmatprep.subr.bf16.mxu0 %v5641_v0  ;;  %v2065_v60 = vrot.slane %v2063_v3, 5  ;;  %v2069_v19 = vrot.slane %v2067_v5, 4  ;;  %v2075_v38 = vrot.slane %v2073_v20, 5  ;;  %v1992_v41 = vld [vmem:[#allocation2 + $0x38] sm:$0x1]  ;;  %v2102_v47 = vshrl.u32 %v1993_v34, 16 }
 0x1f3   : > { %5267 = vmatpush3.bf16.msra.mxu1 %v5629_v59  ;;  %v2018_v59 = vsel %vm6576_vm11, %v2013_v48, %v2017_v29  ;;  %v5654_v29 = vld [vmem:[#allocation11 + $0x1c0] sm:$0xff]   ;;  %v2093_v35 = vrot.slane %v2091_v32, 4  ;;  %v2105_v48 = vshll.u32 %v1993_v34, 16  ;;  %v1995_v40 = vld [vmem:[#allocation2 + $0x44] sm:$0x1]  ;;  %s1277_s21 = sand.u32 1, %s1276_s2 }
 0x1f4   : > { %5268 = vmatprep.subr.bf16.mxu1 %v5630_v2  ;;  %v4701_v0 = vcombine.low %v2018_v59, %v2028_v1  ;;  %v2070_v28 = vor.u32 %v2069_v19, %v2065_v60  ;;  %v5657_v59 = vld [vmem:[#allocation11 + $0x188] sm:$0xff]   ;;  %v1996_v3 = vld [vmem:[#allocation2 + $0x48] sm:$0xf]  ;;  %v1997_v5 = vld [vmem:[#allocation2 + $0x4c] sm:$0xf]  ;;  %s1264_s25 = sand.u32 1, %s1263_s29 }
 0x1f5   : > { %4979 = vmatpush3.bf16.msra.mxu0 %v5642_v6  ;;  %v2047_v6 = vrot.slane %v2046_v62, 4  ;;  %v2104_v62 = vrot.slane %v2102_v47, 4  ;;  %v5660_v19 = vld [vmem:[#allocation11 + $0x190] sm:$0xff]   ;;  %v2135_v20 = vshll.u32 %v1997_v5, 16  ;;  %v2139_v21 = vshrl.u32 %v1997_v5, 16  ;;  %v5652_v5 = vld [vmem:[#allocation2 + $0x30] sm:$0xff]  }
 0x1f6   : > { %4980 = vmatprep.subr.bf16.mxu0 %v5643_v17  ;;  %v2056_v17 = vrot.slane %v2054_v63, 4  ;;  %2629 = vmatprep.mubr.bf16.mxu0 %v4701_v0  ;;  %v2071_v37 = vrot.slane %v2070_v28, 4  ;;  %v2107_v63 = vrot.slane %v2105_v48, 5  ;;  %v1998_v32 = vld [vmem:[#allocation2 + $0x50] sm:$0x1]  ;;  %s1278_s12 = sadd.s32 32767, %s1277_s21 }
 0x1f7   : > { %5269 = vmatpush3.bf16.msra.mxu1 %v5630_v2  ;;  %v2057_v2 = vshll.u32 %v1987_v51, 16  ;;  %v2052_v23 = vsel %vm6576_vm11, %v2047_v6, %v2051_v54  ;;  %v5656_v54 = vld [vmem:[#allocation11 + $0x1c8] sm:$0xff]   ;;  %v2129_v6 = vshll.u32 %v1996_v3, 16  ;;  %v6603_v34 = vrot.slane %v2135_v20, 5  ;;  %s1265_s28 = sadd.s32 32767, %s1264_s25  ;;  %s1279_s8 = sadd.s32 %s1278_s12, %s1273_s14 }
 0x1f8   : > { %5270 = vmatprep.subr.bf16.mxu1 %v5631_v7  ;;  %v2076_v50 = vsel %vm6576_vm11, %v2071_v37, %v2075_v38  ;;  %v2000_v37 = vld [vmem:[#allocation2 + $0x58] sm:$0xf]  ;;  %s1266_s30 = sadd.s32 %s1265_s28, %s1260_s5  ;;  %s1280_s27 = sand.u32 4294901760, %s1279_s8  ;;  %v1693_v45 = vld [vmem:[#allocation2 + $0xc] sm:$0xe] }
 0x1f9   : > { %4981 = vmatpush3.bf16.msra.mxu0 %v5644_v22  ;;  %v2059_v18 = vrot.slane %v2057_v2, 5  ;;  %v2121_v2 = vshll.u32 %v1995_v40, 16  ;;  %v2163_v48 = vshrl.u32 %v2000_v37, 16  ;;  %s1267_s17 = sand.u32 4294901760, %s1266_s30  ;;  %s7276_s27 = smov (%p1275_p10, %s1280_s27), 2143289344 }
 0x1fa   : > { %4982 = vmatprep.subr.bf16.mxu0 %v5645_v33  ;;  %s7278_s17 = smov (%p1262_p5, %s1267_s17), 2143289344  ;;  %s1283_s16 = sshrl.u32 %s7276_s27, 16 }
 0x1fb   : > { %5271 = vmatpush3.bf16.msra.mxu1 %v5631_v7  ;;  %v1990_v7 = vld [vmem:[#allocation2 + $0x30] sm:$0xf]  ;;  %v2060_v27 = vor.u32 %v2059_v18, %v2056_v17  ;;  %s1270_s2 = sshrl.u32 %s7278_s17, 16  ;;  %s1321_s14 = sshll.u32 %s1283_s16, 16 }
 0x1fc   : > { %5272 = vmatprep.subr.bf16.mxu1 %v5632_v58  ;;  %v2078_v24 = vshrl.u32 %v1990_v7, 16  ;;  %v2081_v25 = vshll.u32 %v1990_v7, 16  ;;  %v5659_v7 = vld [vmem:[#allocation11 + $0x1d0] sm:$0xff]   ;;  %s1284_s5 = sshll.u32 %s1270_s2, 16  ;;  %s1322_s0 = sor.u32 %s1321_s14, %s1283_s16 }
 0x1fd   : > { %4983 = vmatpush3.bf16.msra.mxu0 %v5646_v44  ;;  %v2061_v33 = vrot.slane %v2060_v27, 4  ;;  %v6588_v44 = vrot.slane %v2087_v31, 5  ;;  %v5662_v27 = vld [vmem:[#allocation11 + $0x198] sm:$0xff]   ;;  %s1285_s9 = sor.u32 %s1284_s5, %s1270_s2  ;;  %s7248_s21 = sld [smem:[#allocation37_spill]] }
 0x1fe   : > { %4984 = vmatprep.subr.bf16.mxu0 %v5647_v57  ;;  %v2080_v42 = vrot.slane %v2078_v24, 4  ;;  %v2083_v43 = vrot.slane %v2081_v25, 5  ;;  %v2097_v57 = vshll.u32 %v1992_v41, 16  ;;  %v2123_v24 = vrot.slane %v2121_v2, 5  ;;  %v2001_v41 = vld [vmem:[#allocation2 + $0x5c] sm:$0x1] }
 0x1ff   : > { %5273 = vmatpush3.bf16.msra.mxu1 %v5632_v58  ;;  %v2037_v58 = vrot.slane %v2036_v61, 4  ;;  %v2094_v56 = vor.u32 %v2093_v35, %v6588_v44  ;;  %v5650_v61 = vld [vmem:[#allocation2 + $0x18] sm:$0xff]   ;;  %v2159_v35 = vshll.u32 %v2000_v37, 16  ;;  %v5667_v2 = vld [vmem:[#allocation11 + $0x1a8] sm:$0xff]   ;;  %v5673_v37 = vld [vmem:[#allocation11 + $0x1f8] sm:$0xff]   ;;  %s7249_s28 = sld [smem:[#allocation38_spill]] }
 0x200   : > { %v2084_v55 = vor.u32 %v2083_v43, %v2080_v42  ;;  %s7250_s27 = sld [smem:[#allocation40_spill]]  ;;  %s7251_s26 = sld [smem:[#allocation41_spill]] }
 0x201   : > { %v2042_v22 = vsel %vm6576_vm11, %v2037_v58, %v2041_v49  ;;  %4985 = vmatpush3.bf16.msra.mxu0 %v5648_v8  ;;  %v2066_v49 = vsel %vm6576_vm11, %v2061_v33, %v2065_v60  ;;  %v2126_v58 = vshrl.u32 %v1996_v3, 16  ;;  %v2095_v18 = vrot.slane %v2094_v56, 4  ;;  %v1999_v33 = vld [vmem:[#allocation2 + $0x54] sm:$0xf]  ;;  %v2002_v3 = vld [vmem:[#allocation2 + $0x60] sm:$0xf] }
 0x202   : > { %5275 = vmatmul.mubr.bf16.vlgmr.msra.gmra.mrb[0].mxu1 %v1116_v36  ;;  %v4702_v30 = vcombine.low %v2042_v22, %v2052_v23  ;;  %v1994_v36 = vld [vmem:[#allocation2 + $0x40] sm:$0xf]  ;;  %5130 = vmatprep.subr.bf16.mxu0 %v5654_v29  ;;  %v4703_v1 = vcombine.low %v2066_v49, %v2076_v50  ;;  %v2085_v17 = vrot.slane %v2084_v55, 4  ;;  %v2099_v60 = vrot.slane %v2097_v57, 5  ;;  %v5651_v29 = vld [vmem:[#allocation2 + $0x24] sm:$0xff]   ;;  %s4858_s2 = sshll.u32 %s5993_s20, 4 }
 0x203   : > { %v2111_v51 = vshll.u32 %v1994_v36, 16  ;;  %v2115_v53 = vshrl.u32 %v1994_v36, 16  ;;  %v5661_v22 = vld [vmem:[#allocation11 + $0x1d8] sm:$0xff]   ;;  %v2108_v23 = vor.u32 %v2107_v63, %v2104_v62  ;;  %v2128_v25 = vrot.slane %v2126_v58, 4  ;;  %v5664_v50 = vld [vmem:[#allocation11 + $0x1e0] sm:$0xff]   ;;  %v5666_v62 = vld [vmem:[#allocation11 + $0x1e8] sm:$0xff]   ;;  %s4446_s20 = sadd.s32 %s4858_s2, %s6431_s3 }
 0x204   : > { %2630 = vmatmul.mubr.bf16.vlgmr.msra.gmra.mrb[16].mxu0 %v5649_v26  ;;  %v2131_v26 = vrot.slane %v2129_v6, 5  ;;  %v2100_v31 = vsel %vm6576_vm11, %v2095_v18, %v2099_v60  ;;  %v2141_v36 = vrot.slane %v2139_v21, 4  ;;  %v2150_v42 = vshrl.u32 %v1999_v33, 16  ;;  %v2003_v18 = vld [vmem:[#allocation2 + $0x64] sm:$0xf]  ;;  %s4860_s14 = sshll.u32 %s4446_s20, 6 }
 0x205   : > { %2637 = vmatprep.mubr.bf16.mxu0 %v4702_v30  ;;  %5131 = vmatpush3.bf16.msra.mxu0 %v5655_v46  ;;  %v6595_v8 = vrot.slane %v2111_v51, 5  ;;  %v2117_v0 = vrot.slane %v2115_v53, 4  ;;  %v2090_v30 = vsel %vm6576_vm11, %v2085_v17, %v6588_v44  ;;  %v2109_v38 = vrot.slane %v2108_v23, 4  ;;  %v2004_v21 = vld [vmem:[#allocation2 + $0x68] sm:$0x1]  ;;  %s4449_s5 = sshll.u32 %s6572_s4, 4  ;;  %s7111_s5 = int_to_ptr.vmem [resolvable:$true] %s4449_s5 }
 0x206   : > { %5132 = vmatprep.subr.bf16.mxu0 %v5656_v54  ;;  %v2153_v43 = vshll.u32 %v1999_v33, 16  ;;  %v4704_v46 = vcombine.low %v2090_v30, %v2100_v31  ;;  %v2152_v44 = vrot.slane %v2150_v42, 4  ;;  %v6605_v49 = vrot.slane %v2159_v35, 5  ;;  %v3202_v42 = vld [vmem:[#allocation2 + $0x18] sm:$0xf]  ;;  %s7253_s3 = sld [smem:[#allocation42_spill]] }
 0x207   : > { %v2118_v28 = vor.u32 %v2117_v0, %v6595_v8  ;;  %v2132_v51 = vor.u32 %v2131_v26, %v2128_v25  ;;  %v2142_v53 = vor.u32 %v2141_v36, %v6603_v34  ;;  %v2145_v54 = vshll.u32 %v1998_v32, 16  ;;  %v5671_v26 = vld [vmem:[#allocation11 + $0x1b0] sm:$0xff]   ;;  %s4434_s29 = scalar_lea.sflag [#allocation8], %s6325_s10  ;;  %s6019_s25 = smov [#allocation14]  }
 0x208   : > { %v2155_v40 = vrot.slane %v2153_v43, 5  ;;  %v2165_v55 = vrot.slane %v2163_v48, 4  ;;  %v2169_v57 = vshll.u32 %v2001_v41, 16  ;;  %v2114_v63 = vsel %vm6576_vm11, %v2109_v38, %v6595_v8  ;;  %v5674_v41 = vld [vmem:[#allocation11 + $0x1b8] sm:$0xff]   ;;  %v3203_v43 = vld [vmem:[#allocation2 + $0x1c] sm:$0xf] }
 0x209   : > { %5133 = vmatpush3.bf16.msra.mxu0 %v5657_v59  ;;  %v2119_v47 = vrot.slane %v2118_v28, 4  ;;  %v5665_v59 = vld [vmem:[#allocation11 + $0x1a0] sm:$0xff]   ;;  %v2143_v0 = vrot.slane %v2142_v53, 4  ;;  %v2147_v58 = vrot.slane %v2145_v54, 5  ;;  %v2174_v20 = vshrl.u32 %v2002_v3, 16  ;;  %v5672_v28 = vld [vmem:[#allocation11 + $0x148] sm:$0xff]  }
 0x20a   : > { %5134 = vmatprep.subr.bf16.mxu0 %v5659_v7  ;;  %v2156_v56 = vor.u32 %v2155_v40, %v2152_v44  ;;  %v2133_v7 = vrot.slane %v2132_v51, 4  ;;  %v2171_v17 = vrot.slane %v2169_v57, 5  ;;  %v2177_v8 = vshll.u32 %v2002_v3, 16  ;;  %v5675_v44 = vld [vmem:[#allocation11 + $0x150] sm:$0xff]   ;;  %v3207_v3 = vld [vmem:[#allocation2 + $0x2c] sm:$0x1] }
 0x20b   : > { %v2183_v23 = vshll.u32 %v2003_v18, 16  ;;  %v2187_v25 = vshrl.u32 %v2003_v18, 16  ;;  %v2148_v31 = vsel %vm6576_vm11, %v2143_v0, %v2147_v58  ;;  %v2193_v36 = vshll.u32 %v2004_v21, 16  ;;  %v5658_v0 = vld [vmem:[#allocation2 + $0x48] sm:$0xff]   ;;  %s5903_s12 = sshll.u32 %s6019_s25, 4  ;;  %s5904_s12 = int_to_ptr.vmem [resolvable:$false] %s5903_s12 }
 0x20c   : > { %2638 = vmatmul.mubr.bf16.gmra.mrb[20].mxu0 %v5650_v61  ;;  %v2166_v61 = vor.u32 %v2165_v55, %v6605_v49  ;;  %v2157_v6 = vrot.slane %v2156_v56, 4  ;;  %v2138_v30 = vsel %vm6576_vm11, %v2133_v7, %v6603_v34  ;;  %v2179_v32 = vrot.slane %v2177_v8, 5  ;;  %v5678_v8 = vld [vmem:[#allocation11 + $0x160] sm:$0xff]   ;;  %s7109_s15 = scalar_lea.hbm %s7253_s3, %s4860_s14  ;;  %p5906_p2 = scmp.lt.s32.totalorder %s7111_s5, %s5904_s12 }
 0x20d   : > { %2645 = vmatprep.mubr.bf16.mxu0 %v4703_v1  ;;  %5135 = vmatpush3.bf16.msra.mxu0 %v5660_v19  ;;  %v2124_v1 = vsel %vm6576_vm11, %v2119_v47, %v2123_v24  ;;  %v5670_v24 = vld [vmem:[#allocation11 + $0x1f0] sm:$0xff]   ;;  %v6619_v33 = vrot.slane %v2183_v23, 5  ;;  %v2189_v38 = vrot.slane %v2187_v25, 4  ;;  %v4706_v35 = vcombine.low %v2138_v30, %v2148_v31 }
 0x20e   : > { %5136 = vmatprep.subr.bf16.mxu0 %v5661_v22  ;;  %v4705_v60 = vcombine.low %v2114_v63, %v2124_v1  ;;  %v2167_v19 = vrot.slane %v2166_v61, 4  ;;  %v5669_v22 = vld [vmem:[#allocation11 + $0x140] sm:$0xff]   ;;  %v3227_v47 = vshrl.u32 %v3202_v42, 16  ;;  %v3230_v34 = vshll.u32 %v3202_v42, 16  ;;  %v5677_v63 = vld [vmem:[#allocation11 + $0x158] sm:$0xff]  }
 0x20f   : > { %5278 = vmatprep.subr.bf16.mxu1 %v5669_v22  ;;  %v3236_v48 = vshll.u32 %v3203_v43, 16  ;;  %v2162_v40 = vsel %vm6576_vm11, %v2157_v6, %v6605_v49  ;;  %v3240_v51 = vshrl.u32 %v3203_v43, 16  ;;  %v2195_v54 = vrot.slane %v2193_v36, 5  ;;  %v3205_v49 = vld [vmem:[#allocation2 + $0x24] sm:$0xf] }
 0x210   : > { %5279 = vmatpush3.bf16.msra.mxu1 %v5669_v22  ;;  %v3229_v55 = vrot.slane %v3227_v47, 4  ;;  %v3232_v56 = vrot.slane %v3230_v34, 5  ;;  %v2190_v61 = vor.u32 %v2189_v38, %v6619_v33  ;;  %v3254_v7 = vshll.u32 %v3205_v49, 16  ;;  %v5668_v43 = vld [vmem:[#allocation2 + $0x60] sm:$0xff]  }
 0x211   : > { %5137 = vmatpush3.bf16.msra.mxu0 %v5662_v27  ;;  %v2176_v27 = vrot.slane %v2174_v20, 4  ;;  %5280 = vmatprep.subr.bf16.mxu1 %v5672_v28  ;;  %v3238_v57 = vrot.slane %v3236_v48, 5  ;;  %v3270_v21 = vshll.u32 %v3207_v3, 16 }
 0x212   : > { %5138 = vmatprep.subr.bf16.mxu0 %v5664_v50  ;;  %v2172_v50 = vsel %vm6576_vm11, %v2167_v19, %v2171_v17  ;;  %v3233_v6 = vor.u32 %v3232_v56, %v3229_v55  ;;  %v3256_v20 = vrot.slane %v3254_v7, 5  ;;  %v2191_v22 = vrot.slane %v2190_v61, 4 }
 0x213   : > { %v2180_v53 = vor.u32 %v2179_v32, %v2176_v27  ;;  %v4707_v1 = vcombine.low %v2162_v40, %v2172_v50  ;;  %v3272_v31 = vrot.slane %v3270_v21, 5  ;;  %v3208_v40 = vld [vmem:[#allocation2 + $0x30] sm:$0xf]  ;;  %v3209_v50 = vld [vmem:[#allocation2 + $0x34] sm:$0xf] }
 0x214   : > { %2646 = vmatmul.mubr.bf16.gmra.mrb[24].mxu0 %v5651_v29  ;;  %v5653_v29 = vld [vmem:[#allocation2 + $0x3c] sm:$0xff]   ;;  %5281 = vmatpush3.bf16.msra.mxu1 %v5672_v28  ;;  %v3234_v27 = vrot.slane %v3233_v6, 4  ;;  %v3288_v55 = vshrl.u32 %v3209_v50, 16 }
 0x215   : > { %2653 = vmatprep.mubr.bf16.mxu0 %v4704_v46  ;;  %5139 = vmatpush3.bf16.msra.mxu0 %v5665_v59  ;;  %v3204_v46 = vld [vmem:[#allocation2 + $0x20] sm:$0x1]  ;;  %v3242_v59 = vrot.slane %v3240_v51, 4  ;;  %v2181_v58 = vrot.slane %v2180_v53, 4  ;;  %v3275_v51 = vshrl.u32 %v3208_v40, 16  ;;  %v3278_v53 = vshll.u32 %v3208_v40, 16 }
 0x216   : > { %5140 = vmatprep.subr.bf16.mxu0 %v5666_v62  ;;  %5282 = vmatprep.subr.bf16.mxu1 %v5675_v44  ;;  %v3246_v62 = vshll.u32 %v3204_v46, 16  ;;  %v3290_v61 = vrot.slane %v3288_v55, 4 }
 0x217   : > { %v2186_v38 = vsel %vm6576_vm11, %v2181_v58, %v6619_v33  ;;  %v5676_v33 = vld [vmem:[#allocation2 + $0x18] sm:$0xff]   ;;  %v3277_v56 = vrot.slane %v3275_v51, 4  ;;  %v3212_v58 = vld [vmem:[#allocation2 + $0x40] sm:$0xf] }
 0x218   : > { %5283 = vmatpush3.bf16.msra.mxu1 %v5675_v44  ;;  %v3248_v23 = vrot.slane %v3246_v62, 5  ;;  %v3210_v62 = vld [vmem:[#allocation2 + $0x38] sm:$0x1]  ;;  %v3312_v21 = vshrl.u32 %v3212_v58, 16 }
 0x219   : > { %5141 = vmatpush3.bf16.msra.mxu0 %v5667_v2  ;;  %v3206_v2 = vld [vmem:[#allocation2 + $0x28] sm:$0xf]  ;;  %5284 = vmatprep.subr.bf16.mxu1 %v5677_v63 }
 0x21a   : > { %5142 = vmatprep.subr.bf16.mxu0 %v5670_v24  ;;  %v3260_v17 = vshll.u32 %v3206_v2, 16  ;;  %v3264_v18 = vshrl.u32 %v3206_v2, 16  ;;  %v3294_v2 = vshll.u32 %v3210_v62, 16  ;;  %v3214_v62 = vld [vmem:[#allocation2 + $0x48] sm:$0xf] }
 0x21c   : > { %2654 = vmatmul.mubr.bf16.gmra.mrb[28].mxu0 %v5652_v5  ;;  %v3251_v5 = vshrl.u32 %v3205_v49, 16  ;;  %v3262_v24 = vrot.slane %v3260_v17, 5  ;;  %v3266_v25 = vrot.slane %v3264_v18, 4  ;;  %5285 = vmatpush3.bf16.msra.mxu1 %v5677_v63  ;;  %v5679_v63 = vld [vmem:[#allocation2 + $0x24] sm:$0xff]   ;;  %v3296_v7 = vrot.slane %v3294_v2, 5 }
 0x21d   : > { %2661 = vmatprep.mubr.bf16.mxu0 %v4705_v60  ;;  %5143 = vmatpush3.bf16.msra.mxu0 %v5671_v26  ;;  %v3243_v60 = vor.u32 %v3242_v59, %v3238_v57  ;;  %v5686_v2 = vld [vmem:[#allocation11] sm:$0xff]  }
 0x21e   : > { %5144 = vmatprep.subr.bf16.mxu0 %v5673_v37  ;;  %v3253_v19 = vrot.slane %v3251_v5, 4  ;;  %v3267_v28 = vor.u32 %v3266_v25, %v3262_v24  ;;  %5286 = vmatprep.subr.bf16.mxu1 %v5678_v8  ;;  %v5663_v37 = vld [vmem:[#allocation2 + $0x54] sm:$0xff]  }
 0x21f   : > { %v3244_v30 = vrot.slane %v3243_v60, 4  ;;  %v5682_v25 = vld [vmem:[#allocation2 + $0x30] sm:$0xff]  }
 0x220   : > { %v3257_v26 = vor.u32 %v3256_v20, %v3253_v19  ;;  %v3268_v36 = vrot.slane %v3267_v28, 4  ;;  %5287 = vmatpush3.bf16.msra.mxu1 %v5678_v8  ;;  %v3308_v20 = vshll.u32 %v3212_v58, 16  ;;  %v3314_v28 = vrot.slane %v3312_v21, 4 }
 0x221   : > { %5145 = vmatpush3.bf16.msra.mxu0 %v5674_v41  ;;  %v2196_v41 = vsel %vm6576_vm11, %v2191_v22, %v2195_v54  ;;  %v3249_v46 = vsel %vm6576_vm11, %v3244_v30, %v3248_v23  ;;  %v3284_v54 = vshll.u32 %v3209_v50, 16  ;;  %v5681_v23 = vld [vmem:[#allocation11 + $0x170] sm:$0xff]   ;;  %v2238_v30 = vld [vmem:[#allocation2 + $0x10] sm:$0xf] }
 0x222   : > { %v3258_v32 = vrot.slane %v3257_v26, 4  ;;  %v4708_v42 = vcombine.low %v2186_v38, %v2196_v41  ;;  %v3273_v48 = vsel %vm6576_vm11, %v3268_v36, %v3272_v31  ;;  %v3213_v26 = vld [vmem:[#allocation2 + $0x44] sm:$0x1]  ;;  %v2241_v31 = vld [vmem:[#allocation2 + $0x1c] sm:$0xf] }
 0x223   : > { %v3286_v59 = vrot.slane %v3284_v54, 5  ;;  %v2239_v38 = vld [vmem:[#allocation2 + $0x14] sm:$0x1]  ;;  %v5683_v41 = vld [vmem:[#allocation11 + $0x178] sm:$0xff]   ;;  %v2294_v50 = vrot.slane %v2241_v31, 5 }
 0x224   : > { %2662 = vmatmul.mubr.bf16.gmra.mrb[32].mxu0 %v5653_v29  ;;  %v5680_v29 = vld [vmem:[#allocation11 + $0x168] sm:$0xff]   ;;  %v3263_v34 = vsel %vm6576_vm11, %v3258_v32, %v3262_v24  ;;  %v3310_v24 = vrot.slane %v3308_v20, 5 }
 0x225   : > { %2669 = vmatprep.mubr.bf16.mxu0 %v4706_v35  ;;  %5288 = vmatprep.subr.bf16.mxu1 %v5680_v29  ;;  %v3239_v35 = vsel %vm6576_vm11, %v3234_v27, %v3238_v57  ;;  %v4782_v44 = vcombine.low %v3263_v34, %v3273_v48  ;;  %v3280_v57 = vrot.slane %v3278_v53, 5  ;;  %v2290_v34 = vrot.slane %v2239_v38, 5  ;;  %v2240_v48 = vld [vmem:[#allocation2 + $0x18] sm:$0xe]  ;;  %v2248_v38 = vld [vmem:[#allocation2 + $0x38] sm:$0x1] }
 0x226   : > { %5289 = vmatpush3.bf16.msra.mxu1 %v5680_v29  ;;  %v4781_v47 = vcombine.low %v3239_v35, %v3249_v46  ;;  %v3318_v29 = vshll.u32 %v3213_v26, 16  ;;  %v3315_v36 = vor.u32 %v3314_v28, %v3310_v24  ;;  %v4710_v40 = vrot.slane %v2240_v48, 9  ;;  %v2245_v26 = vld [vmem:[#allocation2 + $0x2c] sm:$0x1]  ;;  %v5689_v48 = vld [vmem:[#allocation11 + $0x50] sm:$0xff]  }
 0x227   : > { %v3281_v49 = vor.u32 %v3280_v57, %v3277_v56  ;;  %5290 = vmatprep.subr.bf16.mxu1 %v5681_v23  ;;  %v5684_v57 = vld [vmem:[#allocation11 + $0x40] sm:$0xff]  }
 0x228   : > { %v3316_v46 = vrot.slane %v3315_v36, 4 }
 0x229   : > { %v3282_v3 = vrot.slane %v3281_v49, 4 }
 0x22a   : > { %5291 = vmatpush3.bf16.msra.mxu1 %v5681_v23  ;;  %v5687_v23 = vld [vmem:[#allocation11 + $0x48] sm:$0xff]  }
 0x22b   : > { %v3287_v6 = vsel %vm6576_vm11, %v3282_v3, %v3286_v59  ;;  %5292 = vmatprep.subr.bf16.mxu1 %v5683_v41  ;;  %v3216_v3 = vld [vmem:[#allocation2 + $0x50] sm:$0x1] }
 0x22c   : > { %2670 = vmatmul.mubr.bf16.gmra.mrb[36].mxu0 %v5658_v0  ;;  %v3211_v0 = vld [vmem:[#allocation2 + $0x3c] sm:$0xf] }
 0x22d   : > { %2677 = vmatprep.mubr.bf16.mxu0 %v4707_v1  ;;  %v3291_v1 = vor.u32 %v3290_v61, %v3286_v59  ;;  %v3299_v18 = vshrl.u32 %v3211_v0, 16  ;;  %v3302_v60 = vshll.u32 %v3211_v0, 16  ;;  %v2295_v59 = vsel %vm6646_vm14, %v4710_v40, %v2294_v50  ;;  %v3218_v40 = vld [vmem:[#allocation2 + $0x58] sm:$0xf] }
 0x22e   : > { %5293 = vmatpush3.bf16.msra.mxu1 %v5683_v41  ;;  %v2296_v61 = vrot.slane %v2294_v50, 4 }
 0x22f   : > { %v3292_v5 = vrot.slane %v3291_v1, 4  ;;  %v3301_v8 = vrot.slane %v3299_v18, 4  ;;  %v3304_v22 = vrot.slane %v3302_v60, 5  ;;  %v5685_v1 = vld [vmem:[#allocation2 + $0x3c] sm:$0xff]   ;;  %5050 = vmatprep.subr.bf16.mxu1 %v5684_v57  ;;  %v2244_v18 = vld [vmem:[#allocation2 + $0x28] sm:$0xf] }
 0x230   : > { %v2247_v60 = vld [vmem:[#allocation2 + $0x34] sm:$0xf]  ;;  %v2301_v31 = vrot.slane %v2244_v18, 5 }
 0x231   : > { %v3297_v17 = vsel %vm6576_vm11, %v3292_v5, %v3296_v7  ;;  %v3305_v27 = vor.u32 %v3304_v22, %v3301_v8  ;;  %v3323_v5 = vshrl.u32 %v3214_v62, 16  ;;  %v3326_v7 = vshll.u32 %v3214_v62, 16  ;;  %v2243_v22 = vld [vmem:[#allocation2 + $0x24] sm:$0xe] }
 0x232   : > { %v4783_v19 = vcombine.low %v3287_v6, %v3297_v17  ;;  %v3342_v8 = vshll.u32 %v3216_v3, 16  ;;  %v3356_v3 = vshll.u32 %v3218_v40, 16 }
 0x233   : > { %v3306_v32 = vrot.slane %v3305_v27, 4  ;;  %v3325_v20 = vrot.slane %v3323_v5, 4  ;;  %v3328_v21 = vrot.slane %v3326_v7, 5  ;;  %v5688_v27 = vld [vmem:[#allocation11 + $0x8] sm:$0xff]   ;;  %v3360_v5 = vshrl.u32 %v3218_v40, 16 }
 0x234   : > { %2678 = vmatmul.mubr.bf16.gmra.mrb[40].mxu0 %v5663_v37  ;;  %v2237_v37 = vld [vmem:[#allocation2 + $0xc] sm:$0xe]  ;;  %v2250_v7 = vld [vmem:[#allocation2 + $0x40] sm:$0xf]  ;;  %v3358_v18 = vrot.slane %v3356_v3, 5 }
 0x235   : > { %2685 = vmatprep.mubr.bf16.mxu0 %v4708_v42  ;;  %v3320_v42 = vrot.slane %v3318_v29, 5  ;;  %v3311_v35 = vsel %vm6576_vm11, %v3306_v32, %v3310_v24  ;;  %v3329_v28 = vor.u32 %v3328_v21, %v3325_v20  ;;  %v3344_v29 = vrot.slane %v3342_v8, 5  ;;  %v2246_v32 = vld [vmem:[#allocation2 + $0x30] sm:$0xe]  ;;  %v2249_v20 = vld [vmem:[#allocation2 + $0x3c] sm:$0xe] }
 0x236   : > { %v4712_v41 = vrot.slane %v2246_v32, 9  ;;  %v5693_v21 = vld [vmem:[#allocation11 + $0x18] sm:$0xff]  }
 0x237   : > { %v3321_v51 = vsel %vm6576_vm11, %v3316_v46, %v3320_v42  ;;  %v3217_v42 = vld [vmem:[#allocation2 + $0x54] sm:$0xf]  ;;  %v2303_v46 = vrot.slane %v2301_v31, 4 }
 0x238   : > { %v4784_v56 = vcombine.low %v3311_v35, %v3321_v51  ;;  %v3347_v50 = vshrl.u32 %v3217_v42, 16 }
 0x23a   : > { %v3349_v62 = vrot.slane %v3347_v50, 4 }
 0x23c   : > { %2686 = vmatmul.mubr.bf16.gmra.mrb[44].mxu0 %v5668_v43  ;;  %v4709_v43 = vrot.slane %v2237_v37, 9  ;;  %v2304_v37 = vrot.slane %v2245_v26, 5 }
 0x23d   : > { %3850 = vmatprep.mubr.bf16.mxu0 %v4781_v47  ;;  %v5735_v47 = vld [vmem:[#allocation12 + $0x30] sm:$0xff]  }
 0x244   : > { %3851 = vmatmul.mubr.bf16.vlgmr.msra.gmra.mrb[48].mxu0 %v5676_v33  ;;  %v2287_v33 = vrot.slane %v2238_v30, 5  ;;  %v4711_v30 = vrot.slane %v2243_v22, 9  ;;  %v2251_v22 = vld [vmem:[#allocation2 + $0x44] sm:$0x1] }
 0x245   : > { %3858 = vmatprep.mubr.bf16.mxu0 %v4782_v44  ;;  %v2242_v44 = vld [vmem:[#allocation2 + $0x20] sm:$0x1] }
 0x246   : > { %v2288_v53 = vsel %vm6646_vm14, %v4709_v43, %v2287_v33  ;;  %v2289_v54 = vrot.slane %v2287_v33, 4  ;;  %v2297_v55 = vrot.slane %v2242_v44, 5  ;;  %v3330_v43 = vrot.slane %v3329_v28, 4  ;;  %v2252_v28 = vld [vmem:[#allocation2 + $0x48] sm:$0xe] }
 0x247   : > { %v2302_v35 = vsel %vm6646_vm14, %v4711_v30, %v2301_v31  ;;  %v2308_v33 = vrot.slane %v2247_v60, 5  ;;  %v2311_v44 = vrot.slane %v2248_v38, 5  ;;  %v3362_v60 = vrot.slane %v3360_v5, 4 }
 0x248   : > { %v2291_v49 = vsel %vm6646_vm14, %v2289_v54, %v2290_v34  ;;  %v2298_v58 = vsel %vm6646_vm14, %v2296_v61, %v2297_v55  ;;  %v5690_v54 = vld [vmem:[#allocation2 + $0x48] sm:$0xff]   ;;  %v3219_v61 = vld [vmem:[#allocation2 + $0x5c] sm:$0x1] }
 0x249   : > { %v4717_v0 = vcombine.low %v2288_v53, %v2291_v49  ;;  %v2305_v53 = vsel %vm6646_vm14, %v2303_v46, %v2304_v37  ;;  %v2309_v55 = vsel %vm6646_vm14, %v4712_v41, %v2308_v33  ;;  %v4714_v37 = vrot.slane %v2252_v28, 9  ;;  %v5695_v41 = vld [vmem:[#allocation2 + $0x54] sm:$0xff]  }
 0x24b   : > { %5294 = vmatprep.mubr.bf16.mxu1 %v4717_v0 }
 0x24c   : > { %3859 = vmatmul.mubr.bf16.gmra.mrb[52].mxu0 %v5679_v63  ;;  %v3215_v63 = vld [vmem:[#allocation2 + $0x4c] sm:$0xf] }
 0x24d   : > { %3866 = vmatprep.mubr.bf16.mxu0 %v4783_v19  ;;  %v3332_v6 = vshll.u32 %v3215_v63, 16  ;;  %v3336_v17 = vshrl.u32 %v3215_v63, 16  ;;  %v4718_v19 = vcombine.low %v2295_v59, %v2298_v58  ;;  %v4719_v59 = vcombine.low %v2302_v35, %v2305_v53  ;;  %v5692_v58 = vld [vmem:[#allocation11 + $0x58] sm:$0xff]  }
 0x24e   : > { %v3350_v63 = vshll.u32 %v3217_v42, 16  ;;  %v3220_v35 = vld [vmem:[#allocation2 + $0x60] sm:$0xf] }
 0x24f   : > { %v3334_v24 = vrot.slane %v3332_v6, 5  ;;  %5295 = vmatmul.mubr.bf16.vlgmr.msra.gmra.mrb[4].mxu1 %v4718_v19  ;;  %v3366_v19 = vshll.u32 %v3219_v61, 16  ;;  %v3374_v40 = vshll.u32 %v3220_v35, 16  ;;  %v5697_v61 = vld [vmem:[#allocation11 + $0x68] sm:$0xff]  }
 0x250   : > { %5051 = vmatpush3.bf16.msra.mxu1 %v5686_v2  ;;  %v5691_v2 = vld [vmem:[#allocation11 + $0x10] sm:$0xff]   ;;  %5298 = vmatprep.mubr.bf16.mxu1 %v4719_v59  ;;  %v3352_v6 = vrot.slane %v3350_v63, 5 }
 0x251   : > { %5052 = vmatprep.subr.bf16.mxu1 %v5687_v23  ;;  %v3335_v51 = vsel %vm6576_vm11, %v3330_v43, %v3334_v24  ;;  %v4713_v23 = vrot.slane %v2249_v20, 9  ;;  %v3368_v26 = vrot.slane %v3366_v19, 5  ;;  %v3376_v63 = vrot.slane %v3374_v40, 5  ;;  %v2260_v19 = vld [vmem:[#allocation2 + $0x68] sm:$0x1]  ;;  %v5698_v20 = vld [vmem:[#allocation11 + $0x28] sm:$0xff]  }
 0x252   : > { %v3353_v8 = vor.u32 %v3352_v6, %v3349_v62  ;;  %v6696_v40 = vld [vmem:[#allocation11 + $0x80] sm:$0xff]  }
 0x254   : > { %3867 = vmatmul.mubr.bf16.gmra.mrb[56].mxu0 %v5682_v25  ;;  %v3338_v25 = vrot.slane %v3336_v17, 4  ;;  %5053 = vmatpush3.bf16.msra.mxu1 %v5688_v27  ;;  %v2253_v17 = vld [vmem:[#allocation2 + $0x4c] sm:$0xf]  ;;  %v2318_v27 = vrot.slane %v2251_v22, 5  ;;  %v3354_v30 = vrot.slane %v3353_v8, 4 }
 0x255   : > { %3874 = vmatprep.mubr.bf16.mxu0 %v4784_v56  ;;  %v2310_v56 = vrot.slane %v2308_v33, 4  ;;  %5054 = vmatprep.subr.bf16.mxu1 %v5689_v48  ;;  %v2322_v42 = vrot.slane %v2253_v17, 5  ;;  %v3222_v48 = vld [vmem:[#allocation2 + $0x68] sm:$0x1] }
 0x256   : > { %v3339_v36 = vor.u32 %v3338_v25, %v3334_v24  ;;  %v2315_v24 = vrot.slane %v2250_v7, 5  ;;  %v3363_v25 = vor.u32 %v3362_v60, %v3358_v18  ;;  %v3359_v46 = vsel %vm6576_vm11, %v3354_v30, %v3358_v18  ;;  %v2259_v60 = vld [vmem:[#allocation2 + $0x64] sm:$0xf] }
 0x257   : > { %v2323_v53 = vsel %vm6646_vm14, %v4714_v37, %v2322_v42  ;;  %v3390_v5 = vshll.u32 %v3222_v48, 16  ;;  %v2339_v30 = vrot.slane %v2260_v19, 5  ;;  %v5701_v37 = vld [vmem:[#allocation11 + $0x30] sm:$0xff]   ;;  %v5703_v48 = vld [vmem:[#allocation11 + $0x38] sm:$0xff]  }
 0x258   : > { %v3340_v34 = vrot.slane %v3339_v36, 4  ;;  %5055 = vmatpush3.bf16.msra.mxu1 %v5691_v2  ;;  %v2316_v31 = vsel %vm6646_vm14, %v4713_v23, %v2315_v24  ;;  %v2317_v32 = vrot.slane %v2315_v24, 4  ;;  %v5694_v36 = vld [vmem:[#allocation11 + $0x60] sm:$0xff]   ;;  %v3364_v38 = vrot.slane %v3363_v25, 4 }
 0x259   : > { %5056 = vmatprep.subr.bf16.mxu1 %v5692_v58 }
 0x25a   : > { %v3345_v57 = vsel %vm6576_vm11, %v3340_v34, %v3344_v29  ;;  %v2254_v29 = vld [vmem:[#allocation2 + $0x50] sm:$0x1]  ;;  %v2319_v33 = vsel %vm6646_vm14, %v2317_v32, %v2318_v27  ;;  %v3221_v34 = vld [vmem:[#allocation2 + $0x64] sm:$0xf]  ;;  %v3369_v50 = vsel %vm6576_vm11, %v3364_v38, %v3368_v26  ;;  %v5699_v26 = vld [vmem:[#allocation11 + $0x70] sm:$0xff]   ;;  %v2336_v27 = vrot.slane %v2259_v60, 5 }
 0x25b   : > { %v4785_v49 = vcombine.low %v3335_v51, %v3345_v57  ;;  %v2325_v43 = vrot.slane %v2254_v29, 5  ;;  %v4721_v51 = vcombine.low %v2316_v31, %v2319_v33  ;;  %v2256_v57 = vld [vmem:[#allocation2 + $0x58] sm:$0xf]  ;;  %v4786_v59 = vcombine.low %v3359_v46, %v3369_v50  ;;  %v4655_v50 = vld [vmem:[%s7237_s11] ss:$0 sm:$0xff] }
 0x25c   : > { %3875 = vmatmul.mubr.bf16.gmra.mrb[60].mxu0 %v5685_v1  ;;  %v2312_v1 = vsel %vm6646_vm14, %v2310_v56, %v2311_v44  ;;  %v3371_v44 = vshrl.u32 %v3220_v35, 16  ;;  %5057 = vmatpush3.bf16.msra.mxu1 %v5693_v21  ;;  %v2255_v56 = vld [vmem:[#allocation2 + $0x54] sm:$0xe]  ;;  %v3384_v3 = vshrl.u32 %v3221_v34, 16  ;;  %v2329_v18 = vrot.slane %v2256_v57, 5  ;;  %v5702_v35 = vld [vmem:[#allocation11 + $0x78] sm:$0xff]  }
 0x25d   : > { %v4720_v0 = vcombine.low %v2309_v55, %v2312_v1  ;;  %3882 = vmatprep.mubr.bf16.mxu0 %v4785_v49  ;;  %v5696_v55 = vld [vmem:[#allocation11 + $0x20] sm:$0xff]   ;;  %5058 = vmatprep.subr.bf16.mxu1 %v5694_v36  ;;  %v3380_v49 = vshll.u32 %v3221_v34, 16  ;;  %v2257_v1 = vld [vmem:[#allocation2 + $0x5c] sm:$0x1]  ;;  %v4715_v7 = vrot.slane %v2255_v56, 9  ;;  %v3392_v29 = vrot.slane %v3390_v5, 5 }
 0x25e   : > { %v3373_v62 = vrot.slane %v3371_v44, 4  ;;  %v3386_v21 = vrot.slane %v3384_v3, 4  ;;  %v2332_v8 = vrot.slane %v2257_v1, 5  ;;  %v2331_v25 = vrot.slane %v2329_v18, 4  ;;  %v1435_v60 = vld [vmem:[#allocation2 + $0x10] sm:$0xf] }
 0x25f   : > { %5299 = vmatmul.mubr.bf16.gmra.mrb[8].mxu1 %v4720_v0  ;;  %v2258_v0 = vld [vmem:[#allocation2 + $0x60] sm:$0xe]  ;;  %v3382_v17 = vrot.slane %v3380_v49, 5  ;;  %v2330_v24 = vsel %vm6646_vm14, %v4715_v7, %v2329_v18  ;;  %v2338_v36 = vrot.slane %v2336_v27, 4  ;;  %v1286_v18 = vstv %s1285_s9 }
 0x260   : > { %5302 = vmatprep.mubr.bf16.mxu1 %v4721_v51  ;;  %v3377_v6 = vor.u32 %v3376_v63, %v3373_v62  ;;  %5059 = vmatpush3.bf16.msra.mxu1 %v5696_v55  ;;  %v4716_v22 = vrot.slane %v2258_v0, 9  ;;  %v2333_v31 = vsel %vm6646_vm14, %v2331_v25, %v2332_v8  ;;  %v1323_v0 = vstv %s1322_s0 }
 0x261   : > { %5060 = vmatprep.subr.bf16.mxu1 %v5697_v61  ;;  %v3387_v28 = vor.u32 %v3386_v21, %v3382_v17  ;;  %v2340_v46 = vsel %vm6646_vm14, %v2338_v36, %v2339_v30 }
 0x262   : > { %v3378_v23 = vrot.slane %v3377_v6, 4  ;;  %v2337_v32 = vsel %vm6646_vm14, %v4716_v22, %v2336_v27  ;;  %v1434_v6 = vld [vmem:[#allocation2 + $0xc] sm:$0xf] }
 0x263   : > { %v4724_v34 = vcombine.low %v2337_v32, %v2340_v46  ;;  %v1483_v21 = vshrl.u32 %v1434_v6, 16  ;;  %v1486_v8 = vshll.u32 %v1434_v6, 16 }
 0x264   : > { %3883 = vmatmul.mubr.bf16.gmra.mrb[64].mxu0 %v5690_v54  ;;  %v2324_v54 = vrot.slane %v2322_v42, 4  ;;  %5061 = vmatpush3.bf16.msra.mxu1 %v5698_v20  ;;  %v3383_v38 = vsel %vm6576_vm11, %v3378_v23, %v3382_v17  ;;  %v4723_v42 = vcombine.low %v2330_v24, %v2333_v31  ;;  %v1492_v23 = vshll.u32 %v1435_v60, 16 }
 0x265   : > { %3890 = vmatprep.mubr.bf16.mxu0 %v4786_v59  ;;  %5062 = vmatprep.subr.bf16.mxu1 %v5699_v26  ;;  %v1496_v24 = vshrl.u32 %v1435_v60, 16  ;;  %v1485_v31 = vrot.slane %v1483_v21, 4  ;;  %v1488_v32 = vrot.slane %v1486_v8, 5 }
 0x266   : > { %v2326_v2 = vsel %vm6646_vm14, %v2324_v54, %v2325_v43  ;;  %v5700_v43 = vld [vmem:[#allocation2 + $0x60] sm:$0xff]  }
 0x267   : > { %v4722_v58 = vcombine.low %v2323_v53, %v2326_v2  ;;  %v4656_v53 = vld [vmem:[%s7238_s13] ss:$0 sm:$0xff] }
 0x268   : > { %5063 = vmatpush3.bf16.msra.mxu1 %v5701_v37 }
 0x269   : > { %5303 = vmatmul.mubr.bf16.gmra.mrb[12].mxu1 %v4722_v58  ;;  %5064 = vmatprep.subr.bf16.mxu1 %v5702_v35 }
 0x26a   : > { %5306 = vmatprep.mubr.bf16.mxu1 %v4723_v42 }
 0x26c   : > { %3891 = vmatmul.mubr.bf16.gmra.mrb[68].mxu0 %v5695_v41  ;;  %v3388_v41 = vrot.slane %v3387_v28, 4  ;;  %5065 = vmatpush3.bf16.msra.mxu1 %v5703_v48 }
 0x26d   : > { %5310 = vmatprep.subr.bf16.mxu1 %v6696_v40 }
 0x26e   : > { %v3393_v33 = vsel %vm6576_vm11, %v3388_v41, %v3392_v29  ;;  %v1498_v41 = vrot.slane %v1496_v24, 4 }
 0x26f   : > { %v4787_v44 = vcombine.low %v3383_v38, %v3393_v33  ;;  %v6707_v38 = vrot.slane %v1492_v23, 5  ;;  %v1352_v33 = vld [vmem:[#allocation2 + $0x6c] sm:$0xf] }
 0x271   : > { %3898 = vmatprep.mubr.bf16.mxu0 %v4787_v44  ;;  %5307 = vmatmul.mubr.bf16.gmra.mrb[16].mxu1 %v4724_v34  ;;  %v1356_v34 = vld [vmem:[#allocation2 + $0x74] sm:$0x1]  ;;  %v1499_v60 = vor.u32 %v1498_v41, %v6707_v38 }
 0x273   : > { %v1500_v52 = vrot.slane %v1499_v60, 4 }
 0x274   : > { %3899 = vmatmul.mubr.bf16.gmra.mrb[72].mxu0 %v5700_v43 }
 0x2d5   : > { %v5276_v51 = vpop.f32.mrb[0].mxu1 }
 0x2d6   : > { %v1239_v54 = vmul.f32 %v5276_v51, %v4655_v50  ;;  %v1215_v55 = vpop.f32.mrb[1].mxu1 }
 0x2d7   : > { %v1237_v56 = vmul.f32 %v4655_v50, %v1215_v55  ;;  %v5277_v57 = vpop.f32.mrb[2].mxu1 }
 0x2d8   : > { %v1250_v59 = vadd.f32 %v4656_v53, %v1239_v54  ;;  %v1240_v61 = vmul.f32 %v5277_v57, %v4655_v50  ;;  %v1218_v62 = vpop.f32.mrb[3].mxu1  ;;  %v1314_v57 = vld [vmem:[#allocation2] sm:$0xf] }
 0x2d9   : > { %v1248_v63 = vadd.f32 %v4656_v53, %v1237_v56  ;;  %v1238_v49 = vmul.f32 %v4655_v50, %v1218_v62 }
 0x2da   : > { %v1251_v1 = vadd.f32 %v4656_v53, %v1240_v61  ;;  %v1254_v3 = vmax.f32 %v1250_v59, 0.0  ;;  %v1318_v59 = vld [vmem:[#allocation2 + $0x8] sm:$0x1] }
 0x2db   : > { %v1249_v2 = vadd.f32 %v4656_v53, %v1238_v49  ;;  %v1252_v7 = vmax.f32 %v1248_v63, 0.0 }
 0x2dc   : > { %v1255_v5 = vmax.f32 %v1251_v1, 0.0  ;;  %v1436_v1 = vld [vmem:[#allocation2 + $0x14] sm:$0x1] }
 0x2dd   : > { %v1253_v58 = vmax.f32 %v1249_v2, 0.0 }
 0x2de   : > { %v1257_v17 = vpack.c.bf16 %v1255_v5, %v1254_v3 }
 0x2df   : > { %v1256_v19 = vpack.c.bf16 %v1253_v58, %v1252_v7  ;;  %v1437_v7 = vld [vmem:[#allocation2 + $0x18] sm:$0xf] }
 0x2e0   : > { %v1325_v20 = vmul.bf16 %v1323_v0, %v1257_v17  ;;  %v1438_v0 = vld [vmem:[#allocation2 + $0x1c] sm:$0xf]  ;;  %v1510_v21 = vshll.u32 %v1437_v7, 16 }
 0x2e1   : > { %v1288_v22 = vmul.bf16 %v1286_v18, %v1256_v19  ;;  %v1489_v18 = vor.u32 %v1488_v32, %v1485_v31  ;;  %v1502_v19 = vshll.u32 %v1436_v1, 16  ;;  %v1516_v8 = vshll.u32 %v1438_v0, 16 }
 0x2e2   : > { %v4659_v25 = vcombine.low %v1325_v20, %v1325_v20  ;;  %v4660_v26 = vcombine.high %v1325_v20, %v1325_v20  ;;  %v1507_v20 = vshrl.u32 %v1437_v7, 16  ;;  %v6726_v39 = vrot.slane %v1510_v21, 5  ;;  %v1441_v7 = vld [vmem:[#allocation2 + $0x28] sm:$0xf] }
 0x2e3   : > { %v4657_v27 = vcombine.low %v1288_v22, %v1288_v22  ;;  %v4658_v28 = vcombine.high %v1288_v22, %v1288_v22  ;;  %v6722_v22 = vrot.slane %v1489_v18, 4  ;;  %v1504_v23 = vrot.slane %v1502_v19, 5 }
 0x2e4   : > { %v1332_v29 = vshrl.u32 %v4659_v25, 16  ;;  %v1340_v30 = vshrl.u32 %v4660_v26, 16  ;;  %v1335_v43 = vshll.u32 %v4659_v25, 16  ;;  %v1343_v46 = vshll.u32 %v4660_v26, 16 }
 0x2e5   : > { %v1295_v36 = vshrl.u32 %v4657_v27, 16  ;;  %v1303_v37 = vshrl.u32 %v4658_v28, 16  ;;  %v1298_v44 = vshll.u32 %v4657_v27, 16  ;;  %v1306_v51 = vshll.u32 %v4658_v28, 16 }
 0x2e6   : > { %v1334_v42 = vrot.slane %v1332_v29, 7  ;;  %v1342_v35 = vrot.slane %v1340_v30, 7  ;;  %v6724_v24 = vrot.slane %v1507_v20, 4  ;;  %v6728_v16 = vrot.slane %v1516_v8, 5  ;;  %v4986_v20 = vpop.f32.mrb[16].mxu0 }
 0x2e7   : > { %v1297_v48 = vrot.slane %v1295_v36, 7  ;;  %v1305_v50 = vrot.slane %v1303_v37, 7  ;;  %v1520_v25 = vshrl.u32 %v1438_v0, 16 }
 0x2e8   : > { %v1337_v53 = vor.u32 %v1335_v43, %v1334_v42  ;;  %v1338_v54 = vrot.slane %v1334_v42, 4  ;;  %v1345_v55 = vor.u32 %v1343_v46, %v1342_v35  ;;  %v1347_v56 = vrot.slane %v1342_v35, 4 }
 0x2e9   : > { %v1300_v61 = vor.u32 %v1298_v44, %v1297_v48  ;;  %v1301_v62 = vrot.slane %v1297_v48, 4  ;;  %v1308_v63 = vor.u32 %v1306_v51, %v1305_v50  ;;  %v1310_v49 = vrot.slane %v1305_v50, 4  ;;  %v1439_v48 = vld [vmem:[#allocation2 + $0x20] sm:$0x1] }
 0x2ea   : > { %v1346_v2 = vsel %vm6490_vm8, %v1338_v54, %v1345_v55  ;;  %v1353_v3 = vsel %vm6483_vm7, %v1337_v53, %v1352_v33  ;;  %v1357_v5 = vsel %vm6378_vm2, %v1347_v56, %v1356_v34  ;;  %v1522_v53 = vrot.slane %v1520_v25, 4 }
 0x2eb   : > { %1354 = vst [vmem:[#allocation2 + $0x6c] sm:$0xf] %v1353_v3  ;;  %1355 = vst [vmem:[#allocation2 + $0x70] sm:$0xf] %v1346_v2  ;;  %v1309_v58 = vsel %vm6490_vm8, %v1301_v62, %v1308_v63  ;;  %v1315_v6 = vsel %vm6483_vm7, %v1300_v61, %v1314_v57  ;;  %v1319_v17 = vsel %vm6378_vm2, %v1310_v49, %v1318_v59  ;;  %v1440_v59 = vld [vmem:[#allocation2 + $0x24] sm:$0xf] }
 0x2ec   : > { %1358 = vst [vmem:[#allocation2 + $0x74] sm:$0x1] %v1357_v5  ;;  %1316 = vst [vmem:[#allocation2] sm:$0xf] %v1315_v6  ;;  %v1495_v57 = vsel %vm6576_vm11, %v6722_v22, %v6707_v38  ;;  %v1505_v49 = vsel %vm6576_vm11, %v1500_v52, %v1504_v23  ;;  %v1523_v6 = vor.u32 %v1522_v53, %v6728_v16  ;;  %v1531_v19 = vshrl.u32 %v1440_v59, 16 }
 0x2ed   : > { %1317 = vst [vmem:[#allocation2 + $0x4] sm:$0xf] %v1309_v58  ;;  %1320 = vst [vmem:[#allocation2 + $0x8] sm:$0x1] %v1319_v17  ;;  %v1513_v58 = vor.u32 %v6726_v39, %v6724_v24  ;;  %v1526_v17 = vshll.u32 %v1439_v48, 16  ;;  %v1534_v22 = vshll.u32 %v1440_v59, 16 }
 0x2ee   : > { %v1540_v52 = vshll.u32 %v1441_v7, 16  ;;  %v1544_v24 = vshrl.u32 %v1441_v7, 16  ;;  %v4987_v39 = vpop.f32.mrb[17].mxu0  ;;  %v5709_v7 = vld [vmem:[#allocation11 + $0x90] sm:$0xff]  }
 0x2ef   : > { %v6749_v53 = vadd.f32 %v4987_v39, %v4986_v20  ;;  %v5708_v20 = vld [vmem:[#allocation2 + $0xc] sm:$0xff]  }
 0x2f2   : > { %v3223_v26 = vld [vmem:[#allocation2 + $0x6c] sm:$0xf]  ;;  %v3224_v27 = vld [vmem:[#allocation2 + $0x70] sm:$0xf] }
 0x2f3   : > { %v3225_v28 = vld [vmem:[#allocation2 + $0x74] sm:$0x1]  ;;  %v3395_v29 = vshrl.u32 %v3223_v26, 16  ;;  %v3398_v30 = vshll.u32 %v3223_v26, 16  ;;  %v3404_v31 = vshll.u32 %v3224_v27, 16  ;;  %v3408_v32 = vshrl.u32 %v3224_v27, 16 }
 0x2f4   : > { %v1431_v36 = vld [vmem:[#allocation2] sm:$0xf]  ;;  %v3414_v37 = vshll.u32 %v3225_v28, 16  ;;  %v1432_v41 = vld [vmem:[#allocation2 + $0x4] sm:$0xf]  ;;  %v5705_v26 = vld [vmem:[#allocation2 + $0x6c] sm:$0xff]   ;;  %v4670_v28 = vcombine.low %v1495_v57, %v1505_v49 }
 0x2f5   : > { %v1433_v42 = vld [vmem:[#allocation2 + $0x8] sm:$0x1]  ;;  %v1459_v43 = vshrl.u32 %v1431_v36, 16  ;;  %v3397_v35 = vrot.slane %v3395_v29, 4  ;;  %v3400_v46 = vrot.slane %v3398_v30, 5  ;;  %v3406_v33 = vrot.slane %v3404_v31, 5 }
 0x2f6   : > { %v3410_v34 = vrot.slane %v3408_v32, 4  ;;  %v1462_v50 = vshll.u32 %v1431_v36, 16  ;;  %v1468_v51 = vshll.u32 %v1432_v41, 16  ;;  %v1472_v56 = vshrl.u32 %v1432_v41, 16  ;;  %v1443_v29 = vld [vmem:[#allocation2 + $0x30] sm:$0xf] }
 0x2f7   : > { %v1461_v44 = vrot.slane %v1459_v43, 4  ;;  %v3401_v54 = vor.u32 %v3400_v46, %v3397_v35  ;;  %v3416_v61 = vrot.slane %v3414_v37, 5  ;;  %v1478_v5 = vshll.u32 %v1433_v42, 16  ;;  %v4989_v30 = vpop.f32.mrb[18].mxu0  ;;  %v1444_v41 = vld [vmem:[#allocation2 + $0x34] sm:$0xf] }
 0x2f8   : > { %v3411_v55 = vor.u32 %v3410_v34, %v3406_v33  ;;  %v1464_v62 = vrot.slane %v1462_v50, 5  ;;  %v1470_v63 = vrot.slane %v1468_v51, 5  ;;  %v1474_v3 = vrot.slane %v1472_v56, 4  ;;  %v4990_v42 = vpop.f32.mrb[19].mxu0  ;;  %v5706_v48 = vld [vmem:[#allocation2] sm:$0xff]  }
 0x2f9   : > { %v3402_v1 = vrot.slane %v3401_v54, 4  ;;  %v1480_v25 = vrot.slane %v1478_v5, 5  ;;  %v1514_v32 = vrot.slane %v1513_v58, 4  ;;  %v1524_v36 = vrot.slane %v1523_v6, 4  ;;  %v4992_v34 = vpop.f32.mrb[20].mxu0 }
 0x2fa   : > { %v3412_v2 = vrot.slane %v3411_v55, 4  ;;  %v1465_v0 = vor.u32 %v1464_v62, %v1461_v44  ;;  %v1475_v60 = vor.u32 %v1474_v3, %v1470_v63  ;;  %v1528_v37 = vrot.slane %v1526_v17, 5  ;;  %v5707_v44 = vld [vmem:[#allocation11 + $0x88] sm:$0xff]   ;;  %v4993_v55 = vpop.f32.mrb[21].mxu0  ;;  %v1442_v56 = vld [vmem:[#allocation2 + $0x2c] sm:$0x1] }
 0x2fb   : > { %v3407_v38 = vsel %vm6576_vm11, %v3402_v1, %v3406_v33  ;;  %v1533_v35 = vrot.slane %v1531_v19, 4  ;;  %v1536_v46 = vrot.slane %v1534_v22, 5  ;;  %v6747_v33 = vrot.slane %v1540_v52, 5  ;;  %v1446_v52 = vld [vmem:[#allocation2 + $0x3c] sm:$0xf] }
 0x2fc   : > { %v3417_v18 = vsel %vm6576_vm11, %v3412_v2, %v3416_v61  ;;  %v1466_v8 = vrot.slane %v1465_v0, 4  ;;  %v1476_v23 = vrot.slane %v1475_v60, 4  ;;  %v1546_v50 = vrot.slane %v1544_v24, 4 }
 0x2fd   : > { %v4788_v21 = vcombine.low %v3407_v38, %v3417_v18  ;;  %v1555_v51 = vshrl.u32 %v1443_v29, 16  ;;  %v6751_v54 = vadd.f32 %v4990_v42, %v4989_v30  ;;  %v1558_v57 = vshll.u32 %v1443_v29, 16 }
 0x2fe   : > { %v1471_v27 = vsel %vm6576_vm11, %v1466_v8, %v1470_v63  ;;  %v1481_v31 = vsel %vm6576_vm11, %v1476_v23, %v1480_v25  ;;  %v1564_v59 = vshll.u32 %v1444_v41, 16  ;;  %v1568_v61 = vshrl.u32 %v1444_v41, 16  ;;  %v4995_v63 = vpop.f32.mrb[22].mxu0  ;;  %v1447_v23 = vld [vmem:[#allocation2 + $0x40] sm:$0xf] }
 0x2ff   : > { %3906 = vmatprep.mubr.bf16.mxu0 %v4788_v21  ;;  %v4669_v43 = vcombine.low %v1471_v27, %v1481_v31  ;;  %v6753_v62 = vadd.f32 %v4993_v55, %v4992_v34  ;;  %v4996_v49 = vpop.f32.mrb[23].mxu0  ;;  %v1519_v1 = vsel %vm6576_vm11, %v1514_v32, %v6728_v16  ;;  %v1529_v2 = vsel %vm6576_vm11, %v1524_v36, %v1528_v37  ;;  %v1445_v21 = vld [vmem:[#allocation2 + $0x38] sm:$0x1] }
 0x300   : > { %3907 = vmatmul.mubr.bf16.gmra.mrb[76].mxu0 %v5705_v26  ;;  %v6761_v3 = vadd.f32 %v4996_v49, %v4995_v63  ;;  %v4998_v5 = vpop.f32.mrb[24].mxu0  ;;  %v1537_v0 = vor.u32 %v1536_v46, %v1533_v35  ;;  %v1547_v58 = vor.u32 %v1546_v50, %v6747_v33  ;;  %v1550_v6 = vshll.u32 %v1442_v56, 16  ;;  %v5710_v49 = vld [vmem:[#allocation2 + $0x18] sm:$0xff]  }
 0x301   : > { %2967 = vmatprep.mubr.bf16.mxu1 %v4669_v43  ;;  %v1557_v17 = vrot.slane %v1555_v51, 4  ;;  %v4999_v38 = vpop.f32.mrb[25].mxu0  ;;  %v6764_v18 = vrot.slane %v1564_v59, 5  ;;  %v1570_v60 = vrot.slane %v1568_v61, 4  ;;  %v4671_v22 = vcombine.low %v1519_v1, %v1529_v2  ;;  %v5713_v51 = vld [vmem:[#allocation11 + $0xa0] sm:$0xff]  }
 0x302   : > { %2968 = vmatmul.mubr.bf16.vlgmr.msra.gmra.mrb[20].mxu1 %v5706_v48  ;;  %v6766_v19 = vadd.f32 %v4999_v38, %v4998_v5  ;;  %v5001_v16 = vpop.f32.mrb[26].mxu0  ;;  %v1538_v24 = vrot.slane %v1537_v0, 4  ;;  %v1548_v39 = vrot.slane %v1547_v58, 4  ;;  %v1552_v27 = vrot.slane %v1550_v6, 5  ;;  %v1448_v58 = vld [vmem:[#allocation2 + $0x44] sm:$0x1] }
 0x303   : > { %5311 = vmatpush3.bf16.msra.mxu1 %v6696_v40  ;;  %2975 = vmatprep.mubr.bf16.mxu1 %v4670_v28  ;;  %v1560_v40 = vrot.slane %v1558_v57, 5  ;;  %v5002_v8 = vpop.f32.mrb[27].mxu0  ;;  %v5711_v28 = vld [vmem:[#allocation11 + $0x98] sm:$0xff]   ;;  %v1571_v31 = vor.u32 %v1570_v60, %v6764_v18  ;;  %v1574_v32 = vshll.u32 %v1445_v21, 16  ;;  %v1579_v41 = vshrl.u32 %v1446_v52, 16 }
 0x304   : > { %5312 = vmatprep.subr.bf16.mxu1 %v5707_v44  ;;  %v6768_v25 = vadd.f32 %v5002_v8, %v5001_v16  ;;  %v5004_v26 = vpop.f32.mrb[28].mxu0  ;;  %v1582_v42 = vshll.u32 %v1446_v52, 16  ;;  %v1588_v43 = vshll.u32 %v1447_v23, 16  ;;  %v1592_v35 = vshrl.u32 %v1447_v23, 16  ;;  %v1449_v6 = vld [vmem:[#allocation2 + $0x48] sm:$0xf] }
 0x305   : > { %v5005_v29 = vpop.f32.mrb[29].mxu0  ;;  %v1561_v30 = vor.u32 %v1560_v40, %v1557_v17  ;;  %v1553_v50 = vsel %vm6576_vm11, %v1548_v39, %v1552_v27  ;;  %v1572_v57 = vrot.slane %v1571_v31, 4  ;;  %v1576_v59 = vrot.slane %v1574_v32, 5  ;;  %v5715_v40 = vld [vmem:[#allocation11 + $0xa8] sm:$0xff]   ;;  %v1450_v60 = vld [vmem:[#allocation2 + $0x4c] sm:$0xf] }
 0x306   : > { %v6771_v36 = vadd.f32 %v5005_v29, %v5004_v26  ;;  %v5007_v37 = vpop.f32.mrb[30].mxu0  ;;  %v1581_v1 = vrot.slane %v1579_v41, 4  ;;  %v1584_v2 = vrot.slane %v1582_v42, 5  ;;  %v6782_v5 = vrot.slane %v1588_v43, 5  ;;  %v5717_v31 = vld [vmem:[#allocation11 + $0xb0] sm:$0xff]   ;;  %v5712_v43 = vld [vmem:[#allocation2 + $0x24] sm:$0xff]  }
 0x307   : > { %5313 = vmatpush3.bf16.msra.mxu1 %v5707_v44  ;;  %v5008_v46 = vpop.f32.mrb[31].mxu0  ;;  %v1543_v44 = vsel %vm6576_vm11, %v1538_v24, %v6747_v33  ;;  %v1562_v56 = vrot.slane %v1561_v30, 4  ;;  %v1577_v21 = vsel %vm6576_vm11, %v1572_v57, %v1576_v59  ;;  %v1598_v26 = vshll.u32 %v1448_v58, 16 }
 0x308   : > { %5314 = vmatprep.subr.bf16.mxu1 %v5709_v7  ;;  %v6773_v34 = vadd.f32 %v5008_v46, %v5007_v37  ;;  %v5010_v48 = vpop.f32.mrb[32].mxu0  ;;  %v4672_v33 = vcombine.low %v1543_v44, %v1553_v50  ;;  %v1585_v52 = vor.u32 %v1584_v2, %v1581_v1  ;;  %v1603_v24 = vshrl.u32 %v1449_v6, 16  ;;  %v1452_v2 = vld [vmem:[#allocation2 + $0x54] sm:$0xf] }
 0x309   : > { %v5011_v55 = vpop.f32.mrb[33].mxu0  ;;  %v1606_v27 = vshll.u32 %v1449_v6, 16  ;;  %v1616_v29 = vshrl.u32 %v1450_v60, 16 }
 0x30a   : > { %2976 = vmatmul.mubr.bf16.gmra.mrb[24].mxu1 %v5708_v20  ;;  %v6780_v61 = vadd.f32 %v5011_v55, %v5010_v48  ;;  %v5013_v63 = vpop.f32.mrb[34].mxu0  ;;  %v1567_v20 = vsel %vm6576_vm11, %v1562_v56, %v6764_v18  ;;  %v1600_v48 = vrot.slane %v1598_v26, 5  ;;  %v1605_v44 = vrot.slane %v1603_v24, 4  ;;  %v6809_v26 = vld [vmem:[#allocation11 + $0x200] sm:$0xff]  }
 0x30b   : > { %2983 = vmatprep.mubr.bf16.mxu1 %v4671_v22  ;;  %5315 = vmatpush3.bf16.msra.mxu1 %v5709_v7  ;;  %v1594_v7 = vrot.slane %v1592_v35, 4  ;;  %v5014_v0 = vpop.f32.mrb[35].mxu0  ;;  %v4673_v37 = vcombine.low %v1567_v20, %v1577_v21  ;;  %v1586_v35 = vrot.slane %v1585_v52, 4  ;;  %v1618_v56 = vrot.slane %v1616_v29, 4 }
 0x30c   : > { %5316 = vmatprep.subr.bf16.mxu1 %v5711_v28  ;;  %v6784_v17 = vadd.f32 %v5014_v0, %v5013_v63  ;;  %v5016_v38 = vpop.f32.mrb[36].mxu0  ;;  %v1451_v63 = vld [vmem:[#allocation2 + $0x50] sm:$0x1]  ;;  %v1627_v21 = vshrl.u32 %v1452_v2, 16 }
 0x30d   : > { %v5017_v16 = vpop.f32.mrb[37].mxu0  ;;  %v1595_v23 = vor.u32 %v1594_v7, %v6782_v5  ;;  %v1453_v7 = vld [vmem:[#allocation2 + $0x58] sm:$0xf]  ;;  %v1591_v58 = vsel %vm6576_vm11, %v1586_v35, %v6782_v5  ;;  %v5714_v5 = vld [vmem:[#allocation2 + $0x30] sm:$0xff]  }
 0x30e   : > { %v6791_v8 = vadd.f32 %v5017_v16, %v5016_v38  ;;  %v5019_v22 = vpop.f32.mrb[38].mxu0  ;;  %v1622_v16 = vshll.u32 %v1451_v63, 16  ;;  %v1636_v52 = vshll.u32 %v1453_v7, 16 }
 0x30f   : > { %5317 = vmatpush3.bf16.msra.mxu1 %v5711_v28  ;;  %v5020_v39 = vpop.f32.mrb[39].mxu0  ;;  %v1612_v28 = vshll.u32 %v1450_v60, 16  ;;  %v1596_v46 = vrot.slane %v1595_v23, 4  ;;  %v1640_v23 = vshrl.u32 %v1453_v7, 16 }
 0x310   : > { %5318 = vmatprep.subr.bf16.mxu1 %v5713_v51  ;;  %v6794_v30 = vadd.f32 %v5020_v39, %v5019_v22  ;;  %v5022_v18 = vpop.f32.mrb[40].mxu0  ;;  %v1630_v22 = vshll.u32 %v1452_v2, 16 }
 0x311   : > { %v5023_v32 = vpop.f32.mrb[41].mxu0  ;;  %v1614_v55 = vrot.slane %v1612_v28, 5  ;;  %v1601_v6 = vsel %vm6576_vm11, %v1596_v46, %v1600_v48  ;;  %v1642_v35 = vrot.slane %v1640_v23, 4  ;;  %v1454_v48 = vld [vmem:[#allocation2 + $0x5c] sm:$0x1]  ;;  %v5718_v23 = vld [vmem:[#allocation2 + $0x48] sm:$0xff]  }
 0x312   : > { %2984 = vmatmul.mubr.bf16.gmra.mrb[28].mxu1 %v5710_v49  ;;  %v6796_v41 = vadd.f32 %v5023_v32, %v5022_v18  ;;  %v5025_v42 = vpop.f32.mrb[42].mxu0  ;;  %v5719_v49 = vld [vmem:[#allocation11 + $0xb8] sm:$0xff]   ;;  %v4674_v39 = vcombine.low %v1591_v58, %v1601_v6  ;;  %v1624_v18 = vrot.slane %v1622_v16, 5  ;;  %v1646_v63 = vshll.u32 %v1454_v48, 16 }
 0x313   : > { %2991 = vmatprep.mubr.bf16.mxu1 %v4672_v33  ;;  %5319 = vmatpush3.bf16.msra.mxu1 %v5713_v51  ;;  %v5026_v50 = vpop.f32.mrb[43].mxu0  ;;  %v1608_v51 = vrot.slane %v1606_v27, 5  ;;  %v1619_v60 = vor.u32 %v1618_v56, %v1614_v55 }
 0x314   : > { %5320 = vmatprep.subr.bf16.mxu1 %v5715_v40  ;;  %v6798_v57 = vadd.f32 %v5026_v50, %v5025_v42  ;;  %v5028_v59 = vpop.f32.mrb[44].mxu0  ;;  %v1632_v42 = vrot.slane %v1630_v22, 5 }
 0x315   : > { %v5029_v1 = vpop.f32.mrb[45].mxu0  ;;  %v1620_v29 = vrot.slane %v1619_v60, 4 }
 0x316   : > { %v6800_v0 = vadd.f32 %v5029_v1, %v5028_v59  ;;  %v5031_v33 = vpop.f32.mrb[46].mxu0  ;;  %v5716_v1 = vld [vmem:[#allocation2 + $0x3c] sm:$0xff]  }
 0x317   : > { %5321 = vmatpush3.bf16.msra.mxu1 %v5715_v40  ;;  %v5032_v38 = vpop.f32.mrb[47].mxu0  ;;  %v1609_v40 = vor.u32 %v1608_v51, %v1605_v44  ;;  %v1625_v51 = vsel %vm6576_vm11, %v1620_v29, %v1624_v18  ;;  %v1694_v29 = vld [vmem:[#allocation2 + $0x10] sm:$0xf] }
 0x318   : > { %5322 = vmatprep.subr.bf16.mxu1 %v5717_v31  ;;  %v6807_v20 = vadd.f32 %v5032_v38, %v5031_v33  ;;  %v5146_v24 = vpop.f32.mrb[48].mxu0 }
 0x319   : > { %v5147_v27 = vpop.f32.mrb[49].mxu0  ;;  %v1610_v28 = vrot.slane %v1609_v40, 4  ;;  %v1648_v40 = vrot.slane %v1646_v63, 5  ;;  %v1698_v63 = vld [vmem:[#allocation2 + $0x20] sm:$0x1] }
 0x31a   : > { %2992 = vmatmul.mubr.bf16.gmra.mrb[32].mxu1 %v5712_v43  ;;  %v6811_v32 = vadd.f32 %v5147_v27, %v5146_v24  ;;  %v1638_v43 = vrot.slane %v1636_v52, 5 }
 0x31b   : > { %2999 = vmatprep.mubr.bf16.mxu1 %v4673_v37  ;;  %5323 = vmatpush3.bf16.msra.mxu1 %v5717_v31  ;;  %v5149_v31 = vpop.f32.mrb[50].mxu0  ;;  %v1629_v37 = vrot.slane %v1627_v21, 4  ;;  %v1615_v50 = vsel %vm6576_vm11, %v1610_v28, %v1614_v55  ;;  %v1691_v55 = vld [vmem:[#allocation2 + $0x4] sm:$0xf] }
 0x31c   : > { %5324 = vmatprep.subr.bf16.mxu1 %v5719_v49  ;;  %v5150_v46 = vpop.f32.mrb[51].mxu0  ;;  %v1643_v59 = vor.u32 %v1642_v35, %v1638_v43  ;;  %v4675_v7 = vcombine.low %v1615_v50, %v1625_v51  ;;  %v1743_v24 = vrot.slane %v1691_v55, 5  ;;  %v1695_v51 = vld [vmem:[#allocation2 + $0x14] sm:$0x1] }
 0x31d   : > { %v6814_v44 = vadd.f32 %v5150_v46, %v5149_v31  ;;  %v1633_v56 = vor.u32 %v1632_v42, %v1629_v37  ;;  %v1690_v31 = vld [vmem:[#allocation2] sm:$0xe]  ;;  %v1692_v37 = vld [vmem:[#allocation2 + $0x8] sm:$0x1]  ;;  %v1697_v42 = vld [vmem:[#allocation2 + $0x1c] sm:$0xf] }
 0x31e   : > { %v1644_v38 = vrot.slane %v1643_v59, 4  ;;  %v1750_v46 = vrot.slane %v1694_v29, 5  ;;  %v4677_v48 = vrot.slane %v1690_v31, 9  ;;  %v1746_v50 = vrot.slane %v1692_v37, 5  ;;  %v1696_v59 = vld [vmem:[#allocation2 + $0x18] sm:$0xe] }
 0x31f   : > { %5325 = vmatpush3.bf16.msra.mxu1 %v5719_v49  ;;  %v5152_v49 = vpop.f32.mrb[52].mxu0  ;;  %v1634_v6 = vrot.slane %v1633_v56, 4  ;;  %v1757_v56 = vrot.slane %v1697_v42, 5 }
 0x320   : > { %5342 = vmatprep.subr.bf16.mxu1 %v6809_v26  ;;  %v5153_v2 = vpop.f32.mrb[53].mxu0  ;;  %v1649_v22 = vsel %vm6576_vm11, %v1644_v38, %v1648_v40  ;;  %v1753_v38 = vrot.slane %v1695_v51, 5  ;;  %v1744_v55 = vsel %vm6646_vm14, %v4677_v48, %v1743_v24  ;;  %v1704_v51 = vld [vmem:[#allocation2 + $0x38] sm:$0x1] }
 0x321   : > { %v6820_v33 = vadd.f32 %v5153_v2, %v5152_v49  ;;  %v5155_v58 = vpop.f32.mrb[54].mxu0  ;;  %v1639_v21 = vsel %vm6576_vm11, %v1634_v6, %v1638_v43  ;;  %v1745_v43 = vrot.slane %v1743_v24, 4  ;;  %v1752_v6 = vrot.slane %v1750_v46, 4 }
 0x322   : > { %3000 = vmatmul.mubr.bf16.gmra.mrb[36].mxu1 %v5714_v5  ;;  %v5156_v60 = vpop.f32.mrb[55].mxu0 }
 0x323   : > { %3007 = vmatprep.mubr.bf16.mxu1 %v4674_v39  ;;  %v6822_v16 = vadd.f32 %v5156_v60, %v5155_v58  ;;  %v4676_v39 = vcombine.low %v1639_v21, %v1649_v22  ;;  %v1747_v2 = vsel %vm6646_vm14, %v1745_v43, %v1746_v50  ;;  %v4678_v58 = vrot.slane %v1693_v45, 9  ;;  %v1699_v43 = vld [vmem:[#allocation2 + $0x24] sm:$0xe]  ;;  %v1701_v45 = vld [vmem:[#allocation2 + $0x2c] sm:$0x1] }
 0x324   : > { %v4679_v21 = vrot.slane %v1696_v59, 9  ;;  %v1759_v22 = vrot.slane %v1757_v56, 4  ;;  %v1754_v31 = vsel %vm6646_vm14, %v1752_v6, %v1753_v38  ;;  %v1702_v50 = vld [vmem:[#allocation2 + $0x30] sm:$0xe] }
 0x325   : > { %v4681_v6 = vrot.slane %v1702_v50, 9  ;;  %v1710_v50 = vld [vmem:[#allocation2 + $0x50] sm:$0x1] }
 0x326   : > { %v1758_v24 = vsel %vm6646_vm14, %v4679_v21, %v1757_v56  ;;  %v1706_v56 = vld [vmem:[#allocation2 + $0x40] sm:$0xf] }
 0x327   : > { %v5158_v52 = vpop.f32.mrb[56].mxu0 }
 0x328   : > { %v5159_v5 = vpop.f32.mrb[57].mxu0 }
 0x329   : > { %v6828_v27 = vadd.f32 %v5159_v5, %v5158_v52  ;;  %v5161_v28 = vpop.f32.mrb[58].mxu0  ;;  %v1760_v52 = vrot.slane %v1698_v63, 5 }
 0x32a   : > { %3008 = vmatmul.mubr.bf16.gmra.mrb[40].mxu1 %v5716_v1  ;;  %v5162_v18 = vpop.f32.mrb[59].mxu0  ;;  %v5720_v1 = vld [vmem:[#allocation2 + $0x54] sm:$0xff]  }
 0x32b   : > { %3015 = vmatprep.mubr.bf16.mxu1 %v4675_v7  ;;  %v6830_v35 = vadd.f32 %v5162_v18, %v5161_v28  ;;  %v1703_v28 = vld [vmem:[#allocation2 + $0x34] sm:$0xf]  ;;  %v1751_v18 = vsel %vm6646_vm14, %v4678_v58, %v1750_v46  ;;  %v1761_v42 = vsel %vm6646_vm14, %v1759_v22, %v1760_v52  ;;  %v4680_v46 = vrot.slane %v1699_v43, 9  ;;  %v1709_v22 = vld [vmem:[#allocation2 + $0x4c] sm:$0xf] }
 0x32c   : > { %v1771_v48 = vrot.slane %v1703_v28, 5  ;;  %v4686_v59 = vcombine.low %v1751_v18, %v1754_v31  ;;  %v1778_v28 = vrot.slane %v1706_v56, 5  ;;  %v5723_v18 = vld [vmem:[#allocation11 + $0x210] sm:$0xff]   ;;  %v1707_v43 = vld [vmem:[#allocation2 + $0x44] sm:$0x1] }
 0x32e   : > { %v1773_v38 = vrot.slane %v1771_v48, 4  ;;  %v1772_v31 = vsel %vm6646_vm14, %v4681_v6, %v1771_v48  ;;  %v1788_v48 = vrot.slane %v1710_v50, 5  ;;  %v1712_v6 = vld [vmem:[#allocation2 + $0x58] sm:$0xf] }
 0x32f   : > { %v5164_v49 = vpop.f32.mrb[60].mxu0  ;;  %v3458_v50 = vld [vmem:[#allocation2 + $0x18] sm:$0xe] }
 0x330   : > { %v5165_v7 = vpop.f32.mrb[61].mxu0 }
 0x331   : > { %v6834_v40 = vadd.f32 %v5165_v7, %v5164_v49  ;;  %v5167_v60 = vpop.f32.mrb[62].mxu0  ;;  %v5722_v49 = vld [vmem:[#allocation11 + $0x208] sm:$0xff]   ;;  %v1767_v7 = vrot.slane %v1701_v45, 5  ;;  %v1785_v45 = vrot.slane %v1709_v22, 5 }
 0x332   : > { %3016 = vmatmul.mubr.bf16.gmra.mrb[44].mxu1 %v5718_v23  ;;  %v1700_v23 = vld [vmem:[#allocation2 + $0x28] sm:$0xf]  ;;  %v5168_v5 = vpop.f32.mrb[63].mxu0 }
 0x333   : > { %3023 = vmatprep.mubr.bf16.mxu1 %v4676_v39  ;;  %v4685_v39 = vcombine.low %v1744_v55, %v1747_v2  ;;  %v6838_v29 = vadd.f32 %v5168_v5, %v5167_v60  ;;  %v1764_v37 = vrot.slane %v1700_v23, 5  ;;  %v1774_v60 = vrot.slane %v1704_v51, 5 }
 0x335   : > { %v1766_v2 = vrot.slane %v1764_v37, 4  ;;  %v1765_v5 = vsel %vm6646_vm14, %v4680_v46, %v1764_v37  ;;  %v5724_v37 = vld [vmem:[#allocation11 + $0x218] sm:$0xff]   ;;  %v1781_v46 = vrot.slane %v1707_v43, 5  ;;  %v1711_v43 = vld [vmem:[#allocation2 + $0x54] sm:$0xe] }
 0x337   : > { %v5170_v63 = vpop.f32.mrb[64].mxu0 }
 0x338   : > { %v5171_v58 = vpop.f32.mrb[65].mxu0 }
 0x339   : > { %v6848_v55 = vadd.f32 %v5171_v58, %v5170_v63  ;;  %v5173_v21 = vpop.f32.mrb[66].mxu0  ;;  %v1787_v58 = vrot.slane %v1785_v45, 4 }
 0x33a   : > { %3024 = vmatmul.mubr.bf16.gmra.mrb[48].mxu1 %v5720_v1  ;;  %v4687_v1 = vcombine.low %v1758_v24, %v1761_v42  ;;  %v5174_v52 = vpop.f32.mrb[67].mxu0  ;;  %v1775_v24 = vsel %vm6646_vm14, %v1773_v38, %v1774_v60  ;;  %v1705_v42 = vld [vmem:[#allocation2 + $0x3c] sm:$0xe] }
 0x33b   : > { %5326 = vmatprep.mubr.bf16.mxu1 %v4685_v39  ;;  %v6850_v23 = vadd.f32 %v5174_v52, %v5173_v21  ;;  %v1768_v39 = vsel %vm6646_vm14, %v1766_v2, %v1767_v7  ;;  %v4682_v63 = vrot.slane %v1705_v42, 9  ;;  %v3459_v38 = vld [vmem:[#allocation2 + $0x1c] sm:$0xf]  ;;  %v1789_v42 = vsel %vm6646_vm14, %v1787_v58, %v1788_v48 }
 0x33c   : > { %v4688_v51 = vcombine.low %v1765_v5, %v1768_v39  ;;  %v1792_v5 = vrot.slane %v1712_v6, 5  ;;  %v4789_v6 = vrot.slane %v3458_v50, 9  ;;  %v5727_v48 = vld [vmem:[#allocation11 + $0x230] sm:$0xff]  }
 0x33f   : > { %v5176_v2 = vpop.f32.mrb[68].mxu0 }
 0x340   : > { %v5177_v56 = vpop.f32.mrb[69].mxu0 }
 0x341   : > { %v6861_v60 = vadd.f32 %v5177_v56, %v5176_v2  ;;  %v5179_v21 = vpop.f32.mrb[70].mxu0  ;;  %v5726_v2 = vld [vmem:[#allocation11 + $0x228] sm:$0xff]  }
 0x342   : > { %5327 = vmatmul.mubr.bf16.vlgmr.msra.gmra.mrb[4].mxu1 %v4686_v59  ;;  %v4689_v59 = vcombine.low %v1772_v31, %v1775_v24  ;;  %v5180_v22 = vpop.f32.mrb[71].mxu0  ;;  %v5725_v31 = vld [vmem:[#allocation11 + $0x220] sm:$0xff]  }
 0x343   : > { %5343 = vmatpush3.bf16.msra.mxu1 %v6809_v26  ;;  %5330 = vmatprep.mubr.bf16.mxu1 %v4687_v1  ;;  %v1708_v26 = vld [vmem:[#allocation2 + $0x48] sm:$0xe]  ;;  %v1780_v1 = vrot.slane %v1778_v28, 4  ;;  %v6867_v39 = vadd.f32 %v5180_v22, %v5179_v21 }
 0x344   : > { %5344 = vmatprep.subr.bf16.mxu1 %v5722_v49  ;;  %v4683_v7 = vrot.slane %v1708_v26, 9  ;;  %v3508_v26 = vrot.slane %v3459_v38, 5 }
 0x345   : > { %v1782_v52 = vsel %vm6646_vm14, %v1780_v1, %v1781_v46  ;;  %v1794_v1 = vrot.slane %v1792_v5, 4 }
 0x346   : > { %v1786_v24 = vsel %vm6646_vm14, %v4683_v7, %v1785_v45  ;;  %v3510_v56 = vrot.slane %v3508_v26, 4  ;;  %v3462_v45 = vld [vmem:[#allocation2 + $0x28] sm:$0xf]  ;;  %v3465_v7 = vld [vmem:[#allocation2 + $0x34] sm:$0xf] }
 0x347   : > { %5345 = vmatpush3.bf16.msra.mxu1 %v5722_v49  ;;  %v1779_v49 = vsel %vm6646_vm14, %v4682_v63, %v1778_v28  ;;  %v4684_v63 = vrot.slane %v1711_v43, 9  ;;  %v5182_v22 = vpop.f32.mrb[72].mxu0  ;;  %v3522_v50 = vrot.slane %v3465_v7, 5 }
 0x348   : > { %5346 = vmatprep.subr.bf16.mxu1 %v5723_v18  ;;  %v4690_v28 = vcombine.low %v1779_v49, %v1782_v52  ;;  %v5183_v58 = vpop.f32.mrb[73].mxu0  ;;  %v3515_v49 = vrot.slane %v3462_v45, 5 }
 0x349   : > { %v6877_v52 = vadd.f32 %v5183_v58, %v5182_v22  ;;  %v5728_v58 = vld [vmem:[#allocation11 + $0x238] sm:$0xff]  }
 0x34a   : > { %5331 = vmatmul.mubr.bf16.gmra.mrb[8].mxu1 %v4688_v51  ;;  %v3460_v51 = vld [vmem:[#allocation2 + $0x20] sm:$0x1]  ;;  %v3517_v45 = vrot.slane %v3515_v49, 4 }
 0x34b   : > { %5347 = vmatpush3.bf16.msra.mxu1 %v5723_v18  ;;  %5334 = vmatprep.mubr.bf16.mxu1 %v4689_v59  ;;  %v1713_v18 = vld [vmem:[#allocation2 + $0x5c] sm:$0x1]  ;;  %v4691_v59 = vcombine.low %v1786_v24, %v1789_v42  ;;  %v3511_v21 = vrot.slane %v3460_v51, 5  ;;  %v5185_v24 = vpop.f32.mrb[74].mxu0  ;;  %v3509_v42 = vsel %vm6646_vm14, %v4789_v6, %v3508_v26  ;;  %v3524_v6 = vrot.slane %v3522_v50, 4 }
 0x34c   : > { %5348 = vmatprep.subr.bf16.mxu1 %v5724_v37  ;;  %v1795_v46 = vrot.slane %v1713_v18, 5  ;;  %v3463_v18 = vld [vmem:[#allocation2 + $0x2c] sm:$0x1]  ;;  %v5186_v51 = vpop.f32.mrb[75].mxu0 }
 0x34d   : > { %v3512_v43 = vsel %vm6646_vm14, %v3510_v56, %v3511_v21  ;;  %v3518_v22 = vrot.slane %v3463_v18, 5  ;;  %v3468_v56 = vld [vmem:[#allocation2 + $0x40] sm:$0xf]  ;;  %v3471_v21 = vld [vmem:[#allocation2 + $0x4c] sm:$0xf] }
 0x34e   : > { %v1796_v38 = vsel %vm6646_vm14, %v1794_v1, %v1795_v46  ;;  %v4797_v1 = vcombine.low %v3509_v42, %v3512_v43  ;;  %v3467_v42 = vld [vmem:[#allocation2 + $0x3c] sm:$0xe]  ;;  %v3469_v43 = vld [vmem:[#allocation2 + $0x44] sm:$0x1]  ;;  %v3470_v18 = vld [vmem:[#allocation2 + $0x48] sm:$0xe] }
 0x34f   : > { %5349 = vmatpush3.bf16.msra.mxu1 %v5724_v37  ;;  %v1793_v37 = vsel %vm6646_vm14, %v4684_v63, %v1792_v5  ;;  %v3466_v5 = vld [vmem:[#allocation2 + $0x38] sm:$0x1] }
 0x350   : > { %5350 = vmatprep.subr.bf16.mxu1 %v5725_v31  ;;  %v4692_v63 = vcombine.low %v1793_v37, %v1796_v38  ;;  %v3525_v14 = vrot.slane %v3466_v5, 5  ;;  %v3529_v37 = vrot.slane %v3468_v56, 5  ;;  %v3477_v56 = vld [vmem:[#allocation2 + $0x64] sm:$0xf] }
 0x352   : > { %5335 = vmatmul.mubr.bf16.gmra.mrb[12].mxu1 %v4690_v28  ;;  %v3464_v28 = vld [vmem:[#allocation2 + $0x30] sm:$0xe]  ;;  %v3531_v5 = vrot.slane %v3529_v37, 4 }
 0x353   : > { %5351 = vmatpush3.bf16.msra.mxu1 %v5725_v31  ;;  %5338 = vmatprep.mubr.bf16.mxu1 %v4691_v59  ;;  %v3461_v31 = vld [vmem:[#allocation2 + $0x24] sm:$0xe]  ;;  %v6883_v59 = vadd.f32 %v5186_v51, %v5185_v24  ;;  %v4791_v26 = vrot.slane %v3464_v28, 9  ;;  %v3526_v24 = vsel %vm6646_vm14, %v3524_v6, %v3525_v14 }
 0x354   : > { %5352 = vmatprep.subr.bf16.mxu1 %v5726_v2  ;;  %v4790_v46 = vrot.slane %v3461_v31, 9  ;;  %v3536_v31 = vrot.slane %v3471_v21, 5  ;;  %v3473_v21 = vld [vmem:[#allocation2 + $0x54] sm:$0xe] }
 0x355   : > { %v3523_v38 = vsel %vm6646_vm14, %v4791_v26, %v3522_v50 }
 0x356   : > { %v3516_v7 = vsel %vm6646_vm14, %v4790_v46, %v3515_v49  ;;  %v4799_v28 = vcombine.low %v3523_v38, %v3526_v24  ;;  %v4792_v49 = vrot.slane %v3467_v42, 9  ;;  %v3538_v46 = vrot.slane %v3536_v31, 4  ;;  %v3476_v38 = vld [vmem:[#allocation2 + $0x60] sm:$0xe]  ;;  %v3478_v24 = vld [vmem:[#allocation2 + $0x68] sm:$0x1] }
 0x357   : > { %5353 = vmatpush3.bf16.msra.mxu1 %v5726_v2  ;;  %v3519_v2 = vsel %vm6646_vm14, %v3517_v45, %v3518_v22  ;;  %v3474_v22 = vld [vmem:[#allocation2 + $0x58] sm:$0xf] }
 0x358   : > { %5354 = vmatprep.subr.bf16.mxu1 %v5727_v48  ;;  %v4798_v51 = vcombine.low %v3516_v7, %v3519_v2  ;;  %v3530_v14 = vsel %vm6646_vm14, %v4792_v49, %v3529_v37  ;;  %v3543_v26 = vrot.slane %v3474_v22, 5  ;;  %v3475_v7 = vld [vmem:[#allocation2 + $0x5c] sm:$0x1]  ;;  %v3550_v2 = vrot.slane %v3477_v56, 5 }
 0x359   : > { %v3546_v37 = vrot.slane %v3475_v7, 5  ;;  %v3553_v49 = vrot.slane %v3478_v24, 5  ;;  %v5730_v24 = vld [vmem:[#allocation12 + $0x8] sm:$0xff]  }
 0x35a   : > { %5339 = vmatmul.mubr.bf16.gmra.mrb[16].mxu1 %v4692_v63  ;;  %v3532_v63 = vrot.slane %v3469_v43, 5 }
 0x35b   : > { %5355 = vmatpush3.bf16.msra.mxu1 %v5727_v48  ;;  %5358 = vmatprep.mubr.bf16.mxu1 %v4797_v1  ;;  %v3472_v48 = vld [vmem:[#allocation2 + $0x50] sm:$0x1]  ;;  %v4793_v1 = vrot.slane %v3470_v18, 9  ;;  %v4794_v18 = vrot.slane %v3473_v21, 9 }
 0x35c   : > { %5356 = vmatprep.subr.bf16.mxu1 %v5728_v58  ;;  %v3539_v45 = vrot.slane %v3472_v48, 5  ;;  %v3533_v50 = vsel %vm6646_vm14, %v3531_v5, %v3532_v63  ;;  %v3545_v48 = vrot.slane %v3543_v26, 4  ;;  %v3480_v5 = vld [vmem:[#allocation2 + $0x70] sm:$0xf] }
 0x35d   : > { %v4800_v42 = vcombine.low %v3530_v14, %v3533_v50  ;;  %v3479_v14 = vld [vmem:[#allocation2 + $0x6c] sm:$0xe]  ;;  %v3481_v50 = vld [vmem:[#allocation2 + $0x74] sm:$0x1] }
 0x35e   : > { %v3540_v6 = vsel %vm6646_vm14, %v3538_v46, %v3539_v45  ;;  %v3547_v63 = vsel %vm6646_vm14, %v3545_v48, %v3546_v37  ;;  %v3557_v45 = vrot.slane %v3480_v5, 5  ;;  %v3560_v21 = vrot.slane %v3481_v50, 5  ;;  %v5734_v48 = vld [vmem:[#allocation12 + $0x28] sm:$0xff]   ;;  %v5736_v37 = vld [vmem:[#allocation12 + $0x38] sm:$0xff]  }
 0x35f   : > { %5357 = vmatpush3.bf16.msra.mxu1 %v5728_v58  ;;  %v3537_v58 = vsel %vm6646_vm14, %v4793_v1, %v3536_v31  ;;  %v3544_v31 = vsel %vm6646_vm14, %v4794_v18, %v3543_v26  ;;  %v5733_v18 = vld [vmem:[#allocation12 + $0x20] sm:$0xff]  }
 0x360   : > { %v4801_v43 = vcombine.low %v3537_v58, %v3540_v6  ;;  %v4802_v22 = vcombine.low %v3544_v31, %v3547_v63  ;;  %v3559_v58 = vrot.slane %v3557_v45, 4  ;;  %v4796_v6 = vrot.slane %v3479_v14, 9 }
 0x362   : > { %5359 = vmatmul.mubr.bf16.vlgmr.msra.gmra.mrb[4].mxu1 %v4798_v51  ;;  %v4795_v51 = vrot.slane %v3476_v38, 9  ;;  %v3561_v26 = vsel %vm6646_vm14, %v3559_v58, %v3560_v21  ;;  %v3558_v7 = vsel %vm6646_vm14, %v4796_v6, %v3557_v45  ;;  %v5729_v38 = vld [vmem:[#allocation12] sm:$0xff]  }
 0x363   : > { %5362 = vmatprep.mubr.bf16.mxu1 %v4799_v28  ;;  %v3552_v28 = vrot.slane %v3550_v2, 4  ;;  %5374 = vmatprep.subr.bf16.mxu0 %v5729_v38 }
 0x364   : > { %v3551_v1 = vsel %vm6646_vm14, %v4795_v51, %v3550_v2  ;;  %v4804_v2 = vcombine.low %v3558_v7, %v3561_v26  ;;  %5375 = vmatpush3.bf16.msra.mxu0 %v5729_v38 }
 0x365   : > { %v3554_v46 = vsel %vm6646_vm14, %v3552_v28, %v3553_v49  ;;  %5376 = vmatprep.subr.bf16.mxu0 %v5730_v24 }
 0x366   : > { %v4803_v56 = vcombine.low %v3551_v1, %v3554_v46 }
 0x368   : > { %5377 = vmatpush3.bf16.msra.mxu0 %v5730_v24 }
 0x36a   : > { %5363 = vmatmul.mubr.bf16.gmra.mrb[8].mxu1 %v4800_v42  ;;  %v5731_v42 = vld [vmem:[#allocation12 + $0x10] sm:$0xff]  }
 0x36b   : > { %5366 = vmatprep.mubr.bf16.mxu1 %v4801_v43  ;;  %v5732_v43 = vld [vmem:[#allocation12 + $0x18] sm:$0xff]   ;;  %5378 = vmatprep.subr.bf16.mxu0 %v5731_v42 }
 0x36c   : > { %5379 = vmatpush3.bf16.msra.mxu0 %v5731_v42 }
 0x36d   : > { %5380 = vmatprep.subr.bf16.mxu0 %v5732_v43 }
 0x370   : > { %5381 = vmatpush3.bf16.msra.mxu0 %v5732_v43 }
 0x371   : > { %5382 = vmatprep.subr.bf16.mxu0 %v5733_v18 }
 0x372   : > { %5367 = vmatmul.mubr.bf16.gmra.mrb[12].mxu1 %v4802_v22 }
 0x373   : > { %5370 = vmatprep.mubr.bf16.mxu1 %v4803_v56 }
 0x374   : > { %5383 = vmatpush3.bf16.msra.mxu0 %v5733_v18 }
 0x375   : > { %5384 = vmatprep.subr.bf16.mxu0 %v5734_v48 }
 0x378   : > { %5385 = vmatpush3.bf16.msra.mxu0 %v5734_v48 }
 0x379   : > { %5386 = vmatprep.subr.bf16.mxu0 %v5735_v47 }
 0x37a   : > { %5371 = vmatmul.mubr.bf16.gmra.mrb[16].mxu1 %v4804_v2 }
 0x37c   : > { %5387 = vmatpush3.bf16.msra.mxu0 %v5735_v47 }
 0x37d   : > { %5388 = vmatprep.subr.bf16.mxu0 %v5736_v37 }
 0x380   : > { %5389 = vmatpush3.bf16.msra.mxu0 %v5736_v37 }
 0x3d3   : > { %v5188_v51 = vpop.f32.mrb[76].mxu0 }
 0x3d4   : > { %v5189_v28 = vpop.f32.mrb[77].mxu0 }
 0x3d5   : > { %v6913_v49 = vadd.f32 %v5189_v28, %v5188_v51  ;;  %v5191_v5 = vpop.f32.mrb[78].mxu0  ;;  %v5066_v63 = vpop.f32.mrb[20].mxu1 }
 0x3d6   : > { %v5192_v31 = vpop.f32.mrb[79].mxu0  ;;  %v5067_v46 = vpop.f32.mrb[21].mxu1 }
 0x3d7   : > { %v6915_v1 = vadd.f32 %v5192_v31, %v5191_v5  ;;  %v5068_v45 = vadd.f32 %v5067_v46, %v5066_v63  ;;  %v5069_v22 = vpop.f32.mrb[22].mxu1 }
 0x3d8   : > { %v5070_v56 = vpop.f32.mrb[23].mxu1 }
 0x3d9   : > { %v5409_v14 = vadd.f32 %v5068_v45, %v6749_v53  ;;  %v5071_v50 = vadd.f32 %v5070_v56, %v5069_v22 }
 0x3db   : > { %v5415_v58 = vadd.f32 %v5071_v50, %v6751_v54  ;;  %v6920_v6 = vadd.f32 %v5409_v14, %v6811_v32 }
 0x3dd   : > { %v5072_v21 = vpop.f32.mrb[24].mxu1  ;;  %v6923_v26 = vadd.f32 %v5415_v58, %v6814_v44 }
 0x3de   : > { %v5073_v7 = vpop.f32.mrb[25].mxu1 }
 0x3df   : > { %v5074_v2 = vadd.f32 %v5073_v7, %v5072_v21  ;;  %v5075_v38 = vpop.f32.mrb[26].mxu1 }
 0x3e0   : > { %v5076_v24 = vpop.f32.mrb[27].mxu1 }
 0x3e1   : > { %v5406_v42 = vadd.f32 %v5074_v2, %v6753_v62  ;;  %v5077_v43 = vadd.f32 %v5076_v24, %v5075_v38 }
 0x3e3   : > { %v5412_v18 = vadd.f32 %v5077_v43, %v6761_v3  ;;  %v6928_v53 = vadd.f32 %v5406_v42, %v6820_v33 }
 0x3e5   : > { %v5078_v54 = vpop.f32.mrb[28].mxu1  ;;  %v6931_v32 = vadd.f32 %v5412_v18, %v6822_v16 }
 0x3e6   : > { %v5079_v48 = vpop.f32.mrb[29].mxu1 }
 0x3e7   : > { %v5080_v47 = vadd.f32 %v5079_v48, %v5078_v54  ;;  %v5081_v44 = vpop.f32.mrb[30].mxu1 }
 0x3e8   : > { %v5082_v37 = vpop.f32.mrb[31].mxu1 }
 0x3e9   : > { %v5421_v51 = vadd.f32 %v5080_v47, %v6766_v19  ;;  %v5083_v28 = vadd.f32 %v5082_v37, %v5081_v44 }
 0x3eb   : > { %v5427_v5 = vadd.f32 %v5083_v28, %v6768_v25  ;;  %v6936_v62 = vadd.f32 %v5421_v51, %v6828_v27 }
 0x3ed   : > { %v5084_v3 = vpop.f32.mrb[32].mxu1  ;;  %v6939_v33 = vadd.f32 %v5427_v5, %v6830_v35 }
 0x3ee   : > { %v5085_v31 = vpop.f32.mrb[33].mxu1 }
 0x3ef   : > { %v5086_v63 = vadd.f32 %v5085_v31, %v5084_v3  ;;  %v5087_v16 = vpop.f32.mrb[34].mxu1 }
 0x3f0   : > { %v5088_v46 = vpop.f32.mrb[35].mxu1 }
 0x3f1   : > { %v5418_v45 = vadd.f32 %v5086_v63, %v6771_v36  ;;  %v5089_v22 = vadd.f32 %v5088_v46, %v5087_v16 }
 0x3f3   : > { %v5424_v56 = vadd.f32 %v5089_v22, %v6773_v34  ;;  %v6944_v19 = vadd.f32 %v5418_v45, %v6834_v40 }
 0x3f5   : > { %v5090_v25 = vpop.f32.mrb[36].mxu1  ;;  %v6947_v27 = vadd.f32 %v5424_v56, %v6838_v29 }
 0x3f6   : > { %v5091_v14 = vpop.f32.mrb[37].mxu1 }
 0x3f7   : > { %v5092_v50 = vadd.f32 %v5091_v14, %v5090_v25  ;;  %v5093_v35 = vpop.f32.mrb[38].mxu1 }
 0x3f8   : > { %v5094_v58 = vpop.f32.mrb[39].mxu1 }
 0x3f9   : > { %v5433_v21 = vadd.f32 %v5092_v50, %v6780_v61  ;;  %v5095_v7 = vadd.f32 %v5094_v58, %v5093_v35 }
 0x3fb   : > { %v5439_v2 = vadd.f32 %v5095_v7, %v6784_v17  ;;  %v6952_v36 = vadd.f32 %v5433_v21, %v6848_v55 }
 0x3fd   : > { %v5096_v34 = vpop.f32.mrb[40].mxu1  ;;  %v6955_v40 = vadd.f32 %v5439_v2, %v6850_v23 }
 0x3fe   : > { %v5097_v38 = vpop.f32.mrb[41].mxu1 }
 0x3ff   : > { %v5098_v24 = vadd.f32 %v5097_v38, %v5096_v34  ;;  %v5099_v29 = vpop.f32.mrb[42].mxu1 }
 0x400   : > { %v5100_v42 = vpop.f32.mrb[43].mxu1 }
 0x401   : > { %v5430_v43 = vadd.f32 %v5098_v24, %v6791_v8  ;;  %v5101_v18 = vadd.f32 %v5100_v42, %v5099_v29 }
 0x403   : > { %v5436_v54 = vadd.f32 %v5101_v18, %v6794_v30  ;;  %v6960_v61 = vadd.f32 %v5430_v43, %v6861_v60 }
 0x405   : > { %v5102_v17 = vpop.f32.mrb[44].mxu1  ;;  %v6963_v55 = vadd.f32 %v5436_v54, %v6867_v39 }
 0x406   : > { %v5103_v48 = vpop.f32.mrb[45].mxu1 }
 0x407   : > { %v5104_v47 = vadd.f32 %v5103_v48, %v5102_v17  ;;  %v5105_v23 = vpop.f32.mrb[46].mxu1 }
 0x408   : > { %v5106_v44 = vpop.f32.mrb[47].mxu1 }
 0x409   : > { %v5445_v37 = vadd.f32 %v5104_v47, %v6796_v41  ;;  %v5107_v51 = vadd.f32 %v5106_v44, %v5105_v23 }
 0x40b   : > { %v5451_v28 = vadd.f32 %v5107_v51, %v6798_v57  ;;  %v6968_v8 = vadd.f32 %v5445_v37, %v6877_v52 }
 0x40d   : > { %v5108_v30 = vpop.f32.mrb[48].mxu1  ;;  %v6971_v60 = vadd.f32 %v5451_v28, %v6883_v59  ;;  %v6984_v59 = vld [vmem:[%s7248_s21] ss:$0 sm:$0xff]  ;;  %s5899_s21 = scalar_lea.vmem %s7111_s5, 1024 }
 0x40e   : > { %v5109_v5 = vpop.f32.mrb[49].mxu1  ;;  %p5900_p7 = scmp.ne.s32.totalorder %s7111_s5, %s5899_s21 }
 0x40f   : > { %v5110_v3 = vadd.f32 %v5109_v5, %v5108_v30  ;;  %v5111_v39 = vpop.f32.mrb[50].mxu1 }
 0x410   : > { %v5112_v31 = vpop.f32.mrb[51].mxu1  ;;  %p5901_p11 = pnand %p5900_p7, %p6257_p3 }
 0x411   : > { %v5442_v63 = vadd.f32 %v5110_v3, %v6800_v0  ;;  %v5113_v16 = vadd.f32 %v5112_v31, %v5111_v39  ;;  %v6990_v0 = vld [vmem:[%s7249_s28] ss:$0 sm:$0xff]  ;;  %s5905_s28 = scalar_lea.vmem %s5904_s12, 2048 }
 0x412   : > { %p5902_p1 = pneg %p5901_p11  ;;  %p5907_p8 = scmp.lt.s32.totalorder %s5905_s28, %s5899_s21 }
 0x413   : > { %v5448_v46 = vadd.f32 %v5113_v16, %v6807_v20  ;;  %v6976_v41 = vadd.f32 %v5442_v63, %v6913_v49 }
 0x414   : > { %p5908_p12 = por %p5907_p8, %p5906_p2 }
 0x415   : > { %v6979_v57 = vadd.f32 %v5448_v46, %v6915_v1 }
 0x416   : > { %p5909_p13 = pnand %p5908_p12, %p5902_p1 }
 0x435   : > { %v5360_v52 = vpop.f32.mrb[4].mxu1 }
 0x436   : > { %v5408_v45 = vadd.f32 %v6928_v53, %v5360_v52  ;;  %v3949_v22 = vpop.f32.mrb[5].mxu1 }
 0x437   : > { %v5411_v20 = vadd.f32 %v6920_v6, %v3949_v22  ;;  %v5361_v49 = vpop.f32.mrb[6].mxu1 }
 0x438   : > { %v4037_v1 = vmul.f32 %v5408_v45, %v6984_v59  ;;  %v5414_v56 = vadd.f32 %v6931_v32, %v5361_v49  ;;  %v3952_v25 = vpop.f32.mrb[7].mxu1 }
 0x439   : > { %v4035_v14 = vmul.f32 %v5411_v20, %v6984_v59  ;;  %v5417_v50 = vadd.f32 %v6923_v26, %v3952_v25 }
 0x43a   : > { %v4060_v53 = vadd.f32 %v6990_v0, %v4037_v1  ;;  %v4038_v35 = vmul.f32 %v5414_v56, %v6984_v59 }
 0x43b   : > { %v4058_v58 = vadd.f32 %v6990_v0, %v4035_v14  ;;  %v4036_v21 = vmul.f32 %v5417_v50, %v6984_v59 }
 0x43c   : > { %v4061_v6 = vadd.f32 %v6990_v0, %v4038_v35  ;;  %v4076_v34 = vmax.f32 %v4060_v53, 0.0 }
 0x43d   : > { %v4059_v7 = vadd.f32 %v6990_v0, %v4036_v21  ;;  %v5364_v2 = vpop.f32.mrb[8].mxu1  ;;  %v4074_v29 = vmax.f32 %v4058_v58, 0.0 }
 0x43e   : > { %v4077_v32 = vmax.f32 %v4061_v6, 0.0  ;;  %v5420_v38 = vadd.f32 %v6944_v19, %v5364_v2  ;;  %v3965_v24 = vpop.f32.mrb[9].mxu1 }
 0x43f   : > { %v4075_v26 = vmax.f32 %v4059_v7, 0.0  ;;  %v5423_v42 = vadd.f32 %v6936_v62, %v3965_v24  ;;  %v5365_v43 = vpop.f32.mrb[10].mxu1 }
 0x440   : > { %v4091_v18 = vpack.c.bf16 %v4077_v32, %v4076_v34  ;;  %v4041_v54 = vmul.f32 %v5420_v38, %v6984_v59  ;;  %v5426_v17 = vadd.f32 %v6947_v27, %v5365_v43  ;;  %v3968_v48 = vpop.f32.mrb[11].mxu1 }
 0x441   : > { %v4039_v47 = vmul.f32 %v5423_v42, %v6984_v59  ;;  %v5429_v23 = vadd.f32 %v6939_v33, %v3968_v48  ;;  %v4090_v44 = vpack.c.bf16 %v4075_v26, %v4074_v29 }
 0x442   : > { %v4064_v37 = vadd.f32 %v6990_v0, %v4041_v54  ;;  %v4042_v19 = vmul.f32 %v5426_v17, %v6984_v59 }
 0x443   : > { %v4062_v51 = vadd.f32 %v6990_v0, %v4039_v47  ;;  %v4040_v62 = vmul.f32 %v5429_v23, %v6984_v59  ;;  %5390 = vmatprep.mubr.bf16.mxu0 %v4090_v44 }
 0x444   : > { %v4065_v28 = vadd.f32 %v6990_v0, %v4042_v19  ;;  %5391 = vmatmul.mubr.bf16.vlgmr.msra.gmra.mrb[80].mxu0 %v4091_v18  ;;  %v4080_v5 = vmax.f32 %v4064_v37, 0.0  ;;  %v7042_v19 = vld [vmem:[%s7250_s27] ss:$0 sm:$0xff] }
 0x445   : > { %v4063_v27 = vadd.f32 %v6990_v0, %v4040_v62  ;;  %v5368_v30 = vpop.f32.mrb[12].mxu1  ;;  %v4078_v31 = vmax.f32 %v4062_v51, 0.0  ;;  %v7047_v51 = vld [vmem:[%s7251_s26] ss:$0 sm:$0xff]  ;;  %v4307_v62 = vunpack.c.l.bf16 %v6350_v9 }
 0x446   : > { %v4081_v3 = vmax.f32 %v4065_v28, 0.0  ;;  %v5432_v33 = vadd.f32 %v6960_v61, %v5368_v30  ;;  %v3981_v39 = vpop.f32.mrb[13].mxu1  ;;  %v4305_v30 = vunpack.c.l.bf16 %v6346_v4 }
 0x447   : > { %v4079_v63 = vmax.f32 %v4063_v27, 0.0  ;;  %v5435_v16 = vadd.f32 %v6952_v36, %v3981_v39  ;;  %v5369_v46 = vpop.f32.mrb[14].mxu1  ;;  %v4308_v39 = vunpack.c.h.bf16 %v6350_v9 }
 0x448   : > { %v4045_v52 = vmul.f32 %v5432_v33, %v6984_v59  ;;  %v5438_v45 = vadd.f32 %v6963_v55, %v5369_v46  ;;  %v3984_v22 = vpop.f32.mrb[15].mxu1  ;;  %v4093_v20 = vpack.c.bf16 %v4081_v3, %v4080_v5  ;;  %v4306_v46 = vunpack.c.h.bf16 %v6346_v4 }
 0x449   : > { %v4043_v49 = vmul.f32 %v5435_v16, %v6984_v59  ;;  %v5441_v1 = vadd.f32 %v6955_v40, %v3984_v22  ;;  %v4092_v56 = vpack.c.bf16 %v4079_v63, %v4078_v31 }
 0x44a   : > { %v4068_v25 = vadd.f32 %v6990_v0, %v4045_v52  ;;  %v4046_v61 = vmul.f32 %v5438_v45, %v6984_v59 }
 0x44b   : > { %v4066_v14 = vadd.f32 %v6990_v0, %v4043_v49  ;;  %v4044_v36 = vmul.f32 %v5441_v1, %v6984_v59  ;;  %5394 = vmatprep.mubr.bf16.mxu0 %v4092_v56 }
 0x44c   : > { %v4069_v50 = vadd.f32 %v6990_v0, %v4046_v61  ;;  %5395 = vmatmul.mubr.bf16.gmra.mrb[84].mxu0 %v4093_v20  ;;  %v4084_v35 = vmax.f32 %v4068_v25, 0.0 }
 0x44d   : > { %v4067_v55 = vadd.f32 %v6990_v0, %v4044_v36  ;;  %v5372_v53 = vpop.f32.mrb[16].mxu1  ;;  %v4082_v6 = vmax.f32 %v4066_v14, 0.0  ;;  %v4311_v14 = vunpack.c.l.bf16 %v6358_v11 }
 0x44e   : > { %v4085_v58 = vmax.f32 %v4069_v50, 0.0  ;;  %v5444_v40 = vadd.f32 %v6976_v41, %v5372_v53  ;;  %v3997_v21 = vpop.f32.mrb[17].mxu1  ;;  %v4309_v53 = vunpack.c.l.bf16 %v6353_v10 }
 0x44f   : > { %v4083_v7 = vmax.f32 %v4067_v55, 0.0  ;;  %v5447_v2 = vadd.f32 %v6968_v8, %v3997_v21  ;;  %v5373_v34 = vpop.f32.mrb[18].mxu1 }
 0x450   : > { %v4049_v32 = vmul.f32 %v5444_v40, %v6984_v59  ;;  %v5450_v38 = vadd.f32 %v6979_v57, %v5373_v34  ;;  %v4000_v24 = vpop.f32.mrb[19].mxu1  ;;  %v4095_v29 = vpack.c.bf16 %v4085_v58, %v4084_v35 }
 0x451   : > { %v4047_v26 = vmul.f32 %v5447_v2, %v6984_v59  ;;  %v5453_v42 = vadd.f32 %v6971_v60, %v4000_v24  ;;  %v4094_v43 = vpack.c.bf16 %v4083_v7, %v4082_v6  ;;  %v4312_v6 = vunpack.c.h.bf16 %v6358_v11 }
 0x452   : > { %v4072_v18 = vadd.f32 %v6990_v0, %v4049_v32  ;;  %v4050_v41 = vmul.f32 %v5450_v38, %v6984_v59  ;;  %v4310_v38 = vunpack.c.h.bf16 %v6353_v10 }
 0x453   : > { %v4070_v54 = vadd.f32 %v6990_v0, %v4047_v26  ;;  %v4048_v8 = vmul.f32 %v5453_v42, %v6984_v59  ;;  %5398 = vmatprep.mubr.bf16.mxu0 %v4094_v43 }
 0x454   : > { %v4073_v17 = vadd.f32 %v6990_v0, %v4050_v41  ;;  %5399 = vmatmul.mubr.bf16.gmra.mrb[88].mxu0 %v4095_v29  ;;  %v4088_v48 = vmax.f32 %v4072_v18, 0.0 }
 0x455   : > { %v4071_v57 = vadd.f32 %v6990_v0, %v4048_v8  ;;  %v4086_v23 = vmax.f32 %v4070_v54, 0.0 }
 0x456   : > { %v4089_v47 = vmax.f32 %v4073_v17, 0.0  ;;  %v4315_v17 = vunpack.c.l.bf16 %v6366_v13 }
 0x457   : > { %v4087_v44 = vmax.f32 %v4071_v57, 0.0 }
 0x458   : > { %v4097_v60 = vpack.c.bf16 %v4089_v47, %v4088_v48 }
 0x459   : > { %v4096_v37 = vpack.c.bf16 %v4087_v44, %v4086_v23  ;;  %v4313_v23 = vunpack.c.l.bf16 %v6361_v12 }
 0x45b   : > { %5402 = vmatprep.mubr.bf16.mxu0 %v4096_v37 }
 0x45c   : > { %5403 = vmatmul.mubr.bf16.gmra.mrb[92].mxu0 %v4097_v60 }
 0x517   : > { %v5392_v59 = vpop.f32.mrb[80].mxu0 }
 0x518   : > { %v4268_v0 = vmul.f32 %v5392_v59, %v7042_v19  ;;  %v4196_v28 = vpop.f32.mrb[81].mxu0 }
 0x519   : > { %v4266_v27 = vmul.f32 %v7042_v19, %v4196_v28  ;;  %v5393_v5 = vpop.f32.mrb[82].mxu0 }
 0x51a   : > { %v4291_v3 = vadd.f32 %v7047_v51, %v4268_v0  ;;  %v4269_v33 = vmul.f32 %v5393_v5, %v7042_v19  ;;  %v4199_v31 = vpop.f32.mrb[83].mxu0  ;;  %v4316_v0 = vunpack.c.h.bf16 %v6366_v13  ;;  %v4314_v5 = vunpack.c.h.bf16 %v6361_v12 }
 0x51b   : > { %v4289_v63 = vadd.f32 %v7047_v51, %v4266_v27  ;;  %v4267_v16 = vmul.f32 %v7042_v19, %v4199_v31 }
 0x51c   : > { %v4323_v52 = vadd.f32 %v4307_v62, %v4291_v3  ;;  %v4292_v45 = vadd.f32 %v7047_v51, %v4269_v33 }
 0x51d   : > { %v4321_v22 = vadd.f32 %v4305_v30, %v4289_v63  ;;  %v4290_v20 = vadd.f32 %v7047_v51, %v4267_v16 }
 0x51e   : > { %v4324_v49 = vadd.f32 %v4308_v39, %v4292_v45  ;;  %v4339_v25 = vmax.f32 %v4323_v52, 0.0 }
 0x51f   : > { %v4322_v1 = vadd.f32 %v4306_v46, %v4290_v20  ;;  %v5396_v56 = vpop.f32.mrb[84].mxu0  ;;  %v4337_v50 = vmax.f32 %v4321_v22, 0.0  ;;  %v4319_v22 = vunpack.c.l.bf16 %v6374_v15 }
 0x520   : > { %v4340_v61 = vmax.f32 %v4324_v49, 0.0  ;;  %v4272_v9 = vmul.f32 %v5396_v56, %v7042_v19  ;;  %v4212_v36 = vpop.f32.mrb[85].mxu0  ;;  %v7252_v56 = vld [vmem:[#allocation30_spill] sm:$0xff] }
 0x521   : > { %v4338_v55 = vmax.f32 %v4322_v1, 0.0  ;;  %v4270_v4 = vmul.f32 %v7042_v19, %v4212_v36  ;;  %v5397_v35 = vpop.f32.mrb[86].mxu0 }
 0x522   : > { %v4905_v58 = vpack.c.bf16 %v4340_v61, %v4339_v25  ;;  %v4295_v40 = vadd.f32 %v7047_v51, %v4272_v9  ;;  %v4273_v21 = vmul.f32 %v5397_v35, %v7042_v19  ;;  %v4215_v7 = vpop.f32.mrb[87].mxu0  ;;  %v4317_v25 = vunpack.c.l.bf16 %v7252_v56 }
 0x523   : > { %v4900_v2 = vpack.c.bf16 %v4338_v55, %v4337_v50  ;;  %v4293_v34 = vadd.f32 %v7047_v51, %v4270_v4  ;;  %v4271_v32 = vmul.f32 %v7042_v19, %v4215_v7  ;;  %v4320_v50 = vunpack.c.h.bf16 %v6374_v15 }
 0x524   : > { %4937 = vst [vmem:[%s6572_s4 + $0x8] sm:$0xff] %v4905_v58   ;;  %v4327_v24 = vadd.f32 %v4311_v14, %v4295_v40  ;;  %v4296_v29 = vadd.f32 %v7047_v51, %v4273_v21  ;;  %v4318_v58 = vunpack.c.h.bf16 %v7252_v56 }
 0x525   : > { %4901 = vst [vmem:[%s6572_s4] sm:$0xff] %v4900_v2   ;;  %v4325_v26 = vadd.f32 %v4309_v53, %v4293_v34  ;;  %v4294_v42 = vadd.f32 %v7047_v51, %v4271_v32 }
 0x526   : > { %v4328_v43 = vadd.f32 %v4312_v6, %v4296_v29  ;;  %v4343_v11 = vmax.f32 %v4327_v24, 0.0 }
 0x527   : > { %v4326_v18 = vadd.f32 %v4310_v38, %v4294_v42  ;;  %v5400_v41 = vpop.f32.mrb[88].mxu0  ;;  %v4341_v10 = vmax.f32 %v4325_v26, 0.0 }
 0x528   : > { %v4344_v54 = vmax.f32 %v4328_v43, 0.0  ;;  %v4276_v8 = vmul.f32 %v5400_v41, %v7042_v19  ;;  %v4228_v57 = vpop.f32.mrb[89].mxu0 }
 0x529   : > { %v4342_v48 = vmax.f32 %v4326_v18, 0.0  ;;  %v4274_v47 = vmul.f32 %v7042_v19, %v4228_v57  ;;  %v5401_v44 = vpop.f32.mrb[90].mxu0 }
 0x52a   : > { %v4915_v60 = vpack.c.bf16 %v4344_v54, %v4343_v11  ;;  %v4299_v37 = vadd.f32 %v7047_v51, %v4276_v8  ;;  %v4277_v59 = vmul.f32 %v5401_v44, %v7042_v19  ;;  %v4231_v62 = vpop.f32.mrb[91].mxu0 }
 0x52b   : > { %v4910_v28 = vpack.c.bf16 %v4342_v48, %v4341_v10  ;;  %v4297_v27 = vadd.f32 %v7047_v51, %v4274_v47  ;;  %v4275_v30 = vmul.f32 %v7042_v19, %v4231_v62 }
 0x52c   : > { %4939 = vst [vmem:[%s6572_s4 + $0x18] sm:$0xff] %v4915_v60   ;;  %v4331_v3 = vadd.f32 %v4315_v17, %v4299_v37  ;;  %v4300_v33 = vadd.f32 %v7047_v51, %v4277_v59 }
 0x52d   : > { %4938 = vst [vmem:[%s6572_s4 + $0x10] sm:$0xff] %v4910_v28   ;;  %v4329_v39 = vadd.f32 %v4313_v23, %v4297_v27  ;;  %v4298_v31 = vadd.f32 %v7047_v51, %v4275_v30 }
 0x52e   : > { %v4332_v63 = vadd.f32 %v4316_v0, %v4300_v33  ;;  %v4347_v46 = vmax.f32 %v4331_v3, 0.0 }
 0x52f   : > { %v4330_v16 = vadd.f32 %v4314_v5, %v4298_v31  ;;  %v5404_v13 = vpop.f32.mrb[92].mxu0  ;;  %v4345_v12 = vmax.f32 %v4329_v39, 0.0 }
 0x530   : > { %v4348_v52 = vmax.f32 %v4332_v63, 0.0  ;;  %v4280_v45 = vmul.f32 %v5404_v13, %v7042_v19  ;;  %v4244_v20 = vpop.f32.mrb[93].mxu0 }
 0x531   : > { %v4346_v49 = vmax.f32 %v4330_v16, 0.0  ;;  %v4278_v1 = vmul.f32 %v7042_v19, %v4244_v20  ;;  %v5405_v61 = vpop.f32.mrb[94].mxu0 }
 0x532   : > { %v4925_v9 = vpack.c.bf16 %v4348_v52, %v4347_v46  ;;  %v4303_v14 = vadd.f32 %v7047_v51, %v4280_v45  ;;  %v4281_v36 = vmul.f32 %v5405_v61, %v7042_v19  ;;  %v4247_v55 = vpop.f32.mrb[95].mxu0 }
 0x533   : > { %v4920_v4 = vpack.c.bf16 %v4346_v49, %v4345_v12  ;;  %v4301_v53 = vadd.f32 %v7047_v51, %v4278_v1  ;;  %v4279_v35 = vmul.f32 %v7042_v19, %v4247_v55 }
 0x534   : > { %4941 = vst [vmem:[%s6572_s4 + $0x28] sm:$0xff] %v4925_v9   ;;  %v4335_v40 = vadd.f32 %v4319_v22, %v4303_v14  ;;  %v4304_v21 = vadd.f32 %v7047_v51, %v4281_v36 }
 0x535   : > { %4940 = vst [vmem:[%s6572_s4 + $0x20] sm:$0xff] %v4920_v4   ;;  %v4333_v6 = vadd.f32 %v4317_v25, %v4301_v53  ;;  %v4302_v15 = vadd.f32 %v7047_v51, %v4279_v35 }
 0x536   : > { %v4336_v7 = vadd.f32 %v4320_v50, %v4304_v21  ;;  %v4351_v19 = vmax.f32 %v4335_v40, 0.0 }
 0x537   : > { %v4334_v2 = vadd.f32 %v4318_v58, %v4302_v15  ;;  %v4349_v32 = vmax.f32 %v4333_v6, 0.0 }
 0x538   : > { %v4352_v34 = vmax.f32 %v4336_v7, 0.0 }
 0x539   : > { %v4350_v38 = vmax.f32 %v4334_v2, 0.0 }
 0x53a   : > { %v4935_v24 = vpack.c.bf16 %v4352_v34, %v4351_v19 }
 0x53b   : > { %v4930_v51 = vpack.c.bf16 %v4350_v38, %v4349_v32 }
 0x53c   : > { %4943 = vst [vmem:[%s6572_s4 + $0x38] sm:$0xff] %v4935_v24  }
 0x53d   : > { %4942 = vst [vmem:[%s6572_s4 + $0x30] sm:$0xff] %v4930_v51  }
 0x53e   : > { %5912 = shalt.err (!%p5909_p13)
}
 0x53f   : > { %s5913_s4 = scalar_lea.hbm %s7109_s15, 1024  ;;  %s5917_s27 = scalar_lea.hbm %s7253_s3, 4096 }
 0x540   : > { %p5914_p4 = scmp.ne.s32.totalorder %s7109_s15, %s5913_s4  ;;  %p5918_p0 = scmp.lt.u32.totalorder %s7109_s15, %s7253_s3 }
 0x541   : > { %p5919_p10 = scmp.lt.u32.totalorder %s5917_s27, %s5913_s4  ;;  %p5921_p7 = scmp.lt.u32.totalorder %s5913_s4, %s7109_s15 }
 0x542   : > { %p5915_p9 = pnand %p5914_p4, %p6257_p3 }
 0x543   : > { %p5920_p5 = por %p5919_p10, %p5918_p0 }
 0x544   : > { %p5916_p6 = pneg %p5915_p9 }
 0x545   : > { %p5922_p11 = por %p5921_p7, %p5920_p5 }
 0x547   : > { %p5923_p1 = pnand %p5922_p11, %p5916_p6 }
 0x549   : > { %5926 = shalt.err (!%p5923_p1)
}
 0x54a   : > { %s6020_s26 = smov 64   ;;  %s6021_s2 = smov 4  }
 0x54b   : > { %5500 = dma.vmem_to_hbm [thread:$0]  (%p6257_p3), %s7111_s5, 1024, %s7109_s15, %s4434_s29, %s6020_s26, %s6020_s26, %s6021_s2  }
 0x54c PF: > { %s7254_s20 = sld [smem:[#allocation27_spill]]  ;;  %s7255_s14 = sld [smem:[#allocation28_spill]] }
 0x54d   : > { %p5527_p2 = scmp.ge.s32.totalorder %s6009_s24, 2 }
 0x552   : > { %s4464_s0 = sand.u32 1, %s7254_s20   ;;  %p7256_p8 = scmp.ne.s32.totalorder %s7255_s14, 0 }
 0x553   : > { %s4465_s9 = scalar_lea.sflag [#allocation8], %s4464_s0 }
 0x554   : > { %p5517_p12 = pnand %p5527_p2, %p7256_p8 }
 0x556   : > { %5976 = dma.done.wait (!%p5517_p12), %s4465_s9, 1024  }
 0x557   : > { %5978 = vsyncadd (!%p5517_p12), %s4465_s9, 4294966272  ;;  %s29_s24 = sadd.s32 1, %s6009_s24   ;;  %s7257_s6 = sld [smem:[#allocation29_spill]] }
 0x558   : > { %p26_p13 = scmp.ge.s32.totalorder %s29_s24, 6   ;;  %s7258_s17 = smov %s5985_s18 }
 0x559   : > { %s7259_s18 = smov %s5989_s19  ;;  %s7260_s19 = smov %s6274_s1 }
 0x55a   : > { %s7261_s20 = smov %s6001_s22  ;;  %s7262_s21 = smov %s6005_s23 }
 0x55b   : > { %s7263_s22 = smov %s7266_s7  ;;  %28 = sbr.rel (!%p26_p13) target bundleno = 22 (0x16), region = 133 }
 0x55d   : > { %s7264_s23 = smov %s7257_s6 }
 0x562   :  { %4470 = vsyncpa [#allocation7], 1 }
 0x563   :  { %4472 = vsyncpa [#allocation7 + $0x1], 1 }
 0x564   :  { %4473 = vsyncpa [#allocation10], 1 }
 0x565   :  { %4474 = vsyncpa [#allocation13], 1 }
 0x566   :  { %4475 = vsyncpa [#allocation8], 1 }
 0x567   :  { %4477 = vsyncpa [#allocation8 + $0x1], 1 }
 0x568   :  { %4478 = vsyncmov [#allocation5] }
 0x56b   :  { %s4479_s10 = vpop.sfrf %4478 }
 0x56c   :  { %p4863_p3 = scmp.ne.s32.totalorder %s4479_s10, 0 }
 0x56e   :  { %4483 = shalt.err (%p4863_p3)  }
 0x56f   :  { %4485 = vsyncmov [#allocation5 + $0x1] }
 0x572   :  { %s4486_s1 = vpop.sfrf %4485 }
 0x573   :  { %p4864_p4 = scmp.ne.s32.totalorder %s4486_s1, 0 }
 0x575   :  { %4490 = shalt.err (%p4864_p4)  }

</bundles_post_ra>
